<compile_context>
chip_gen: v7x
topology: tpu7x:2x2x1
jax: 0.10.0
libtpu: 0.0.40
codegen_flags: <defaults>
</compile_context>

<pallas_src>
import functools

import jax
import jax.numpy as jnp
from jax import lax
from jax.experimental import pallas as pl
from jax.experimental.pallas import tpu as pltpu


# --------------------------------------------------------------------------- helpers
def _round_up(x, m):
    return (x + m - 1) // m * m


def _pick_tile(n, cap, align=1):
    """Largest divisor of n that is <= cap and a multiple of `align` (fallback: n)."""
    for cand in range(min(n, cap), 0, -1):
        if n % cand == 0 and cand % align == 0:
            return cand
    return n


@functools.lru_cache(maxsize=1)
def _vmem_limit_bytes():
    """Generation-aware VMEM budget (~85% of physical per-core VMEM)."""
    try:
        cap = int(getattr(pltpu.get_tpu_info(), "vmem_capacity_bytes"))
    except Exception:
        cap = 64 * 1024 * 1024  # conservative fallback, safe on all generations
    return int(cap * 0.85)


def _pick_row_tile(h, w, cp):
    """Row tile: matmul M = th*w up to ~2048, f32 accumulator <= ~2 MiB."""
    acc_rows = max(1, (2 * 1024 * 1024) // (cp * 4 * max(w, 1)))
    cap = max(1, min(2048 // max(w, 1), acc_rows))
    return _pick_tile(h, cap)


def _check_vmem_fit(h, w, cp, th):
    limit = _vmem_limit_bytes()
    est = (h * w * cp * 2                      # resident bf16 image (1 buffer)
           + 9 * cp * cp * 2                   # weights (1 buffer)
           + (th + 2) * (w + 2) * cp * 2       # padded band scratch
           + th * w * cp * 4                   # f32 accumulator
           + 2 * th * w * cp * 2               # double-buffered output tile
           + 8 * cp * 4)                       # stats / bias / scale / shift
    if est > int(limit * 0.9):
        # TODO(synk): manual-DMA halo pipeline for images too large for VMEM.
        raise NotImplementedError(
            f"feature map too large for whole-image VMEM residency "
            f"(need ~{est >> 20} MiB, budget ~{limit >> 20} MiB)")


def _pad1(x, padding_type):
    # Used by the pure-JAX reference only; the kernels pad in VMEM.
    mode = {"reflect": "reflect", "replicate": "edge", "zero": "constant"}[padding_type]
    return jnp.pad(x, ((0, 0), (1, 1), (1, 1), (0, 0)), mode=mode)


# --------------------------------------------------------------------------- kernels
def _conv3x3_kernel(x_ref, w_ref, b_ref, sc_ref, sh_ref,
                    y_ref, stats_ref, band_ref, acc_ref,
                    *, th, h, w, cp, padding_type, pre_act):
    # x_ref:     (1, H, W, Cp)   bf16 unpadded image, resident per batch image
    # w_ref:     (9, Cp, Cp)     bf16 weights (tap-major), resident
    # b_ref:     (1, Cp)         f32 conv bias (zeros when use_bias=False)
    # sc/sh_ref: (1, Cp)         f32 BN1 scale/shift fused into the input read
    # y_ref:     (1, TH, W, Cp)  bf16 conv output tile
    # stats_ref: (1, 1, 2, Cp)   f32 per-row-tile [sum, sumsq] of the conv output
    # band_ref:  VMEM (TH+2, W+2, Cp) bf16  padded + pre-normalized input band
    # acc_ref:   VMEM (TH*W, Cp) f32        matmul accumulator
    rt = pl.program_id(1)
    row0 = pl.multiple_of(rt * th, th)

    if pre_act:
        sc = sc_ref[0]
        sh = sh_ref[0]

    def norm(v):  # v: bf16 (..., Cp); BN1 + ReLU hoisted out of the tap loop
        if not pre_act:
            return v
        return jnp.maximum(v.astype(jnp.float32) * sc + sh, 0.0).astype(jnp.bfloat16)

    # ---- build the (reflect|replicate|zero)-padded, pre-normalized band ------
    band_ref[1:th + 1, 1:w + 1, :] = norm(x_ref[0, pl.ds(row0, th), :, :])

    if padding_type == "reflect":
        src_top = jnp.abs(row0 - 1)                          # row0 == 0  -> 1
        src_bot = (h - 1) - jnp.abs((h - 1) - (row0 + th))   # last tile  -> H-2
    else:  # replicate / zero (zero rows are overwritten below)
        src_top = jnp.maximum(row0 - 1, 0)
        src_bot = jnp.minimum(row0 + th, h - 1)
    band_ref[0:1, 1:w + 1, :] = norm(x_ref[0, pl.ds(src_top, 1), :, :])
    band_ref[th + 1:th + 2, 1:w + 1, :] = norm(x_ref[0, pl.ds(src_bot, 1), :, :])

    if padding_type == "zero":
        zrow = jnp.zeros((1, w, cp), jnp.bfloat16)

        @pl.when(rt == 0)
        def _():
            band_ref[0:1, 1:w + 1, :] = zrow

        @pl.when(rt == pl.num_programs(1) - 1)
        def _():
            band_ref[th + 1:th + 2, 1:w + 1, :] = zrow

        zcol = jnp.zeros((th + 2, 1, cp), jnp.bfloat16)
        band_ref[:, 0:1, :] = zcol
        band_ref[:, w + 1:w + 2, :] = zcol
    elif padding_type == "reflect":
        band_ref[:, 0:1, :] = band_ref[:, 2:3, :]
        band_ref[:, w + 1:w + 2, :] = band_ref[:, w - 1:w, :]
    else:  # replicate
        band_ref[:, 0:1, :] = band_ref[:, 1:2, :]
        band_ref[:, w + 1:w + 2, :] = band_ref[:, w:w + 1, :]

    # ---- 9 shifted-tap MXU matmuls, f32 accumulation in VMEM scratch ---------
    # TODO(synk): if a bundle dump shows vld/XLU-bound, precompute the three
    #             kw-shifted views (or use pltpu.roll) instead of per-tap
    #             slicing; Cp=128 layers on v6e/v7x could also stack 2 taps
    #             along K for better MXU K-utilization.
    for kh in range(3):
        for kw in range(3):
            slab = band_ref[kh:kh + th, kw:kw + w, :].reshape(th * w, cp)
            tap = jnp.dot(slab, w_ref[kh * 3 + kw],
                          preferred_element_type=jnp.float32)
            if kh == 0 and kw == 0:
                acc_ref[...] = tap
            else:
                acc_ref[...] += tap

    # ---- epilogue: bias, per-tile BN statistics, bf16 output -----------------
    acc = acc_ref[...] + b_ref[0]
    y_ref[...] = acc.reshape(1, th, w, cp).astype(y_ref.dtype)
    stats_ref[0, 0, 0:1, :] = jnp.sum(acc, axis=0, keepdims=True)
    stats_ref[0, 0, 1:2, :] = jnp.sum(acc * acc, axis=0, keepdims=True)


def _bn_residual_kernel(y_ref, sc_ref, sh_ref, res_ref, o_ref):
    # out = y * scale + shift + residual   (all math in f32)
    y = y_ref[...].astype(jnp.float32) * sc_ref[0] + sh_ref[0]
    o_ref[...] = (y + res_ref[...].astype(jnp.float32)).astype(o_ref.dtype)


# --------------------------------------------------------------------------- wrappers
def conv3x3_bn_relu(x_img, w9, bias, scale_in, shift_in, *, padding_type,
                    pre_act, th):
    """3x3 conv over an unpadded NHWC bf16 image; padding built in VMEM.

    Optionally fuses a per-channel affine + ReLU (the previous BatchNorm) into
    the input read, and emits per-row-tile [sum, sumsq] channel statistics of
    the conv output for the following BatchNorm.
    """
    n, h, w, cp = x_img.shape
    nrt = h // th
    kernel = functools.partial(_conv3x3_kernel, th=th, h=h, w=w, cp=cp,
                               padding_type=padding_type, pre_act=pre_act)

    const = pl.Buffered(1)   # constant-index operands: no double buffering
    img_bytes = h * w * cp * 2
    # Single-buffer the resident image when two copies would eat a big chunk
    # of the VMEM budget (one exposed DMA per batch image, amortized over all
    # row tiles); otherwise keep the default pipelining.
    img_mode = pl.Buffered(1) if 2 * img_bytes > _vmem_limit_bytes() // 3 else None

    y, stats = pl.pallas_call(
        kernel,
        out_shape=(
            jax.ShapeDtypeStruct((n, h, w, cp), jnp.bfloat16),
            jax.ShapeDtypeStruct((n, nrt, 2, cp), jnp.float32),
        ),
        grid=(n, nrt),
        in_specs=[
            pl.BlockSpec((1, h, w, cp), lambda i, j: (i, 0, 0, 0),
                         pipeline_mode=img_mode),
            pl.BlockSpec((9, cp, cp), lambda i, j: (0, 0, 0), pipeline_mode=const),
            pl.BlockSpec((1, cp), lambda i, j: (0, 0), pipeline_mode=const),
            pl.BlockSpec((1, cp), lambda i, j: (0, 0), pipeline_mode=const),
            pl.BlockSpec((1, cp), lambda i, j: (0, 0), pipeline_mode=const),
        ],
        out_specs=(
            pl.BlockSpec((1, th, w, cp), lambda i, j: (i, j, 0, 0)),
            pl.BlockSpec((1, 1, 2, cp), lambda i, j: (i, j, 0, 0)),
        ),
        scratch_shapes=[
            pltpu.VMEM((th + 2, w + 2, cp), jnp.bfloat16),   # padded band
            pltpu.VMEM((th * w, cp), jnp.float32),           # f32 accumulator
        ],
        compiler_params=pltpu.CompilerParams(
            dimension_semantics=("parallel", "parallel"),
            vmem_limit_bytes=_vmem_limit_bytes()),
    )(x_img, w9, bias, scale_in, shift_in)
    return y, stats


def bn_residual(y2d, scale, shift, residual, *, out_dtype=jnp.float32):
    """Tiled per-channel affine + residual add over an (M, Cp) activation."""
    m, cp = y2d.shape
    tm = _pick_tile(m, 2048, align=8)
    const = pl.Buffered(1)
    return pl.pallas_call(
        _bn_residual_kernel,
        out_shape=jax.ShapeDtypeStruct((m, cp), out_dtype),
        grid=(m // tm,),
        in_specs=[
            pl.BlockSpec((tm, cp), lambda i: (i, 0)),
            pl.BlockSpec((1, cp), lambda i: (0, 0), pipeline_mode=const),
            pl.BlockSpec((1, cp), lambda i: (0, 0), pipeline_mode=const),
            pl.BlockSpec((tm, cp), lambda i: (i, 0)),
        ],
        out_specs=pl.BlockSpec((tm, cp), lambda i: (i, 0)),
        compiler_params=pltpu.CompilerParams(
            dimension_semantics=("parallel",),
            vmem_limit_bytes=_vmem_limit_bytes()),
    )(y2d, scale, shift, residual)


# --------------------------------------------------------------------------- model
def _prep_weight(w, cp):
    # w: (3, 3, Cin, Cout)  (== PyTorch (Cout, Cin, 3, 3).permute(2, 3, 1, 0))
    c_in, c_out = w.shape[2], w.shape[3]
    w = jnp.pad(w.astype(jnp.float32), ((0, 0), (0, 0), (0, cp - c_in), (0, cp - c_out)))
    return w.reshape(9, cp, cp).astype(jnp.bfloat16)


def _bn_scale_shift(stats, gamma, beta, count, eps):
    # stats: (N, n_row_tiles, 2, Cp) per-tile [sum, sumsq]; biased batch variance.
    tot = jnp.sum(stats, axis=(0, 1))                 # (2, Cp)
    mean = tot[0] / count
    var = jnp.maximum(tot[1] / count - mean * mean, 0.0)
    scale = gamma * lax.rsqrt(var + eps)              # (1, Cp)
    shift = beta - mean * scale
    return scale, shift


def resnet_block_forward(x_nchw, params, *, padding_type="reflect",
                         use_dropout=False, eps=1e-5):
    """out = x + conv_block(x); conv_block = pad,conv,BN,ReLU,[drop],pad,conv,BN."""
    # TODO(synk): use_dropout=True needs train-mode RNG; treated as identity here.
    # TODO(synk): BatchNorm uses batch statistics (train-mode forward, matching a
    #             freshly-constructed nn.BatchNorm2d), not running stats.
    n, c, h, w = x_nchw.shape
    cp = _round_up(max(c, 128), 128)

    x = jnp.transpose(x_nchw, (0, 2, 3, 1)).astype(jnp.float32)  # NCHW -> NHWC
    if cp != c:
        x = jnp.pad(x, ((0, 0), (0, 0), (0, 0), (0, cp - c)))
    x_bf = x.astype(jnp.bfloat16)

    def padc(v):
        return jnp.pad(v.astype(jnp.float32), (0, cp - c)).reshape(1, cp)

    w1 = _prep_weight(params["w1"], cp)
    w2 = _prep_weight(params["w2"], cp)
    zeros_c = jnp.zeros((1, cp), jnp.float32)
    bias1 = padc(params["bias1"]) if params.get("bias1") is not None else zeros_c
    bias2 = padc(params["bias2"]) if params.get("bias2") is not None else zeros_c
    g1, be1 = padc(params["gamma1"]), padc(params["beta1"])
    g2, be2 = padc(params["gamma2"]), padc(params["beta2"])

    count = n * h * w
    th = _pick_row_tile(h, w, cp)
    _check_vmem_fit(h, w, cp, th)

    # conv1 (+ per-row-tile sum / sumsq for BN1); no pre-normalization
    y1, st1 = conv3x3_bn_relu(x_bf, w1, bias1, zeros_c, zeros_c,
                              padding_type=padding_type, pre_act=False, th=th)
    scale1, shift1 = _bn_scale_shift(st1, g1, be1, count, eps)

    # conv2 with BN1 + ReLU fused into the (in-kernel padded) input read
    y2, st2 = conv3x3_bn_relu(y1, w2, bias2, scale1, shift1,
                              padding_type=padding_type, pre_act=True, th=th)
    scale2, shift2 = _bn_scale_shift(st2, g2, be2, count, eps)

    # BN2 + residual skip connection (f32 epilogue, real residual stream)
    out = bn_residual(y2.reshape(count, cp), scale2, shift2,
                      x.reshape(count, cp), out_dtype=jnp.float32)
    out = out.reshape(n, h, w, cp)[..., :c]
    return jnp.transpose(out, (0, 3, 1, 2))  # NHWC -> NCHW


def init_params(key, dim, use_bias=False):
    k1, k2, k3, k4, k5, k6 = jax.random.split(key, 6)
    params = {
        "w1": jax.random.normal(k1, (3, 3, dim, dim), jnp.float32) * 0.02,
        "w2": jax.random.normal(k2, (3, 3, dim, dim), jnp.float32) * 0.02,
        "gamma1": 1.0 + 0.1 * jax.random.normal(k3, (dim,), jnp.float32),
        "beta1": 0.1 * jax.random.normal(k4, (dim,), jnp.float32),
        "gamma2": 1.0 + 0.1 * jax.random.normal(k5, (dim,), jnp.float32),
        "beta2": 0.1 * jax.random.normal(k6, (dim,), jnp.float32),
    }
    if use_bias:
        params["bias1"] = jnp.zeros((dim,), jnp.float32)
        params["bias2"] = jnp.zeros((dim,), jnp.float32)
    return params


# --------------------------------------------------------------------------- reference
def reference_forward(x_nchw, params, *, padding_type="reflect", eps=1e-5):
    """Pure-JAX f32 reference of the same ResnetBlock forward (for validation)."""
    x = jnp.transpose(x_nchw, (0, 2, 3, 1)).astype(jnp.float32)

    def conv(v, wgt, bias):
        vp = _pad1(v, padding_type)
        out = lax.conv_general_dilated(vp, wgt, (1, 1), "VALID",
                                       dimension_numbers=("NHWC", "HWIO", "NHWC"))
        if bias is not None:
            out = out + bias
        return out

    def bn(v, g, b):
        mean = jnp.mean(v, axis=(0, 1, 2))
        var = jnp.var(v, axis=(0, 1, 2))
        return (v - mean) * lax.rsqrt(var + eps) * g + b

    y = conv(x, params["w1"], params.get("bias1"))
    y = jnp.maximum(bn(y, params["gamma1"], params["beta1"]), 0.0)
    y = conv(y, params["w2"], params.get("bias2"))
    y = bn(y, params["gamma2"], params["beta2"])
    return jnp.transpose(x + y, (0, 3, 1, 2))


# --------------------------------------------------------------------------- test
if __name__ == "__main__":
    key = jax.random.PRNGKey(0)
    kx, kp = jax.random.split(key)

    dim, batch, height, width = 32, 2, 16, 16  # ResnetBlock(dim=32), small test
    x = jax.random.normal(kx, (batch, dim, height, width), jnp.float32)
    params = init_params(kp, dim, use_bias=False)  # BatchNorm => use_bias=False

    for ptype in ("reflect", "zero"):
        fwd = jax.jit(functools.partial(resnet_block_forward, padding_type=ptype))
        out = jax.block_until_ready(fwd(x, params))

        assert out.shape == (batch, dim, height, width), out.shape
        assert bool(jnp.all(jnp.isfinite(out)))

        ref = jax.jit(functools.partial(reference_forward, padding_type=ptype))(x, params)
        max_err = float(jnp.max(jnp.abs(out - ref)))
        assert max_err < 0.15, f"[{ptype}] max |out - ref| = {max_err}"

    print("KERNEL_OK")
</pallas_src>

<mosaic_0001>
module attributes {stable_mosaic.version = 11 : i64} {
  func.func @_conv3x3_kernel(%arg0: i32, %arg1: i32, %arg2: memref<1x16x16x128xbf16, #tpu.memory_space<vmem>>, %arg3: memref<9x128x128xbf16, #tpu.memory_space<vmem>>, %arg4: memref<1x128xf32, #tpu.memory_space<vmem>>, %arg5: memref<1x128xf32, #tpu.memory_space<vmem>>, %arg6: memref<1x128xf32, #tpu.memory_space<vmem>>, %arg7: memref<1x16x16x128xbf16, #tpu.memory_space<vmem>>, %arg8: memref<1x1x2x128xf32, #tpu.memory_space<vmem>>, %arg9: memref<18x18x128xbf16, #tpu.memory_space<vmem>>, %arg10: memref<256x128xf32, #tpu.memory_space<vmem>>) attributes {dimension_semantics = [#tpu.dimension_semantics<parallel>, #tpu.dimension_semantics<parallel>], iteration_bounds = array<i64: 2, 1>, scalar_prefetch = 0 : i64, scratch_operands = 2 : i64, tpu.core_type = #tpu.core_type<tc>, window_params = [{transform_indices = @transform_0, window_bounds = array<i64: 1, 16, 16, 128>}, {pipeline_mode = #tpu.pipeline_mode<synchronous>, transform_indices = @transform_1, window_bounds = array<i64: 9, 128, 128>}, {pipeline_mode = #tpu.pipeline_mode<synchronous>, transform_indices = @transform_2, window_bounds = array<i64: 1, 128>}, {pipeline_mode = #tpu.pipeline_mode<synchronous>, transform_indices = @transform_3, window_bounds = array<i64: 1, 128>}, {pipeline_mode = #tpu.pipeline_mode<synchronous>, transform_indices = @transform_4, window_bounds = array<i64: 1, 128>}, {transform_indices = @transform_5, window_bounds = array<i64: 1, 16, 16, 128>}, {transform_indices = @transform_6, window_bounds = array<i64: 1, 1, 2, 128>}]} {
    %c16_i32 = arith.constant 16 : i32
    %0 = arith.muli %arg1, %c16_i32 : i32
    %1 = tpu.assume_multiple %0, 16 : i32
    %c0 = arith.constant 0 : index
    %2 = arith.index_cast %1 : i32 to index
    %c0_0 = arith.constant 0 : index
    %c0_1 = arith.constant 0 : index
    %3 = vector.load %arg2[%c0, %2, %c0_0, %c0_1] : memref<1x16x16x128xbf16, #tpu.memory_space<vmem>>, vector<1x16x16x128xbf16>
    %4 = vector.shape_cast %3 : vector<1x16x16x128xbf16> to vector<16x16x128xbf16>
    %c1 = arith.constant 1 : index
    %c1_2 = arith.constant 1 : index
    %c0_3 = arith.constant 0 : index
    %5 = vector.load %arg9[%c1, %c1_2, %c0_3] : memref<18x18x128xbf16, #tpu.memory_space<vmem>>, vector<16x16x128xbf16>
    tpu.vector_store %arg9[%c1, %c1_2, %c0_3], %4 {strides = array<i32>} : memref<18x18x128xbf16, #tpu.memory_space<vmem>>, vector<16x16x128xbf16>,
    %c1_i32 = arith.constant 1 : i32
    %6 = arith.subi %1, %c1_i32 : i32
    %7 = math.absi %6 : i32
    %c16_i32_4 = arith.constant 16 : i32
    %8 = arith.addi %1, %c16_i32_4 : i32
    %c15_i32 = arith.constant 15 : i32
    %9 = arith.subi %c15_i32, %8 : i32
    %10 = math.absi %9 : i32
    %c15_i32_5 = arith.constant 15 : i32
    %11 = arith.subi %c15_i32_5, %10 : i32
    %c0_6 = arith.constant 0 : index
    %12 = arith.index_cast %7 : i32 to index
    %c0_7 = arith.constant 0 : index
    %c0_8 = arith.constant 0 : index
    %13 = vector.load %arg2[%c0_6, %12, %c0_7, %c0_8] : memref<1x16x16x128xbf16, #tpu.memory_space<vmem>>, vector<1x1x16x128xbf16>
    %14 = vector.shape_cast %13 : vector<1x1x16x128xbf16> to vector<1x16x128xbf16>
    %c0_9 = arith.constant 0 : index
    %c1_10 = arith.constant 1 : index
    %c0_11 = arith.constant 0 : index
    %15 = vector.load %arg9[%c0_9, %c1_10, %c0_11] : memref<18x18x128xbf16, #tpu.memory_space<vmem>>, vector<1x16x128xbf16>
    tpu.vector_store %arg9[%c0_9, %c1_10, %c0_11], %14 {strides = array<i32>} : memref<18x18x128xbf16, #tpu.memory_space<vmem>>, vector<1x16x128xbf16>,
    %c0_12 = arith.constant 0 : index
    %16 = arith.index_cast %11 : i32 to index
    %c0_13 = arith.constant 0 : index
    %c0_14 = arith.constant 0 : index
    %17 = vector.load %arg2[%c0_12, %16, %c0_13, %c0_14] : memref<1x16x16x128xbf16, #tpu.memory_space<vmem>>, vector<1x1x16x128xbf16>
    %18 = vector.shape_cast %17 : vector<1x1x16x128xbf16> to vector<1x16x128xbf16>
    %c17 = arith.constant 17 : index
    %c1_15 = arith.constant 1 : index
    %c0_16 = arith.constant 0 : index
    %19 = vector.load %arg9[%c17, %c1_15, %c0_16] : memref<18x18x128xbf16, #tpu.memory_space<vmem>>, vector<1x16x128xbf16>
    tpu.vector_store %arg9[%c17, %c1_15, %c0_16], %18 {strides = array<i32>} : memref<18x18x128xbf16, #tpu.memory_space<vmem>>, vector<1x16x128xbf16>,
    %c0_17 = arith.constant 0 : index
    %c2 = arith.constant 2 : index
    %c0_18 = arith.constant 0 : index
    %20 = vector.load %arg9[%c0_17, %c2, %c0_18] : memref<18x18x128xbf16, #tpu.memory_space<vmem>>, vector<18x1x128xbf16>
    %c0_19 = arith.constant 0 : index
    %c0_20 = arith.constant 0 : index
    %c0_21 = arith.constant 0 : index
    %21 = vector.load %arg9[%c0_19, %c0_20, %c0_21] : memref<18x18x128xbf16, #tpu.memory_space<vmem>>, vector<18x1x128xbf16>
    tpu.vector_store %arg9[%c0_19, %c0_20, %c0_21], %20 {strides = array<i32>} : memref<18x18x128xbf16, #tpu.memory_space<vmem>>, vector<18x1x128xbf16>,
    %c0_22 = arith.constant 0 : index
    %c15 = arith.constant 15 : index
    %c0_23 = arith.constant 0 : index
    %22 = vector.load %arg9[%c0_22, %c15, %c0_23] : memref<18x18x128xbf16, #tpu.memory_space<vmem>>, vector<18x1x128xbf16>
    %c0_24 = arith.constant 0 : index
    %c17_25 = arith.constant 17 : index
    %c0_26 = arith.constant 0 : index
    %23 = vector.load %arg9[%c0_24, %c17_25, %c0_26] : memref<18x18x128xbf16, #tpu.memory_space<vmem>>, vector<18x1x128xbf16>
    tpu.vector_store %arg9[%c0_24, %c17_25, %c0_26], %22 {strides = array<i32>} : memref<18x18x128xbf16, #tpu.memory_space<vmem>>, vector<18x1x128xbf16>,
    %c0_27 = arith.constant 0 : index
    %c0_28 = arith.constant 0 : index
    %c0_29 = arith.constant 0 : index
    %24 = vector.load %arg9[%c0_27, %c0_28, %c0_29] : memref<18x18x128xbf16, #tpu.memory_space<vmem>>, vector<16x16x128xbf16>
    %25 = vector.shape_cast %24 : vector<16x16x128xbf16> to vector<256x128xbf16>
    %c0_30 = arith.constant 0 : index
    %c0_31 = arith.constant 0 : index
    %c0_32 = arith.constant 0 : index
    %26 = vector.load %arg3[%c0_30, %c0_31, %c0_32] : memref<9x128x128xbf16, #tpu.memory_space<vmem>>, vector<1x128x128xbf16>
    %27 = vector.shape_cast %26 : vector<1x128x128xbf16> to vector<128x128xbf16>
    %cst = arith.constant dense<0.000000e+00> : vector<256x128xf32>
    %28 = tpu.matmul %25, %27, %cst {dimension_numbers = #tpu.dot_dimension_numbers<[1], [0], [0], [1], [0, 0, 1, 1], [], []>} : vector<256x128xbf16>, vector<128x128xbf16>, vector<256x128xf32> -> vector<256x128xf32>
    %c0_33 = arith.constant 0 : index
    %c0_34 = arith.constant 0 : index
    %29 = vector.load %arg10[%c0_33, %c0_34] : memref<256x128xf32, #tpu.memory_space<vmem>>, vector<256x128xf32>
    tpu.vector_store %arg10[%c0_33, %c0_34], %28 {strides = array<i32>} : memref<256x128xf32, #tpu.memory_space<vmem>>, vector<256x128xf32>,
    %c0_35 = arith.constant 0 : index
    %c1_36 = arith.constant 1 : index
    %c0_37 = arith.constant 0 : index
    %30 = vector.load %arg9[%c0_35, %c1_36, %c0_37] : memref<18x18x128xbf16, #tpu.memory_space<vmem>>, vector<16x16x128xbf16>
    %31 = vector.shape_cast %30 : vector<16x16x128xbf16> to vector<256x128xbf16>
    %c1_38 = arith.constant 1 : index
    %c0_39 = arith.constant 0 : index
    %c0_40 = arith.constant 0 : index
    %32 = vector.load %arg3[%c1_38, %c0_39, %c0_40] : memref<9x128x128xbf16, #tpu.memory_space<vmem>>, vector<1x128x128xbf16>
    %33 = vector.shape_cast %32 : vector<1x128x128xbf16> to vector<128x128xbf16>
    %cst_41 = arith.constant dense<0.000000e+00> : vector<256x128xf32>
    %34 = tpu.matmul %31, %33, %cst_41 {dimension_numbers = #tpu.dot_dimension_numbers<[1], [0], [0], [1], [0, 0, 1, 1], [], []>} : vector<256x128xbf16>, vector<128x128xbf16>, vector<256x128xf32> -> vector<256x128xf32>
    %c0_42 = arith.constant 0 : index
    %c0_43 = arith.constant 0 : index
    %35 = vector.load %arg10[%c0_42, %c0_43] : memref<256x128xf32, #tpu.memory_space<vmem>>, vector<256x128xf32>
    %36 = arith.addf %35, %34 : vector<256x128xf32>
    %c0_44 = arith.constant 0 : index
    %c0_45 = arith.constant 0 : index
    %37 = vector.load %arg10[%c0_44, %c0_45] : memref<256x128xf32, #tpu.memory_space<vmem>>, vector<256x128xf32>
    tpu.vector_store %arg10[%c0_44, %c0_45], %36 {strides = array<i32>} : memref<256x128xf32, #tpu.memory_space<vmem>>, vector<256x128xf32>,
    %c0_46 = arith.constant 0 : index
    %c2_47 = arith.constant 2 : index
    %c0_48 = arith.constant 0 : index
    %38 = vector.load %arg9[%c0_46, %c2_47, %c0_48] : memref<18x18x128xbf16, #tpu.memory_space<vmem>>, vector<16x16x128xbf16>
    %39 = vector.shape_cast %38 : vector<16x16x128xbf16> to vector<256x128xbf16>
    %c2_49 = arith.constant 2 : index
    %c0_50 = arith.constant 0 : index
    %c0_51 = arith.constant 0 : index
    %40 = vector.load %arg3[%c2_49, %c0_50, %c0_51] : memref<9x128x128xbf16, #tpu.memory_space<vmem>>, vector<1x128x128xbf16>
    %41 = vector.shape_cast %40 : vector<1x128x128xbf16> to vector<128x128xbf16>
    %cst_52 = arith.constant dense<0.000000e+00> : vector<256x128xf32>
    %42 = tpu.matmul %39, %41, %cst_52 {dimension_numbers = #tpu.dot_dimension_numbers<[1], [0], [0], [1], [0, 0, 1, 1], [], []>} : vector<256x128xbf16>, vector<128x128xbf16>, vector<256x128xf32> -> vector<256x128xf32>
    %c0_53 = arith.constant 0 : index
    %c0_54 = arith.constant 0 : index
    %43 = vector.load %arg10[%c0_53, %c0_54] : memref<256x128xf32, #tpu.memory_space<vmem>>, vector<256x128xf32>
    %44 = arith.addf %43, %42 : vector<256x128xf32>
    %c0_55 = arith.constant 0 : index
    %c0_56 = arith.constant 0 : index
    %45 = vector.load %arg10[%c0_55, %c0_56] : memref<256x128xf32, #tpu.memory_space<vmem>>, vector<256x128xf32>
    tpu.vector_store %arg10[%c0_55, %c0_56], %44 {strides = array<i32>} : memref<256x128xf32, #tpu.memory_space<vmem>>, vector<256x128xf32>,
    %c1_57 = arith.constant 1 : index
    %c0_58 = arith.constant 0 : index
    %c0_59 = arith.constant 0 : index
    %46 = vector.load %arg9[%c1_57, %c0_58, %c0_59] : memref<18x18x128xbf16, #tpu.memory_space<vmem>>, vector<16x16x128xbf16>
    %47 = vector.shape_cast %46 : vector<16x16x128xbf16> to vector<256x128xbf16>
    %c3 = arith.constant 3 : index
    %c0_60 = arith.constant 0 : index
    %c0_61 = arith.constant 0 : index
    %48 = vector.load %arg3[%c3, %c0_60, %c0_61] : memref<9x128x128xbf16, #tpu.memory_space<vmem>>, vector<1x128x128xbf16>
    %49 = vector.shape_cast %48 : vector<1x128x128xbf16> to vector<128x128xbf16>
    %cst_62 = arith.constant dense<0.000000e+00> : vector<256x128xf32>
    %50 = tpu.matmul %47, %49, %cst_62 {dimension_numbers = #tpu.dot_dimension_numbers<[1], [0], [0], [1], [0, 0, 1, 1], [], []>} : vector<256x128xbf16>, vector<128x128xbf16>, vector<256x128xf32> -> vector<256x128xf32>
    %c0_63 = arith.constant 0 : index
    %c0_64 = arith.constant 0 : index
    %51 = vector.load %arg10[%c0_63, %c0_64] : memref<256x128xf32, #tpu.memory_space<vmem>>, vector<256x128xf32>
    %52 = arith.addf %51, %50 : vector<256x128xf32>
    %c0_65 = arith.constant 0 : index
    %c0_66 = arith.constant 0 : index
    %53 = vector.load %arg10[%c0_65, %c0_66] : memref<256x128xf32, #tpu.memory_space<vmem>>, vector<256x128xf32>
    tpu.vector_store %arg10[%c0_65, %c0_66], %52 {strides = array<i32>} : memref<256x128xf32, #tpu.memory_space<vmem>>, vector<256x128xf32>,
    %c1_67 = arith.constant 1 : index
    %c1_68 = arith.constant 1 : index
    %c0_69 = arith.constant 0 : index
    %54 = vector.load %arg9[%c1_67, %c1_68, %c0_69] : memref<18x18x128xbf16, #tpu.memory_space<vmem>>, vector<16x16x128xbf16>
    %55 = vector.shape_cast %54 : vector<16x16x128xbf16> to vector<256x128xbf16>
    %c4 = arith.constant 4 : index
    %c0_70 = arith.constant 0 : index
    %c0_71 = arith.constant 0 : index
    %56 = vector.load %arg3[%c4, %c0_70, %c0_71] : memref<9x128x128xbf16, #tpu.memory_space<vmem>>, vector<1x128x128xbf16>
    %57 = vector.shape_cast %56 : vector<1x128x128xbf16> to vector<128x128xbf16>
    %cst_72 = arith.constant dense<0.000000e+00> : vector<256x128xf32>
    %58 = tpu.matmul %55, %57, %cst_72 {dimension_numbers = #tpu.dot_dimension_numbers<[1], [0], [0], [1], [0, 0, 1, 1], [], []>} : vector<256x128xbf16>, vector<128x128xbf16>, vector<256x128xf32> -> vector<256x128xf32>
    %c0_73 = arith.constant 0 : index
    %c0_74 = arith.constant 0 : index
    %59 = vector.load %arg10[%c0_73, %c0_74] : memref<256x128xf32, #tpu.memory_space<vmem>>, vector<256x128xf32>
    %60 = arith.addf %59, %58 : vector<256x128xf32>
    %c0_75 = arith.constant 0 : index
    %c0_76 = arith.constant 0 : index
    %61 = vector.load %arg10[%c0_75, %c0_76] : memref<256x128xf32, #tpu.memory_space<vmem>>, vector<256x128xf32>
    tpu.vector_store %arg10[%c0_75, %c0_76], %60 {strides = array<i32>} : memref<256x128xf32, #tpu.memory_space<vmem>>, vector<256x128xf32>,
    %c1_77 = arith.constant 1 : index
    %c2_78 = arith.constant 2 : index
    %c0_79 = arith.constant 0 : index
    %62 = vector.load %arg9[%c1_77, %c2_78, %c0_79] : memref<18x18x128xbf16, #tpu.memory_space<vmem>>, vector<16x16x128xbf16>
    %63 = vector.shape_cast %62 : vector<16x16x128xbf16> to vector<256x128xbf16>
    %c5 = arith.constant 5 : index
    %c0_80 = arith.constant 0 : index
    %c0_81 = arith.constant 0 : index
    %64 = vector.load %arg3[%c5, %c0_80, %c0_81] : memref<9x128x128xbf16, #tpu.memory_space<vmem>>, vector<1x128x128xbf16>
    %65 = vector.shape_cast %64 : vector<1x128x128xbf16> to vector<128x128xbf16>
    %cst_82 = arith.constant dense<0.000000e+00> : vector<256x128xf32>
    %66 = tpu.matmul %63, %65, %cst_82 {dimension_numbers = #tpu.dot_dimension_numbers<[1], [0], [0], [1], [0, 0, 1, 1], [], []>} : vector<256x128xbf16>, vector<128x128xbf16>, vector<256x128xf32> -> vector<256x128xf32>
    %c0_83 = arith.constant 0 : index
    %c0_84 = arith.constant 0 : index
    %67 = vector.load %arg10[%c0_83, %c0_84] : memref<256x128xf32, #tpu.memory_space<vmem>>, vector<256x128xf32>
    %68 = arith.addf %67, %66 : vector<256x128xf32>
    %c0_85 = arith.constant 0 : index
    %c0_86 = arith.constant 0 : index
    %69 = vector.load %arg10[%c0_85, %c0_86] : memref<256x128xf32, #tpu.memory_space<vmem>>, vector<256x128xf32>
    tpu.vector_store %arg10[%c0_85, %c0_86], %68 {strides = array<i32>} : memref<256x128xf32, #tpu.memory_space<vmem>>, vector<256x128xf32>,
    %c2_87 = arith.constant 2 : index
    %c0_88 = arith.constant 0 : index
    %c0_89 = arith.constant 0 : index
    %70 = vector.load %arg9[%c2_87, %c0_88, %c0_89] : memref<18x18x128xbf16, #tpu.memory_space<vmem>>, vector<16x16x128xbf16>
    %71 = vector.shape_cast %70 : vector<16x16x128xbf16> to vector<256x128xbf16>
    %c6 = arith.constant 6 : index
    %c0_90 = arith.constant 0 : index
    %c0_91 = arith.constant 0 : index
    %72 = vector.load %arg3[%c6, %c0_90, %c0_91] : memref<9x128x128xbf16, #tpu.memory_space<vmem>>, vector<1x128x128xbf16>
    %73 = vector.shape_cast %72 : vector<1x128x128xbf16> to vector<128x128xbf16>
    %cst_92 = arith.constant dense<0.000000e+00> : vector<256x128xf32>
    %74 = tpu.matmul %71, %73, %cst_92 {dimension_numbers = #tpu.dot_dimension_numbers<[1], [0], [0], [1], [0, 0, 1, 1], [], []>} : vector<256x128xbf16>, vector<128x128xbf16>, vector<256x128xf32> -> vector<256x128xf32>
    %c0_93 = arith.constant 0 : index
    %c0_94 = arith.constant 0 : index
    %75 = vector.load %arg10[%c0_93, %c0_94] : memref<256x128xf32, #tpu.memory_space<vmem>>, vector<256x128xf32>
    %76 = arith.addf %75, %74 : vector<256x128xf32>
    %c0_95 = arith.constant 0 : index
    %c0_96 = arith.constant 0 : index
    %77 = vector.load %arg10[%c0_95, %c0_96] : memref<256x128xf32, #tpu.memory_space<vmem>>, vector<256x128xf32>
    tpu.vector_store %arg10[%c0_95, %c0_96], %76 {strides = array<i32>} : memref<256x128xf32, #tpu.memory_space<vmem>>, vector<256x128xf32>,
    %c2_97 = arith.constant 2 : index
    %c1_98 = arith.constant 1 : index
    %c0_99 = arith.constant 0 : index
    %78 = vector.load %arg9[%c2_97, %c1_98, %c0_99] : memref<18x18x128xbf16, #tpu.memory_space<vmem>>, vector<16x16x128xbf16>
    %79 = vector.shape_cast %78 : vector<16x16x128xbf16> to vector<256x128xbf16>
    %c7 = arith.constant 7 : index
    %c0_100 = arith.constant 0 : index
    %c0_101 = arith.constant 0 : index
    %80 = vector.load %arg3[%c7, %c0_100, %c0_101] : memref<9x128x128xbf16, #tpu.memory_space<vmem>>, vector<1x128x128xbf16>
    %81 = vector.shape_cast %80 : vector<1x128x128xbf16> to vector<128x128xbf16>
    %cst_102 = arith.constant dense<0.000000e+00> : vector<256x128xf32>
    %82 = tpu.matmul %79, %81, %cst_102 {dimension_numbers = #tpu.dot_dimension_numbers<[1], [0], [0], [1], [0, 0, 1, 1], [], []>} : vector<256x128xbf16>, vector<128x128xbf16>, vector<256x128xf32> -> vector<256x128xf32>
    %c0_103 = arith.constant 0 : index
    %c0_104 = arith.constant 0 : index
    %83 = vector.load %arg10[%c0_103, %c0_104] : memref<256x128xf32, #tpu.memory_space<vmem>>, vector<256x128xf32>
    %84 = arith.addf %83, %82 : vector<256x128xf32>
    %c0_105 = arith.constant 0 : index
    %c0_106 = arith.constant 0 : index
    %85 = vector.load %arg10[%c0_105, %c0_106] : memref<256x128xf32, #tpu.memory_space<vmem>>, vector<256x128xf32>
    tpu.vector_store %arg10[%c0_105, %c0_106], %84 {strides = array<i32>} : memref<256x128xf32, #tpu.memory_space<vmem>>, vector<256x128xf32>,
    %c2_107 = arith.constant 2 : index
    %c2_108 = arith.constant 2 : index
    %c0_109 = arith.constant 0 : index
    %86 = vector.load %arg9[%c2_107, %c2_108, %c0_109] : memref<18x18x128xbf16, #tpu.memory_space<vmem>>, vector<16x16x128xbf16>
    %87 = vector.shape_cast %86 : vector<16x16x128xbf16> to vector<256x128xbf16>
    %c8 = arith.constant 8 : index
    %c0_110 = arith.constant 0 : index
    %c0_111 = arith.constant 0 : index
    %88 = vector.load %arg3[%c8, %c0_110, %c0_111] : memref<9x128x128xbf16, #tpu.memory_space<vmem>>, vector<1x128x128xbf16>
    %89 = vector.shape_cast %88 : vector<1x128x128xbf16> to vector<128x128xbf16>
    %cst_112 = arith.constant dense<0.000000e+00> : vector<256x128xf32>
    %90 = tpu.matmul %87, %89, %cst_112 {dimension_numbers = #tpu.dot_dimension_numbers<[1], [0], [0], [1], [0, 0, 1, 1], [], []>} : vector<256x128xbf16>, vector<128x128xbf16>, vector<256x128xf32> -> vector<256x128xf32>
    %c0_113 = arith.constant 0 : index
    %c0_114 = arith.constant 0 : index
    %91 = vector.load %arg10[%c0_113, %c0_114] : memref<256x128xf32, #tpu.memory_space<vmem>>, vector<256x128xf32>
    %92 = arith.addf %91, %90 : vector<256x128xf32>
    %c0_115 = arith.constant 0 : index
    %c0_116 = arith.constant 0 : index
    %93 = vector.load %arg10[%c0_115, %c0_116] : memref<256x128xf32, #tpu.memory_space<vmem>>, vector<256x128xf32>
    tpu.vector_store %arg10[%c0_115, %c0_116], %92 {strides = array<i32>} : memref<256x128xf32, #tpu.memory_space<vmem>>, vector<256x128xf32>,
    %c0_117 = arith.constant 0 : index
    %c0_118 = arith.constant 0 : index
    %94 = vector.load %arg10[%c0_117, %c0_118] : memref<256x128xf32, #tpu.memory_space<vmem>>, vector<256x128xf32>
    %c0_119 = arith.constant 0 : index
    %c0_120 = arith.constant 0 : index
    %95 = vector.load %arg4[%c0_119, %c0_120] : memref<1x128xf32, #tpu.memory_space<vmem>>, vector<1x128xf32>
    %96 = vector.shape_cast %95 : vector<1x128xf32> to vector<128xf32>
    %97 = vector.shape_cast %96 : vector<128xf32> to vector<1x128xf32>
    %98 = vector.broadcast %97 : vector<1x128xf32> to vector<256x128xf32>
    %99 = arith.addf %94, %98 : vector<256x128xf32>
    %100 = vector.shape_cast %99 : vector<256x128xf32> to vector<1x16x16x128xf32>
    %101 = arith.truncf %100 : vector<1x16x16x128xf32> to vector<1x16x16x128xbf16>
    %c0_121 = arith.constant 0 : index
    %c0_122 = arith.constant 0 : index
    %c0_123 = arith.constant 0 : index
    %c0_124 = arith.constant 0 : index
    %102 = vector.load %arg7[%c0_121, %c0_122, %c0_123, %c0_124] : memref<1x16x16x128xbf16, #tpu.memory_space<vmem>>, vector<1x16x16x128xbf16>
    tpu.vector_store %arg7[%c0_121, %c0_122, %c0_123, %c0_124], %101 {strides = array<i32>} : memref<1x16x16x128xbf16, #tpu.memory_space<vmem>>, vector<1x16x16x128xbf16>,
    %cst_125 = arith.constant dense<0.000000e+00> : vector<128xf32>
    %103 = vector.multi_reduction <add>, %99, %cst_125 [0] : vector<256x128xf32> to vector<128xf32>
    %104 = vector.shape_cast %103 : vector<128xf32> to vector<1x128xf32>
    %c0_126 = arith.constant 0 : index
    %c0_127 = arith.constant 0 : index
    %c0_128 = arith.constant 0 : index
    %c0_129 = arith.constant 0 : index
    %105 = vector.load %arg8[%c0_126, %c0_127, %c0_128, %c0_129] : memref<1x1x2x128xf32, #tpu.memory_space<vmem>>, vector<1x1x1x128xf32>
    %106 = vector.shape_cast %105 : vector<1x1x1x128xf32> to vector<1x128xf32>
    %107 = vector.shape_cast %104 : vector<1x128xf32> to vector<1x1x1x128xf32>
    tpu.vector_store %arg8[%c0_126, %c0_127, %c0_128, %c0_129], %107 {strides = array<i32>} : memref<1x1x2x128xf32, #tpu.memory_space<vmem>>, vector<1x1x1x128xf32>,
    %108 = arith.mulf %99, %99 : vector<256x128xf32>
    %cst_130 = arith.constant dense<0.000000e+00> : vector<128xf32>
    %109 = vector.multi_reduction <add>, %108, %cst_130 [0] : vector<256x128xf32> to vector<128xf32>
    %110 = vector.shape_cast %109 : vector<128xf32> to vector<1x128xf32>
    %c0_131 = arith.constant 0 : index
    %c0_132 = arith.constant 0 : index
    %c1_133 = arith.constant 1 : index
    %c0_134 = arith.constant 0 : index
    %111 = vector.load %arg8[%c0_131, %c0_132, %c1_133, %c0_134] : memref<1x1x2x128xf32, #tpu.memory_space<vmem>>, vector<1x1x1x128xf32>
    %112 = vector.shape_cast %111 : vector<1x1x1x128xf32> to vector<1x128xf32>
    %113 = vector.shape_cast %110 : vector<1x128xf32> to vector<1x1x1x128xf32>
    tpu.vector_store %arg8[%c0_131, %c0_132, %c1_133, %c0_134], %113 {strides = array<i32>} : memref<1x1x2x128xf32, #tpu.memory_space<vmem>>, vector<1x1x1x128xf32>,
    return
  }
  func.func @transform_0(%arg0: i32, %arg1: i32) -> (i32, i32, i32, i32) {
    %c0_i32 = arith.constant 0 : i32
    %c0_i32_0 = arith.constant 0 : i32
    %c0_i32_1 = arith.constant 0 : i32
    %c0_i32_2 = arith.constant 0 : i32
    return %arg0, %c0_i32, %c0_i32_0, %c0_i32_1 : i32, i32, i32, i32
  }
  func.func @transform_1(%arg0: i32, %arg1: i32) -> (i32, i32, i32) {
    %c0_i32 = arith.constant 0 : i32
    %c0_i32_0 = arith.constant 0 : i32
    %c0_i32_1 = arith.constant 0 : i32
    %c0_i32_2 = arith.constant 0 : i32
    return %c0_i32, %c0_i32_0, %c0_i32_1 : i32, i32, i32
  }
  func.func @transform_2(%arg0: i32, %arg1: i32) -> (i32, i32) {
    %c0_i32 = arith.constant 0 : i32
    %c0_i32_0 = arith.constant 0 : i32
    %c0_i32_1 = arith.constant 0 : i32
    return %c0_i32, %c0_i32_0 : i32, i32
  }
  func.func @transform_3(%arg0: i32, %arg1: i32) -> (i32, i32) {
    %c0_i32 = arith.constant 0 : i32
    %c0_i32_0 = arith.constant 0 : i32
    %c0_i32_1 = arith.constant 0 : i32
    return %c0_i32, %c0_i32_0 : i32, i32
  }
  func.func @transform_4(%arg0: i32, %arg1: i32) -> (i32, i32) {
    %c0_i32 = arith.constant 0 : i32
    %c0_i32_0 = arith.constant 0 : i32
    %c0_i32_1 = arith.constant 0 : i32
    return %c0_i32, %c0_i32_0 : i32, i32
  }
  func.func @transform_5(%arg0: i32, %arg1: i32) -> (i32, i32, i32, i32) {
    %c0_i32 = arith.constant 0 : i32
    %c0_i32_0 = arith.constant 0 : i32
    %c0_i32_1 = arith.constant 0 : i32
    return %arg0, %arg1, %c0_i32, %c0_i32_0 : i32, i32, i32, i32
  }
  func.func @transform_6(%arg0: i32, %arg1: i32) -> (i32, i32, i32, i32) {
    %c0_i32 = arith.constant 0 : i32
    %c0_i32_0 = arith.constant 0 : i32
    %c0_i32_1 = arith.constant 0 : i32
    return %arg0, %arg1, %c0_i32, %c0_i32_0 : i32, i32, i32, i32
  }
}

module attributes {stable_mosaic.version = 11 : i64} {
  func.func @_conv3x3_kernel(%arg0: i32, %arg1: i32, %arg2: memref<1x16x16x128xbf16, #tpu.memory_space<vmem>>, %arg3: memref<9x128x128xbf16, #tpu.memory_space<vmem>>, %arg4: memref<1x128xf32, #tpu.memory_space<vmem>>, %arg5: memref<1x128xf32, #tpu.memory_space<vmem>>, %arg6: memref<1x128xf32, #tpu.memory_space<vmem>>, %arg7: memref<1x16x16x128xbf16, #tpu.memory_space<vmem>>, %arg8: memref<1x1x2x128xf32, #tpu.memory_space<vmem>>, %arg9: memref<18x18x128xbf16, #tpu.memory_space<vmem>>, %arg10: memref<256x128xf32, #tpu.memory_space<vmem>>) attributes {dimension_semantics = [#tpu.dimension_semantics<parallel>, #tpu.dimension_semantics<parallel>], iteration_bounds = array<i64: 2, 1>, scalar_prefetch = 0 : i64, scratch_operands = 2 : i64, tpu.core_type = #tpu.core_type<tc>, window_params = [{transform_indices = @transform_0, window_bounds = array<i64: 1, 16, 16, 128>}, {pipeline_mode = #tpu.pipeline_mode<synchronous>, transform_indices = @transform_1, window_bounds = array<i64: 9, 128, 128>}, {pipeline_mode = #tpu.pipeline_mode<synchronous>, transform_indices = @transform_2, window_bounds = array<i64: 1, 128>}, {pipeline_mode = #tpu.pipeline_mode<synchronous>, transform_indices = @transform_3, window_bounds = array<i64: 1, 128>}, {pipeline_mode = #tpu.pipeline_mode<synchronous>, transform_indices = @transform_4, window_bounds = array<i64: 1, 128>}, {transform_indices = @transform_5, window_bounds = array<i64: 1, 16, 16, 128>}, {transform_indices = @transform_6, window_bounds = array<i64: 1, 1, 2, 128>}]} {
    %c16_i32 = arith.constant 16 : i32
    %0 = arith.muli %arg1, %c16_i32 : i32
    %1 = tpu.assume_multiple %0, 16 : i32
    %c0 = arith.constant 0 : index
    %c0_0 = arith.constant 0 : index
    %2 = vector.load %arg5[%c0, %c0_0] : memref<1x128xf32, #tpu.memory_space<vmem>>, vector<1x128xf32>
    %3 = vector.shape_cast %2 : vector<1x128xf32> to vector<128xf32>
    %c0_1 = arith.constant 0 : index
    %c0_2 = arith.constant 0 : index
    %4 = vector.load %arg6[%c0_1, %c0_2] : memref<1x128xf32, #tpu.memory_space<vmem>>, vector<1x128xf32>
    %5 = vector.shape_cast %4 : vector<1x128xf32> to vector<128xf32>
    %c0_3 = arith.constant 0 : index
    %6 = arith.index_cast %1 : i32 to index
    %c0_4 = arith.constant 0 : index
    %c0_5 = arith.constant 0 : index
    %7 = vector.load %arg2[%c0_3, %6, %c0_4, %c0_5] : memref<1x16x16x128xbf16, #tpu.memory_space<vmem>>, vector<1x16x16x128xbf16>
    %8 = vector.shape_cast %7 : vector<1x16x16x128xbf16> to vector<16x16x128xbf16>
    %9 = arith.extf %8 : vector<16x16x128xbf16> to vector<16x16x128xf32>
    %10 = vector.shape_cast %3 : vector<128xf32> to vector<1x1x128xf32>
    %11 = vector.broadcast %10 : vector<1x1x128xf32> to vector<16x16x128xf32>
    %12 = arith.mulf %9, %11 : vector<16x16x128xf32>
    %13 = vector.shape_cast %5 : vector<128xf32> to vector<1x1x128xf32>
    %14 = vector.broadcast %13 : vector<1x1x128xf32> to vector<16x16x128xf32>
    %15 = arith.addf %12, %14 : vector<16x16x128xf32>
    %cst = arith.constant 0.000000e+00 : f32
    %16 = vector.broadcast %cst : f32 to vector<16x16x128xf32>
    %17 = arith.maximumf %15, %16 : vector<16x16x128xf32>
    %18 = arith.truncf %17 : vector<16x16x128xf32> to vector<16x16x128xbf16>
    %c1 = arith.constant 1 : index
    %c1_6 = arith.constant 1 : index
    %c0_7 = arith.constant 0 : index
    %19 = vector.load %arg9[%c1, %c1_6, %c0_7] : memref<18x18x128xbf16, #tpu.memory_space<vmem>>, vector<16x16x128xbf16>
    tpu.vector_store %arg9[%c1, %c1_6, %c0_7], %18 {strides = array<i32>} : memref<18x18x128xbf16, #tpu.memory_space<vmem>>, vector<16x16x128xbf16>,
    %c1_i32 = arith.constant 1 : i32
    %20 = arith.subi %1, %c1_i32 : i32
    %21 = math.absi %20 : i32
    %c16_i32_8 = arith.constant 16 : i32
    %22 = arith.addi %1, %c16_i32_8 : i32
    %c15_i32 = arith.constant 15 : i32
    %23 = arith.subi %c15_i32, %22 : i32
    %24 = math.absi %23 : i32
    %c15_i32_9 = arith.constant 15 : i32
    %25 = arith.subi %c15_i32_9, %24 : i32
    %c0_10 = arith.constant 0 : index
    %26 = arith.index_cast %21 : i32 to index
    %c0_11 = arith.constant 0 : index
    %c0_12 = arith.constant 0 : index
    %27 = vector.load %arg2[%c0_10, %26, %c0_11, %c0_12] : memref<1x16x16x128xbf16, #tpu.memory_space<vmem>>, vector<1x1x16x128xbf16>
    %28 = vector.shape_cast %27 : vector<1x1x16x128xbf16> to vector<1x16x128xbf16>
    %29 = arith.extf %28 : vector<1x16x128xbf16> to vector<1x16x128xf32>
    %30 = vector.shape_cast %3 : vector<128xf32> to vector<1x1x128xf32>
    %31 = vector.broadcast %30 : vector<1x1x128xf32> to vector<1x16x128xf32>
    %32 = arith.mulf %29, %31 : vector<1x16x128xf32>
    %33 = vector.shape_cast %5 : vector<128xf32> to vector<1x1x128xf32>
    %34 = vector.broadcast %33 : vector<1x1x128xf32> to vector<1x16x128xf32>
    %35 = arith.addf %32, %34 : vector<1x16x128xf32>
    %cst_13 = arith.constant 0.000000e+00 : f32
    %36 = vector.broadcast %cst_13 : f32 to vector<1x16x128xf32>
    %37 = arith.maximumf %35, %36 : vector<1x16x128xf32>
    %38 = arith.truncf %37 : vector<1x16x128xf32> to vector<1x16x128xbf16>
    %c0_14 = arith.constant 0 : index
    %c1_15 = arith.constant 1 : index
    %c0_16 = arith.constant 0 : index
    %39 = vector.load %arg9[%c0_14, %c1_15, %c0_16] : memref<18x18x128xbf16, #tpu.memory_space<vmem>>, vector<1x16x128xbf16>
    tpu.vector_store %arg9[%c0_14, %c1_15, %c0_16], %38 {strides = array<i32>} : memref<18x18x128xbf16, #tpu.memory_space<vmem>>, vector<1x16x128xbf16>,
    %c0_17 = arith.constant 0 : index
    %40 = arith.index_cast %25 : i32 to index
    %c0_18 = arith.constant 0 : index
    %c0_19 = arith.constant 0 : index
    %41 = vector.load %arg2[%c0_17, %40, %c0_18, %c0_19] : memref<1x16x16x128xbf16, #tpu.memory_space<vmem>>, vector<1x1x16x128xbf16>
    %42 = vector.shape_cast %41 : vector<1x1x16x128xbf16> to vector<1x16x128xbf16>
    %43 = arith.extf %42 : vector<1x16x128xbf16> to vector<1x16x128xf32>
    %44 = vector.shape_cast %3 : vector<128xf32> to vector<1x1x128xf32>
    %45 = vector.broadcast %44 : vector<1x1x128xf32> to vector<1x16x128xf32>
    %46 = arith.mulf %43, %45 : vector<1x16x128xf32>
    %47 = vector.shape_cast %5 : vector<128xf32> to vector<1x1x128xf32>
    %48 = vector.broadcast %47 : vector<1x1x128xf32> to vector<1x16x128xf32>
    %49 = arith.addf %46, %48 : vector<1x16x128xf32>
    %cst_20 = arith.constant 0.000000e+00 : f32
    %50 = vector.broadcast %cst_20 : f32 to vector<1x16x128xf32>
    %51 = arith.maximumf %49, %50 : vector<1x16x128xf32>
    %52 = arith.truncf %51 : vector<1x16x128xf32> to vector<1x16x128xbf16>
    %c17 = arith.constant 17 : index
    %c1_21 = arith.constant 1 : index
    %c0_22 = arith.constant 0 : index
    %53 = vector.load %arg9[%c17, %c1_21, %c0_22] : memref<18x18x128xbf16, #tpu.memory_space<vmem>>, vector<1x16x128xbf16>
    tpu.vector_store %arg9[%c17, %c1_21, %c0_22], %52 {strides = array<i32>} : memref<18x18x128xbf16, #tpu.memory_space<vmem>>, vector<1x16x128xbf16>,
    %c0_23 = arith.constant 0 : index
    %c2 = arith.constant 2 : index
    %c0_24 = arith.constant 0 : index
    %54 = vector.load %arg9[%c0_23, %c2, %c0_24] : memref<18x18x128xbf16, #tpu.memory_space<vmem>>, vector<18x1x128xbf16>
    %c0_25 = arith.constant 0 : index
    %c0_26 = arith.constant 0 : index
    %c0_27 = arith.constant 0 : index
    %55 = vector.load %arg9[%c0_25, %c0_26, %c0_27] : memref<18x18x128xbf16, #tpu.memory_space<vmem>>, vector<18x1x128xbf16>
    tpu.vector_store %arg9[%c0_25, %c0_26, %c0_27], %54 {strides = array<i32>} : memref<18x18x128xbf16, #tpu.memory_space<vmem>>, vector<18x1x128xbf16>,
    %c0_28 = arith.constant 0 : index
    %c15 = arith.constant 15 : index
    %c0_29 = arith.constant 0 : index
    %56 = vector.load %arg9[%c0_28, %c15, %c0_29] : memref<18x18x128xbf16, #tpu.memory_space<vmem>>, vector<18x1x128xbf16>
    %c0_30 = arith.constant 0 : index
    %c17_31 = arith.constant 17 : index
    %c0_32 = arith.constant 0 : index
    %57 = vector.load %arg9[%c0_30, %c17_31, %c0_32] : memref<18x18x128xbf16, #tpu.memory_space<vmem>>, vector<18x1x128xbf16>
    tpu.vector_store %arg9[%c0_30, %c17_31, %c0_32], %56 {strides = array<i32>} : memref<18x18x128xbf16, #tpu.memory_space<vmem>>, vector<18x1x128xbf16>,
    %c0_33 = arith.constant 0 : index
    %c0_34 = arith.constant 0 : index
    %c0_35 = arith.constant 0 : index
    %58 = vector.load %arg9[%c0_33, %c0_34, %c0_35] : memref<18x18x128xbf16, #tpu.memory_space<vmem>>, vector<16x16x128xbf16>
    %59 = vector.shape_cast %58 : vector<16x16x128xbf16> to vector<256x128xbf16>
    %c0_36 = arith.constant 0 : index
    %c0_37 = arith.constant 0 : index
    %c0_38 = arith.constant 0 : index
    %60 = vector.load %arg3[%c0_36, %c0_37, %c0_38] : memref<9x128x128xbf16, #tpu.memory_space<vmem>>, vector<1x128x128xbf16>
    %61 = vector.shape_cast %60 : vector<1x128x128xbf16> to vector<128x128xbf16>
    %cst_39 = arith.constant dense<0.000000e+00> : vector<256x128xf32>
    %62 = tpu.matmul %59, %61, %cst_39 {dimension_numbers = #tpu.dot_dimension_numbers<[1], [0], [0], [1], [0, 0, 1, 1], [], []>} : vector<256x128xbf16>, vector<128x128xbf16>, vector<256x128xf32> -> vector<256x128xf32>
    %c0_40 = arith.constant 0 : index
    %c0_41 = arith.constant 0 : index
    %63 = vector.load %arg10[%c0_40, %c0_41] : memref<256x128xf32, #tpu.memory_space<vmem>>, vector<256x128xf32>
    tpu.vector_store %arg10[%c0_40, %c0_41], %62 {strides = array<i32>} : memref<256x128xf32, #tpu.memory_space<vmem>>, vector<256x128xf32>,
    %c0_42 = arith.constant 0 : index
    %c1_43 = arith.constant 1 : index
    %c0_44 = arith.constant 0 : index
    %64 = vector.load %arg9[%c0_42, %c1_43, %c0_44] : memref<18x18x128xbf16, #tpu.memory_space<vmem>>, vector<16x16x128xbf16>
    %65 = vector.shape_cast %64 : vector<16x16x128xbf16> to vector<256x128xbf16>
    %c1_45 = arith.constant 1 : index
    %c0_46 = arith.constant 0 : index
    %c0_47 = arith.constant 0 : index
    %66 = vector.load %arg3[%c1_45, %c0_46, %c0_47] : memref<9x128x128xbf16, #tpu.memory_space<vmem>>, vector<1x128x128xbf16>
    %67 = vector.shape_cast %66 : vector<1x128x128xbf16> to vector<128x128xbf16>
    %cst_48 = arith.constant dense<0.000000e+00> : vector<256x128xf32>
    %68 = tpu.matmul %65, %67, %cst_48 {dimension_numbers = #tpu.dot_dimension_numbers<[1], [0], [0], [1], [0, 0, 1, 1], [], []>} : vector<256x128xbf16>, vector<128x128xbf16>, vector<256x128xf32> -> vector<256x128xf32>
    %c0_49 = arith.constant 0 : index
    %c0_50 = arith.constant 0 : index
    %69 = vector.load %arg10[%c0_49, %c0_50] : memref<256x128xf32, #tpu.memory_space<vmem>>, vector<256x128xf32>
    %70 = arith.addf %69, %68 : vector<256x128xf32>
    %c0_51 = arith.constant 0 : index
    %c0_52 = arith.constant 0 : index
    %71 = vector.load %arg10[%c0_51, %c0_52] : memref<256x128xf32, #tpu.memory_space<vmem>>, vector<256x128xf32>
    tpu.vector_store %arg10[%c0_51, %c0_52], %70 {strides = array<i32>} : memref<256x128xf32, #tpu.memory_space<vmem>>, vector<256x128xf32>,
    %c0_53 = arith.constant 0 : index
    %c2_54 = arith.constant 2 : index
    %c0_55 = arith.constant 0 : index
    %72 = vector.load %arg9[%c0_53, %c2_54, %c0_55] : memref<18x18x128xbf16, #tpu.memory_space<vmem>>, vector<16x16x128xbf16>
    %73 = vector.shape_cast %72 : vector<16x16x128xbf16> to vector<256x128xbf16>
    %c2_56 = arith.constant 2 : index
    %c0_57 = arith.constant 0 : index
    %c0_58 = arith.constant 0 : index
    %74 = vector.load %arg3[%c2_56, %c0_57, %c0_58] : memref<9x128x128xbf16, #tpu.memory_space<vmem>>, vector<1x128x128xbf16>
    %75 = vector.shape_cast %74 : vector<1x128x128xbf16> to vector<128x128xbf16>
    %cst_59 = arith.constant dense<0.000000e+00> : vector<256x128xf32>
    %76 = tpu.matmul %73, %75, %cst_59 {dimension_numbers = #tpu.dot_dimension_numbers<[1], [0], [0], [1], [0, 0, 1, 1], [], []>} : vector<256x128xbf16>, vector<128x128xbf16>, vector<256x128xf32> -> vector<256x128xf32>
    %c0_60 = arith.constant 0 : index
    %c0_61 = arith.constant 0 : index
    %77 = vector.load %arg10[%c0_60, %c0_61] : memref<256x128xf32, #tpu.memory_space<vmem>>, vector<256x128xf32>
    %78 = arith.addf %77, %76 : vector<256x128xf32>
    %c0_62 = arith.constant 0 : index
    %c0_63 = arith.constant 0 : index
    %79 = vector.load %arg10[%c0_62, %c0_63] : memref<256x128xf32, #tpu.memory_space<vmem>>, vector<256x128xf32>
    tpu.vector_store %arg10[%c0_62, %c0_63], %78 {strides = array<i32>} : memref<256x128xf32, #tpu.memory_space<vmem>>, vector<256x128xf32>,
    %c1_64 = arith.constant 1 : index
    %c0_65 = arith.constant 0 : index
    %c0_66 = arith.constant 0 : index
    %80 = vector.load %arg9[%c1_64, %c0_65, %c0_66] : memref<18x18x128xbf16, #tpu.memory_space<vmem>>, vector<16x16x128xbf16>
    %81 = vector.shape_cast %80 : vector<16x16x128xbf16> to vector<256x128xbf16>
    %c3 = arith.constant 3 : index
    %c0_67 = arith.constant 0 : index
    %c0_68 = arith.constant 0 : index
    %82 = vector.load %arg3[%c3, %c0_67, %c0_68] : memref<9x128x128xbf16, #tpu.memory_space<vmem>>, vector<1x128x128xbf16>
    %83 = vector.shape_cast %82 : vector<1x128x128xbf16> to vector<128x128xbf16>
    %cst_69 = arith.constant dense<0.000000e+00> : vector<256x128xf32>
    %84 = tpu.matmul %81, %83, %cst_69 {dimension_numbers = #tpu.dot_dimension_numbers<[1], [0], [0], [1], [0, 0, 1, 1], [], []>} : vector<256x128xbf16>, vector<128x128xbf16>, vector<256x128xf32> -> vector<256x128xf32>
    %c0_70 = arith.constant 0 : index
    %c0_71 = arith.constant 0 : index
    %85 = vector.load %arg10[%c0_70, %c0_71] : memref<256x128xf32, #tpu.memory_space<vmem>>, vector<256x128xf32>
    %86 = arith.addf %85, %84 : vector<256x128xf32>
    %c0_72 = arith.constant 0 : index
    %c0_73 = arith.constant 0 : index
    %87 = vector.load %arg10[%c0_72, %c0_73] : memref<256x128xf32, #tpu.memory_space<vmem>>, vector<256x128xf32>
    tpu.vector_store %arg10[%c0_72, %c0_73], %86 {strides = array<i32>} : memref<256x128xf32, #tpu.memory_space<vmem>>, vector<256x128xf32>,
    %c1_74 = arith.constant 1 : index
    %c1_75 = arith.constant 1 : index
    %c0_76 = arith.constant 0 : index
    %88 = vector.load %arg9[%c1_74, %c1_75, %c0_76] : memref<18x18x128xbf16, #tpu.memory_space<vmem>>, vector<16x16x128xbf16>
    %89 = vector.shape_cast %88 : vector<16x16x128xbf16> to vector<256x128xbf16>
    %c4 = arith.constant 4 : index
    %c0_77 = arith.constant 0 : index
    %c0_78 = arith.constant 0 : index
    %90 = vector.load %arg3[%c4, %c0_77, %c0_78] : memref<9x128x128xbf16, #tpu.memory_space<vmem>>, vector<1x128x128xbf16>
    %91 = vector.shape_cast %90 : vector<1x128x128xbf16> to vector<128x128xbf16>
    %cst_79 = arith.constant dense<0.000000e+00> : vector<256x128xf32>
    %92 = tpu.matmul %89, %91, %cst_79 {dimension_numbers = #tpu.dot_dimension_numbers<[1], [0], [0], [1], [0, 0, 1, 1], [], []>} : vector<256x128xbf16>, vector<128x128xbf16>, vector<256x128xf32> -> vector<256x128xf32>
    %c0_80 = arith.constant 0 : index
    %c0_81 = arith.constant 0 : index
    %93 = vector.load %arg10[%c0_80, %c0_81] : memref<256x128xf32, #tpu.memory_space<vmem>>, vector<256x128xf32>
    %94 = arith.addf %93, %92 : vector<256x128xf32>
    %c0_82 = arith.constant 0 : index
    %c0_83 = arith.constant 0 : index
    %95 = vector.load %arg10[%c0_82, %c0_83] : memref<256x128xf32, #tpu.memory_space<vmem>>, vector<256x128xf32>
    tpu.vector_store %arg10[%c0_82, %c0_83], %94 {strides = array<i32>} : memref<256x128xf32, #tpu.memory_space<vmem>>, vector<256x128xf32>,
    %c1_84 = arith.constant 1 : index
    %c2_85 = arith.constant 2 : index
    %c0_86 = arith.constant 0 : index
    %96 = vector.load %arg9[%c1_84, %c2_85, %c0_86] : memref<18x18x128xbf16, #tpu.memory_space<vmem>>, vector<16x16x128xbf16>
    %97 = vector.shape_cast %96 : vector<16x16x128xbf16> to vector<256x128xbf16>
    %c5 = arith.constant 5 : index
    %c0_87 = arith.constant 0 : index
    %c0_88 = arith.constant 0 : index
    %98 = vector.load %arg3[%c5, %c0_87, %c0_88] : memref<9x128x128xbf16, #tpu.memory_space<vmem>>, vector<1x128x128xbf16>
    %99 = vector.shape_cast %98 : vector<1x128x128xbf16> to vector<128x128xbf16>
    %cst_89 = arith.constant dense<0.000000e+00> : vector<256x128xf32>
    %100 = tpu.matmul %97, %99, %cst_89 {dimension_numbers = #tpu.dot_dimension_numbers<[1], [0], [0], [1], [0, 0, 1, 1], [], []>} : vector<256x128xbf16>, vector<128x128xbf16>, vector<256x128xf32> -> vector<256x128xf32>
    %c0_90 = arith.constant 0 : index
    %c0_91 = arith.constant 0 : index
    %101 = vector.load %arg10[%c0_90, %c0_91] : memref<256x128xf32, #tpu.memory_space<vmem>>, vector<256x128xf32>
    %102 = arith.addf %101, %100 : vector<256x128xf32>
    %c0_92 = arith.constant 0 : index
    %c0_93 = arith.constant 0 : index
    %103 = vector.load %arg10[%c0_92, %c0_93] : memref<256x128xf32, #tpu.memory_space<vmem>>, vector<256x128xf32>
    tpu.vector_store %arg10[%c0_92, %c0_93], %102 {strides = array<i32>} : memref<256x128xf32, #tpu.memory_space<vmem>>, vector<256x128xf32>,
    %c2_94 = arith.constant 2 : index
    %c0_95 = arith.constant 0 : index
    %c0_96 = arith.constant 0 : index
    %104 = vector.load %arg9[%c2_94, %c0_95, %c0_96] : memref<18x18x128xbf16, #tpu.memory_space<vmem>>, vector<16x16x128xbf16>
    %105 = vector.shape_cast %104 : vector<16x16x128xbf16> to vector<256x128xbf16>
    %c6 = arith.constant 6 : index
    %c0_97 = arith.constant 0 : index
    %c0_98 = arith.constant 0 : index
    %106 = vector.load %arg3[%c6, %c0_97, %c0_98] : memref<9x128x128xbf16, #tpu.memory_space<vmem>>, vector<1x128x128xbf16>
    %107 = vector.shape_cast %106 : vector<1x128x128xbf16> to vector<128x128xbf16>
    %cst_99 = arith.constant dense<0.000000e+00> : vector<256x128xf32>
    %108 = tpu.matmul %105, %107, %cst_99 {dimension_numbers = #tpu.dot_dimension_numbers<[1], [0], [0], [1], [0, 0, 1, 1], [], []>} : vector<256x128xbf16>, vector<128x128xbf16>, vector<256x128xf32> -> vector<256x128xf32>
    %c0_100 = arith.constant 0 : index
    %c0_101 = arith.constant 0 : index
    %109 = vector.load %arg10[%c0_100, %c0_101] : memref<256x128xf32, #tpu.memory_space<vmem>>, vector<256x128xf32>
    %110 = arith.addf %109, %108 : vector<256x128xf32>
    %c0_102 = arith.constant 0 : index
    %c0_103 = arith.constant 0 : index
    %111 = vector.load %arg10[%c0_102, %c0_103] : memref<256x128xf32, #tpu.memory_space<vmem>>, vector<256x128xf32>
    tpu.vector_store %arg10[%c0_102, %c0_103], %110 {strides = array<i32>} : memref<256x128xf32, #tpu.memory_space<vmem>>, vector<256x128xf32>,
    %c2_104 = arith.constant 2 : index
    %c1_105 = arith.constant 1 : index
    %c0_106 = arith.constant 0 : index
    %112 = vector.load %arg9[%c2_104, %c1_105, %c0_106] : memref<18x18x128xbf16, #tpu.memory_space<vmem>>, vector<16x16x128xbf16>
    %113 = vector.shape_cast %112 : vector<16x16x128xbf16> to vector<256x128xbf16>
    %c7 = arith.constant 7 : index
    %c0_107 = arith.constant 0 : index
    %c0_108 = arith.constant 0 : index
    %114 = vector.load %arg3[%c7, %c0_107, %c0_108] : memref<9x128x128xbf16, #tpu.memory_space<vmem>>, vector<1x128x128xbf16>
    %115 = vector.shape_cast %114 : vector<1x128x128xbf16> to vector<128x128xbf16>
    %cst_109 = arith.constant dense<0.000000e+00> : vector<256x128xf32>
    %116 = tpu.matmul %113, %115, %cst_109 {dimension_numbers = #tpu.dot_dimension_numbers<[1], [0], [0], [1], [0, 0, 1, 1], [], []>} : vector<256x128xbf16>, vector<128x128xbf16>, vector<256x128xf32> -> vector<256x128xf32>
    %c0_110 = arith.constant 0 : index
    %c0_111 = arith.constant 0 : index
    %117 = vector.load %arg10[%c0_110, %c0_111] : memref<256x128xf32, #tpu.memory_space<vmem>>, vector<256x128xf32>
    %118 = arith.addf %117, %116 : vector<256x128xf32>
    %c0_112 = arith.constant 0 : index
    %c0_113 = arith.constant 0 : index
    %119 = vector.load %arg10[%c0_112, %c0_113] : memref<256x128xf32, #tpu.memory_space<vmem>>, vector<256x128xf32>
    tpu.vector_store %arg10[%c0_112, %c0_113], %118 {strides = array<i32>} : memref<256x128xf32, #tpu.memory_space<vmem>>, vector<256x128xf32>,
    %c2_114 = arith.constant 2 : index
    %c2_115 = arith.constant 2 : index
    %c0_116 = arith.constant 0 : index
    %120 = vector.load %arg9[%c2_114, %c2_115, %c0_116] : memref<18x18x128xbf16, #tpu.memory_space<vmem>>, vector<16x16x128xbf16>
    %121 = vector.shape_cast %120 : vector<16x16x128xbf16> to vector<256x128xbf16>
    %c8 = arith.constant 8 : index
    %c0_117 = arith.constant 0 : index
    %c0_118 = arith.constant 0 : index
    %122 = vector.load %arg3[%c8, %c0_117, %c0_118] : memref<9x128x128xbf16, #tpu.memory_space<vmem>>, vector<1x128x128xbf16>
    %123 = vector.shape_cast %122 : vector<1x128x128xbf16> to vector<128x128xbf16>
    %cst_119 = arith.constant dense<0.000000e+00> : vector<256x128xf32>
    %124 = tpu.matmul %121, %123, %cst_119 {dimension_numbers = #tpu.dot_dimension_numbers<[1], [0], [0], [1], [0, 0, 1, 1], [], []>} : vector<256x128xbf16>, vector<128x128xbf16>, vector<256x128xf32> -> vector<256x128xf32>
    %c0_120 = arith.constant 0 : index
    %c0_121 = arith.constant 0 : index
    %125 = vector.load %arg10[%c0_120, %c0_121] : memref<256x128xf32, #tpu.memory_space<vmem>>, vector<256x128xf32>
    %126 = arith.addf %125, %124 : vector<256x128xf32>
    %c0_122 = arith.constant 0 : index
    %c0_123 = arith.constant 0 : index
    %127 = vector.load %arg10[%c0_122, %c0_123] : memref<256x128xf32, #tpu.memory_space<vmem>>, vector<256x128xf32>
    tpu.vector_store %arg10[%c0_122, %c0_123], %126 {strides = array<i32>} : memref<256x128xf32, #tpu.memory_space<vmem>>, vector<256x128xf32>,
    %c0_124 = arith.constant 0 : index
    %c0_125 = arith.constant 0 : index
    %128 = vector.load %arg10[%c0_124, %c0_125] : memref<256x128xf32, #tpu.memory_space<vmem>>, vector<256x128xf32>
    %c0_126 = arith.constant 0 : index
    %c0_127 = arith.constant 0 : index
    %129 = vector.load %arg4[%c0_126, %c0_127] : memref<1x128xf32, #tpu.memory_space<vmem>>, vector<1x128xf32>
    %130 = vector.shape_cast %129 : vector<1x128xf32> to vector<128xf32>
    %131 = vector.shape_cast %130 : vector<128xf32> to vector<1x128xf32>
    %132 = vector.broadcast %131 : vector<1x128xf32> to vector<256x128xf32>
    %133 = arith.addf %128, %132 : vector<256x128xf32>
    %134 = vector.shape_cast %133 : vector<256x128xf32> to vector<1x16x16x128xf32>
    %135 = arith.truncf %134 : vector<1x16x16x128xf32> to vector<1x16x16x128xbf16>
    %c0_128 = arith.constant 0 : index
    %c0_129 = arith.constant 0 : index
    %c0_130 = arith.constant 0 : index
    %c0_131 = arith.constant 0 : index
    %136 = vector.load %arg7[%c0_128, %c0_129, %c0_130, %c0_131] : memref<1x16x16x128xbf16, #tpu.memory_space<vmem>>, vector<1x16x16x128xbf16>
    tpu.vector_store %arg7[%c0_128, %c0_129, %c0_130, %c0_131], %135 {strides = array<i32>} : memref<1x16x16x128xbf16, #tpu.memory_space<vmem>>, vector<1x16x16x128xbf16>,
    %cst_132 = arith.constant dense<0.000000e+00> : vector<128xf32>
    %137 = vector.multi_reduction <add>, %133, %cst_132 [0] : vector<256x128xf32> to vector<128xf32>
    %138 = vector.shape_cast %137 : vector<128xf32> to vector<1x128xf32>
    %c0_133 = arith.constant 0 : index
    %c0_134 = arith.constant 0 : index
    %c0_135 = arith.constant 0 : index
    %c0_136 = arith.constant 0 : index
    %139 = vector.load %arg8[%c0_133, %c0_134, %c0_135, %c0_136] : memref<1x1x2x128xf32, #tpu.memory_space<vmem>>, vector<1x1x1x128xf32>
    %140 = vector.shape_cast %139 : vector<1x1x1x128xf32> to vector<1x128xf32>
    %141 = vector.shape_cast %138 : vector<1x128xf32> to vector<1x1x1x128xf32>
    tpu.vector_store %arg8[%c0_133, %c0_134, %c0_135, %c0_136], %141 {strides = array<i32>} : memref<1x1x2x128xf32, #tpu.memory_space<vmem>>, vector<1x1x1x128xf32>,
    %142 = arith.mulf %133, %133 : vector<256x128xf32>
    %cst_137 = arith.constant dense<0.000000e+00> : vector<128xf32>
    %143 = vector.multi_reduction <add>, %142, %cst_137 [0] : vector<256x128xf32> to vector<128xf32>
    %144 = vector.shape_cast %143 : vector<128xf32> to vector<1x128xf32>
    %c0_138 = arith.constant 0 : index
    %c0_139 = arith.constant 0 : index
    %c1_140 = arith.constant 1 : index
    %c0_141 = arith.constant 0 : index
    %145 = vector.load %arg8[%c0_138, %c0_139, %c1_140, %c0_141] : memref<1x1x2x128xf32, #tpu.memory_space<vmem>>, vector<1x1x1x128xf32>
    %146 = vector.shape_cast %145 : vector<1x1x1x128xf32> to vector<1x128xf32>
    %147 = vector.shape_cast %144 : vector<1x128xf32> to vector<1x1x1x128xf32>
    tpu.vector_store %arg8[%c0_138, %c0_139, %c1_140, %c0_141], %147 {strides = array<i32>} : memref<1x1x2x128xf32, #tpu.memory_space<vmem>>, vector<1x1x1x128xf32>,
    return
  }
  func.func @transform_0(%arg0: i32, %arg1: i32) -> (i32, i32, i32, i32) {
    %c0_i32 = arith.constant 0 : i32
    %c0_i32_0 = arith.constant 0 : i32
    %c0_i32_1 = arith.constant 0 : i32
    %c0_i32_2 = arith.constant 0 : i32
    return %arg0, %c0_i32, %c0_i32_0, %c0_i32_1 : i32, i32, i32, i32
  }
  func.func @transform_1(%arg0: i32, %arg1: i32) -> (i32, i32, i32) {
    %c0_i32 = arith.constant 0 : i32
    %c0_i32_0 = arith.constant 0 : i32
    %c0_i32_1 = arith.constant 0 : i32
    %c0_i32_2 = arith.constant 0 : i32
    return %c0_i32, %c0_i32_0, %c0_i32_1 : i32, i32, i32
  }
  func.func @transform_2(%arg0: i32, %arg1: i32) -> (i32, i32) {
    %c0_i32 = arith.constant 0 : i32
    %c0_i32_0 = arith.constant 0 : i32
    %c0_i32_1 = arith.constant 0 : i32
    return %c0_i32, %c0_i32_0 : i32, i32
  }
  func.func @transform_3(%arg0: i32, %arg1: i32) -> (i32, i32) {
    %c0_i32 = arith.constant 0 : i32
    %c0_i32_0 = arith.constant 0 : i32
    %c0_i32_1 = arith.constant 0 : i32
    return %c0_i32, %c0_i32_0 : i32, i32
  }
  func.func @transform_4(%arg0: i32, %arg1: i32) -> (i32, i32) {
    %c0_i32 = arith.constant 0 : i32
    %c0_i32_0 = arith.constant 0 : i32
    %c0_i32_1 = arith.constant 0 : i32
    return %c0_i32, %c0_i32_0 : i32, i32
  }
  func.func @transform_5(%arg0: i32, %arg1: i32) -> (i32, i32, i32, i32) {
    %c0_i32 = arith.constant 0 : i32
    %c0_i32_0 = arith.constant 0 : i32
    %c0_i32_1 = arith.constant 0 : i32
    return %arg0, %arg1, %c0_i32, %c0_i32_0 : i32, i32, i32, i32
  }
  func.func @transform_6(%arg0: i32, %arg1: i32) -> (i32, i32, i32, i32) {
    %c0_i32 = arith.constant 0 : i32
    %c0_i32_0 = arith.constant 0 : i32
    %c0_i32_1 = arith.constant 0 : i32
    return %arg0, %arg1, %c0_i32, %c0_i32_0 : i32, i32, i32, i32
  }
}

module attributes {stable_mosaic.version = 11 : i64} {
  func.func @_bn_residual_kernel(%arg0: i32, %arg1: memref<512x128xbf16, #tpu.memory_space<vmem>>, %arg2: memref<1x128xf32, #tpu.memory_space<vmem>>, %arg3: memref<1x128xf32, #tpu.memory_space<vmem>>, %arg4: memref<512x128xf32, #tpu.memory_space<vmem>>, %arg5: memref<512x128xf32, #tpu.memory_space<vmem>>) attributes {dimension_semantics = [#tpu.dimension_semantics<parallel>], iteration_bounds = array<i64: 1>, scalar_prefetch = 0 : i64, scratch_operands = 0 : i64, tpu.core_type = #tpu.core_type<tc>, window_params = [{transform_indices = @transform_0, window_bounds = array<i64: 512, 128>}, {pipeline_mode = #tpu.pipeline_mode<synchronous>, transform_indices = @transform_1, window_bounds = array<i64: 1, 128>}, {pipeline_mode = #tpu.pipeline_mode<synchronous>, transform_indices = @transform_2, window_bounds = array<i64: 1, 128>}, {transform_indices = @transform_3, window_bounds = array<i64: 512, 128>}, {transform_indices = @transform_4, window_bounds = array<i64: 512, 128>}]} {
    %c0 = arith.constant 0 : index
    %c0_0 = arith.constant 0 : index
    %0 = vector.load %arg1[%c0, %c0_0] : memref<512x128xbf16, #tpu.memory_space<vmem>>, vector<512x128xbf16>
    %1 = arith.extf %0 : vector<512x128xbf16> to vector<512x128xf32>
    %c0_1 = arith.constant 0 : index
    %c0_2 = arith.constant 0 : index
    %2 = vector.load %arg2[%c0_1, %c0_2] : memref<1x128xf32, #tpu.memory_space<vmem>>, vector<1x128xf32>
    %3 = vector.shape_cast %2 : vector<1x128xf32> to vector<128xf32>
    %4 = vector.shape_cast %3 : vector<128xf32> to vector<1x128xf32>
    %5 = vector.broadcast %4 : vector<1x128xf32> to vector<512x128xf32>
    %6 = arith.mulf %1, %5 : vector<512x128xf32>
    %c0_3 = arith.constant 0 : index
    %c0_4 = arith.constant 0 : index
    %7 = vector.load %arg3[%c0_3, %c0_4] : memref<1x128xf32, #tpu.memory_space<vmem>>, vector<1x128xf32>
    %8 = vector.shape_cast %7 : vector<1x128xf32> to vector<128xf32>
    %9 = vector.shape_cast %8 : vector<128xf32> to vector<1x128xf32>
    %10 = vector.broadcast %9 : vector<1x128xf32> to vector<512x128xf32>
    %11 = arith.addf %6, %10 : vector<512x128xf32>
    %c0_5 = arith.constant 0 : index
    %c0_6 = arith.constant 0 : index
    %12 = vector.load %arg4[%c0_5, %c0_6] : memref<512x128xf32, #tpu.memory_space<vmem>>, vector<512x128xf32>
    %13 = arith.addf %11, %12 : vector<512x128xf32>
    %c0_7 = arith.constant 0 : index
    %c0_8 = arith.constant 0 : index
    %14 = vector.load %arg5[%c0_7, %c0_8] : memref<512x128xf32, #tpu.memory_space<vmem>>, vector<512x128xf32>
    tpu.vector_store %arg5[%c0_7, %c0_8], %13 {strides = array<i32>} : memref<512x128xf32, #tpu.memory_space<vmem>>, vector<512x128xf32>,
    return
  }
  func.func @transform_0(%arg0: i32) -> (i32, i32) {
    %c0_i32 = arith.constant 0 : i32
    %c0_i32_0 = arith.constant 0 : i32
    return %arg0, %c0_i32 : i32, i32
  }
  func.func @transform_1(%arg0: i32) -> (i32, i32) {
    %c0_i32 = arith.constant 0 : i32
    %c0_i32_0 = arith.constant 0 : i32
    %c0_i32_1 = arith.constant 0 : i32
    return %c0_i32, %c0_i32_0 : i32, i32
  }
  func.func @transform_2(%arg0: i32) -> (i32, i32) {
    %c0_i32 = arith.constant 0 : i32
    %c0_i32_0 = arith.constant 0 : i32
    %c0_i32_1 = arith.constant 0 : i32
    return %c0_i32, %c0_i32_0 : i32, i32
  }
  func.func @transform_3(%arg0: i32) -> (i32, i32) {
    %c0_i32 = arith.constant 0 : i32
    %c0_i32_0 = arith.constant 0 : i32
    return %arg0, %c0_i32 : i32, i32
  }
  func.func @transform_4(%arg0: i32) -> (i32, i32) {
    %c0_i32 = arith.constant 0 : i32
    %c0_i32_0 = arith.constant 0 : i32
    return %arg0, %c0_i32 : i32, i32
  }
}

</mosaic_0001>

<bundles_post_ra>
// kernel: resnet_block_forward.5
= control target key start
LH: loop header
LB: loop body
LE: loop exit
PB: predicated region body
PF: predicated region fallthrough
CT: control target
= control target key end

     0   :  { %s1287_s0 = inlined_call_operand.vmem [shape: bf16[512,128], index: 0, kind: input, shape index: {}]   ;;  %s1288_s1 = inlined_call_operand.vmem [shape: f32[1,128], index: 1, kind: input, shape index: {}]   ;;  %s1289_s2 = inlined_call_operand.vmem [shape: f32[1,128], index: 2, kind: input, shape index: {}]   ;;  %s1290_s3 = inlined_call_operand.vmem [shape: f32[512,128], index: 3, kind: input, shape index: {}]   ;;  %s1291_s4 = inlined_call_operand.vmem [shape: f32[512,128], index: 4, kind: output, shape index: {}]  }
   0x1   :  { %v486_v0 = vld [vmem:[%s1287_s0] sm:$0xff]   ;;  %v613_v4 = vld [vmem:[%s1287_s0 + $0x8] sm:$0xff]   ;;  %v614_v8 = vld [vmem:[%s1287_s0 + $0x10] sm:$0xff]  }
   0x2   :  { %v675_v1 = vld [vmem:[%s1288_s1] ss:$0 sm:$0xff]  ;;  %v487_v2 = vunpack.c.l.bf16 %v486_v0  ;;  %v488_v3 = vunpack.c.h.bf16 %v486_v0  ;;  %v491_v6 = vunpack.c.l.bf16 %v613_v4  ;;  %v492_v7 = vunpack.c.h.bf16 %v613_v4  ;;  %v615_v13 = vld [vmem:[%s1287_s0 + $0x18] sm:$0xff]   ;;  %v288_v15 = vld [vmem:[%s1290_s3 + $0x8] sm:$0xff] }
   0x3   :  { %v683_v5 = vld [vmem:[%s1289_s2] ss:$0 sm:$0xff]  ;;  %v495_v11 = vunpack.c.l.bf16 %v614_v8  ;;  %v496_v12 = vunpack.c.h.bf16 %v614_v8  ;;  %v499_v18 = vunpack.c.l.bf16 %v615_v13  ;;  %v500_v19 = vunpack.c.h.bf16 %v615_v13  ;;  %v289_v22 = vld [vmem:[%s1290_s3 + $0x10] sm:$0xff]  ;;  %v290_v23 = vld [vmem:[%s1290_s3 + $0x18] sm:$0xff] }
   0x4   :  { %v152_v9 = vmul.f32 %v487_v2, %v675_v1  ;;  %v153_v10 = vmul.f32 %v488_v3, %v675_v1  ;;  %v287_v14 = vld [vmem:[%s1290_s3] sm:$0xff]  ;;  %v154_v16 = vmul.f32 %v491_v6, %v675_v1  ;;  %v155_v17 = vmul.f32 %v492_v7, %v675_v1  ;;  %v292_v29 = vld [vmem:[%s1290_s3 + $0x28] sm:$0xff]  ;;  %v293_v37 = vld [vmem:[%s1290_s3 + $0x30] sm:$0xff] }
   0x5   :  { %v156_v24 = vmul.f32 %v495_v11, %v675_v1  ;;  %v157_v25 = vmul.f32 %v496_v12, %v675_v1  ;;  %v291_v28 = vld [vmem:[%s1290_s3 + $0x20] sm:$0xff]  ;;  %v158_v30 = vmul.f32 %v499_v18, %v675_v1  ;;  %v159_v31 = vmul.f32 %v500_v19, %v675_v1  ;;  %v294_v38 = vld [vmem:[%s1290_s3 + $0x38] sm:$0xff]  ;;  %v617_v39 = vld [vmem:[%s1287_s0 + $0x28] sm:$0xff]  }
   0x6   :  { %v223_v20 = vadd.f32 %v683_v5, %v152_v9  ;;  %v224_v21 = vadd.f32 %v683_v5, %v153_v10  ;;  %v225_v26 = vadd.f32 %v683_v5, %v154_v16  ;;  %v226_v27 = vadd.f32 %v683_v5, %v155_v17  ;;  %v616_v32 = vld [vmem:[%s1287_s0 + $0x20] sm:$0xff]   ;;  %v618_v44 = vld [vmem:[%s1287_s0 + $0x30] sm:$0xff]   ;;  %v619_v49 = vld [vmem:[%s1287_s0 + $0x38] sm:$0xff]  }
   0x7   :  { %v227_v35 = vadd.f32 %v683_v5, %v156_v24  ;;  %v228_v36 = vadd.f32 %v683_v5, %v157_v25  ;;  %v229_v42 = vadd.f32 %v683_v5, %v158_v30  ;;  %v230_v43 = vadd.f32 %v683_v5, %v159_v31  ;;  %v295_v58 = vld [vmem:[%s1290_s3 + $0x40] sm:$0xff]  ;;  %v296_v59 = vld [vmem:[%s1290_s3 + $0x48] sm:$0xff]  ;;  %v297_v3 = vld [vmem:[%s1290_s3 + $0x50] sm:$0xff] }
   0x8   :  { %v351_v33 = vadd.f32 %v287_v14, %v223_v20  ;;  %v352_v34 = vadd.f32 %v288_v15, %v224_v21  ;;  %v353_v40 = vadd.f32 %v289_v22, %v225_v26  ;;  %v354_v41 = vadd.f32 %v290_v23, %v226_v27  ;;  %v298_v4 = vld [vmem:[%s1290_s3 + $0x58] sm:$0xff]  ;;  %v299_v10 = vld [vmem:[%s1290_s3 + $0x60] sm:$0xff]  ;;  %v300_v11 = vld [vmem:[%s1290_s3 + $0x68] sm:$0xff] }
   0x9   :  { %v355_v45 = vadd.f32 %v291_v28, %v227_v35  ;;  %v356_v46 = vadd.f32 %v292_v29, %v228_v36  ;;  %v503_v47 = vunpack.c.l.bf16 %v616_v32  ;;  %v504_v48 = vunpack.c.h.bf16 %v616_v32  ;;  %v620_v14 = vld [vmem:[%s1287_s0 + $0x40] sm:$0xff]   ;;  %v301_v19 = vld [vmem:[%s1290_s3 + $0x70] sm:$0xff]  ;;  %v302_v20 = vld [vmem:[%s1290_s3 + $0x78] sm:$0xff] }
   0xa   :  { %415 = vst [vmem:[%s1291_s4] sm:$0xff] %v351_v33  ;;  %416 = vst [vmem:[%s1291_s4 + $0x8] sm:$0xff] %v352_v34  ;;  %v357_v50 = vadd.f32 %v293_v37, %v229_v42  ;;  %v358_v51 = vadd.f32 %v294_v38, %v230_v43  ;;  %v507_v52 = vunpack.c.l.bf16 %v617_v39  ;;  %v508_v53 = vunpack.c.h.bf16 %v617_v39  ;;  %v621_v21 = vld [vmem:[%s1287_s0 + $0x48] sm:$0xff]   ;;  %v622_v26 = vld [vmem:[%s1287_s0 + $0x50] sm:$0xff]  }
   0xb   :  { %417 = vst [vmem:[%s1291_s4 + $0x10] sm:$0xff] %v353_v40  ;;  %418 = vst [vmem:[%s1291_s4 + $0x18] sm:$0xff] %v354_v41  ;;  %v160_v54 = vmul.f32 %v503_v47, %v675_v1  ;;  %v161_v55 = vmul.f32 %v504_v48, %v675_v1  ;;  %v511_v56 = vunpack.c.l.bf16 %v618_v44  ;;  %v512_v57 = vunpack.c.h.bf16 %v618_v44  ;;  %v623_v31 = vld [vmem:[%s1287_s0 + $0x58] sm:$0xff]   ;;  %v303_v40 = vld [vmem:[%s1290_s3 + $0x80] sm:$0xff] }
   0xc   :  { %419 = vst [vmem:[%s1291_s4 + $0x20] sm:$0xff] %v355_v45  ;;  %420 = vst [vmem:[%s1291_s4 + $0x28] sm:$0xff] %v356_v46  ;;  %v162_v60 = vmul.f32 %v507_v52, %v675_v1  ;;  %v163_v61 = vmul.f32 %v508_v53, %v675_v1  ;;  %v515_v62 = vunpack.c.l.bf16 %v619_v49  ;;  %v516_v63 = vunpack.c.h.bf16 %v619_v49  ;;  %v304_v41 = vld [vmem:[%s1290_s3 + $0x88] sm:$0xff]  ;;  %v305_v48 = vld [vmem:[%s1290_s3 + $0x90] sm:$0xff] }
   0xd   :  { %421 = vst [vmem:[%s1291_s4 + $0x30] sm:$0xff] %v357_v50  ;;  %422 = vst [vmem:[%s1291_s4 + $0x38] sm:$0xff] %v358_v51  ;;  %v231_v0 = vadd.f32 %v683_v5, %v160_v54  ;;  %v232_v2 = vadd.f32 %v683_v5, %v161_v55  ;;  %v164_v6 = vmul.f32 %v511_v56, %v675_v1  ;;  %v519_v29 = vunpack.c.l.bf16 %v620_v14  ;;  %v306_v49 = vld [vmem:[%s1290_s3 + $0x98] sm:$0xff]  ;;  %v307_v54 = vld [vmem:[%s1290_s3 + $0xa0] sm:$0xff] }
   0xe   :  { %v165_v7 = vmul.f32 %v512_v57, %v675_v1  ;;  %v233_v8 = vadd.f32 %v683_v5, %v162_v60  ;;  %v234_v9 = vadd.f32 %v683_v5, %v163_v61  ;;  %v166_v12 = vmul.f32 %v515_v62, %v675_v1  ;;  %v308_v55 = vld [vmem:[%s1290_s3 + $0xa8] sm:$0xff] }
   0xf   :  { %v167_v13 = vmul.f32 %v516_v63, %v675_v1  ;;  %v359_v15 = vadd.f32 %v295_v58, %v231_v0  ;;  %v360_v16 = vadd.f32 %v296_v59, %v232_v2  ;;  %v235_v17 = vadd.f32 %v683_v5, %v164_v6  ;;  %v624_v58 = vld [vmem:[%s1287_s0 + $0x60] sm:$0xff]   ;;  %v309_v63 = vld [vmem:[%s1290_s3 + $0xb0] sm:$0xff]  ;;  %v310_v0 = vld [vmem:[%s1290_s3 + $0xb8] sm:$0xff] }
  0x10   :  { %v236_v18 = vadd.f32 %v683_v5, %v165_v7  ;;  %v361_v22 = vadd.f32 %v297_v3, %v233_v8  ;;  %v362_v23 = vadd.f32 %v298_v4, %v234_v9  ;;  %v237_v24 = vadd.f32 %v683_v5, %v166_v12  ;;  %v625_v2 = vld [vmem:[%s1287_s0 + $0x68] sm:$0xff]   ;;  %v626_v8 = vld [vmem:[%s1287_s0 + $0x70] sm:$0xff]  }
  0x11   :  { %v238_v25 = vadd.f32 %v683_v5, %v167_v13  ;;  %423 = vst [vmem:[%s1291_s4 + $0x40] sm:$0xff] %v359_v15  ;;  %424 = vst [vmem:[%s1291_s4 + $0x48] sm:$0xff] %v360_v16  ;;  %v363_v27 = vadd.f32 %v299_v10, %v235_v17  ;;  %v520_v30 = vunpack.c.h.bf16 %v620_v14  ;;  %v523_v34 = vunpack.c.l.bf16 %v621_v21  ;;  %v627_v13 = vld [vmem:[%s1287_s0 + $0x78] sm:$0xff]  }
  0x12   :  { %v364_v28 = vadd.f32 %v300_v11, %v236_v18  ;;  %425 = vst [vmem:[%s1291_s4 + $0x50] sm:$0xff] %v361_v22  ;;  %426 = vst [vmem:[%s1291_s4 + $0x58] sm:$0xff] %v362_v23  ;;  %v365_v32 = vadd.f32 %v301_v19, %v237_v24  ;;  %v524_v35 = vunpack.c.h.bf16 %v621_v21  ;;  %v168_v36 = vmul.f32 %v519_v29, %v675_v1  ;;  %v311_v22 = vld [vmem:[%s1290_s3 + $0xc0] sm:$0xff]  ;;  %v312_v23 = vld [vmem:[%s1290_s3 + $0xc8] sm:$0xff] }
  0x13   :  { %v366_v33 = vadd.f32 %v302_v20, %v238_v25  ;;  %427 = vst [vmem:[%s1291_s4 + $0x60] sm:$0xff] %v363_v27  ;;  %v169_v37 = vmul.f32 %v520_v30, %v675_v1  ;;  %v527_v38 = vunpack.c.l.bf16 %v622_v26  ;;  %v528_v39 = vunpack.c.h.bf16 %v622_v26  ;;  %v313_v30 = vld [vmem:[%s1290_s3 + $0xd0] sm:$0xff] }
  0x14   :  { %428 = vst [vmem:[%s1291_s4 + $0x68] sm:$0xff] %v364_v28  ;;  %429 = vst [vmem:[%s1291_s4 + $0x70] sm:$0xff] %v365_v32  ;;  %v170_v42 = vmul.f32 %v523_v34, %v675_v1  ;;  %v171_v43 = vmul.f32 %v524_v35, %v675_v1  ;;  %v531_v44 = vunpack.c.l.bf16 %v623_v31  ;;  %v532_v45 = vunpack.c.h.bf16 %v623_v31  ;;  %v314_v31 = vld [vmem:[%s1290_s3 + $0xd8] sm:$0xff] }
  0x15   :  { %430 = vst [vmem:[%s1291_s4 + $0x78] sm:$0xff] %v366_v33  ;;  %v239_v46 = vadd.f32 %v683_v5, %v168_v36  ;;  %v240_v47 = vadd.f32 %v683_v5, %v169_v37  ;;  %v172_v50 = vmul.f32 %v527_v38, %v675_v1  ;;  %v173_v51 = vmul.f32 %v528_v39, %v675_v1  ;;  %v315_v36 = vld [vmem:[%s1290_s3 + $0xe0] sm:$0xff]  ;;  %v316_v37 = vld [vmem:[%s1290_s3 + $0xe8] sm:$0xff] }
  0x16   :  { %v241_v52 = vadd.f32 %v683_v5, %v170_v42  ;;  %v242_v53 = vadd.f32 %v683_v5, %v171_v43  ;;  %v174_v56 = vmul.f32 %v531_v44, %v675_v1  ;;  %v175_v57 = vmul.f32 %v532_v45, %v675_v1  ;;  %v317_v45 = vld [vmem:[%s1290_s3 + $0xf0] sm:$0xff] }
  0x17   :  { %v367_v59 = vadd.f32 %v303_v40, %v239_v46  ;;  %v368_v60 = vadd.f32 %v304_v41, %v240_v47  ;;  %v243_v61 = vadd.f32 %v683_v5, %v172_v50  ;;  %v244_v62 = vadd.f32 %v683_v5, %v173_v51  ;;  %v628_v40 = vld [vmem:[%s1287_s0 + $0x80] sm:$0xff]   ;;  %v318_v46 = vld [vmem:[%s1290_s3 + $0xf8] sm:$0xff]  ;;  %v629_v47 = vld [vmem:[%s1287_s0 + $0x88] sm:$0xff]  }
  0x18   :  { %v369_v3 = vadd.f32 %v305_v48, %v241_v52  ;;  %v370_v4 = vadd.f32 %v306_v49, %v242_v53  ;;  %v245_v6 = vadd.f32 %v683_v5, %v174_v56  ;;  %v246_v7 = vadd.f32 %v683_v5, %v175_v57  ;;  %v630_v52 = vld [vmem:[%s1287_s0 + $0x90] sm:$0xff]   ;;  %v631_v57 = vld [vmem:[%s1287_s0 + $0x98] sm:$0xff]  }
  0x19   :  { %431 = vst [vmem:[%s1291_s4 + $0x80] sm:$0xff] %v367_v59  ;;  %432 = vst [vmem:[%s1291_s4 + $0x88] sm:$0xff] %v368_v60  ;;  %v371_v9 = vadd.f32 %v307_v54, %v243_v61  ;;  %v372_v10 = vadd.f32 %v308_v55, %v244_v62  ;;  %v535_v11 = vunpack.c.l.bf16 %v624_v58  ;;  %v536_v12 = vunpack.c.h.bf16 %v624_v58 }
  0x1a   :  { %433 = vst [vmem:[%s1291_s4 + $0x90] sm:$0xff] %v369_v3  ;;  %434 = vst [vmem:[%s1291_s4 + $0x98] sm:$0xff] %v370_v4  ;;  %v373_v14 = vadd.f32 %v309_v63, %v245_v6  ;;  %v374_v15 = vadd.f32 %v310_v0, %v246_v7  ;;  %v539_v16 = vunpack.c.l.bf16 %v625_v2  ;;  %v540_v17 = vunpack.c.h.bf16 %v625_v2  ;;  %v319_v3 = vld [vmem:[%s1290_s3 + $0x100] sm:$0xff]  ;;  %v320_v4 = vld [vmem:[%s1290_s3 + $0x108] sm:$0xff] }
  0x1b   :  { %435 = vst [vmem:[%s1291_s4 + $0xa0] sm:$0xff] %v371_v9  ;;  %436 = vst [vmem:[%s1291_s4 + $0xa8] sm:$0xff] %v372_v10  ;;  %v176_v18 = vmul.f32 %v535_v11, %v675_v1  ;;  %v177_v19 = vmul.f32 %v536_v12, %v675_v1  ;;  %v543_v20 = vunpack.c.l.bf16 %v626_v8  ;;  %v544_v21 = vunpack.c.h.bf16 %v626_v8  ;;  %v321_v12 = vld [vmem:[%s1290_s3 + $0x110] sm:$0xff] }
  0x1c   :  { %437 = vst [vmem:[%s1291_s4 + $0xb0] sm:$0xff] %v373_v14  ;;  %438 = vst [vmem:[%s1291_s4 + $0xb8] sm:$0xff] %v374_v15  ;;  %v178_v24 = vmul.f32 %v539_v16, %v675_v1  ;;  %v179_v25 = vmul.f32 %v540_v17, %v675_v1  ;;  %v547_v26 = vunpack.c.l.bf16 %v627_v13  ;;  %v548_v27 = vunpack.c.h.bf16 %v627_v13  ;;  %v322_v13 = vld [vmem:[%s1290_s3 + $0x118] sm:$0xff] }
  0x1d   :  { %v247_v28 = vadd.f32 %v683_v5, %v176_v18  ;;  %v248_v29 = vadd.f32 %v683_v5, %v177_v19  ;;  %v180_v32 = vmul.f32 %v543_v20, %v675_v1  ;;  %v181_v33 = vmul.f32 %v544_v21, %v675_v1  ;;  %v323_v18 = vld [vmem:[%s1290_s3 + $0x120] sm:$0xff]  ;;  %v324_v19 = vld [vmem:[%s1290_s3 + $0x128] sm:$0xff] }
  0x1e   :  { %v249_v34 = vadd.f32 %v683_v5, %v178_v24  ;;  %v250_v35 = vadd.f32 %v683_v5, %v179_v25  ;;  %v182_v38 = vmul.f32 %v547_v26, %v675_v1  ;;  %v183_v39 = vmul.f32 %v548_v27, %v675_v1  ;;  %v325_v27 = vld [vmem:[%s1290_s3 + $0x130] sm:$0xff] }
  0x1f   :  { %v375_v41 = vadd.f32 %v311_v22, %v247_v28  ;;  %v376_v42 = vadd.f32 %v312_v23, %v248_v29  ;;  %v251_v43 = vadd.f32 %v683_v5, %v180_v32  ;;  %v252_v44 = vadd.f32 %v683_v5, %v181_v33  ;;  %v632_v22 = vld [vmem:[%s1287_s0 + $0xa0] sm:$0xff]   ;;  %v326_v28 = vld [vmem:[%s1290_s3 + $0x138] sm:$0xff]  ;;  %v633_v29 = vld [vmem:[%s1287_s0 + $0xa8] sm:$0xff]  }
  0x20   :  { %v377_v48 = vadd.f32 %v313_v30, %v249_v34  ;;  %v378_v49 = vadd.f32 %v314_v31, %v250_v35  ;;  %v253_v50 = vadd.f32 %v683_v5, %v182_v38  ;;  %v254_v51 = vadd.f32 %v683_v5, %v183_v39  ;;  %v634_v34 = vld [vmem:[%s1287_s0 + $0xb0] sm:$0xff]   ;;  %v635_v39 = vld [vmem:[%s1287_s0 + $0xb8] sm:$0xff]  }
  0x21   :  { %439 = vst [vmem:[%s1291_s4 + $0xc0] sm:$0xff] %v375_v41  ;;  %440 = vst [vmem:[%s1291_s4 + $0xc8] sm:$0xff] %v376_v42  ;;  %v379_v53 = vadd.f32 %v315_v36, %v251_v43  ;;  %v380_v54 = vadd.f32 %v316_v37, %v252_v44  ;;  %v551_v55 = vunpack.c.l.bf16 %v628_v40  ;;  %v552_v56 = vunpack.c.h.bf16 %v628_v40 }
  0x22   :  { %441 = vst [vmem:[%s1291_s4 + $0xd0] sm:$0xff] %v377_v48  ;;  %442 = vst [vmem:[%s1291_s4 + $0xd8] sm:$0xff] %v378_v49  ;;  %v381_v58 = vadd.f32 %v317_v45, %v253_v50  ;;  %v382_v59 = vadd.f32 %v318_v46, %v254_v51  ;;  %v555_v60 = vunpack.c.l.bf16 %v629_v47  ;;  %v556_v61 = vunpack.c.h.bf16 %v629_v47  ;;  %v327_v48 = vld [vmem:[%s1290_s3 + $0x140] sm:$0xff]  ;;  %v328_v49 = vld [vmem:[%s1290_s3 + $0x148] sm:$0xff] }
  0x23   :  { %443 = vst [vmem:[%s1291_s4 + $0xe0] sm:$0xff] %v379_v53  ;;  %444 = vst [vmem:[%s1291_s4 + $0xe8] sm:$0xff] %v380_v54  ;;  %v184_v62 = vmul.f32 %v551_v55, %v675_v1  ;;  %v185_v63 = vmul.f32 %v552_v56, %v675_v1  ;;  %v559_v0 = vunpack.c.l.bf16 %v630_v52  ;;  %v560_v2 = vunpack.c.h.bf16 %v630_v52  ;;  %v329_v56 = vld [vmem:[%s1290_s3 + $0x150] sm:$0xff] }
  0x24   :  { %445 = vst [vmem:[%s1291_s4 + $0xf0] sm:$0xff] %v381_v58  ;;  %446 = vst [vmem:[%s1291_s4 + $0xf8] sm:$0xff] %v382_v59  ;;  %v186_v6 = vmul.f32 %v555_v60, %v675_v1  ;;  %v187_v7 = vmul.f32 %v556_v61, %v675_v1  ;;  %v563_v8 = vunpack.c.l.bf16 %v631_v57  ;;  %v564_v9 = vunpack.c.h.bf16 %v631_v57  ;;  %v330_v57 = vld [vmem:[%s1290_s3 + $0x158] sm:$0xff] }
  0x25   :  { %v255_v10 = vadd.f32 %v683_v5, %v184_v62  ;;  %v256_v11 = vadd.f32 %v683_v5, %v185_v63  ;;  %v188_v14 = vmul.f32 %v559_v0, %v675_v1  ;;  %v189_v15 = vmul.f32 %v560_v2, %v675_v1  ;;  %v331_v62 = vld [vmem:[%s1290_s3 + $0x160] sm:$0xff]  ;;  %v332_v63 = vld [vmem:[%s1290_s3 + $0x168] sm:$0xff] }
  0x26   :  { %v257_v16 = vadd.f32 %v683_v5, %v186_v6  ;;  %v258_v17 = vadd.f32 %v683_v5, %v187_v7  ;;  %v190_v20 = vmul.f32 %v563_v8, %v675_v1  ;;  %v191_v21 = vmul.f32 %v564_v9, %v675_v1  ;;  %v333_v9 = vld [vmem:[%s1290_s3 + $0x170] sm:$0xff] }
  0x27   :  { %v383_v23 = vadd.f32 %v319_v3, %v255_v10  ;;  %v384_v24 = vadd.f32 %v320_v4, %v256_v11  ;;  %v259_v25 = vadd.f32 %v683_v5, %v188_v14  ;;  %v260_v26 = vadd.f32 %v683_v5, %v189_v15  ;;  %v636_v3 = vld [vmem:[%s1287_s0 + $0xc0] sm:$0xff]   ;;  %v334_v10 = vld [vmem:[%s1290_s3 + $0x178] sm:$0xff]  ;;  %v637_v11 = vld [vmem:[%s1287_s0 + $0xc8] sm:$0xff]  }
  0x28   :  { %v385_v30 = vadd.f32 %v321_v12, %v257_v16  ;;  %v386_v31 = vadd.f32 %v322_v13, %v258_v17  ;;  %v261_v32 = vadd.f32 %v683_v5, %v190_v20  ;;  %v262_v33 = vadd.f32 %v683_v5, %v191_v21  ;;  %v638_v16 = vld [vmem:[%s1287_s0 + $0xd0] sm:$0xff]   ;;  %v639_v21 = vld [vmem:[%s1287_s0 + $0xd8] sm:$0xff]  }
  0x29   :  { %447 = vst [vmem:[%s1291_s4 + $0x100] sm:$0xff] %v383_v23  ;;  %448 = vst [vmem:[%s1291_s4 + $0x108] sm:$0xff] %v384_v24  ;;  %v387_v35 = vadd.f32 %v323_v18, %v259_v25  ;;  %v388_v36 = vadd.f32 %v324_v19, %v260_v26  ;;  %v567_v37 = vunpack.c.l.bf16 %v632_v22  ;;  %v568_v38 = vunpack.c.h.bf16 %v632_v22 }
  0x2a   :  { %449 = vst [vmem:[%s1291_s4 + $0x110] sm:$0xff] %v385_v30  ;;  %450 = vst [vmem:[%s1291_s4 + $0x118] sm:$0xff] %v386_v31  ;;  %v389_v40 = vadd.f32 %v325_v27, %v261_v32  ;;  %v390_v41 = vadd.f32 %v326_v28, %v262_v33  ;;  %v571_v42 = vunpack.c.l.bf16 %v633_v29  ;;  %v572_v43 = vunpack.c.h.bf16 %v633_v29  ;;  %v335_v30 = vld [vmem:[%s1290_s3 + $0x180] sm:$0xff]  ;;  %v336_v31 = vld [vmem:[%s1290_s3 + $0x188] sm:$0xff] }
  0x2b   :  { %451 = vst [vmem:[%s1291_s4 + $0x120] sm:$0xff] %v387_v35  ;;  %452 = vst [vmem:[%s1291_s4 + $0x128] sm:$0xff] %v388_v36  ;;  %v192_v44 = vmul.f32 %v567_v37, %v675_v1  ;;  %v193_v45 = vmul.f32 %v568_v38, %v675_v1  ;;  %v575_v46 = vunpack.c.l.bf16 %v634_v34  ;;  %v576_v47 = vunpack.c.h.bf16 %v634_v34  ;;  %v337_v38 = vld [vmem:[%s1290_s3 + $0x190] sm:$0xff] }
  0x2c   :  { %453 = vst [vmem:[%s1291_s4 + $0x130] sm:$0xff] %v389_v40  ;;  %454 = vst [vmem:[%s1291_s4 + $0x138] sm:$0xff] %v390_v41  ;;  %v194_v50 = vmul.f32 %v571_v42, %v675_v1  ;;  %v195_v51 = vmul.f32 %v572_v43, %v675_v1  ;;  %v579_v52 = vunpack.c.l.bf16 %v635_v39  ;;  %v580_v53 = vunpack.c.h.bf16 %v635_v39  ;;  %v338_v39 = vld [vmem:[%s1290_s3 + $0x198] sm:$0xff] }
  0x2d   :  { %v263_v54 = vadd.f32 %v683_v5, %v192_v44  ;;  %v264_v55 = vadd.f32 %v683_v5, %v193_v45  ;;  %v196_v58 = vmul.f32 %v575_v46, %v675_v1  ;;  %v197_v59 = vmul.f32 %v576_v47, %v675_v1  ;;  %v339_v44 = vld [vmem:[%s1290_s3 + $0x1a0] sm:$0xff]  ;;  %v340_v45 = vld [vmem:[%s1290_s3 + $0x1a8] sm:$0xff] }
  0x2e   :  { %v265_v60 = vadd.f32 %v683_v5, %v194_v50  ;;  %v266_v61 = vadd.f32 %v683_v5, %v195_v51  ;;  %v198_v0 = vmul.f32 %v579_v52, %v675_v1  ;;  %v199_v2 = vmul.f32 %v580_v53, %v675_v1  ;;  %v341_v53 = vld [vmem:[%s1290_s3 + $0x1b0] sm:$0xff] }
  0x2f   :  { %v391_v4 = vadd.f32 %v327_v48, %v263_v54  ;;  %v392_v6 = vadd.f32 %v328_v49, %v264_v55  ;;  %v267_v7 = vadd.f32 %v683_v5, %v196_v58  ;;  %v268_v8 = vadd.f32 %v683_v5, %v197_v59  ;;  %v640_v48 = vld [vmem:[%s1287_s0 + $0xe0] sm:$0xff]   ;;  %v342_v54 = vld [vmem:[%s1290_s3 + $0x1b8] sm:$0xff]  ;;  %v641_v55 = vld [vmem:[%s1287_s0 + $0xe8] sm:$0xff]  }
  0x30   :  { %v393_v12 = vadd.f32 %v329_v56, %v265_v60  ;;  %v394_v13 = vadd.f32 %v330_v57, %v266_v61  ;;  %v269_v14 = vadd.f32 %v683_v5, %v198_v0  ;;  %v270_v15 = vadd.f32 %v683_v5, %v199_v2  ;;  %v642_v60 = vld [vmem:[%s1287_s0 + $0xf0] sm:$0xff]   ;;  %v643_v2 = vld [vmem:[%s1287_s0 + $0xf8] sm:$0xff]  }
  0x31   :  { %455 = vst [vmem:[%s1291_s4 + $0x140] sm:$0xff] %v391_v4  ;;  %456 = vst [vmem:[%s1291_s4 + $0x148] sm:$0xff] %v392_v6  ;;  %v395_v17 = vadd.f32 %v331_v62, %v267_v7  ;;  %v396_v18 = vadd.f32 %v332_v63, %v268_v8  ;;  %v583_v19 = vunpack.c.l.bf16 %v636_v3  ;;  %v584_v20 = vunpack.c.h.bf16 %v636_v3 }
  0x32   :  { %457 = vst [vmem:[%s1291_s4 + $0x150] sm:$0xff] %v393_v12  ;;  %458 = vst [vmem:[%s1291_s4 + $0x158] sm:$0xff] %v394_v13  ;;  %v397_v22 = vadd.f32 %v333_v9, %v269_v14  ;;  %v398_v23 = vadd.f32 %v334_v10, %v270_v15  ;;  %v587_v24 = vunpack.c.l.bf16 %v637_v11  ;;  %v588_v25 = vunpack.c.h.bf16 %v637_v11  ;;  %v343_v12 = vld [vmem:[%s1290_s3 + $0x1c0] sm:$0xff]  ;;  %v344_v13 = vld [vmem:[%s1290_s3 + $0x1c8] sm:$0xff] }
  0x33   :  { %459 = vst [vmem:[%s1291_s4 + $0x160] sm:$0xff] %v395_v17  ;;  %460 = vst [vmem:[%s1291_s4 + $0x168] sm:$0xff] %v396_v18  ;;  %v200_v26 = vmul.f32 %v583_v19, %v675_v1  ;;  %v201_v27 = vmul.f32 %v584_v20, %v675_v1  ;;  %v591_v28 = vunpack.c.l.bf16 %v638_v16  ;;  %v592_v29 = vunpack.c.h.bf16 %v638_v16  ;;  %v345_v20 = vld [vmem:[%s1290_s3 + $0x1d0] sm:$0xff] }
  0x34   :  { %461 = vst [vmem:[%s1291_s4 + $0x170] sm:$0xff] %v397_v22  ;;  %462 = vst [vmem:[%s1291_s4 + $0x178] sm:$0xff] %v398_v23  ;;  %v202_v32 = vmul.f32 %v587_v24, %v675_v1  ;;  %v203_v33 = vmul.f32 %v588_v25, %v675_v1  ;;  %v595_v34 = vunpack.c.l.bf16 %v639_v21  ;;  %v596_v35 = vunpack.c.h.bf16 %v639_v21  ;;  %v346_v21 = vld [vmem:[%s1290_s3 + $0x1d8] sm:$0xff] }
  0x35   :  { %v271_v36 = vadd.f32 %v683_v5, %v200_v26  ;;  %v272_v37 = vadd.f32 %v683_v5, %v201_v27  ;;  %v204_v40 = vmul.f32 %v591_v28, %v675_v1  ;;  %v205_v41 = vmul.f32 %v592_v29, %v675_v1  ;;  %v347_v26 = vld [vmem:[%s1290_s3 + $0x1e0] sm:$0xff]  ;;  %v348_v27 = vld [vmem:[%s1290_s3 + $0x1e8] sm:$0xff] }
  0x36   :  { %v273_v42 = vadd.f32 %v683_v5, %v202_v32  ;;  %v274_v43 = vadd.f32 %v683_v5, %v203_v33  ;;  %v206_v46 = vmul.f32 %v595_v34, %v675_v1  ;;  %v207_v47 = vmul.f32 %v596_v35, %v675_v1  ;;  %v349_v34 = vld [vmem:[%s1290_s3 + $0x1f0] sm:$0xff]  ;;  %v350_v35 = vld [vmem:[%s1290_s3 + $0x1f8] sm:$0xff] }
  0x37   :  { %v399_v49 = vadd.f32 %v335_v30, %v271_v36  ;;  %v400_v50 = vadd.f32 %v336_v31, %v272_v37  ;;  %v275_v51 = vadd.f32 %v683_v5, %v204_v40  ;;  %v276_v52 = vadd.f32 %v683_v5, %v205_v41 }
  0x38   :  { %v401_v56 = vadd.f32 %v337_v38, %v273_v42  ;;  %v402_v57 = vadd.f32 %v338_v39, %v274_v43  ;;  %v277_v58 = vadd.f32 %v683_v5, %v206_v46  ;;  %v278_v59 = vadd.f32 %v683_v5, %v207_v47 }
  0x39   :  { %463 = vst [vmem:[%s1291_s4 + $0x180] sm:$0xff] %v399_v49  ;;  %464 = vst [vmem:[%s1291_s4 + $0x188] sm:$0xff] %v400_v50  ;;  %v403_v61 = vadd.f32 %v339_v44, %v275_v51  ;;  %v404_v62 = vadd.f32 %v340_v45, %v276_v52  ;;  %v599_v63 = vunpack.c.l.bf16 %v640_v48  ;;  %v600_v0 = vunpack.c.h.bf16 %v640_v48 }
  0x3a   :  { %465 = vst [vmem:[%s1291_s4 + $0x190] sm:$0xff] %v401_v56  ;;  %466 = vst [vmem:[%s1291_s4 + $0x198] sm:$0xff] %v402_v57  ;;  %v405_v3 = vadd.f32 %v341_v53, %v277_v58  ;;  %v406_v4 = vadd.f32 %v342_v54, %v278_v59  ;;  %v603_v6 = vunpack.c.l.bf16 %v641_v55  ;;  %v604_v7 = vunpack.c.h.bf16 %v641_v55 }
  0x3b   :  { %467 = vst [vmem:[%s1291_s4 + $0x1a0] sm:$0xff] %v403_v61  ;;  %468 = vst [vmem:[%s1291_s4 + $0x1a8] sm:$0xff] %v404_v62  ;;  %v208_v8 = vmul.f32 %v599_v63, %v675_v1  ;;  %v209_v9 = vmul.f32 %v600_v0, %v675_v1  ;;  %v607_v10 = vunpack.c.l.bf16 %v642_v60  ;;  %v608_v11 = vunpack.c.h.bf16 %v642_v60 }
  0x3c   :  { %469 = vst [vmem:[%s1291_s4 + $0x1b0] sm:$0xff] %v405_v3  ;;  %470 = vst [vmem:[%s1291_s4 + $0x1b8] sm:$0xff] %v406_v4  ;;  %v210_v14 = vmul.f32 %v603_v6, %v675_v1  ;;  %v211_v15 = vmul.f32 %v604_v7, %v675_v1  ;;  %v611_v16 = vunpack.c.l.bf16 %v643_v2  ;;  %v612_v17 = vunpack.c.h.bf16 %v643_v2 }
  0x3d   :  { %v279_v18 = vadd.f32 %v683_v5, %v208_v8  ;;  %v280_v19 = vadd.f32 %v683_v5, %v209_v9  ;;  %v212_v22 = vmul.f32 %v607_v10, %v675_v1  ;;  %v213_v23 = vmul.f32 %v608_v11, %v675_v1 }
  0x3e   :  { %v281_v24 = vadd.f32 %v683_v5, %v210_v14  ;;  %v282_v25 = vadd.f32 %v683_v5, %v211_v15  ;;  %v214_v28 = vmul.f32 %v611_v16, %v675_v1  ;;  %v215_v29 = vmul.f32 %v612_v17, %v675_v1 }
  0x3f   :  { %v407_v30 = vadd.f32 %v343_v12, %v279_v18  ;;  %v408_v31 = vadd.f32 %v344_v13, %v280_v19  ;;  %v283_v32 = vadd.f32 %v683_v5, %v212_v22  ;;  %v284_v33 = vadd.f32 %v683_v5, %v213_v23 }
  0x40   :  { %v409_v36 = vadd.f32 %v345_v20, %v281_v24  ;;  %v410_v37 = vadd.f32 %v346_v21, %v282_v25  ;;  %v285_v38 = vadd.f32 %v683_v5, %v214_v28  ;;  %v286_v1 = vadd.f32 %v683_v5, %v215_v29 }
  0x41   :  { %471 = vst [vmem:[%s1291_s4 + $0x1c0] sm:$0xff] %v407_v30  ;;  %472 = vst [vmem:[%s1291_s4 + $0x1c8] sm:$0xff] %v408_v31  ;;  %v411_v39 = vadd.f32 %v347_v26, %v283_v32  ;;  %v412_v40 = vadd.f32 %v348_v27, %v284_v33 }
  0x42   :  { %473 = vst [vmem:[%s1291_s4 + $0x1d0] sm:$0xff] %v409_v36  ;;  %474 = vst [vmem:[%s1291_s4 + $0x1d8] sm:$0xff] %v410_v37  ;;  %v413_v41 = vadd.f32 %v349_v34, %v285_v38  ;;  %v414_v5 = vadd.f32 %v350_v35, %v286_v1 }
  0x43   :  { %475 = vst [vmem:[%s1291_s4 + $0x1e0] sm:$0xff] %v411_v39  ;;  %476 = vst [vmem:[%s1291_s4 + $0x1e8] sm:$0xff] %v412_v40 }
  0x44   :  { %477 = vst [vmem:[%s1291_s4 + $0x1f0] sm:$0xff] %v413_v41  ;;  %478 = vst [vmem:[%s1291_s4 + $0x1f8] sm:$0xff] %v414_v5 }

// kernel: resnet_block_forward.3
= control target key start
LH: loop header
LB: loop body
LE: loop exit
PB: predicated region body
PF: predicated region fallthrough
CT: control target
= control target key end

     0   :  { %s8877_s21 = smov 0   ;;  %s8879_s22 = smov 0   ;;  %s10337_s0 = inlined_call_operand.vmem [shape: bf16[2,16,16,128], index: 0, kind: input, shape index: {}]   ;;  %s10338_s1 = inlined_call_operand.vmem [shape: bf16[9,128,128], index: 1, kind: input, shape index: {}]   ;;  %s10339_s2 = inlined_call_operand.vmem [shape: f32[1,128], index: 2, kind: input, shape index: {}, may-alias: {2,3,4}]   ;;  %s10340_s3 = inlined_call_operand.vmem [shape: f32[1,128], index: 3, kind: input, shape index: {}, may-alias: {2,3,4}]   ;;  %s10341_s4 = inlined_call_operand.vmem [shape: f32[1,128], index: 4, kind: input, shape index: {}, may-alias: {2,3,4}]   ;;  %s10342_s5 = inlined_call_operand.vmem [shape: bf16[2,16,16,128], index: 5, kind: output, shape index: {0}]   ;;  %s10343_s6 = inlined_call_operand.vmem [shape: f32[2,1,2,128], index: 6, kind: output, shape index: {1}]  }
   0x1   :  { %s8881_s23 = smov 0  }
   0x2 LB: > { %s29_s3 = sadd.s32 1, %s8836_s22  ;;  %p7142_p0 = scmp.ge.s32.totalorder %s8840_s23, 1  ;;  %s8840_s23 = sphi %s8881_s23, %s17_s23   ;;  %s8836_s22 = sphi %s8879_s22, %s10357_s22   ;;  %s8832_s21 = sphi %s8877_s21, %s10356_s21  }
   0x3   : > { %p31_p1 = scmp.ge.s32.totalorder %s29_s3, 2  ;;  %p231_p2 = scmp.lt.s32.totalorder %s8840_s23, 3 }
   0x5   : > { %s10359_s3 = smov (%p31_p1, %s29_s3), 0  ;;  %p232_p3 = pnand %p7142_p0, %p231_p2 }
   0x6   : > { %v8688_v0 = vld [vmem:[%s10338_s1] sm:$0xff] (!%p232_p3)   ;;  %v8689_v1 = vld [vmem:[%s10338_s1 + $0x8] sm:$0xff] (!%p232_p3)   ;;  %p273_p4 = scmp.lt.s32.totalorder (!%p232_p3), %s8832_s21, 1  ;;  %v8690_v3 = vld [vmem:[%s10338_s1 + $0x10] sm:$0xff] (!%p232_p3)   ;;  %vm657_vm0 = vcmask (!%p232_p3), 1043456   ;;  %vm664_vm3 = vcmask (!%p232_p3), 1040384  }
   0x7   : > { %235 = sbr.rel (%p232_p3) target bundleno = 670 (0x29e), region = 40  ;;  %7960 = vmatprep.subr.bf16.mxu1 (!%p232_p3), %v8688_v0  ;;  %v8691_v2 = vld [vmem:[%s10338_s1 + $0x100] sm:$0xff] (!%p232_p3)   ;;  %v8693_v4 = vld [vmem:[%s10338_s1 + $0x108] sm:$0xff] (!%p232_p3)   ;;  %v8695_v5 = vld [vmem:[%s10338_s1 + $0x110] sm:$0xff] (!%p232_p3)   ;;  %vm333_vm1 = vsmask.f32 (!%p232_p3), 256 }
   0x8   : > { %7961 = vmatpush3.bf16.msra.mxu1 (!%p232_p3), %v8688_v0  ;;  %8152 = vmatprep.subr.bf16.mxu0 (!%p232_p3), %v8691_v2  ;;  %v8692_v6 = vld [vmem:[%s10338_s1 + $0x18] sm:$0xff] (!%p232_p3)   ;;  %v8694_v8 = vld [vmem:[%s10338_s1 + $0x20] sm:$0xff] (!%p232_p3)   ;;  %vm334_vm2 = vsmask.f32 (!%p232_p3), 4368  ;;  %vm658_vm4 = vsmask.f32 (!%p232_p3), 7938  ;;  %vm8962_vm7 = vmand (!%p232_p3), %vm664_vm3, %vm333_vm1 }
   0x9   : > { %7962 = vmatprep.subr.bf16.mxu1 (!%p232_p3), %v8689_v1  ;;  %8153 = vmatpush3.bf16.msra.mxu0 (!%p232_p3), %v8691_v2  ;;  %v8697_v7 = vld [vmem:[%s10338_s1 + $0x118] sm:$0xff] (!%p232_p3)   ;;  %v8699_v9 = vld [vmem:[%s10338_s1 + $0x120] sm:$0xff] (!%p232_p3)   ;;  %v8696_v12 = vld [vmem:[%s10338_s1 + $0x28] sm:$0xff] (!%p232_p3)   ;;  %vm1570_vm9 = vsmask.f32 (!%p232_p3), 3328  ;;  %vm2439_vm12 = vcmask (!%p232_p3), 1042432  }
   0xa   : > { %8154 = vmatprep.subr.bf16.mxu0 (!%p232_p3), %v8693_v4  ;;  %v808_v17 = vld [vmem:[#allocation2] sm:$0xf] (!%p232_p3)  ;;  %v812_v18 = vld [vmem:[#allocation2 + $0x8] sm:$0x1] (!%p232_p3)  ;;  %v8698_v20 = vld [vmem:[%s10338_s1 + $0x30] sm:$0xff] (!%p232_p3)   ;;  %vm2440_vm13 = vcmask (!%p232_p3), 1046532  }
   0xb   : > { %v8701_v25 = vld [vmem:[%s10338_s1 + $0x128] sm:$0xff] (!%p232_p3)   ;;  %vm8950_vm5 = vmand (!%p232_p3), %vm657_vm0, %vm658_vm4  ;;  %v8704_v42 = vld [vmem:[%s10338_s1 + $0x130] sm:$0xff] (!%p232_p3)   ;;  %vm1571_vm10 = vsmask.f32 (!%p232_p3), 7440 }
   0xc   : > { %7963 = vmatpush3.bf16.msra.mxu1 (!%p232_p3), %v8689_v1  ;;  %vm8956_vm6 = vmor (!%p232_p3), %vm333_vm1, %vm334_vm2  ;;  %v660_v35 = vld [vmem:[#allocation2 + $0xc] sm:$0xf] (!%p232_p3)  ;;  %v8700_v51 = vld [vmem:[%s10338_s1 + $0x38] sm:$0xff] (!%p232_p3)  }
   0xd   : > { %7964 = vmatprep.subr.bf16.mxu1 (!%p232_p3), %v8690_v3  ;;  %8155 = vmatpush3.bf16.msra.mxu0 (!%p232_p3), %v8693_v4  ;;  %v8705_v58 = vld [vmem:[%s10338_s1 + $0x138] sm:$0xff] (!%p232_p3)   ;;  %v676_v2 = vld [vmem:[#allocation2 + $0x24] sm:$0xf] (!%p232_p3)  ;;  %vm9021_vm8 = vmand (!%p232_p3), %vm664_vm3, %vm658_vm4 }
   0xe   : > { %s10361_s21 = smov (!%p273_p4, %s8832_s21), 1  ;;  %8156 = vmatprep.subr.bf16.mxu0 %v8695_v5  ;;  %v669_v59 = vld [vmem:[#allocation2 + $0x18] sm:$0xf]  ;;  %v8992_v4 = vld [vmem:[%s10338_s1 + $0x40] sm:$0xff]   ;;  %vm9069_vm11 = vmor %vm1570_vm9, %vm1571_vm10 }
   0xf   : > { %s7615_s13 = sshll.u32 %s10361_s21, 7  ;;  %vm9283_vm14 = vmor %vm2439_vm12, %vm2440_vm13 }
  0x10   : > { %7965 = vmatpush3.bf16.msra.mxu1 %v8690_v3  ;;  %s8930_s20 = scalar_lea.vmem %s10337_s0, %s7615_s13  ;;  %s10227_s7 = scalar_lea.vmem %s10342_s5, %s7615_s13 }
  0x11   : > { %7966 = vmatprep.subr.bf16.mxu1 %v8692_v6  ;;  %8157 = vmatpush3.bf16.msra.mxu0 %v8695_v5  ;;  %v7148_v10 = vld [vmem:[%s8930_s20 + $0x8] sm:$0xf]  ;;  %v7149_v11 = vld [vmem:[%s8930_s20 + $0xc] sm:$0xf]  ;;  %v301_v19 = vld [vmem:[%s8930_s20] sm:$0xf] }
  0x12   : > { %8158 = vmatprep.subr.bf16.mxu0 %v8697_v7  ;;  %v789_v13 = vshrl.u32 %v7148_v10, 16  ;;  %v792_v14 = vshll.u32 %v7148_v10, 16  ;;  %v797_v15 = vshrl.u32 %v7149_v11, 16  ;;  %v800_v16 = vshll.u32 %v7149_v11, 16  ;;  %v302_v23 = vld [vmem:[%s8930_s20 + $0x4] sm:$0xf] }
  0x13   : > { %v337_v24 = vshrl.u32 %v301_v19, 16  ;;  %v340_v27 = vshll.u32 %v301_v19, 16  ;;  %v345_v28 = vshrl.u32 %v302_v23, 16  ;;  %v348_v29 = vshll.u32 %v302_v23, 16  ;;  %v303_v43 = vld [vmem:[%s8930_s20 + $0x8] sm:$0xf] }
  0x14   : > { %7967 = vmatpush3.bf16.msra.mxu1 %v8692_v6  ;;  %v791_v21 = vrot.slane %v789_v13, 7  ;;  %v799_v22 = vrot.slane %v797_v15, 7  ;;  %v304_v44 = vld [vmem:[%s8930_s20 + $0xc] sm:$0xf]  ;;  %v305_v49 = vld [vmem:[%s8930_s20 + $0x10] sm:$0xf] }
  0x15   : > { %7968 = vmatprep.subr.bf16.mxu1 %v8694_v8  ;;  %8159 = vmatpush3.bf16.msra.mxu0 %v8697_v7  ;;  %v339_v37 = vrot.slane %v337_v24, 7  ;;  %v347_v38 = vrot.slane %v345_v28, 7  ;;  %v306_v50 = vld [vmem:[%s8930_s20 + $0x14] sm:$0xf]  ;;  %v354_v52 = vshrl.u32 %v303_v43, 16  ;;  %v357_v53 = vshll.u32 %v303_v43, 16 }
  0x16   : > { %8160 = vmatprep.subr.bf16.mxu0 %v8699_v9  ;;  %v794_v31 = vor.u32 %v792_v14, %v791_v21  ;;  %v795_v32 = vrot.slane %v791_v21, 4  ;;  %v802_v33 = vor.u32 %v800_v16, %v799_v22  ;;  %v804_v34 = vrot.slane %v799_v22, 4  ;;  %v666_v5 = vld [vmem:[#allocation2 + $0x14] sm:$0x1]  ;;  %v673_v10 = vld [vmem:[#allocation2 + $0x20] sm:$0x1] }
  0x17   : > { %v342_v45 = vor.u32 %v340_v27, %v339_v37  ;;  %v343_v46 = vrot.slane %v339_v37, 4  ;;  %v350_v47 = vor.u32 %v348_v29, %v347_v38  ;;  %v352_v48 = vrot.slane %v347_v38, 4  ;;  %v9010_v23 = vld [vmem:[%s10338_s1 + $0x140] sm:$0xff]   ;;  %v307_v24 = vld [vmem:[%s8930_s20 + $0x18] sm:$0xf]  ;;  %s7147_s13 = sshll.u32 %s10361_s21, 1 }
  0x18   : > { %7969 = vmatpush3.bf16.msra.mxu1 %v8694_v8  ;;  %v803_v39 = vsel %vm8956_vm6, %v795_v32, %v802_v33  ;;  %v809_v40 = vsel %vm8950_vm5, %v794_v31, %v808_v17  ;;  %v813_v41 = vsel %vm8962_vm7, %v804_v34, %v812_v18  ;;  %v362_v54 = vshrl.u32 %v304_v44, 16  ;;  %v683_v37 = vld [vmem:[#allocation2 + $0x30] sm:$0xf]  ;;  %s295_s10 = scalar_lea.vmem %s10343_s6, %s7147_s13 }
  0x19   : > { %7970 = vmatprep.subr.bf16.mxu1 %v8696_v12  ;;  %8161 = vmatpush3.bf16.msra.mxu0 %v8699_v9  ;;  %810 = vst [vmem:[#allocation2] sm:$0xf] %v809_v40  ;;  %811 = vst [vmem:[#allocation2 + $0x4] sm:$0xf] %v803_v39  ;;  %v365_v55 = vshll.u32 %v304_v44, 16  ;;  %v351_v56 = vsel %vm8956_vm6, %v343_v46, %v350_v47  ;;  %v661_v57 = vsel %vm8950_vm5, %v342_v45, %v660_v35 }
  0x1a   : > { %8162 = vmatprep.subr.bf16.mxu0 %v8701_v25  ;;  %814 = vst [vmem:[#allocation2 + $0x8] sm:$0x1] %v813_v41  ;;  %v371_v60 = vshrl.u32 %v305_v49, 16  ;;  %v374_v61 = vshll.u32 %v305_v49, 16  ;;  %662 = vst [vmem:[#allocation2 + $0xc] sm:$0xf] %v661_v57  ;;  %v667_v14 = vsel %vm8962_vm7, %v352_v48, %v666_v5 }
  0x1b   : > { %663 = vst [vmem:[#allocation2 + $0x10] sm:$0xf] %v351_v56  ;;  %v356_v62 = vrot.slane %v354_v52, 7  ;;  %v364_v63 = vrot.slane %v362_v54, 7  ;;  %v379_v0 = vshrl.u32 %v306_v50, 16  ;;  %v382_v1 = vshll.u32 %v306_v50, 16 }
  0x1c   : > { %7971 = vmatpush3.bf16.msra.mxu1 %v8696_v12  ;;  %v373_v3 = vrot.slane %v371_v60, 7  ;;  %668 = vst [vmem:[#allocation2 + $0x14] sm:$0x1] %v667_v14  ;;  %v388_v27 = vshrl.u32 %v307_v24, 16  ;;  %v391_v28 = vshll.u32 %v307_v24, 16 }
  0x1d   : > { %7972 = vmatprep.subr.bf16.mxu1 %v8698_v20  ;;  %8163 = vmatpush3.bf16.msra.mxu0 %v8701_v25  ;;  %v359_v6 = vor.u32 %v357_v53, %v356_v62  ;;  %v360_v7 = vrot.slane %v356_v62, 4  ;;  %v367_v8 = vor.u32 %v365_v55, %v364_v63  ;;  %v369_v9 = vrot.slane %v364_v63, 4  ;;  %v308_v25 = vld [vmem:[%s8930_s20 + $0x1c] sm:$0xf]  ;;  %v309_v47 = vld [vmem:[%s8930_s20 + $0x20] sm:$0xf] }
  0x1e   : > { %8164 = vmatprep.subr.bf16.mxu0 %v8704_v42  ;;  %v376_v11 = vor.u32 %v374_v61, %v373_v3  ;;  %v377_v12 = vrot.slane %v373_v3, 4  ;;  %v8994_v13 = vrot.slane %v379_v0, 7  ;;  %v396_v29 = vshrl.u32 %v308_v25, 16  ;;  %v9039_v60 = vld [vmem:[%s8930_s20 + $0x24] sm:$0xf] }
  0x1f   : > { %v368_v17 = vsel %vm8956_vm6, %v360_v7, %v367_v8  ;;  %v670_v18 = vsel %vm8950_vm5, %v359_v6, %v669_v59  ;;  %v674_v19 = vsel %vm8962_vm7, %v369_v9, %v673_v10  ;;  %v399_v31 = vshll.u32 %v308_v25, 16  ;;  %v690_v3 = vld [vmem:[#allocation2 + $0x3c] sm:$0xf] }
  0x20   : > { %7973 = vmatpush3.bf16.msra.mxu1 %v8698_v20  ;;  %v848_v15 = vld [vmem:[#allocation2] sm:$0x2]  ;;  %v938_v16 = vld [vmem:[#allocation2] sm:$0x1]  ;;  %671 = vst [vmem:[#allocation2 + $0x18] sm:$0xf] %v670_v18  ;;  %v384_v21 = vor.u32 %v382_v1, %v8994_v13  ;;  %v677_v22 = vsel %vm8950_vm5, %v376_v11, %v676_v2 }
  0x21   : > { %7974 = vmatprep.subr.bf16.mxu1 %v8700_v51  ;;  %8165 = vmatpush3.bf16.msra.mxu0 %v8704_v42  ;;  %v7152_v20 = vrot.slane %v848_v15, 9  ;;  %672 = vst [vmem:[#allocation2 + $0x1c] sm:$0xf] %v368_v17  ;;  %675 = vst [vmem:[#allocation2 + $0x20] sm:$0x1] %v674_v19  ;;  %v390_v41 = vrot.slane %v388_v27, 7 }
  0x22   : > { %8166 = vmatprep.subr.bf16.mxu0 %v8705_v58  ;;  %678 = vst [vmem:[#allocation2 + $0x24] sm:$0xf] %v677_v22  ;;  %v849_v33 = vld [vmem:[#allocation2 + $0xc] sm:$0x2]  ;;  %v941_v34 = vld [vmem:[#allocation2 + $0xc] sm:$0x1]  ;;  %v385_v35 = vsel %vm8956_vm6, %v377_v12, %v384_v21 }
  0x23   : > { %v939_v32 = vsel %vm8962_vm7, %v7152_v20, %v938_v16  ;;  %v7153_v38 = vrot.slane %v849_v33, 9  ;;  %679 = vst [vmem:[#allocation2 + $0x28] sm:$0xf] %v385_v35  ;;  %v993_v39 = vld [vmem:[#allocation2 + $0x10] sm:$0x8]  ;;  %v9026_v46 = vrot.slane %v396_v29, 7  ;;  %v393_v49 = vor.u32 %v391_v28, %v390_v41 }
  0x24   : > { %7975 = vmatpush3.bf16.msra.mxu1 %v8700_v51  ;;  %940 = vst [vmem:[#allocation2] sm:$0x1] %v939_v32  ;;  %v3391_v40 = vld [vmem:[#allocation2 + $0x10] sm:$0xf]  ;;  %v7171_v43 = vrot.slane %v993_v39, 11  ;;  %v394_v50 = vrot.slane %v390_v41, 4 }
  0x25   : > { %8008 = vmatprep.subr.bf16.mxu1 %v8992_v4  ;;  %8167 = vmatpush3.bf16.msra.mxu0 %v8705_v58  ;;  %v3448_v44 = vshll.u32 %v3391_v40, 16  ;;  %v3452_v45 = vshrl.u32 %v3391_v40, 16  ;;  %v942_v48 = vsel %vm8962_vm7, %v7153_v38, %v941_v34  ;;  %v405_v51 = vshrl.u32 %v309_v47, 16  ;;  %v1086_v52 = vld [vmem:[#allocation2 + $0x14] sm:$0x1]  ;;  %v8713_v17 = vld [vmem:[%s10338_s1 + $0x48] sm:$0xff]  }
  0x26   : > { %8200 = vmatprep.subr.bf16.mxu0 %v9010_v23  ;;  %943 = vst [vmem:[#allocation2 + $0xc] sm:$0x1] %v942_v48  ;;  %v401_v55 = vor.u32 %v399_v31, %v9026_v46  ;;  %v1087_v58 = vsel %vm9021_vm8, %v7171_v43, %v1086_v52  ;;  %v684_v59 = vsel %vm8950_vm5, %v393_v49, %v683_v37  ;;  %v408_v8 = vshll.u32 %v309_v47, 16  ;;  %v680_v33 = vld [vmem:[#allocation2 + $0x2c] sm:$0x1] }
  0x27   : > { %v9031_v53 = vrot.slane %v3448_v44, 5  ;;  %v3454_v54 = vrot.slane %v3452_v45, 4  ;;  %v850_v56 = vld [vmem:[#allocation2 + $0x18] sm:$0x2]  ;;  %v944_v57 = vld [vmem:[#allocation2 + $0x18] sm:$0x1] }
  0x28   : > { %v7154_v61 = vrot.slane %v850_v56, 9  ;;  %1088 = vst [vmem:[#allocation2 + $0x14] sm:$0x1] %v1087_v58  ;;  %v402_v1 = vsel %vm8956_vm6, %v394_v50, %v401_v55  ;;  %685 = vst [vmem:[#allocation2 + $0x30] sm:$0xf] %v684_v59  ;;  %v9044_v2 = vrot.slane %v405_v51, 7 }
  0x29   : > { %v851_v62 = vld [vmem:[#allocation2 + $0x24] sm:$0x2]  ;;  %v947_v63 = vld [vmem:[#allocation2 + $0x24] sm:$0x1]  ;;  %v3455_v0 = vor.u32 %v3454_v54, %v9031_v53  ;;  %v994_v6 = vld [vmem:[#allocation2 + $0x1c] sm:$0x8] }
  0x2a   : > { %v7155_v5 = vrot.slane %v851_v62, 9  ;;  %v1089_v7 = vld [vmem:[#allocation2 + $0x20] sm:$0x1]  ;;  %686 = vst [vmem:[#allocation2 + $0x34] sm:$0xf] %v402_v1  ;;  %v945_v10 = vsel %vm8962_vm7, %v7154_v61, %v944_v57  ;;  %v386_v11 = vrot.slane %v8994_v13, 4  ;;  %v410_v16 = vor.u32 %v408_v8, %v9044_v2 }
  0x2b   : > { %v8702_v9 = vld [vmem:[#allocation2] sm:$0xff]   ;;  %946 = vst [vmem:[#allocation2 + $0x18] sm:$0x1] %v945_v10  ;;  %v7172_v14 = vrot.slane %v994_v6, 11  ;;  %v3394_v15 = vld [vmem:[#allocation2 + $0x1c] sm:$0xf] }
  0x2c   : > { %v948_v12 = vsel %vm8962_vm7, %v7155_v5, %v947_v63  ;;  %7976 = vmatprep.mubr.bf16.mxu1 %v8702_v9  ;;  %v3456_v18 = vrot.slane %v3455_v0, 4  ;;  %v3472_v19 = vshll.u32 %v3394_v15, 16  ;;  %v3476_v20 = vshrl.u32 %v3394_v15, 16  ;;  %v3397_v59 = vld [vmem:[#allocation2 + $0x28] sm:$0xf] }
  0x2d   : > { %949 = vst [vmem:[#allocation2 + $0x24] sm:$0x1] %v948_v12  ;;  %v413_v21 = vshrl.u32 %v9039_v60, 16  ;;  %v8703_v13 = vld [vmem:[#allocation2 + $0xc] sm:$0xff]   ;;  %v1090_v24 = vsel %vm9021_vm8, %v7172_v14, %v1089_v7  ;;  %v416_v25 = vshll.u32 %v9039_v60, 16  ;;  %v691_v27 = vsel %vm8950_vm5, %v410_v16, %v690_v3 }
  0x2e   : > { %v3390_v22 = vld [vmem:[#allocation2 + $0xc] sm:$0xf]  ;;  %1091 = vst [vmem:[#allocation2 + $0x20] sm:$0x1] %v1090_v24  ;;  %v9061_v31 = vrot.slane %v3472_v19, 5  ;;  %v3478_v32 = vrot.slane %v3476_v20, 4  ;;  %7977 = vmatmul.mubr.bf16.vlgmr.msra.gmra.mrb[0].mxu1 %v8703_v13  ;;  %v681_v38 = vsel %vm8962_vm7, %v386_v11, %v680_v33 }
  0x2f   : > { %v3439_v28 = vshrl.u32 %v3390_v22, 16  ;;  %v3442_v29 = vshll.u32 %v3390_v22, 16  ;;  %692 = vst [vmem:[#allocation2 + $0x3c] sm:$0xf] %v691_v27  ;;  %v3392_v34 = vld [vmem:[#allocation2 + $0x14] sm:$0x1]  ;;  %8009 = vmatpush3.bf16.msra.mxu1 %v8992_v4 }
  0x30   : > { %v852_v35 = vld [vmem:[#allocation2 + $0x30] sm:$0x2]  ;;  %v950_v37 = vld [vmem:[#allocation2 + $0x30] sm:$0x1]  ;;  %v3458_v41 = vshll.u32 %v3392_v34, 16  ;;  %v3479_v43 = vor.u32 %v3478_v32, %v9061_v31  ;;  %v411_v47 = vrot.slane %v9044_v2, 4  ;;  %8010 = vmatprep.subr.bf16.mxu1 %v8713_v17 }
  0x31   : > { %v3441_v39 = vrot.slane %v3439_v28, 4  ;;  %v3444_v40 = vrot.slane %v3442_v29, 5  ;;  %682 = vst [vmem:[#allocation2 + $0x2c] sm:$0x1] %v681_v38  ;;  %v7156_v45 = vrot.slane %v852_v35, 9  ;;  %v9074_v48 = vrot.slane %v413_v21, 7 }
  0x32   : > { %v8706_v49 = vld [vmem:[#allocation2 + $0x18] sm:$0xff]   ;;  %v3460_v51 = vrot.slane %v3458_v41, 5  ;;  %v995_v4 = vld [vmem:[#allocation2 + $0x28] sm:$0x8]  ;;  %v403_v57 = vrot.slane %v9026_v46, 4  ;;  %v3480_v62 = vrot.slane %v3479_v43, 4 }
  0x33   : > { %v3445_v50 = vor.u32 %v3444_v40, %v3441_v39  ;;  %v3393_v52 = vld [vmem:[#allocation2 + $0x18] sm:$0xf]  ;;  %v951_v58 = vsel %vm8962_vm7, %v7156_v45, %v950_v37  ;;  %7980 = vmatprep.mubr.bf16.mxu1 %v8706_v49  ;;  %v418_v63 = vor.u32 %v416_v25, %v9074_v48  ;;  %8011 = vmatpush3.bf16.msra.mxu1 %v8713_v17  ;;  %v7173_v12 = vrot.slane %v995_v4, 11  ;;  %v9089_v20 = vld [vmem:[#allocation2 + $0x34] sm:$0x8]  ;;  %v8710_v40 = vld [vmem:[%s10338_s1 + $0x148] sm:$0xff]  }
  0x34   : > { %v8707_v54 = vld [vmem:[#allocation2 + $0x24] sm:$0xff]   ;;  %v3463_v55 = vshrl.u32 %v3393_v52, 16  ;;  %v3466_v56 = vshll.u32 %v3393_v52, 16  ;;  %v3461_v61 = vsel %vm9069_vm11, %v3456_v18, %v3460_v51  ;;  %952 = vst [vmem:[#allocation2 + $0x30] sm:$0x1] %v951_v58  ;;  %v3500_v24 = vshrl.u32 %v3397_v59, 16 }
  0x35   : > { %v3446_v60 = vrot.slane %v3445_v50, 4  ;;  %v3396_v0 = vld [vmem:[#allocation2 + $0x24] sm:$0xf]  ;;  %v3395_v1 = vld [vmem:[#allocation2 + $0x20] sm:$0x1]  ;;  %v419_v7 = vsel %vm8956_vm6, %v411_v47, %v418_v63  ;;  %v8718_v27 = vld [vmem:[%s10338_s1 + $0x50] sm:$0xff]  }
  0x36   : > { %v3465_v2 = vrot.slane %v3463_v55, 4  ;;  %v3468_v3 = vrot.slane %v3466_v56, 5  ;;  %v853_v5 = vld [vmem:[#allocation2 + $0x3c] sm:$0x2]  ;;  %v3482_v6 = vshll.u32 %v3395_v1, 16  ;;  %7981 = vmatmul.mubr.bf16.gmra.mrb[4].mxu1 %v8707_v54  ;;  %v3487_v15 = vshrl.u32 %v3396_v0, 16  ;;  %8012 = vmatprep.subr.bf16.mxu1 %v8718_v27 }
  0x37   : > { %v3451_v46 = vsel %vm9069_vm11, %v3446_v60, %v9031_v53  ;;  %v7157_v8 = vrot.slane %v853_v5, 9  ;;  %v953_v9 = vld [vmem:[#allocation2 + $0x3c] sm:$0x1]  ;;  %693 = vst [vmem:[#allocation2 + $0x40] sm:$0xf] %v419_v7  ;;  %v3490_v19 = vshll.u32 %v3396_v0, 16  ;;  %8013 = vmatpush3.bf16.msra.mxu1 %v8718_v27 }
  0x38   : > { %v7364_v10 = vcombine.low %v3451_v46, %v3461_v61  ;;  %v3469_v11 = vor.u32 %v3468_v3, %v3465_v2  ;;  %v1092_v14 = vld [vmem:[#allocation2 + $0x2c] sm:$0x1]  ;;  %v687_v16 = vld [vmem:[#allocation2 + $0x38] sm:$0x1]  ;;  %v3484_v17 = vrot.slane %v3482_v6, 5  ;;  %v3496_v53 = vshll.u32 %v3397_v59, 16 }
  0x39   : > { %v954_v18 = vsel %vm8962_vm7, %v7157_v8, %v953_v9  ;;  %v1093_v13 = vsel %vm9021_vm8, %v7173_v12, %v1092_v14  ;;  %v3489_v22 = vrot.slane %v3487_v15, 4  ;;  %v3400_v25 = vld [vmem:[#allocation2 + $0x34] sm:$0xf]  ;;  %v3492_v29 = vrot.slane %v3490_v19, 5  ;;  %v311_v47 = vld [vmem:[%s8930_s20 + $0x28] sm:$0xf] }
  0x3a   : > { %8168 = vmatprep.mubr.bf16.mxu0 %v7364_v10  ;;  %v3470_v21 = vrot.slane %v3469_v11, 4  ;;  %955 = vst [vmem:[#allocation2 + $0x3c] sm:$0x1] %v954_v18  ;;  %v3485_v28 = vsel %vm9069_vm11, %v3480_v62, %v3484_v17  ;;  %1094 = vst [vmem:[#allocation2 + $0x2c] sm:$0x1] %v1093_v13  ;;  %v9098_v32 = vrot.slane %v3496_v53, 5  ;;  %v688_v33 = vsel %vm8962_vm7, %v403_v57, %v687_v16 }
  0x3b   : > { %v8711_v35 = vld [vmem:[#allocation2 + $0x30] sm:$0xff]   ;;  %v3502_v37 = vrot.slane %v3500_v24, 4  ;;  %689 = vst [vmem:[#allocation2 + $0x38] sm:$0x1] %v688_v33  ;;  %v3520_v38 = vshll.u32 %v3400_v25, 16  ;;  %v3493_v41 = vor.u32 %v3492_v29, %v3489_v22  ;;  %v3524_v45 = vshrl.u32 %v3400_v25, 16 }
  0x3c   : > { %v3475_v34 = vsel %vm9069_vm11, %v3470_v21, %v9061_v31  ;;  %v3399_v43 = vld [vmem:[#allocation2 + $0x30] sm:$0xf]  ;;  %7984 = vmatprep.mubr.bf16.mxu1 %v8711_v35  ;;  %v420_v49 = vrot.slane %v9074_v48, 4  ;;  %v7174_v31 = vrot.slane %v9089_v20, 11  ;;  %v312_v52 = vld [vmem:[%s8930_s20 + $0x2c] sm:$0xf] }
  0x3d   : > { %v7365_v39 = vcombine.low %v3475_v34, %v3485_v28  ;;  %v3511_v50 = vshrl.u32 %v3399_v43, 16  ;;  %v3514_v51 = vshll.u32 %v3399_v43, 16  ;;  %v3503_v4 = vor.u32 %v3502_v37, %v9098_v32  ;;  %v8714_v54 = vld [vmem:[%s10338_s1 + $0x150] sm:$0xff]   ;;  %v697_v61 = vld [vmem:[#allocation2 + $0x48] sm:$0xf]  ;;  %v8723_v1 = vld [vmem:[%s10338_s1 + $0x58] sm:$0xff]  }
  0x3e   : > { %v9116_v55 = vrot.slane %v3520_v38, 5  ;;  %v422_v56 = vshrl.u32 %v311_v47, 16  ;;  %v425_v57 = vshll.u32 %v311_v47, 16  ;;  %v3494_v48 = vrot.slane %v3493_v41, 4  ;;  %8014 = vmatprep.subr.bf16.mxu1 %v8723_v1  ;;  %v8715_v12 = vld [vmem:[%s10338_s1 + $0x158] sm:$0xff]   ;;  %v8728_v53 = vld [vmem:[%s10338_s1 + $0x60] sm:$0xff]  }
  0x3f   : > { %8169 = vmatmul.mubr.bf16.vlgmr.msra.gmra.mrb[0].mxu0 %v7365_v39  ;;  %v9119_v58 = vrot.slane %v3511_v50, 4  ;;  %v9121_v59 = vrot.slane %v3524_v45, 4  ;;  %v430_v60 = vshrl.u32 %v312_v52, 16  ;;  %v433_v0 = vshll.u32 %v312_v52, 16  ;;  %v314_v15 = vld [vmem:[%s8930_s20 + $0x34] sm:$0xf]  ;;  %8015 = vmatpush3.bf16.msra.mxu1 %v8723_v1 }
  0x40   : > { %8201 = vmatpush3.bf16.msra.mxu0 %v9010_v23  ;;  %v424_v63 = vrot.slane %v422_v56, 7  ;;  %v3516_v3 = vrot.slane %v3514_v51, 5  ;;  %v313_v23 = vld [vmem:[%s8930_s20 + $0x30] sm:$0xf]  ;;  %v3504_v46 = vrot.slane %v3503_v4, 4  ;;  %v3499_v10 = vsel %vm9069_vm11, %v3494_v48, %v9098_v32  ;;  %v8719_v34 = vld [vmem:[%s10338_s1 + $0x160] sm:$0xff]   ;;  %8016 = vmatprep.subr.bf16.mxu1 %v8728_v53 }
  0x41   : > { %8202 = vmatprep.subr.bf16.mxu0 %v8710_v40  ;;  %v8712_v62 = vld [vmem:[#allocation2 + $0x3c] sm:$0xff]   ;;  %v3398_v2 = vld [vmem:[#allocation2 + $0x2c] sm:$0x1]  ;;  %v9126_v5 = vrot.slane %v430_v60, 7  ;;  %v439_v18 = vshrl.u32 %v313_v23, 16  ;;  %v442_v19 = vshll.u32 %v313_v23, 16  ;;  %v3527_v27 = vor.u32 %v9121_v59, %v9116_v55 }
  0x42   : > { %7985 = vmatmul.mubr.bf16.gmra.mrb[8].mxu1 %v8712_v62  ;;  %v3506_v6 = vshll.u32 %v3398_v2, 16  ;;  %v1095_v7 = vld [vmem:[#allocation2 + $0x38] sm:$0x1]  ;;  %v427_v8 = vor.u32 %v425_v57, %v424_v63  ;;  %v428_v9 = vrot.slane %v424_v63, 4  ;;  %v3517_v20 = vor.u32 %v3516_v3, %v9119_v58  ;;  %v694_v24 = vld [vmem:[#allocation2 + $0x44] sm:$0x1] }
  0x43   : > { %v1096_v11 = vsel %vm9021_vm8, %v7174_v31, %v1095_v7  ;;  %v435_v14 = vor.u32 %v433_v0, %v9126_v5  ;;  %v447_v13 = vshrl.u32 %v314_v15, 16  ;;  %v450_v22 = vshll.u32 %v314_v15, 16  ;;  %v704_v29 = vld [vmem:[#allocation2 + $0x54] sm:$0xf]  ;;  %v3402_v33 = vld [vmem:[#allocation2 + $0x3c] sm:$0xf]  ;;  %8017 = vmatpush3.bf16.msra.mxu1 %v8728_v53 }
  0x44   : > { %8203 = vmatpush3.bf16.msra.mxu0 %v8710_v40  ;;  %v3508_v16 = vrot.slane %v3506_v6, 5  ;;  %1097 = vst [vmem:[#allocation2 + $0x38] sm:$0x1] %v1096_v11  ;;  %v698_v17 = vsel %vm8950_vm5, %v427_v8, %v697_v61  ;;  %v441_v28 = vrot.slane %v439_v18, 7  ;;  %v695_v32 = vsel %vm8962_vm7, %v420_v49, %v694_v24  ;;  %v3403_v39 = vld [vmem:[#allocation2 + $0x40] sm:$0xf] }
  0x45   : > { %8204 = vmatprep.subr.bf16.mxu0 %v8714_v54  ;;  %v436_v21 = vsel %vm8956_vm6, %v428_v9, %v435_v14  ;;  %699 = vst [vmem:[#allocation2 + $0x48] sm:$0xf] %v698_v17  ;;  %v437_v37 = vrot.slane %v9126_v5, 4  ;;  %v9157_v38 = vrot.slane %v447_v13, 7  ;;  %696 = vst [vmem:[#allocation2 + $0x44] sm:$0x1] %v695_v32 }
  0x46   : > { %v3509_v25 = vsel %vm9069_vm11, %v3504_v46, %v3508_v16  ;;  %700 = vst [vmem:[#allocation2 + $0x4c] sm:$0xf] %v436_v21  ;;  %v3535_v40 = vshrl.u32 %v3402_v33, 16  ;;  %v8732_v41 = vld [vmem:[%s10338_s1 + $0x68] sm:$0xff]   ;;  %v444_v43 = vor.u32 %v442_v19, %v441_v28  ;;  %v445_v45 = vrot.slane %v441_v28, 4  ;;  %v8736_v4 = vld [vmem:[%s10338_s1 + $0x70] sm:$0xff]  }
  0x47   : > { %v7366_v35 = vcombine.low %v3499_v10, %v3509_v25  ;;  %v997_v47 = vld [vmem:[#allocation2 + $0x40] sm:$0x8]  ;;  %v3538_v49 = vshll.u32 %v3402_v33, 16  ;;  %v3518_v31 = vrot.slane %v3517_v20, 4  ;;  %v452_v50 = vor.u32 %v450_v22, %v9157_v38  ;;  %8018 = vmatprep.subr.bf16.mxu1 %v8732_v41  ;;  %v701_v48 = vld [vmem:[#allocation2 + $0x50] sm:$0x1] }
  0x48   : > { %8205 = vmatpush3.bf16.msra.mxu0 %v8714_v54  ;;  %v3537_v51 = vrot.slane %v3535_v40, 4  ;;  %v3544_v52 = vshll.u32 %v3403_v39, 16  ;;  %v705_v54 = vsel %vm8950_vm5, %v444_v43, %v704_v29  ;;  %v3548_v57 = vshrl.u32 %v3403_v39, 16  ;;  %v8720_v58 = vld [vmem:[%s10338_s1 + $0x168] sm:$0xff]   ;;  %8019 = vmatpush3.bf16.msra.mxu1 %v8732_v41  ;;  %v8738_v5 = vld [vmem:[%s10338_s1 + $0x78] sm:$0xff]   ;;  %v8740_v21 = vld [vmem:[%s10338_s1 + $0x80] sm:$0xff]  }
  0x49   : > { %8206 = vmatprep.subr.bf16.mxu0 %v8715_v12  ;;  %8172 = vmatprep.mubr.bf16.mxu0 %v7366_v35  ;;  %v3540_v56 = vrot.slane %v3538_v49, 5  ;;  %v3528_v60 = vrot.slane %v3527_v27, 4  ;;  %v453_v61 = vsel %vm8956_vm6, %v445_v45, %v452_v50  ;;  %706 = vst [vmem:[#allocation2 + $0x54] sm:$0xf] %v705_v54  ;;  %v7175_v62 = vrot.slane %v997_v47, 11  ;;  %v8724_v28 = vld [vmem:[%s10338_s1 + $0x170] sm:$0xff]  }
  0x4a   : > { %v702_v63 = vsel %vm8962_vm7, %v437_v37, %v701_v48  ;;  %707 = vst [vmem:[#allocation2 + $0x58] sm:$0xf] %v453_v61  ;;  %8020 = vmatprep.subr.bf16.mxu1 %v8736_v4  ;;  %v3523_v6 = vsel %vm9069_vm11, %v3518_v31, %v9116_v55  ;;  %v9181_v9 = vrot.slane %v3544_v52, 5  ;;  %v3550_v10 = vrot.slane %v3548_v57, 4  ;;  %v315_v17 = vld [vmem:[%s8930_s20 + $0x38] sm:$0xf] }
  0x4b   : > { %v3401_v59 = vld [vmem:[#allocation2 + $0x38] sm:$0x1]  ;;  %v3541_v3 = vor.u32 %v3540_v56, %v3537_v51  ;;  %703 = vst [vmem:[#allocation2 + $0x50] sm:$0x1] %v702_v63  ;;  %v316_v20 = vld [vmem:[%s8930_s20 + $0x3c] sm:$0xf] }
  0x4c   : > { %8207 = vmatpush3.bf16.msra.mxu0 %v8715_v12  ;;  %v3530_v0 = vshll.u32 %v3401_v59, 16  ;;  %v854_v1 = vld [vmem:[#allocation2 + $0x48] sm:$0x2]  ;;  %v956_v2 = vld [vmem:[#allocation2 + $0x48] sm:$0x1]  ;;  %v454_v12 = vrot.slane %v9157_v38, 4  ;;  %8021 = vmatpush3.bf16.msra.mxu1 %v8736_v4  ;;  %v3551_v33 = vor.u32 %v3550_v10, %v9181_v9 }
  0x4d   : > { %8208 = vmatprep.subr.bf16.mxu0 %v8719_v34  ;;  %v7158_v23 = vrot.slane %v854_v1, 9  ;;  %v998_v46 = vld [vmem:[#allocation2 + $0x4c] sm:$0x8]  ;;  %v1098_v8 = vld [vmem:[#allocation2 + $0x44] sm:$0x1]  ;;  %v9188_v15 = vrot.slane %v3541_v3, 4  ;;  %8022 = vmatprep.subr.bf16.mxu1 %v8738_v5 }
  0x4e   : > { %v3532_v7 = vrot.slane %v3530_v0, 5  ;;  %v1099_v14 = vsel %vm9021_vm8, %v7175_v62, %v1098_v8  ;;  %v3406_v16 = vld [vmem:[#allocation2 + $0x4c] sm:$0xf]  ;;  %v7176_v18 = vrot.slane %v998_v46, 11  ;;  %v456_v22 = vshrl.u32 %v315_v17, 16  ;;  %v8725_v40 = vld [vmem:[%s10338_s1 + $0x178] sm:$0xff]  }
  0x4f   : > { %v957_v11 = vsel %vm8962_vm7, %v7158_v23, %v956_v2  ;;  %1100 = vst [vmem:[#allocation2 + $0x44] sm:$0x1] %v1099_v14  ;;  %v3568_v19 = vshll.u32 %v3406_v16, 16  ;;  %v3572_v53 = vshrl.u32 %v3406_v16, 16  ;;  %v459_v24 = vshll.u32 %v315_v17, 16  ;;  %v9229_v10 = vld [vmem:[%s10338_s1 + $0x180] sm:$0xff]  }
  0x50   : > { %8209 = vmatpush3.bf16.msra.mxu0 %v8719_v34  ;;  %v3533_v55 = vsel %vm9069_vm11, %v3528_v60, %v3532_v7  ;;  %958 = vst [vmem:[#allocation2 + $0x48] sm:$0x1] %v957_v11  ;;  %v464_v25 = vshrl.u32 %v316_v20, 16  ;;  %v317_v27 = vld [vmem:[%s8930_s20 + $0x40] sm:$0xf]  ;;  %v458_v39 = vrot.slane %v456_v22, 7  ;;  %8023 = vmatpush3.bf16.msra.mxu1 %v8738_v5  ;;  %v3547_v61 = vsel %vm9069_vm11, %v9188_v15, %v9181_v9 }
  0x51   : > { %8210 = vmatprep.subr.bf16.mxu0 %v8720_v58  ;;  %v7367_v13 = vcombine.low %v3523_v6, %v3533_v55  ;;  %v855_v29 = vld [vmem:[#allocation2 + $0x54] sm:$0x2]  ;;  %v959_v32 = vld [vmem:[#allocation2 + $0x54] sm:$0x1]  ;;  %v9202_v34 = vrot.slane %v3568_v19, 5  ;;  %v3574_v35 = vrot.slane %v3572_v53, 4  ;;  %8056 = vmatprep.subr.bf16.mxu1 %v8740_v21 }
  0x52   : > { %v7159_v37 = vrot.slane %v855_v29, 9  ;;  %v1101_v38 = vld [vmem:[#allocation2 + $0x50] sm:$0x1]  ;;  %v9210_v45 = vrot.slane %v464_v25, 7  ;;  %v467_v47 = vshll.u32 %v316_v20, 16  ;;  %v461_v51 = vor.u32 %v459_v24, %v458_v39 }
  0x53   : > { %8173 = vmatmul.mubr.bf16.gmra.mrb[4].mxu0 %v7367_v13  ;;  %v1102_v41 = vsel %vm9021_vm8, %v7176_v18, %v1101_v38  ;;  %v3575_v43 = vor.u32 %v3574_v35, %v9202_v34  ;;  %v711_v49 = vld [vmem:[#allocation2 + $0x60] sm:$0xf]  ;;  %v318_v31 = vld [vmem:[%s8930_s20 + $0x44] sm:$0xf]  ;;  %v462_v52 = vrot.slane %v458_v39, 4  ;;  %v473_v4 = vshrl.u32 %v317_v27, 16 }
  0x54   : > { %8211 = vmatpush3.bf16.msra.mxu0 %v8720_v58  ;;  %v960_v50 = vsel %vm8962_vm7, %v7159_v37, %v959_v32  ;;  %1103 = vst [vmem:[#allocation2 + $0x50] sm:$0x1] %v1102_v41  ;;  %v3552_v54 = vrot.slane %v3551_v33, 4  ;;  %v469_v56 = vor.u32 %v467_v47, %v9210_v45  ;;  %v476_v57 = vshll.u32 %v317_v27, 16  ;;  %v718_v48 = vld [vmem:[#allocation2 + $0x6c] sm:$0xf] }
  0x55   : > { %8212 = vmatprep.subr.bf16.mxu0 %v8724_v28  ;;  %961 = vst [vmem:[#allocation2 + $0x54] sm:$0x1] %v960_v50  ;;  %v708_v58 = vld [vmem:[#allocation2 + $0x5c] sm:$0x1]  ;;  %v712_v62 = vsel %vm8950_vm5, %v461_v51, %v711_v49  ;;  %v475_v63 = vrot.slane %v473_v4, 7  ;;  %v481_v5 = vshrl.u32 %v318_v31, 16 }
  0x56   : > { %v3404_v60 = vld [vmem:[#allocation2 + $0x44] sm:$0x1]  ;;  %v709_v0 = vsel %vm8962_vm7, %v454_v12, %v708_v58  ;;  %v470_v3 = vsel %vm8956_vm6, %v462_v52, %v469_v56  ;;  %713 = vst [vmem:[#allocation2 + $0x60] sm:$0xf] %v712_v62  ;;  %v484_v23 = vshll.u32 %v318_v31, 16  ;;  %v3576_v7 = vrot.slane %v3575_v43, 4 }
  0x57   : > { %v8716_v59 = vld [vmem:[#allocation2 + $0x48] sm:$0xff]   ;;  %v3554_v1 = vshll.u32 %v3404_v60, 16  ;;  %710 = vst [vmem:[#allocation2 + $0x5c] sm:$0x1] %v709_v0  ;;  %714 = vst [vmem:[#allocation2 + $0x64] sm:$0xf] %v470_v3  ;;  %v478_v8 = vor.u32 %v476_v57, %v475_v63 }
  0x58   : > { %v3405_v2 = vld [vmem:[#allocation2 + $0x48] sm:$0xf]  ;;  %8213 = vmatpush3.bf16.msra.mxu0 %v8724_v28  ;;  %7988 = vmatprep.mubr.bf16.mxu1 %v8716_v59  ;;  %v999_v9 = vld [vmem:[#allocation2 + $0x58] sm:$0x8]  ;;  %v471_v12 = vrot.slane %v9210_v45, 4  ;;  %v479_v14 = vrot.slane %v475_v63, 4 }
  0x59   : > { %v3559_v46 = vshrl.u32 %v3405_v2, 16  ;;  %v3562_v6 = vshll.u32 %v3405_v2, 16  ;;  %8214 = vmatprep.subr.bf16.mxu0 %v8725_v40  ;;  %v3556_v11 = vrot.slane %v3554_v1, 5  ;;  %v9232_v15 = vrot.slane %v481_v5, 7  ;;  %v3409_v16 = vld [vmem:[#allocation2 + $0x58] sm:$0xf] }
  0x5a   : > { %v719_v18 = vsel %vm8950_vm5, %v478_v8, %v718_v48  ;;  %v3592_v19 = vshll.u32 %v3409_v16, 16  ;;  %v7177_v13 = vrot.slane %v999_v9, 11  ;;  %v3596_v22 = vshrl.u32 %v3409_v16, 16  ;;  %v715_v38 = vld [vmem:[#allocation2 + $0x68] sm:$0x1] }
  0x5b   : > { %v3561_v17 = vrot.slane %v3559_v46, 4  ;;  %v3564_v55 = vrot.slane %v3562_v6, 5  ;;  %v3557_v53 = vsel %vm9069_vm11, %v3552_v54, %v3556_v11  ;;  %v3407_v20 = vld [vmem:[#allocation2 + $0x50] sm:$0x1]  ;;  %v486_v21 = vor.u32 %v484_v23, %v9232_v15  ;;  %720 = vst [vmem:[#allocation2 + $0x6c] sm:$0xf] %v719_v18 }
  0x5c   : > { %8215 = vmatpush3.bf16.msra.mxu0 %v8725_v40  ;;  %v8717_v24 = vld [vmem:[#allocation2 + $0x54] sm:$0xff]   ;;  %v7368_v25 = vcombine.low %v3547_v61, %v3557_v53  ;;  %v3578_v28 = vshll.u32 %v3407_v20, 16  ;;  %v9242_v37 = vrot.slane %v3592_v19, 5  ;;  %v716_v45 = vsel %vm8962_vm7, %v471_v12, %v715_v38  ;;  %v319_v2 = vld [vmem:[%s8930_s20 + $0x48] sm:$0xf] }
  0x5d   : > { %v3565_v27 = vor.u32 %v3564_v55, %v3561_v17  ;;  %v3408_v29 = vld [vmem:[#allocation2 + $0x54] sm:$0xf]  ;;  %8248 = vmatprep.subr.bf16.mxu0 %v9229_v10  ;;  %v487_v32 = vsel %vm8956_vm6, %v479_v14, %v486_v21  ;;  %7989 = vmatmul.mubr.bf16.gmra.mrb[12].mxu1 %v8717_v24  ;;  %v856_v40 = vld [vmem:[#allocation2 + $0x60] sm:$0x2]  ;;  %v962_v43 = vld [vmem:[#allocation2 + $0x60] sm:$0x1] }
  0x5e   : > { %v3583_v33 = vshrl.u32 %v3408_v29, 16  ;;  %v3586_v35 = vshll.u32 %v3408_v29, 16  ;;  %8176 = vmatprep.mubr.bf16.mxu0 %v7368_v25  ;;  %v3580_v41 = vrot.slane %v3578_v28, 5  ;;  %721 = vst [vmem:[#allocation2 + $0x70] sm:$0xf] %v487_v32  ;;  %v7160_v47 = vrot.slane %v856_v40, 9 }
  0x5f   : > { %v3566_v39 = vrot.slane %v3565_v27, 4  ;;  %v1104_v49 = vld [vmem:[#allocation2 + $0x5c] sm:$0x1]  ;;  %717 = vst [vmem:[#allocation2 + $0x68] sm:$0x1] %v716_v45  ;;  %v3598_v58 = vrot.slane %v3596_v22, 4 }
  0x60   : > { %v3585_v31 = vrot.slane %v3583_v33, 4  ;;  %v3581_v51 = vsel %vm9069_vm11, %v3576_v7, %v3580_v41  ;;  %v1105_v52 = vsel %vm9021_vm8, %v7177_v13, %v1104_v49  ;;  %v3588_v4 = vrot.slane %v3586_v35, 5  ;;  %v1000_v54 = vld [vmem:[#allocation2 + $0x64] sm:$0x8]  ;;  %v320_v3 = vld [vmem:[%s8930_s20 + $0x4c] sm:$0xf] }
  0x61   : > { %v3571_v50 = vsel %vm9069_vm11, %v3566_v39, %v9202_v34  ;;  %v3412_v56 = vld [vmem:[#allocation2 + $0x64] sm:$0xf]  ;;  %v963_v48 = vsel %vm8962_vm7, %v7160_v47, %v962_v43  ;;  %1106 = vst [vmem:[#allocation2 + $0x5c] sm:$0x1] %v1105_v52  ;;  %v3599_v0 = vor.u32 %v3598_v58, %v9242_v37  ;;  %v7178_v1 = vrot.slane %v1000_v54, 11 }
  0x62   : > { %v7369_v57 = vcombine.low %v3571_v50, %v3581_v51  ;;  %964 = vst [vmem:[#allocation2 + $0x60] sm:$0x1] %v963_v48  ;;  %v857_v59 = vld [vmem:[#allocation2 + $0x6c] sm:$0x2]  ;;  %v965_v34 = vld [vmem:[#allocation2 + $0x6c] sm:$0x1]  ;;  %v3589_v60 = vor.u32 %v3588_v4, %v3585_v31 }
  0x63   : > { %v3616_v61 = vshll.u32 %v3412_v56, 16  ;;  %v3620_v62 = vshrl.u32 %v3412_v56, 16  ;;  %v7161_v63 = vrot.slane %v857_v59, 9  ;;  %v490_v6 = vshrl.u32 %v319_v2, 16  ;;  %v725_v11 = vld [vmem:[#allocation2 + $0x78] sm:$0xf] }
  0x64   : > { %8177 = vmatmul.mubr.bf16.gmra.mrb[8].mxu0 %v7369_v57  ;;  %v3590_v5 = vrot.slane %v3589_v60, 4  ;;  %v493_v8 = vshll.u32 %v319_v2, 16  ;;  %v498_v9 = vshrl.u32 %v320_v3, 16  ;;  %v501_v16 = vshll.u32 %v320_v3, 16  ;;  %v321_v17 = vld [vmem:[%s8930_s20 + $0x50] sm:$0xf] }
  0x65   : > { %v9258_v23 = vrot.slane %v3616_v61, 5  ;;  %v3622_v46 = vrot.slane %v3620_v62, 4  ;;  %v966_v7 = vsel %vm8962_vm7, %v7161_v63, %v965_v34  ;;  %v492_v14 = vrot.slane %v490_v6, 7  ;;  %v322_v53 = vld [vmem:[%s8930_s20 + $0x54] sm:$0xf] }
  0x66   : > { %967 = vst [vmem:[#allocation2 + $0x6c] sm:$0x1] %v966_v7  ;;  %v1107_v12 = vld [vmem:[#allocation2 + $0x68] sm:$0x1]  ;;  %v3600_v55 = vrot.slane %v3599_v0, 4  ;;  %v9265_v19 = vrot.slane %v498_v9, 7  ;;  %v3595_v35 = vsel %vm9069_vm11, %v3590_v5, %v9242_v37 }
  0x67   : > { %v1108_v18 = vsel %vm9021_vm8, %v7178_v1, %v1107_v12  ;;  %v507_v20 = vshrl.u32 %v321_v17, 16  ;;  %v495_v13 = vor.u32 %v493_v8, %v492_v14  ;;  %v496_v22 = vrot.slane %v492_v14, 4  ;;  %v732_v40 = vld [vmem:[#allocation2 + $0x84] sm:$0xf]  ;;  %v4208_v34 = vld [vmem:[#allocation2 + $0xc] sm:$0xe] }
  0x68   : > { %v3410_v21 = vld [vmem:[#allocation2 + $0x5c] sm:$0x1]  ;;  %1109 = vst [vmem:[#allocation2 + $0x68] sm:$0x1] %v1108_v18  ;;  %v510_v24 = vshll.u32 %v321_v17, 16  ;;  %v515_v25 = vshrl.u32 %v322_v53, 16  ;;  %v3623_v32 = vor.u32 %v3622_v46, %v9258_v23  ;;  %v503_v33 = vor.u32 %v501_v16, %v9265_v19 }
  0x69   : > { %v8721_v27 = vld [vmem:[#allocation2 + $0x60] sm:$0xff]   ;;  %v3602_v28 = vshll.u32 %v3410_v21, 16  ;;  %v726_v41 = vsel %vm8950_vm5, %v495_v13, %v725_v11  ;;  %v509_v47 = vrot.slane %v507_v20, 7  ;;  %v518_v51 = vshll.u32 %v322_v53, 16  ;;  %v4209_v60 = vld [vmem:[#allocation2 + $0x10] sm:$0xf] }
  0x6a   : > { %v3411_v29 = vld [vmem:[#allocation2 + $0x60] sm:$0xf]  ;;  %7992 = vmatprep.mubr.bf16.mxu1 %v8721_v27  ;;  %v504_v45 = vsel %vm8956_vm6, %v496_v22, %v503_v33  ;;  %727 = vst [vmem:[#allocation2 + $0x78] sm:$0xf] %v726_v41  ;;  %v9277_v49 = vrot.slane %v515_v25, 7  ;;  %v3624_v4 = vrot.slane %v3623_v32, 4 }
  0x6b   : > { %v3607_v38 = vshrl.u32 %v3411_v29, 16  ;;  %v3610_v39 = vshll.u32 %v3411_v29, 16  ;;  %v3604_v43 = vrot.slane %v3602_v28, 5  ;;  %728 = vst [vmem:[#allocation2 + $0x7c] sm:$0xf] %v504_v45  ;;  %v512_v54 = vor.u32 %v510_v24, %v509_v47 }
  0x6c   : > { %v513_v56 = vrot.slane %v509_v47, 4  ;;  %v520_v59 = vor.u32 %v518_v51, %v9277_v49  ;;  %v4210_v61 = vld [vmem:[#allocation2 + $0x14] sm:$0x1]  ;;  %v7388_v0 = vrot.slane %v4208_v34, 9  ;;  %v4306_v1 = vrot.slane %v4209_v60, 5 }
  0x6d   : > { %v3609_v31 = vrot.slane %v3607_v38, 4  ;;  %v3612_v50 = vrot.slane %v3610_v39, 5  ;;  %v8722_v37 = vld [vmem:[#allocation2 + $0x6c] sm:$0xff]   ;;  %v3605_v52 = vsel %vm9069_vm11, %v3600_v55, %v3604_v43  ;;  %v733_v63 = vsel %vm8950_vm5, %v512_v54, %v732_v40  ;;  %v4211_v8 = vld [vmem:[#allocation2 + $0x18] sm:$0xe] }
  0x6e   : > { %v7370_v48 = vcombine.low %v3595_v35, %v3605_v52  ;;  %7993 = vmatmul.mubr.bf16.gmra.mrb[16].mxu1 %v8722_v37  ;;  %v4309_v2 = vrot.slane %v4210_v61, 5  ;;  %v521_v46 = vsel %vm8956_vm6, %v513_v56, %v520_v59  ;;  %734 = vst [vmem:[#allocation2 + $0x84] sm:$0xf] %v733_v63  ;;  %v4307_v6 = vsel %vm9283_vm14, %v7388_v0, %v4306_v1  ;;  %v4212_v9 = vld [vmem:[#allocation2 + $0x1c] sm:$0xf] }
  0x6f   : > { %v3613_v58 = vor.u32 %v3612_v50, %v3609_v31  ;;  %v3413_v62 = vld [vmem:[#allocation2 + $0x68] sm:$0x1]  ;;  %735 = vst [vmem:[#allocation2 + $0x88] sm:$0xf] %v521_v46  ;;  %v4308_v7 = vrot.slane %v4306_v1, 4  ;;  %v7389_v17 = vrot.slane %v4211_v8, 9 }
  0x70   : > { %8180 = vmatprep.mubr.bf16.mxu0 %v7370_v48  ;;  %v3626_v5 = vshll.u32 %v3413_v62, 16  ;;  %v4213_v53 = vld [vmem:[#allocation2 + $0x20] sm:$0x1]  ;;  %v4313_v20 = vrot.slane %v4212_v9, 5  ;;  %v323_v24 = vld [vmem:[%s8930_s20 + $0x58] sm:$0xf] }
  0x71   : > { %v3614_v3 = vrot.slane %v3613_v58, 4  ;;  %v858_v14 = vld [vmem:[#allocation2 + $0x78] sm:$0x2]  ;;  %v968_v16 = vld [vmem:[#allocation2 + $0x78] sm:$0x1]  ;;  %v4310_v18 = vsel %vm9283_vm14, %v4308_v7, %v4309_v2  ;;  %v4316_v22 = vrot.slane %v4213_v53, 5 }
  0x72   : > { %v3628_v12 = vrot.slane %v3626_v5, 5  ;;  %v7162_v55 = vrot.slane %v858_v14, 9  ;;  %v7420_v13 = vcombine.low %v4307_v6, %v4310_v18  ;;  %v324_v25 = vld [vmem:[%s8930_s20 + $0x5c] sm:$0xf]  ;;  %v4315_v28 = vrot.slane %v4313_v20, 4 }
  0x73   : > { %v3619_v11 = vsel %vm9069_vm11, %v3614_v3, %v9258_v23  ;;  %v325_v29 = vld [vmem:[%s8930_s20 + $0x60] sm:$0xf]  ;;  %v524_v32 = vshrl.u32 %v323_v24, 16  ;;  %v527_v33 = vshll.u32 %v323_v24, 16  ;;  %v532_v35 = vshrl.u32 %v324_v25, 16 }
  0x74   : > { %v3629_v21 = vsel %vm9069_vm11, %v3624_v4, %v3628_v12  ;;  %v969_v27 = vsel %vm8962_vm7, %v7162_v55, %v968_v16  ;;  %v535_v38 = vshll.u32 %v324_v25, 16  ;;  %v326_v39 = vld [vmem:[%s8930_s20 + $0x64] sm:$0xf]  ;;  %v4314_v43 = vsel %vm9283_vm14, %v7389_v17, %v4313_v20  ;;  %v739_v45 = vld [vmem:[#allocation2 + $0x90] sm:$0xf]  ;;  %v8733_v12 = vld [vmem:[%s10338_s1 + $0x188] sm:$0xff]  }
  0x75   : > { %v7371_v23 = vcombine.low %v3619_v11, %v3629_v21  ;;  %970 = vst [vmem:[#allocation2 + $0x78] sm:$0x1] %v969_v27  ;;  %v859_v41 = vld [vmem:[#allocation2 + $0x84] sm:$0x2]  ;;  %v971_v40 = vld [vmem:[#allocation2 + $0x84] sm:$0x1]  ;;  %v4317_v51 = vsel %vm9283_vm14, %v4315_v28, %v4316_v22 }
  0x76   : > { %v541_v47 = vshrl.u32 %v325_v29, 16  ;;  %v544_v31 = vshll.u32 %v325_v29, 16  ;;  %v7163_v50 = vrot.slane %v859_v41, 9  ;;  %v526_v37 = vrot.slane %v524_v32, 7  ;;  %v746_v48 = vld [vmem:[#allocation2 + $0x9c] sm:$0xf] }
  0x77   : > { %8181 = vmatmul.mubr.bf16.gmra.mrb[12].mxu0 %v7371_v23  ;;  %v9311_v52 = vrot.slane %v532_v35, 7  ;;  %v549_v54 = vshrl.u32 %v326_v39, 16  ;;  %v552_v56 = vshll.u32 %v326_v39, 16  ;;  %v7421_v61 = vcombine.low %v4314_v43, %v4317_v51  ;;  %v4214_v1 = vld [vmem:[#allocation2 + $0x24] sm:$0xe] }
  0x78   : > { %8216 = vmatprep.mubr.bf16.mxu0 %v7420_v13  ;;  %v543_v4 = vrot.slane %v541_v47, 7  ;;  %v972_v58 = vsel %vm8962_vm7, %v7163_v50, %v971_v40  ;;  %v529_v59 = vor.u32 %v527_v33, %v526_v37  ;;  %v530_v34 = vrot.slane %v526_v37, 4  ;;  %v4215_v5 = vld [vmem:[#allocation2 + $0x28] sm:$0xf]  ;;  %v4216_v46 = vld [vmem:[#allocation2 + $0x2c] sm:$0x1] }
  0x79   : > { %v537_v60 = vor.u32 %v535_v38, %v9311_v52  ;;  %973 = vst [vmem:[#allocation2 + $0x84] sm:$0x1] %v972_v58  ;;  %v9316_v0 = vrot.slane %v549_v54, 7  ;;  %v7390_v6 = vrot.slane %v4214_v1, 9  ;;  %v4320_v11 = vrot.slane %v4215_v5, 5  ;;  %v8737_v38 = vld [vmem:[%s10338_s1 + $0x190] sm:$0xff]  }
  0x7a   : > { %v546_v62 = vor.u32 %v544_v31, %v543_v4  ;;  %v547_v63 = vrot.slane %v543_v4, 4  ;;  %v740_v3 = vsel %vm8950_vm5, %v529_v59, %v739_v45  ;;  %v4323_v14 = vrot.slane %v4216_v46, 5  ;;  %v4217_v18 = vld [vmem:[#allocation2 + $0x30] sm:$0xe]  ;;  %v4218_v53 = vld [vmem:[#allocation2 + $0x34] sm:$0xf] }
  0x7b   : > { %v538_v2 = vsel %vm8956_vm6, %v530_v34, %v537_v60  ;;  %741 = vst [vmem:[#allocation2 + $0x90] sm:$0xf] %v740_v3  ;;  %v554_v8 = vor.u32 %v552_v56, %v9316_v0  ;;  %v4321_v17 = vsel %vm9283_vm14, %v7390_v6, %v4320_v11  ;;  %v4322_v55 = vrot.slane %v4320_v11, 4  ;;  %v4219_v20 = vld [vmem:[#allocation2 + $0x38] sm:$0x1] }
  0x7c   : > { %v8726_v7 = vld [vmem:[#allocation2 + $0x78] sm:$0xff]   ;;  %742 = vst [vmem:[#allocation2 + $0x94] sm:$0xf] %v538_v2  ;;  %v747_v9 = vsel %vm8950_vm5, %v546_v62, %v746_v48  ;;  %v7391_v21 = vrot.slane %v4217_v18, 9  ;;  %v4327_v13 = vrot.slane %v4218_v53, 5  ;;  %v4330_v25 = vrot.slane %v4219_v20, 5 }
  0x7d   : > { %748 = vst [vmem:[#allocation2 + $0x9c] sm:$0xf] %v747_v9  ;;  %7996 = vmatprep.mubr.bf16.mxu1 %v8726_v7  ;;  %v555_v16 = vsel %vm8956_vm6, %v547_v63, %v554_v8  ;;  %v327_v22 = vld [vmem:[%s8930_s20 + $0x68] sm:$0xf]  ;;  %v4324_v24 = vsel %vm9283_vm14, %v4322_v55, %v4323_v14  ;;  %v328_v23 = vld [vmem:[%s8930_s20 + $0x6c] sm:$0xf] }
  0x7e   : > { %749 = vst [vmem:[#allocation2 + $0xa0] sm:$0xf] %v555_v16  ;;  %v558_v27 = vshrl.u32 %v327_v22, 16  ;;  %v561_v28 = vshll.u32 %v327_v22, 16  ;;  %v7422_v32 = vcombine.low %v4321_v17, %v4324_v24  ;;  %v4328_v33 = vsel %vm9283_vm14, %v7391_v21, %v4327_v13  ;;  %v753_v40 = vld [vmem:[#allocation2 + $0xa8] sm:$0xf] }
  0x7f   : > { %8217 = vmatmul.mubr.bf16.vlgmr.msra.gmra.mrb[0].mxu0 %v7421_v61  ;;  %v566_v35 = vshrl.u32 %v328_v23, 16  ;;  %v569_v41 = vshll.u32 %v328_v23, 16  ;;  %v329_v43 = vld [vmem:[%s8930_s20 + $0x70] sm:$0xf]  ;;  %v8739_v50 = vld [vmem:[%s10338_s1 + $0x198] sm:$0xff]   ;;  %v8741_v7 = vld [vmem:[%s10338_s1 + $0x1a0] sm:$0xff]  }
  0x80   : > { %8249 = vmatpush3.bf16.msra.mxu0 %v9229_v10  ;;  %v8727_v29 = vld [vmem:[#allocation2 + $0x84] sm:$0xff]   ;;  %v4329_v10 = vrot.slane %v4327_v13, 4  ;;  %v560_v39 = vrot.slane %v558_v27, 7  ;;  %8220 = vmatprep.mubr.bf16.mxu0 %v7422_v32  ;;  %v330_v34 = vld [vmem:[%s8930_s20 + $0x74] sm:$0xf]  ;;  %v575_v60 = vshrl.u32 %v329_v43, 16 }
  0x81   : > { %8250 = vmatprep.subr.bf16.mxu0 %v8733_v12  ;;  %7997 = vmatmul.mubr.bf16.gmra.mrb[20].mxu1 %v8727_v29  ;;  %v9348_v59 = vrot.slane %v566_v35, 7  ;;  %v578_v61 = vshll.u32 %v329_v43, 16  ;;  %v583_v1 = vshrl.u32 %v330_v34, 16  ;;  %v586_v2 = vshll.u32 %v330_v34, 16  ;;  %v760_v3 = vld [vmem:[#allocation2 + $0xb4] sm:$0xf] }
  0x82   : > { %v860_v45 = vld [vmem:[#allocation2 + $0x90] sm:$0x2]  ;;  %v974_v47 = vld [vmem:[#allocation2 + $0x90] sm:$0x1]  ;;  %v4331_v31 = vsel %vm9283_vm14, %v4329_v10, %v4330_v25  ;;  %v563_v56 = vor.u32 %v561_v28, %v560_v39  ;;  %v564_v48 = vrot.slane %v560_v39, 4  ;;  %v577_v6 = vrot.slane %v575_v60, 7 }
  0x83   : > { %v7164_v51 = vrot.slane %v860_v45, 9  ;;  %v7423_v54 = vcombine.low %v4328_v33, %v4331_v31  ;;  %v571_v46 = vor.u32 %v569_v41, %v9348_v59  ;;  %v488_v8 = vrot.slane %v9232_v15, 4  ;;  %v4220_v11 = vld [vmem:[#allocation2 + $0x3c] sm:$0xe]  ;;  %v4222_v55 = vld [vmem:[#allocation2 + $0x44] sm:$0x1] }
  0x84   : > { %v861_v37 = vld [vmem:[#allocation2 + $0x9c] sm:$0x2]  ;;  %v977_v4 = vld [vmem:[#allocation2 + $0x9c] sm:$0x1]  ;;  %8251 = vmatpush3.bf16.msra.mxu0 %v8733_v12  ;;  %v754_v63 = vsel %vm8950_vm5, %v563_v56, %v753_v40  ;;  %v9362_v9 = vrot.slane %v583_v1, 7  ;;  %v580_v16 = vor.u32 %v578_v61, %v577_v6  ;;  %v581_v17 = vrot.slane %v577_v6, 4 }
  0x85   : > { %v7165_v58 = vrot.slane %v861_v37, 9  ;;  %8252 = vmatprep.subr.bf16.mxu0 %v8737_v38  ;;  %v975_v62 = vsel %vm8962_vm7, %v7164_v51, %v974_v47  ;;  %755 = vst [vmem:[#allocation2 + $0xa8] sm:$0xf] %v754_v63  ;;  %v4221_v12 = vld [vmem:[#allocation2 + $0x40] sm:$0xf]  ;;  %v572_v14 = vsel %vm8956_vm6, %v564_v48, %v571_v46  ;;  %v7392_v18 = vrot.slane %v4220_v11, 9 }
  0x86   : > { %976 = vst [vmem:[#allocation2 + $0x90] sm:$0x1] %v975_v62  ;;  %v505_v53 = vrot.slane %v9265_v19, 4  ;;  %756 = vst [vmem:[#allocation2 + $0xac] sm:$0xf] %v572_v14  ;;  %v588_v20 = vor.u32 %v586_v2, %v9362_v9  ;;  %v4334_v21 = vrot.slane %v4221_v12, 5  ;;  %v761_v22 = vsel %vm8950_vm5, %v580_v16, %v760_v3 }
  0x87   : > { %8221 = vmatmul.mubr.bf16.gmra.mrb[4].mxu0 %v7423_v54  ;;  %v978_v5 = vsel %vm8962_vm7, %v7165_v58, %v977_v4  ;;  %v4337_v13 = vrot.slane %v4222_v55, 5  ;;  %v4223_v24 = vld [vmem:[#allocation2 + $0x48] sm:$0xe]  ;;  %v4224_v25 = vld [vmem:[#allocation2 + $0x4c] sm:$0xf]  ;;  %v522_v37 = vrot.slane %v9277_v49, 4 }
  0x88   : > { %979 = vst [vmem:[#allocation2 + $0x9c] sm:$0x1] %v978_v5  ;;  %8253 = vmatpush3.bf16.msra.mxu0 %v8737_v38  ;;  %v4225_v23 = vld [vmem:[#allocation2 + $0x50] sm:$0x1]  ;;  %v589_v27 = vsel %vm8956_vm6, %v581_v17, %v588_v20  ;;  %762 = vst [vmem:[#allocation2 + $0xb4] sm:$0xf] %v761_v22  ;;  %v4335_v28 = vsel %vm9283_vm14, %v7392_v18, %v4334_v21 }
  0x89   : > { %8254 = vmatprep.subr.bf16.mxu0 %v8739_v50  ;;  %v4336_v29 = vrot.slane %v4334_v21, 4  ;;  %v7393_v32 = vrot.slane %v4223_v24, 9  ;;  %v8743_v33 = vld [vmem:[%s10338_s1 + $0x1a8] sm:$0xff]   ;;  %763 = vst [vmem:[#allocation2 + $0xb8] sm:$0xf] %v589_v27  ;;  %v4341_v10 = vrot.slane %v4224_v25, 5 }
  0x8a   : > { %v4344_v35 = vrot.slane %v4225_v23, 5  ;;  %v992_v38 = vld [vmem:[#allocation2 + $0x4] sm:$0x8]  ;;  %v1083_v39 = vld [vmem:[#allocation2 + $0x8] sm:$0x1]  ;;  %v8745_v63 = vld [vmem:[%s10338_s1 + $0x1b0] sm:$0xff]  }
  0x8b   : > { %v4338_v43 = vsel %vm9283_vm14, %v4336_v29, %v4337_v13  ;;  %v7170_v45 = vrot.slane %v992_v38, 11  ;;  %v4342_v4 = vsel %vm9283_vm14, %v7393_v32, %v4341_v10  ;;  %v4343_v54 = vrot.slane %v4341_v10, 4  ;;  %v1522_v48 = vld [vmem:[#allocation2] sm:$0xf]  ;;  %v1523_v58 = vld [vmem:[#allocation2 + $0x4] sm:$0xf] }
  0x8c   : > { %8255 = vmatpush3.bf16.msra.mxu0 %v8739_v50  ;;  %v862_v40 = vld [vmem:[#allocation2 + $0xa8] sm:$0x2]  ;;  %v980_v51 = vld [vmem:[#allocation2 + $0xa8] sm:$0x1]  ;;  %v7424_v50 = vcombine.low %v4335_v28, %v4338_v43  ;;  %v1574_v60 = vshrl.u32 %v1522_v48, 16  ;;  %v1577_v61 = vshll.u32 %v1522_v48, 16 }
  0x8d   : > { %8256 = vmatprep.subr.bf16.mxu0 %v8741_v7  ;;  %v8730_v41 = vld [vmem:[#allocation2 + $0x90] sm:$0xff]   ;;  %v7166_v31 = vrot.slane %v862_v40, 9  ;;  %v1084_v56 = vsel %vm9021_vm8, %v7170_v45, %v1083_v39  ;;  %v1583_v62 = vshll.u32 %v1523_v58, 16  ;;  %v539_v1 = vrot.slane %v9311_v52, 4  ;;  %v1525_v5 = vld [vmem:[#allocation2 + $0xc] sm:$0xf] }
  0x8e   : > { %8000 = vmatprep.mubr.bf16.mxu1 %v8730_v41  ;;  %8224 = vmatprep.mubr.bf16.mxu0 %v7424_v50  ;;  %1085 = vst [vmem:[#allocation2 + $0x8] sm:$0x1] %v1084_v56  ;;  %v4345_v2 = vsel %vm9283_vm14, %v4343_v54, %v4344_v35  ;;  %v1587_v3 = vshrl.u32 %v1523_v58, 16  ;;  %v1526_v46 = vld [vmem:[#allocation2 + $0x10] sm:$0xf]  ;;  %v1576_v12 = vrot.slane %v1574_v60, 4 }
  0x8f   : > { %v8731_v47 = vld [vmem:[#allocation2 + $0x9c] sm:$0xff]   ;;  %v981_v34 = vsel %vm8962_vm7, %v7166_v31, %v980_v51  ;;  %v863_v6 = vld [vmem:[#allocation2 + $0xb4] sm:$0x2]  ;;  %v7425_v11 = vcombine.low %v4342_v4, %v4345_v2  ;;  %v1579_v14 = vrot.slane %v1577_v61, 5  ;;  %v1585_v17 = vrot.slane %v1583_v62, 5 }
  0x90   : > { %8257 = vmatpush3.bf16.msra.mxu0 %v8741_v7  ;;  %8001 = vmatmul.mubr.bf16.gmra.mrb[24].mxu1 %v8731_v47  ;;  %982 = vst [vmem:[#allocation2 + $0xa8] sm:$0x1] %v981_v34  ;;  %v983_v7 = vld [vmem:[#allocation2 + $0xb4] sm:$0x1]  ;;  %v7167_v16 = vrot.slane %v863_v6, 9  ;;  %v1589_v55 = vrot.slane %v1587_v3, 4 }
  0x91   : > { %8258 = vmatprep.subr.bf16.mxu0 %v8743_v33  ;;  %v1598_v18 = vshrl.u32 %v1525_v5, 16  ;;  %8225 = vmatmul.mubr.bf16.gmra.mrb[8].mxu0 %v7425_v11  ;;  %v1580_v20 = vor.u32 %v1579_v14, %v1576_v12  ;;  %v1527_v21 = vld [vmem:[#allocation2 + $0x14] sm:$0x1]  ;;  %v1601_v13 = vshll.u32 %v1525_v5, 16  ;;  %v1607_v22 = vshll.u32 %v1526_v46, 16  ;;  %v8747_v25 = vld [vmem:[%s10338_s1 + $0x1b8] sm:$0xff]  }
  0x92   : > { %v1611_v24 = vshrl.u32 %v1526_v46, 16  ;;  %v984_v23 = vsel %vm8962_vm7, %v7167_v16, %v983_v7  ;;  %v1590_v27 = vor.u32 %v1589_v55, %v1585_v17  ;;  %v1617_v29 = vshll.u32 %v1527_v21, 16  ;;  %v4226_v32 = vld [vmem:[#allocation2 + $0x54] sm:$0xe]  ;;  %v4227_v10 = vld [vmem:[#allocation2 + $0x58] sm:$0xf] }
  0x93   : > { %v1600_v28 = vrot.slane %v1598_v18, 4  ;;  %985 = vst [vmem:[#allocation2 + $0xb4] sm:$0x1] %v984_v23  ;;  %v1603_v35 = vrot.slane %v1601_v13, 5  ;;  %v1609_v38 = vrot.slane %v1607_v22, 5  ;;  %v8750_v40 = vld [vmem:[%s10338_s1 + $0x1c0] sm:$0xff]  }
  0x94   : > { %8259 = vmatpush3.bf16.msra.mxu0 %v8743_v33  ;;  %v1581_v33 = vrot.slane %v1580_v20, 4  ;;  %v1613_v39 = vrot.slane %v1611_v24, 4  ;;  %v4228_v41 = vld [vmem:[#allocation2 + $0x5c] sm:$0x1]  ;;  %v1591_v45 = vrot.slane %v1590_v27, 4  ;;  %v1619_v47 = vrot.slane %v1617_v29, 5 }
  0x95   : > { %8260 = vmatprep.subr.bf16.mxu0 %v8745_v63  ;;  %v1524_v43 = vld [vmem:[#allocation2 + $0x8] sm:$0x1]  ;;  %v7394_v31 = vrot.slane %v4226_v32, 9  ;;  %v4348_v51 = vrot.slane %v4227_v10, 5  ;;  %v1604_v54 = vor.u32 %v1603_v35, %v1600_v28  ;;  %v4351_v60 = vrot.slane %v4228_v41, 5  ;;  %v8808_v19 = vld [vmem:[%s10338_s1 + $0x80] sm:$0xff]  }
  0x96   : > { %v1593_v4 = vshll.u32 %v1524_v43, 16  ;;  %v1614_v56 = vor.u32 %v1613_v39, %v1609_v38  ;;  %v1586_v48 = vsel %vm9069_vm11, %v1581_v33, %v1585_v17  ;;  %v4229_v61 = vld [vmem:[#allocation2 + $0x60] sm:$0xe]  ;;  %v4230_v5 = vld [vmem:[#allocation2 + $0x64] sm:$0xf]  ;;  %v556_v46 = vrot.slane %v9316_v0, 4 }
  0x97   : > { %v8734_v50 = vld [vmem:[#allocation2 + $0xa8] sm:$0xff]   ;;  %v4349_v58 = vsel %vm9283_vm14, %v7394_v31, %v4348_v51  ;;  %v4350_v34 = vrot.slane %v4348_v51, 4  ;;  %v1605_v2 = vrot.slane %v1604_v54, 4  ;;  %v4355_v11 = vrot.slane %v4230_v5, 5  ;;  %v1528_v12 = vld [vmem:[#allocation2 + $0x18] sm:$0xf] }
  0x98   : > { %8261 = vmatpush3.bf16.msra.mxu0 %v8745_v63  ;;  %8004 = vmatprep.mubr.bf16.mxu1 %v8734_v50  ;;  %v1595_v62 = vrot.slane %v1593_v4, 5  ;;  %v1615_v3 = vrot.slane %v1614_v56, 4  ;;  %v7395_v63 = vrot.slane %v4229_v61, 9  ;;  %v4231_v7 = vld [vmem:[#allocation2 + $0x68] sm:$0x1]  ;;  %v1622_v28 = vshrl.u32 %v1528_v12, 16 }
  0x99   : > { %8262 = vmatprep.subr.bf16.mxu0 %v8747_v25  ;;  %v4352_v6 = vsel %vm9283_vm14, %v4350_v34, %v4351_v60  ;;  %v1610_v16 = vsel %vm9069_vm11, %v1605_v2, %v1609_v38  ;;  %v1529_v55 = vld [vmem:[#allocation2 + $0x1c] sm:$0xf]  ;;  %v1530_v18 = vld [vmem:[#allocation2 + $0x20] sm:$0x1]  ;;  %v1531_v20 = vld [vmem:[#allocation2 + $0x24] sm:$0xf] }
  0x9a   : > { %v1596_v14 = vsel %vm9069_vm11, %v1591_v45, %v1595_v62  ;;  %v7426_v17 = vcombine.low %v4349_v58, %v4352_v6  ;;  %v8735_v21 = vld [vmem:[#allocation2 + $0xb4] sm:$0xff]   ;;  %v1620_v22 = vsel %vm9069_vm11, %v1615_v3, %v1619_v47  ;;  %v4356_v24 = vsel %vm9283_vm14, %v7395_v63, %v4355_v11  ;;  %v1532_v23 = vld [vmem:[#allocation2 + $0x28] sm:$0xf]  ;;  %v1533_v10 = vld [vmem:[#allocation2 + $0x2c] sm:$0x1] }
  0x9b   : > { %v7228_v13 = vcombine.low %v1586_v48, %v1596_v14  ;;  %v4358_v27 = vrot.slane %v4231_v7, 5  ;;  %v1625_v29 = vshll.u32 %v1528_v12, 16  ;;  %v1631_v32 = vshll.u32 %v1529_v55, 16  ;;  %8005 = vmatmul.mubr.bf16.gmra.mrb[28].mxu1 %v8735_v21  ;;  %v722_v4 = vld [vmem:[#allocation2 + $0x74] sm:$0x1]  ;;  %v8742_v12 = vld [vmem:[%s10338_s1 + $0x88] sm:$0xff]  }
  0x9c   : > { %8263 = vmatpush3.bf16.msra.mxu0 %v8747_v25  ;;  %v4357_v25 = vrot.slane %v4355_v11, 4  ;;  %8228 = vmatprep.mubr.bf16.mxu0 %v7426_v17  ;;  %v1635_v33 = vshrl.u32 %v1529_v55, 16  ;;  %v1641_v35 = vshll.u32 %v1530_v18, 16  ;;  %v1646_v38 = vshrl.u32 %v1531_v20, 16  ;;  %v1001_v34 = vld [vmem:[#allocation2 + $0x70] sm:$0x8] }
  0x9d   : > { %8296 = vmatprep.subr.bf16.mxu0 %v8750_v40  ;;  %v1649_v39 = vshll.u32 %v1531_v20, 16  ;;  %8024 = vmatprep.mubr.bf16.mxu1 %v7228_v13  ;;  %v1624_v40 = vrot.slane %v1622_v28, 4  ;;  %v1627_v43 = vrot.slane %v1625_v29, 5  ;;  %v1633_v45 = vrot.slane %v1631_v32, 5  ;;  %v9421_v3 = vld [vmem:[#allocation2 + $0x6c] sm:$0xe] }
  0x9e   : > { %v4359_v41 = vsel %vm9283_vm14, %v4357_v25, %v4358_v27  ;;  %v7229_v47 = vcombine.low %v1610_v16, %v1620_v22  ;;  %v1637_v51 = vrot.slane %v1635_v33, 4  ;;  %v1648_v50 = vrot.slane %v1646_v38, 4  ;;  %v9423_v5 = vld [vmem:[#allocation2 + $0x70] sm:$0xf]  ;;  %v729_v21 = vld [vmem:[#allocation2 + $0x80] sm:$0x1] }
  0x9f   : > { %v7427_v31 = vcombine.low %v4356_v24, %v4359_v41  ;;  %v1628_v54 = vor.u32 %v1627_v43, %v1624_v40  ;;  %v1651_v56 = vrot.slane %v1649_v39, 5  ;;  %v1655_v48 = vshll.u32 %v1532_v23, 16  ;;  %v1002_v13 = vld [vmem:[#allocation2 + $0x7c] sm:$0x8]  ;;  %v9440_v27 = vld [vmem:[#allocation2 + $0x78] sm:$0xe] }
  0xa0   : > { %v1659_v58 = vshrl.u32 %v1532_v23, 16  ;;  %v1638_v60 = vor.u32 %v1637_v51, %v1633_v45  ;;  %v1643_v61 = vrot.slane %v1641_v35, 5  ;;  %v1665_v62 = vshll.u32 %v1533_v10, 16  ;;  %v9442_v28 = vld [vmem:[#allocation2 + $0x7c] sm:$0xf]  ;;  %v8744_v29 = vld [vmem:[%s10338_s1 + $0x90] sm:$0xff]  }
  0xa1   : > { %8229 = vmatmul.mubr.bf16.gmra.mrb[12].mxu0 %v7427_v31  ;;  %v723_v2 = vsel %vm8962_vm7, %v488_v8, %v722_v4  ;;  %v1629_v63 = vrot.slane %v1628_v54, 4  ;;  %v1652_v6 = vor.u32 %v1651_v56, %v1648_v50  ;;  %v1657_v7 = vrot.slane %v1655_v48, 5  ;;  %v1535_v38 = vld [vmem:[#allocation2 + $0x34] sm:$0xf]  ;;  %v1536_v40 = vld [vmem:[#allocation2 + $0x38] sm:$0x1] }
  0xa2   : > { %v1661_v11 = vrot.slane %v1659_v58, 4  ;;  %724 = vst [vmem:[#allocation2 + $0x74] sm:$0x1] %v723_v2  ;;  %v573_v14 = vrot.slane %v9348_v59, 4  ;;  %v590_v15 = vrot.slane %v9362_v9, 4  ;;  %v1639_v16 = vrot.slane %v1638_v60, 4 }
  0xa3   : > { %v4362_v8 = vrot.slane %v9423_v5, 5  ;;  %v1634_v17 = vsel %vm9069_vm11, %v1629_v63, %v1633_v45  ;;  %v1653_v55 = vrot.slane %v1652_v6, 4  ;;  %v1667_v20 = vrot.slane %v1665_v62, 5  ;;  %8025 = vmatmul.mubr.bf16.vlgmr.msra.gmra.mrb[0].mxu1 %v7229_v47  ;;  %v1537_v4 = vld [vmem:[#allocation2 + $0x3c] sm:$0xf] }
  0xa4   : > { %v1662_v18 = vor.u32 %v1661_v11, %v1657_v7  ;;  %v1644_v22 = vsel %vm9069_vm11, %v1639_v16, %v1643_v61  ;;  %v7179_v24 = vrot.slane %v1001_v34, 11  ;;  %v7396_v25 = vrot.slane %v9421_v3, 9  ;;  %8057 = vmatpush3.bf16.msra.mxu1 %v8808_v19  ;;  %v1538_v34 = vld [vmem:[#allocation2 + $0x40] sm:$0xf]  ;;  %v1539_v63 = vld [vmem:[#allocation2 + $0x44] sm:$0x1] }
  0xa5   : > { %v730_v23 = vsel %vm8962_vm7, %v505_v53, %v729_v21  ;;  %v7230_v32 = vcombine.low %v1634_v17, %v1644_v22  ;;  %v1658_v10 = vsel %vm9069_vm11, %v1653_v55, %v1657_v7  ;;  %v9451_v35 = vrot.slane %v4362_v8, 4  ;;  %v1534_v53 = vld [vmem:[#allocation2 + $0x30] sm:$0xf]  ;;  %8058 = vmatprep.subr.bf16.mxu1 %v8742_v12  ;;  %v8746_v6 = vld [vmem:[%s10338_s1 + $0x98] sm:$0xff]   ;;  %v1549_v59 = vld [vmem:[#allocation2 + $0x6c] sm:$0xf] }
  0xa6   : > { %v1663_v33 = vrot.slane %v1662_v18, 4  ;;  %731 = vst [vmem:[#allocation2 + $0x80] sm:$0x1] %v730_v23  ;;  %v7180_v39 = vrot.slane %v1002_v13, 11  ;;  %v7397_v41 = vrot.slane %v9440_v27, 9  ;;  %v1670_v43 = vshrl.u32 %v1534_v53, 16 }
  0xa7   : > { %v1673_v45 = vshll.u32 %v1534_v53, 16  ;;  %8028 = vmatprep.mubr.bf16.mxu1 %v7230_v32  ;;  %v1679_v31 = vshll.u32 %v1535_v38, 16  ;;  %v1683_v51 = vshrl.u32 %v1535_v38, 16  ;;  %v1689_v50 = vshll.u32 %v1536_v40, 16  ;;  %v736_v13 = vld [vmem:[#allocation2 + $0x8c] sm:$0x1] }
  0xa8   : > { %v1668_v47 = vsel %vm9069_vm11, %v1663_v33, %v1667_v20  ;;  %v4369_v48 = vrot.slane %v9442_v28, 5  ;;  %v1672_v58 = vrot.slane %v1670_v43, 4  ;;  %8059 = vmatpush3.bf16.msra.mxu1 %v8742_v12  ;;  %v1694_v11 = vshrl.u32 %v1537_v4, 16  ;;  %v8748_v38 = vld [vmem:[%s10338_s1 + $0xa0] sm:$0xff]   ;;  %v6072_v36 = vld [vmem:[#allocation2 + $0x1c] sm:$0xf] }
  0xa9   : > { %v7231_v54 = vcombine.low %v1658_v10, %v1668_v47  ;;  %v1110_v56 = vld [vmem:[#allocation2 + $0x74] sm:$0x1]  ;;  %v1675_v61 = vrot.slane %v1673_v45, 5  ;;  %v1681_v62 = vrot.slane %v1679_v31, 5  ;;  %v1685_v2 = vrot.slane %v1683_v51, 4  ;;  %8060 = vmatprep.subr.bf16.mxu1 %v8744_v29 }
  0xaa   : > { %v1111_v60 = vsel %vm9021_vm8, %v7179_v24, %v1110_v56  ;;  %v1691_v7 = vrot.slane %v1689_v50, 5  ;;  %v1697_v16 = vshll.u32 %v1537_v4, 16  ;;  %v1703_v17 = vshll.u32 %v1538_v34, 16  ;;  %v9478_v45 = vld [vmem:[#allocation2 + $0x88] sm:$0xf] }
  0xab   : > { %1112 = vst [vmem:[#allocation2 + $0x74] sm:$0x1] %v1111_v60  ;;  %v1676_v55 = vor.u32 %v1675_v61, %v1672_v58  ;;  %v1686_v18 = vor.u32 %v1685_v2, %v1681_v62  ;;  %v1707_v20 = vshrl.u32 %v1538_v34, 16  ;;  %v1713_v21 = vshll.u32 %v1539_v63, 16  ;;  %8029 = vmatmul.mubr.bf16.gmra.mrb[4].mxu1 %v7231_v54  ;;  %v9484_v31 = vld [vmem:[#allocation2 + $0x84] sm:$0xe] }
  0xac   : > { %v1696_v24 = vrot.slane %v1694_v11, 4  ;;  %v1699_v23 = vrot.slane %v1697_v16, 5  ;;  %v1705_v12 = vrot.slane %v1703_v17, 5  ;;  %v737_v32 = vsel %vm8962_vm7, %v522_v37, %v736_v13  ;;  %8061 = vmatpush3.bf16.msra.mxu1 %v8744_v29  ;;  %v1003_v37 = vld [vmem:[#allocation2 + $0x88] sm:$0x8] }
  0xad   : > { %v1113_v22 = vld [vmem:[#allocation2 + $0x80] sm:$0x1]  ;;  %v1677_v33 = vrot.slane %v1676_v55, 4  ;;  %v1687_v19 = vrot.slane %v1686_v18, 4  ;;  %v1709_v53 = vrot.slane %v1707_v20, 4  ;;  %v9476_v40 = vrot.slane %v4369_v48, 4  ;;  %8062 = vmatprep.subr.bf16.mxu1 %v8746_v6 }
  0xae   : > { %v1114_v10 = vsel %vm9021_vm8, %v7180_v39, %v1113_v22  ;;  %738 = vst [vmem:[#allocation2 + $0x8c] sm:$0x1] %v737_v32  ;;  %v1700_v49 = vor.u32 %v1699_v23, %v1696_v24  ;;  %v1715_v43 = vrot.slane %v1713_v21, 5  ;;  %v4376_v4 = vrot.slane %v9478_v45, 5  ;;  %v743_v54 = vld [vmem:[#allocation2 + $0x98] sm:$0x1] }
  0xaf   : > { %1115 = vst [vmem:[#allocation2 + $0x80] sm:$0x1] %v1114_v10  ;;  %v1682_v39 = vsel %vm9069_vm11, %v1677_v33, %v1681_v62  ;;  %v1692_v29 = vsel %vm9069_vm11, %v1687_v19, %v1691_v7  ;;  %v1710_v47 = vor.u32 %v1709_v53, %v1705_v12  ;;  %v9487_v56 = vld [vmem:[#allocation2 + $0x94] sm:$0x8]  ;;  %v8752_v58 = vld [vmem:[%s10338_s1 + $0xa8] sm:$0xff]   ;;  %v7181_v61 = vrot.slane %v1003_v37, 11 }
  0xb0   : > { %v7232_v51 = vcombine.low %v1682_v39, %v1692_v29  ;;  %v1701_v50 = vrot.slane %v1700_v49, 4  ;;  %v744_v62 = vsel %vm8962_vm7, %v539_v1, %v743_v54  ;;  %v9496_v2 = vld [vmem:[#allocation2 + $0x90] sm:$0xe]  ;;  %8063 = vmatpush3.bf16.msra.mxu1 %v8746_v6  ;;  %v4363_v63 = vsel %vm9283_vm14, %v7396_v25, %v4362_v8  ;;  %v9507_v16 = vld [vmem:[#allocation2 + $0x94] sm:$0xf]  ;;  %v9562_v45 = vld [vmem:[%s10338_s1 + $0xc0] sm:$0xff]  }
  0xb1   : > { %v1711_v60 = vrot.slane %v1710_v47, 4  ;;  %v7398_v52 = vrot.slane %v9484_v31, 9  ;;  %745 = vst [vmem:[#allocation2 + $0x98] sm:$0x1] %v744_v62  ;;  %v1540_v1 = vld [vmem:[#allocation2 + $0x48] sm:$0xf]  ;;  %8064 = vmatprep.subr.bf16.mxu1 %v8748_v38  ;;  %v4370_v3 = vsel %vm9283_vm14, %v7397_v41, %v4369_v48 }
  0xb2   : > { %v4234_v34 = vld [vmem:[#allocation2 + $0x74] sm:$0x1]  ;;  %8032 = vmatprep.mubr.bf16.mxu1 %v7232_v51  ;;  %v1706_v11 = vsel %vm9069_vm11, %v1701_v50, %v1705_v12  ;;  %v9519_v8 = vrot.slane %v4376_v4, 4  ;;  %v7182_v25 = vrot.slane %v9487_v56, 11  ;;  %v1541_v6 = vld [vmem:[#allocation2 + $0x4c] sm:$0xf] }
  0xb3   : > { %v4365_v7 = vrot.slane %v4234_v34, 5  ;;  %v1716_v5 = vsel %vm9069_vm11, %v1711_v60, %v1715_v43  ;;  %v1542_v17 = vld [vmem:[#allocation2 + $0x50] sm:$0x1]  ;;  %v1718_v18 = vshrl.u32 %v1540_v1, 16  ;;  %v1721_v20 = vshll.u32 %v1540_v1, 16 }
  0xb4   : > { %v7233_v55 = vcombine.low %v1706_v11, %v1716_v5  ;;  %v1543_v41 = vld [vmem:[#allocation2 + $0x54] sm:$0xf]  ;;  %v7399_v24 = vrot.slane %v9496_v2, 9  ;;  %v4383_v23 = vrot.slane %v9507_v16, 5  ;;  %v1544_v12 = vld [vmem:[#allocation2 + $0x58] sm:$0xf]  ;;  %8065 = vmatpush3.bf16.msra.mxu1 %v8748_v38 }
  0xb5   : > { %v4366_v28 = vsel %vm9283_vm14, %v9451_v35, %v4365_v7  ;;  %v1116_v27 = vld [vmem:[#allocation2 + $0x8c] sm:$0x1]  ;;  %v8756_v48 = vld [vmem:[%s10338_s1 + $0xb0] sm:$0xff]   ;;  %v1720_v32 = vrot.slane %v1718_v18, 4  ;;  %v1723_v10 = vrot.slane %v1721_v20, 5  ;;  %v1727_v33 = vshll.u32 %v1541_v6, 16  ;;  %8066 = vmatprep.subr.bf16.mxu1 %v8752_v58 }
  0xb6   : > { %v7428_v21 = vcombine.low %v4363_v63, %v4366_v28  ;;  %v4237_v13 = vld [vmem:[#allocation2 + $0x80] sm:$0x1]  ;;  %v1117_v22 = vsel %vm9021_vm8, %v7181_v61, %v1116_v27  ;;  %8033 = vmatmul.mubr.bf16.gmra.mrb[8].mxu1 %v7233_v55  ;;  %v1545_v19 = vld [vmem:[#allocation2 + $0x5c] sm:$0x1]  ;;  %v1731_v53 = vshrl.u32 %v1541_v6, 16  ;;  %v1737_v49 = vshll.u32 %v1542_v17, 16 }
  0xb7   : > { %v4372_v35 = vrot.slane %v4237_v13, 5  ;;  %1118 = vst [vmem:[#allocation2 + $0x8c] sm:$0x1] %v1117_v22  ;;  %v1742_v43 = vshrl.u32 %v1543_v41, 16  ;;  %v1745_v37 = vshll.u32 %v1543_v41, 16  ;;  %v1724_v29 = vor.u32 %v1723_v10, %v1720_v32 }
  0xb8   : > { %8232 = vmatprep.mubr.bf16.mxu0 %v7428_v21  ;;  %v1729_v47 = vrot.slane %v1727_v33, 5  ;;  %v1751_v38 = vshll.u32 %v1544_v12, 16  ;;  %v750_v51 = vld [vmem:[#allocation2 + $0xa4] sm:$0x1]  ;;  %v1119_v54 = vld [vmem:[#allocation2 + $0x98] sm:$0x1]  ;;  %8067 = vmatpush3.bf16.msra.mxu1 %v8752_v58  ;;  %v4377_v6 = vsel %vm9283_vm14, %v7398_v52, %v4376_v4  ;;  %v4384_v10 = vsel %vm9283_vm14, %v7399_v24, %v4383_v23 }
  0xb9   : > { %v4373_v39 = vsel %vm9283_vm14, %v9476_v40, %v4372_v35  ;;  %v1733_v56 = vrot.slane %v1731_v53, 4  ;;  %v1739_v34 = vrot.slane %v1737_v49, 5  ;;  %v1744_v60 = vrot.slane %v1742_v43, 4  ;;  %8068 = vmatprep.subr.bf16.mxu1 %v8756_v48  ;;  %v8760_v40 = vld [vmem:[%s10338_s1 + $0xb8] sm:$0xff]   ;;  %v1005_v5 = vld [vmem:[#allocation2 + $0xa0] sm:$0x8] }
  0xba   : > { %v7429_v50 = vcombine.low %v4370_v3, %v4373_v39  ;;  %v1120_v61 = vsel %vm9021_vm8, %v7182_v25, %v1119_v54  ;;  %v1725_v62 = vrot.slane %v1724_v29, 4  ;;  %v1747_v63 = vrot.slane %v1745_v37, 5  ;;  %v9546_v25 = vld [vmem:[#allocation2 + $0xa0] sm:$0xf]  ;;  %v9554_v28 = vld [vmem:[#allocation2 + $0x9c] sm:$0xe] }
  0xbb   : > { %v9537_v7 = vrot.slane %v1751_v38, 5  ;;  %1121 = vst [vmem:[#allocation2 + $0x98] sm:$0x1] %v1120_v61  ;;  %v1734_v11 = vor.u32 %v1733_v56, %v1729_v47  ;;  %v1755_v1 = vshrl.u32 %v1544_v12, 16  ;;  %v1761_v3 = vshll.u32 %v1545_v19, 16 }
  0xbc   : > { %8233 = vmatmul.mubr.bf16.gmra.mrb[16].mxu0 %v7429_v50  ;;  %v751_v58 = vsel %vm8962_vm7, %v556_v46, %v750_v51  ;;  %v1748_v17 = vor.u32 %v1747_v63, %v1744_v60  ;;  %v1730_v0 = vsel %vm9069_vm11, %v1725_v62, %v1729_v47  ;;  %v4390_v18 = vrot.slane %v9546_v25, 5  ;;  %8069 = vmatpush3.bf16.msra.mxu1 %v8756_v48  ;;  %v757_v41 = vld [vmem:[#allocation2 + $0xb0] sm:$0x1]  ;;  %v1006_v12 = vld [vmem:[#allocation2 + $0xac] sm:$0x8] }
  0xbd   : > { %752 = vst [vmem:[#allocation2 + $0xa4] sm:$0x1] %v751_v58  ;;  %v1735_v27 = vrot.slane %v1734_v11, 4  ;;  %v1757_v46 = vrot.slane %v1755_v1, 4  ;;  %v4385_v4 = vrot.slane %v4383_v23, 4  ;;  %v7183_v20 = vrot.slane %v1005_v5, 11  ;;  %8070 = vmatprep.subr.bf16.mxu1 %v8760_v40 }
  0xbe   : > { %v4240_v55 = vld [vmem:[#allocation2 + $0x8c] sm:$0x1]  ;;  %v1749_v52 = vrot.slane %v1748_v17, 4  ;;  %v1763_v22 = vrot.slane %v1761_v3, 5  ;;  %v7400_v48 = vrot.slane %v9554_v28, 9  ;;  %v758_v19 = vsel %vm8962_vm7, %v573_v14, %v757_v41 }
  0xbf   : > { %v4379_v31 = vrot.slane %v4240_v55, 5  ;;  %v1740_v21 = vsel %vm9069_vm11, %v1735_v27, %v1739_v34  ;;  %v1758_v13 = vor.u32 %v1757_v46, %v9537_v7  ;;  %v9570_v35 = vld [vmem:[#allocation2 + $0xa8] sm:$0xe]  ;;  %v1546_v53 = vld [vmem:[#allocation2 + $0x60] sm:$0xf]  ;;  %v9590_v2 = vrot.slane %v4390_v18, 4 }
  0xc0   : > { %v7234_v33 = vcombine.low %v1730_v0, %v1740_v21  ;;  %v1547_v49 = vld [vmem:[#allocation2 + $0x64] sm:$0xf]  ;;  %v1548_v43 = vld [vmem:[#allocation2 + $0x68] sm:$0x1]  ;;  %759 = vst [vmem:[#allocation2 + $0xb0] sm:$0x1] %v758_v19  ;;  %8071 = vmatpush3.bf16.msra.mxu1 %v8760_v40 }
  0xc1   : > { %v4380_v32 = vsel %vm9283_vm14, %v9519_v8, %v4379_v31  ;;  %v1754_v8 = vsel %vm9069_vm11, %v1749_v52, %v9537_v7  ;;  %v1759_v16 = vrot.slane %v1758_v13, 4  ;;  %v9592_v24 = vld [vmem:[#allocation2 + $0xac] sm:$0xf]  ;;  %v7184_v14 = vrot.slane %v1006_v12, 11  ;;  %8104 = vmatprep.subr.bf16.mxu1 %v9562_v45  ;;  %v1550_v63 = vld [vmem:[#allocation2 + $0x70] sm:$0xf] }
  0xc2   : > { %v7430_v37 = vcombine.low %v4377_v6, %v4380_v32  ;;  %v4243_v23 = vld [vmem:[#allocation2 + $0x98] sm:$0x1]  ;;  %8036 = vmatprep.mubr.bf16.mxu1 %v7234_v33  ;;  %v1766_v39 = vshrl.u32 %v1546_v53, 16  ;;  %v1769_v29 = vshll.u32 %v1546_v53, 16  ;;  %v1775_v47 = vshll.u32 %v1547_v49, 16 }
  0xc3   : > { %v4386_v38 = vrot.slane %v4243_v23, 5  ;;  %v1764_v51 = vsel %vm9069_vm11, %v1759_v16, %v1763_v22  ;;  %v1779_v54 = vshrl.u32 %v1547_v49, 16  ;;  %v1785_v56 = vshll.u32 %v1548_v43, 16  ;;  %v1551_v7 = vld [vmem:[#allocation2 + $0x74] sm:$0x1] }
  0xc4   : > { %8236 = vmatprep.mubr.bf16.mxu0 %v7430_v37  ;;  %v1122_v50 = vld [vmem:[#allocation2 + $0xa4] sm:$0x1]  ;;  %v7235_v34 = vcombine.low %v1754_v8, %v1764_v51  ;;  %v7401_v61 = vrot.slane %v9570_v35, 9  ;;  %v4397_v62 = vrot.slane %v9592_v24, 5  ;;  %v1768_v11 = vrot.slane %v1766_v39, 4 }
  0xc5   : > { %v1123_v60 = vsel %vm9021_vm8, %v7183_v20, %v1122_v50  ;;  %v4387_v40 = vsel %vm9283_vm14, %v4385_v4, %v4386_v38  ;;  %v1771_v1 = vrot.slane %v1769_v29, 5  ;;  %v1777_v3 = vrot.slane %v1775_v47, 5  ;;  %v764_v31 = vld [vmem:[#allocation2 + $0xbc] sm:$0x1]  ;;  %v1007_v13 = vld [vmem:[#allocation2 + $0xb8] sm:$0x8] }
  0xc6   : > { %1124 = vst [vmem:[#allocation2 + $0xa4] sm:$0x1] %v1123_v60  ;;  %v7431_v58 = vcombine.low %v4384_v10, %v4387_v40  ;;  %8037 = vmatmul.mubr.bf16.gmra.mrb[12].mxu1 %v7235_v34  ;;  %v1781_v5 = vrot.slane %v1779_v54, 4  ;;  %v1787_v6 = vrot.slane %v1785_v56, 5  ;;  %v1790_v17 = vshrl.u32 %v1549_v59, 16 }
  0xc7   : > { %v1772_v55 = vor.u32 %v1771_v1, %v1768_v11  ;;  %v1793_v0 = vshll.u32 %v1549_v59, 16  ;;  %v1799_v27 = vshll.u32 %v1550_v63, 16  ;;  %v1803_v46 = vshrl.u32 %v1550_v63, 16  ;;  %v1125_v52 = vld [vmem:[#allocation2 + $0xb0] sm:$0x1] }
  0xc8   : > { %8237 = vmatmul.mubr.bf16.gmra.mrb[20].mxu0 %v7431_v58  ;;  %v1782_v20 = vor.u32 %v1781_v5, %v1777_v3  ;;  %v1792_v41 = vrot.slane %v1790_v17, 4  ;;  %v1809_v21 = vshll.u32 %v1551_v7, 16  ;;  %v765_v4 = vsel %vm8962_vm7, %v590_v15, %v764_v31  ;;  %v9609_v10 = vld [vmem:[#allocation2 + $0xb4] sm:$0xe]  ;;  %v9611_v49 = vld [vmem:[#allocation2 + $0xb8] sm:$0xf] }
  0xc9   : > { %v1126_v22 = vsel %vm9021_vm8, %v7184_v14, %v1125_v52  ;;  %v1773_v12 = vrot.slane %v1772_v55, 4  ;;  %v1795_v35 = vrot.slane %v1793_v0, 5  ;;  %v1801_v32 = vrot.slane %v1799_v27, 5  ;;  %766 = vst [vmem:[#allocation2 + $0xbc] sm:$0x1] %v765_v4 }
  0xca   : > { %1127 = vst [vmem:[#allocation2 + $0xb0] sm:$0x1] %v1126_v22  ;;  %v4399_v33 = vrot.slane %v4397_v62, 4  ;;  %v1783_v19 = vrot.slane %v1782_v20, 4  ;;  %v1805_v53 = vrot.slane %v1803_v46, 4  ;;  %v1811_v9 = vrot.slane %v1809_v21, 5 }
  0xcb   : > { %v1778_v15 = vsel %vm9069_vm11, %v1773_v12, %v1777_v3  ;;  %v1796_v43 = vor.u32 %v1795_v35, %v1792_v41  ;;  %v7185_v37 = vrot.slane %v1007_v13, 11  ;;  %v4404_v8 = vrot.slane %v9611_v49, 5  ;;  %v331_v39 = vld [vmem:[%s8930_s20 + $0x78] sm:$0xf]  ;;  %v332_v29 = vld [vmem:[%s8930_s20 + $0x7c] sm:$0xf] }
  0xcc   : > { %v4391_v24 = vsel %vm9283_vm14, %v7400_v48, %v4390_v18  ;;  %v4398_v59 = vsel %vm9283_vm14, %v7401_v61, %v4397_v62  ;;  %v1788_v23 = vsel %vm9069_vm11, %v1783_v19, %v1787_v6  ;;  %v1806_v14 = vor.u32 %v1805_v53, %v1801_v32  ;;  %v1552_v54 = vld [vmem:[#allocation2 + $0x78] sm:$0xf]  ;;  %v767_v62 = vld [vmem:[#allocation2 + $0xc0] sm:$0xf]  ;;  %v1553_v63 = vld [vmem:[#allocation2 + $0x7c] sm:$0xf] }
  0xcd   : > { %v4246_v16 = vld [vmem:[#allocation2 + $0xa4] sm:$0x1]  ;;  %v7236_v38 = vcombine.low %v1778_v15, %v1788_v23  ;;  %v1797_v51 = vrot.slane %v1796_v43, 4  ;;  %v7402_v50 = vrot.slane %v9609_v10, 9  ;;  %v9631_v28 = vrot.slane %v4404_v8, 4 }
  0xce   : > { %v4393_v47 = vrot.slane %v4246_v16, 5  ;;  %v1807_v25 = vrot.slane %v1806_v14, 4  ;;  %v592_v18 = vshrl.u32 %v331_v39, 16  ;;  %v595_v48 = vshll.u32 %v331_v39, 16  ;;  %v771_v3 = vld [vmem:[#allocation2 + $0xc8] sm:$0x1] }
  0xcf   : > { %8040 = vmatprep.mubr.bf16.mxu1 %v7236_v38  ;;  %v1802_v34 = vsel %vm9069_vm11, %v1797_v51, %v1801_v32  ;;  %v600_v60 = vshrl.u32 %v332_v29, 16  ;;  %v603_v61 = vshll.u32 %v332_v29, 16  ;;  %v1554_v58 = vld [vmem:[#allocation2 + $0x80] sm:$0x1]  ;;  %v1814_v5 = vshrl.u32 %v1552_v54, 16 }
  0xd0   : > { %v4394_v56 = vsel %vm9283_vm14, %v9590_v2, %v4393_v47  ;;  %v1812_v40 = vsel %vm9069_vm11, %v1807_v25, %v1811_v9  ;;  %v1128_v11 = vld [vmem:[#allocation2 + $0xbc] sm:$0x1]  ;;  %v594_v1 = vrot.slane %v592_v18, 7  ;;  %v1817_v0 = vshll.u32 %v1552_v54, 16  ;;  %v1555_v27 = vld [vmem:[#allocation2 + $0x84] sm:$0xf] }
  0xd1   : > { %v7432_v7 = vcombine.low %v4391_v24, %v4394_v56  ;;  %v4249_v6 = vld [vmem:[#allocation2 + $0xb0] sm:$0x1]  ;;  %v7237_v17 = vcombine.low %v1802_v34, %v1812_v40  ;;  %v1129_v2 = vsel %vm9021_vm8, %v7185_v37, %v1128_v11  ;;  %v602_v55 = vrot.slane %v600_v60, 7  ;;  %v1556_v41 = vld [vmem:[#allocation2 + $0x88] sm:$0xf] }
  0xd2   : > { %v4400_v46 = vrot.slane %v4249_v6, 5  ;;  %1130 = vst [vmem:[#allocation2 + $0xbc] sm:$0x1] %v1129_v2  ;;  %v597_v31 = vor.u32 %v595_v48, %v594_v1  ;;  %v598_v52 = vrot.slane %v594_v1, 4  ;;  %v1816_v20 = vrot.slane %v1814_v5, 4 }
  0xd3   : > { %8240 = vmatprep.mubr.bf16.mxu0 %v7432_v7  ;;  %8041 = vmatmul.mubr.bf16.gmra.mrb[16].mxu1 %v7237_v17  ;;  %v605_v21 = vor.u32 %v603_v61, %v602_v55  ;;  %v607_v4 = vrot.slane %v602_v55, 4  ;;  %v1819_v13 = vrot.slane %v1817_v0, 5  ;;  %v1823_v22 = vshll.u32 %v1553_v63, 16  ;;  %v1557_v12 = vld [vmem:[#allocation2 + $0x8c] sm:$0x1] }
  0xd4   : > { %v4401_v35 = vsel %vm9283_vm14, %v4399_v33, %v4400_v46  ;;  %v768_v32 = vsel %vm8950_vm5, %v597_v31, %v767_v62  ;;  %v1827_v10 = vshrl.u32 %v1553_v63, 16  ;;  %v1833_v19 = vshll.u32 %v1554_v58, 16  ;;  %v1558_v25 = vld [vmem:[#allocation2 + $0x90] sm:$0xf]  ;;  %v1559_v18 = vld [vmem:[#allocation2 + $0x94] sm:$0xf] }
  0xd5   : > { %v7433_v53 = vcombine.low %v4398_v59, %v4401_v35  ;;  %v606_v9 = vsel %vm8956_vm6, %v598_v52, %v605_v21  ;;  %769 = vst [vmem:[#allocation2 + $0xc0] sm:$0xf] %v768_v32  ;;  %v772_v15 = vsel %vm8962_vm7, %v607_v4, %v771_v3  ;;  %v1820_v43 = vor.u32 %v1819_v13, %v1816_v20  ;;  %v1560_v58 = vld [vmem:[#allocation2 + $0x98] sm:$0x1]  ;;  %v1561_v46 = vld [vmem:[#allocation2 + $0x9c] sm:$0xf] }
  0xd6   : > { %770 = vst [vmem:[#allocation2 + $0xc4] sm:$0xf] %v606_v9  ;;  %773 = vst [vmem:[#allocation2 + $0xc8] sm:$0x1] %v772_v15  ;;  %v1825_v37 = vrot.slane %v1823_v22, 5  ;;  %v1829_v16 = vrot.slane %v1827_v10, 4  ;;  %v4405_v59 = vsel %vm9283_vm14, %v7402_v50, %v4404_v8 }
  0xd7   : > { %v1835_v24 = vrot.slane %v1833_v19, 5  ;;  %v1838_v33 = vshrl.u32 %v1555_v27, 16  ;;  %8241 = vmatmul.mubr.bf16.gmra.mrb[24].mxu0 %v7433_v53  ;;  %v1821_v23 = vrot.slane %v1820_v43, 4  ;;  %v1841_v14 = vshll.u32 %v1555_v27, 16  ;;  %v1562_v31 = vld [vmem:[#allocation2 + $0xa0] sm:$0xf] }
  0xd8   : > { %v1847_v39 = vshll.u32 %v1556_v41, 16  ;;  %v1851_v29 = vshrl.u32 %v1556_v41, 16  ;;  %v1830_v47 = vor.u32 %v1829_v16, %v1825_v37  ;;  %v1857_v51 = vshll.u32 %v1557_v12, 16  ;;  %v1563_v12 = vld [vmem:[#allocation2 + $0xa4] sm:$0x1] }
  0xd9   : > { %v1840_v38 = vrot.slane %v1838_v33, 4  ;;  %v4252_v48 = vld [vmem:[#allocation2 + $0xbc] sm:$0x1]  ;;  %v1826_v54 = vsel %vm9069_vm11, %v1821_v23, %v1825_v37  ;;  %v1843_v56 = vrot.slane %v1841_v14, 5  ;;  %v1862_v7 = vshrl.u32 %v1558_v25, 16 }
  0xda   : > { %v1849_v34 = vrot.slane %v1847_v39, 5  ;;  %v1853_v60 = vrot.slane %v1851_v29, 4  ;;  %v4407_v61 = vrot.slane %v4252_v48, 5  ;;  %v1831_v62 = vrot.slane %v1830_v47, 4 }
  0xdb   : > { %v1859_v63 = vrot.slane %v1857_v51, 5  ;;  %v1844_v49 = vor.u32 %v1843_v56, %v1840_v38  ;;  %v1865_v11 = vshll.u32 %v1558_v25, 16  ;;  %v1871_v8 = vshll.u32 %v1559_v18, 16  ;;  %v1564_v25 = vld [vmem:[#allocation2 + $0xa8] sm:$0xf] }
  0xdc   : > { %v1854_v40 = vor.u32 %v1853_v60, %v1849_v34  ;;  %v4408_v50 = vsel %vm9283_vm14, %v9631_v28, %v4407_v61  ;;  %v4253_v1 = vld [vmem:[#allocation2 + $0xc0] sm:$0xe]  ;;  %v1836_v3 = vsel %vm9069_vm11, %v1831_v62, %v1835_v24  ;;  %v1864_v5 = vrot.slane %v1862_v7, 4  ;;  %v1565_v56 = vld [vmem:[#allocation2 + $0xac] sm:$0xf] }
  0xdd   : > { %v1875_v6 = vshrl.u32 %v1559_v18, 16  ;;  %v7434_v17 = vcombine.low %v4405_v59, %v4408_v50  ;;  %v1008_v2 = vld [vmem:[#allocation2 + $0xc4] sm:$0x8]  ;;  %v1131_v55 = vld [vmem:[#allocation2 + $0xc8] sm:$0x1]  ;;  %v7238_v27 = vcombine.low %v1826_v54, %v1836_v3  ;;  %v7403_v20 = vrot.slane %v4253_v1, 9 }
  0xde   : > { %v4254_v0 = vld [vmem:[#allocation2 + $0xc4] sm:$0xf]  ;;  %v7186_v52 = vrot.slane %v1008_v2, 11  ;;  %v1845_v21 = vrot.slane %v1844_v49, 4  ;;  %v1855_v28 = vrot.slane %v1854_v40, 4  ;;  %v1867_v4 = vrot.slane %v1865_v11, 5 }
  0xdf   : > { %v4411_v41 = vrot.slane %v4254_v0, 5  ;;  %8244 = vmatprep.mubr.bf16.mxu0 %v7434_v17  ;;  %8044 = vmatprep.mubr.bf16.mxu1 %v7238_v27  ;;  %v1873_v13 = vrot.slane %v1871_v8, 5  ;;  %v1877_v22 = vrot.slane %v1875_v6, 4  ;;  %v1881_v43 = vshll.u32 %v1560_v58, 16  ;;  %v1567_v49 = vld [vmem:[#allocation2 + $0xb4] sm:$0xf] }
  0xe0   : > { %v1132_v35 = vsel %vm9021_vm8, %v7186_v52, %v1131_v55  ;;  %v1850_v19 = vsel %vm9069_vm11, %v1845_v21, %v1849_v34  ;;  %v1860_v53 = vsel %vm9069_vm11, %v1855_v28, %v1859_v63  ;;  %v1868_v9 = vor.u32 %v1867_v4, %v1864_v5  ;;  %v1566_v34 = vld [vmem:[#allocation2 + $0xb0] sm:$0x1]  ;;  %v1568_v1 = vld [vmem:[#allocation2 + $0xb8] sm:$0xf]  ;;  %v1569_v17 = vld [vmem:[#allocation2 + $0xbc] sm:$0x1] }
  0xe1   : > { %v9665_v32 = vsel %vm9283_vm14, %v7403_v20, %v4411_v41  ;;  %v4413_v10 = vrot.slane %v4411_v41, 4  ;;  %1133 = vst [vmem:[#allocation2 + $0xc8] sm:$0x1] %v1132_v35  ;;  %v1878_v15 = vor.u32 %v1877_v22, %v1873_v13  ;;  %v7239_v37 = vcombine.low %v1850_v19, %v1860_v53  ;;  %v8749_v28 = vld [vmem:[#allocation2 + $0x18] sm:$0xff]  }
  0xe2   : > { %v1886_v16 = vshrl.u32 %v1561_v46, 16  ;;  %v1889_v24 = vshll.u32 %v1561_v46, 16  ;;  %v1895_v33 = vshll.u32 %v1562_v31, 16  ;;  %v1869_v23 = vrot.slane %v1868_v9, 4 }
  0xe3   : > { %v1879_v14 = vrot.slane %v1878_v15, 4  ;;  %v1883_v39 = vrot.slane %v1881_v43, 5  ;;  %v1899_v29 = vshrl.u32 %v1562_v31, 16  ;;  %8045 = vmatmul.mubr.bf16.gmra.mrb[20].mxu1 %v7239_v37  ;;  %v1905_v51 = vshll.u32 %v1563_v12, 16 }
  0xe4   : > { %v1888_v59 = vrot.slane %v1886_v16, 4  ;;  %v1891_v47 = vrot.slane %v1889_v24, 5  ;;  %v1897_v38 = vrot.slane %v1895_v33, 5  ;;  %v1874_v18 = vsel %vm9069_vm11, %v1869_v23, %v1873_v13 }
  0xe5   : > { %v1884_v48 = vsel %vm9069_vm11, %v1879_v14, %v1883_v39  ;;  %v1901_v54 = vrot.slane %v1899_v29, 4  ;;  %v1910_v60 = vshrl.u32 %v1564_v25, 16  ;;  %v1907_v63 = vrot.slane %v1905_v51, 5  ;;  %v2343_v14 = vld [vmem:[#allocation2] sm:$0xe]  ;;  %v8751_v29 = vld [vmem:[#allocation2 + $0x24] sm:$0xff]  }
  0xe6   : > { %v7240_v61 = vcombine.low %v1874_v18, %v1884_v48  ;;  %v1892_v62 = vor.u32 %v1891_v47, %v1888_v59  ;;  %v1913_v7 = vshll.u32 %v1564_v25, 16  ;;  %v1919_v8 = vshll.u32 %v1565_v56, 16  ;;  %v2344_v39 = vld [vmem:[#allocation2 + $0x4] sm:$0xf]  ;;  %v2345_v47 = vld [vmem:[#allocation2 + $0x8] sm:$0x1] }
  0xe7   : > { %v1902_v40 = vor.u32 %v1901_v54, %v1897_v38  ;;  %v1912_v11 = vrot.slane %v1910_v60, 4  ;;  %v1923_v50 = vshrl.u32 %v1565_v56, 16  ;;  %v1929_v6 = vshll.u32 %v1566_v34, 16  ;;  %v2346_v25 = vld [vmem:[#allocation2 + $0xc] sm:$0xe]  ;;  %v8753_v60 = vld [vmem:[#allocation2 + $0x30] sm:$0xff]  }
  0xe8   : > { %v4255_v3 = vld [vmem:[#allocation2 + $0xc8] sm:$0x1]  ;;  %8048 = vmatprep.mubr.bf16.mxu1 %v7240_v61  ;;  %v1893_v58 = vrot.slane %v1892_v62, 4  ;;  %v1915_v5 = vrot.slane %v1913_v7, 5  ;;  %v1934_v2 = vshrl.u32 %v1567_v49, 16  ;;  %v1921_v27 = vrot.slane %v1919_v8, 5 }
  0xe9   : > { %v4414_v55 = vrot.slane %v4255_v3, 5  ;;  %v1903_v0 = vrot.slane %v1902_v40, 4  ;;  %v1925_v46 = vrot.slane %v1923_v50, 4  ;;  %v1931_v20 = vrot.slane %v1929_v6, 5  ;;  %v2347_v56 = vld [vmem:[#allocation2 + $0x10] sm:$0xf] }
  0xea   : > { %v1898_v31 = vsel %vm9069_vm11, %v1893_v58, %v1897_v38  ;;  %v1916_v52 = vor.u32 %v1915_v5, %v1912_v11  ;;  %v1936_v41 = vrot.slane %v1934_v2, 4  ;;  %v1937_v22 = vshll.u32 %v1567_v49, 16  ;;  %v2348_v34 = vld [vmem:[#allocation2 + $0x14] sm:$0x1]  ;;  %v8754_v61 = vld [vmem:[%s10338_s1 + $0x1c8] sm:$0xff]  }
  0xeb   : > { %v4415_v21 = vsel %vm9283_vm14, %v4413_v10, %v4414_v55  ;;  %v1908_v4 = vsel %vm9069_vm11, %v1903_v0, %v1907_v63  ;;  %v1926_v13 = vor.u32 %v1925_v46, %v1921_v27  ;;  %v1943_v53 = vshll.u32 %v1568_v1, 16  ;;  %v2349_v5 = vld [vmem:[#allocation2 + $0x18] sm:$0xe]  ;;  %v2350_v6 = vld [vmem:[#allocation2 + $0x1c] sm:$0xf]  ;;  %v8758_v46 = vld [vmem:[%s10338_s1 + $0x1d0] sm:$0xff]  }
  0xec   : > { %v7435_v12 = vcombine.low %v9665_v32, %v4415_v21  ;;  %v7241_v35 = vcombine.low %v1898_v31, %v1908_v4  ;;  %v1917_v19 = vrot.slane %v1916_v52, 4  ;;  %v1939_v15 = vrot.slane %v1937_v22, 5  ;;  %v2351_v2 = vld [vmem:[#allocation2 + $0x20] sm:$0x1]  ;;  %v2353_v52 = vld [vmem:[#allocation2 + $0x28] sm:$0xf] }
  0xed   : > { %v1927_v9 = vrot.slane %v1926_v13, 4  ;;  %v1947_v43 = vshrl.u32 %v1568_v1, 16  ;;  %v1953_v37 = vshll.u32 %v1569_v17, 16  ;;  %v1945_v16 = vrot.slane %v1943_v53, 5  ;;  %v2352_v21 = vld [vmem:[#allocation2 + $0x24] sm:$0xe] }
  0xee   : > { %8245 = vmatmul.mubr.bf16.gmra.mrb[28].mxu0 %v7435_v12  ;;  %8049 = vmatmul.mubr.bf16.gmra.mrb[24].mxu1 %v7241_v35  ;;  %v1922_v10 = vsel %vm9069_vm11, %v1917_v19, %v1921_v27  ;;  %v1940_v33 = vor.u32 %v1939_v15, %v1936_v41  ;;  %v7252_v38 = vrot.slane %v2343_v14, 9  ;;  %v2444_v51 = vrot.slane %v2344_v39, 5  ;;  %v8809_v27 = vld [vmem:[%s10338_s1 + $0x1c0] sm:$0xff]   ;;  %v8757_v4 = vld [vmem:[#allocation2 + $0x48] sm:$0xff]   ;;  %v2355_v53 = vld [vmem:[#allocation2 + $0x30] sm:$0xe] }
  0xef   : > { %8264 = vmatprep.mubr.bf16.mxu0 %v8749_v28  ;;  %v1932_v24 = vsel %vm9069_vm11, %v1927_v9, %v1931_v20  ;;  %v1949_v23 = vrot.slane %v1947_v43, 4  ;;  %v1955_v32 = vrot.slane %v1953_v37, 5  ;;  %v2447_v54 = vrot.slane %v2345_v47, 5  ;;  %v8755_v20 = vld [vmem:[#allocation2 + $0x3c] sm:$0xff]   ;;  %v2354_v19 = vld [vmem:[#allocation2 + $0x2c] sm:$0x1] }
  0xf0   : > { %v7242_v59 = vcombine.low %v1922_v10, %v1932_v24  ;;  %v1941_v18 = vrot.slane %v1940_v33, 4  ;;  %v2445_v62 = vsel %vm9283_vm14, %v7252_v38, %v2444_v51  ;;  %v2446_v63 = vrot.slane %v2444_v51, 4  ;;  %v8762_v15 = vld [vmem:[%s10338_s1 + $0x1d8] sm:$0xff]   ;;  %v2356_v37 = vld [vmem:[#allocation2 + $0x34] sm:$0xf]  ;;  %v8768_v14 = vld [vmem:[%s10338_s1 + $0xc8] sm:$0xff]  }
  0xf1   : > { %v1950_v48 = vor.u32 %v1949_v23, %v1945_v16  ;;  %v2451_v7 = vrot.slane %v2347_v56, 5  ;;  %v7253_v11 = vrot.slane %v2346_v25, 9  ;;  %v2454_v1 = vrot.slane %v2348_v34, 5  ;;  %v2357_v10 = vld [vmem:[#allocation2 + $0x38] sm:$0x1]  ;;  %v8766_v39 = vld [vmem:[%s10338_s1 + $0x1e0] sm:$0xff]  }
  0xf2   : > { %8052 = vmatprep.mubr.bf16.mxu1 %v7242_v59  ;;  %v1946_v49 = vsel %vm9069_vm11, %v1941_v18, %v1945_v16  ;;  %v2448_v8 = vsel %vm9283_vm14, %v2446_v63, %v2447_v54  ;;  %v7254_v55 = vrot.slane %v2349_v5, 9  ;;  %v2458_v0 = vrot.slane %v2350_v6, 5  ;;  %v2358_v47 = vld [vmem:[#allocation2 + $0x3c] sm:$0xe]  ;;  %v8759_v25 = vld [vmem:[#allocation2 + $0x54] sm:$0xff]  }
  0xf3   : > { %v1951_v40 = vrot.slane %v1950_v48, 4  ;;  %v2453_v50 = vrot.slane %v2451_v7, 4  ;;  %v7284_v58 = vcombine.low %v2445_v62, %v2448_v8  ;;  %v2461_v31 = vrot.slane %v2351_v2, 5  ;;  %v2360_v18 = vld [vmem:[#allocation2 + $0x44] sm:$0x1]  ;;  %v8772_v48 = vld [vmem:[%s10338_s1 + $0xd0] sm:$0xff]  }
  0xf4   : > { %v2460_v41 = vrot.slane %v2458_v0, 4  ;;  %v2465_v28 = vrot.slane %v2353_v52, 5  ;;  %v2452_v13 = vsel %vm9283_vm14, %v7253_v11, %v2451_v7  ;;  %v2459_v12 = vsel %vm9283_vm14, %v7254_v55, %v2458_v0  ;;  %v2362_v62 = vld [vmem:[#allocation2 + $0x4c] sm:$0xf]  ;;  %v2363_v63 = vld [vmem:[#allocation2 + $0x50] sm:$0x1] }
  0xf5   : > { %v1956_v3 = vsel %vm9069_vm11, %v1951_v40, %v1955_v32  ;;  %v2455_v22 = vsel %vm9283_vm14, %v2453_v50, %v2454_v1  ;;  %v7255_v43 = vrot.slane %v2352_v21, 9  ;;  %v2468_v33 = vrot.slane %v2354_v19, 5  ;;  %v2359_v32 = vld [vmem:[#allocation2 + $0x40] sm:$0xf]  ;;  %v8770_v8 = vld [vmem:[%s10338_s1 + $0x1e8] sm:$0xff]   ;;  %v8776_v6 = vld [vmem:[%s10338_s1 + $0xd8] sm:$0xff]  }
  0xf6   : > { %8265 = vmatmul.mubr.bf16.vlgmr.msra.gmra.mrb[0].mxu0 %v8751_v29  ;;  %v7243_v17 = vcombine.low %v1946_v49, %v1956_v3  ;;  %v2462_v35 = vsel %vm9283_vm14, %v2460_v41, %v2461_v31  ;;  %v7285_v9 = vcombine.low %v2452_v13, %v2455_v22  ;;  %v2467_v24 = vrot.slane %v2465_v28, 4  ;;  %v8761_v7 = vld [vmem:[#allocation2 + $0x60] sm:$0xff]   ;;  %v2365_v5 = vld [vmem:[#allocation2 + $0x58] sm:$0xf]  ;;  %v9738_v55 = vld [vmem:[#allocation2 + $0x5c] sm:$0x1] }
  0xf7   : > { %8297 = vmatpush3.bf16.msra.mxu0 %v8809_v27  ;;  %8268 = vmatprep.mubr.bf16.mxu0 %v8753_v60  ;;  %v7286_v16 = vcombine.low %v2459_v12, %v2462_v35  ;;  %v2472_v23 = vrot.slane %v2356_v37, 5  ;;  %v7256_v29 = vrot.slane %v2355_v53, 9  ;;  %v2475_v59 = vrot.slane %v2357_v10, 5  ;;  %v8774_v27 = vld [vmem:[%s10338_s1 + $0x1f0] sm:$0xff]   ;;  %v2367_v52 = vld [vmem:[#allocation2 + $0x60] sm:$0xe] }
  0xf8   : > { %8298 = vmatprep.subr.bf16.mxu0 %v8754_v61  ;;  %8053 = vmatmul.mubr.bf16.gmra.mrb[28].mxu1 %v7243_v17  ;;  %v2479_v51 = vrot.slane %v2359_v32, 5  ;;  %v2466_v54 = vsel %vm9283_vm14, %v7255_v43, %v2465_v28  ;;  %v2469_v56 = vsel %vm9283_vm14, %v2467_v24, %v2468_v33  ;;  %v7257_v49 = vrot.slane %v2358_v47, 9  ;;  %v2368_v13 = vld [vmem:[#allocation2 + $0x64] sm:$0xf]  ;;  %v2369_v22 = vld [vmem:[#allocation2 + $0x68] sm:$0x1] }
  0xf9   : > { %8072 = vmatprep.mubr.bf16.mxu1 %v7284_v58  ;;  %v2474_v38 = vrot.slane %v2472_v23, 4  ;;  %v2473_v34 = vsel %vm9283_vm14, %v7256_v29, %v2472_v23  ;;  %v2482_v11 = vrot.slane %v2360_v18, 5  ;;  %v7287_v50 = vcombine.low %v2466_v54, %v2469_v56  ;;  %v2364_v58 = vld [vmem:[#allocation2 + $0x54] sm:$0xe]  ;;  %v8780_v43 = vld [vmem:[%s10338_s1 + $0xe0] sm:$0xff]   ;;  %v8782_v32 = vld [vmem:[%s10338_s1 + $0xe8] sm:$0xff]  }
  0xfa   : > { %v2481_v40 = vrot.slane %v2479_v51, 4  ;;  %v2489_v3 = vrot.slane %v2363_v63, 5  ;;  %v2493_v0 = vrot.slane %v2365_v5, 5  ;;  %v2480_v31 = vsel %vm9283_vm14, %v7257_v49, %v2479_v51  ;;  %v9760_v37 = vld [vmem:[#allocation2 + $0x6c] sm:$0xe]  ;;  %v9780_v54 = vld [vmem:[%s10338_s1 + $0x200] sm:$0xff]  }
  0xfb   : > { %8299 = vmatpush3.bf16.msra.mxu0 %v8754_v61  ;;  %v2476_v60 = vsel %vm9283_vm14, %v2474_v38, %v2475_v59  ;;  %v2361_v61 = vld [vmem:[#allocation2 + $0x48] sm:$0xe]  ;;  %v7259_v28 = vrot.slane %v2364_v58, 9  ;;  %v7260_v19 = vrot.slane %v2367_v52, 9  ;;  %v2500_v53 = vrot.slane %v2368_v13, 5 }
  0xfc   : > { %8300 = vmatprep.subr.bf16.mxu0 %v8758_v46  ;;  %v7258_v1 = vrot.slane %v2361_v61, 9  ;;  %v7288_v17 = vcombine.low %v2473_v34, %v2476_v60  ;;  %v2483_v41 = vsel %vm9283_vm14, %v2481_v40, %v2482_v11  ;;  %v2495_v35 = vrot.slane %v2493_v0, 4  ;;  %v9762_v10 = vld [vmem:[#allocation2 + $0x74] sm:$0x1]  ;;  %v864_v23 = vld [vmem:[#allocation2 + $0xc0] sm:$0x2] }
  0xfd   : > { %v2503_v24 = vrot.slane %v2369_v22, 5  ;;  %v7168_v29 = vrot.slane %v864_v23, 9  ;;  %v986_v59 = vld [vmem:[#allocation2 + $0xc0] sm:$0x1]  ;;  %v7150_v47 = vld [vmem:[%s8930_s20 + $0x70] sm:$0xf]  ;;  %v9771_v38 = vsel %vm9283_vm14, %v7259_v28, %v2493_v0  ;;  %v2501_v40 = vsel %vm9283_vm14, %v7260_v19, %v2500_v53 }
  0xfe   : > { %8269 = vmatmul.mubr.bf16.gmra.mrb[4].mxu0 %v8755_v20  ;;  %v8765_v20 = vld [vmem:[#allocation2 + $0x78] sm:$0xff]   ;;  %v7261_v51 = vrot.slane %v9760_v37, 9  ;;  %v7151_v18 = vld [vmem:[%s8930_s20 + $0x74] sm:$0xf]  ;;  %v8767_v56 = vld [vmem:[#allocation2 + $0x84] sm:$0xff]   ;;  %v2510_v34 = vrot.slane %v9762_v10, 5 }
  0xff   : > { %8272 = vmatprep.mubr.bf16.mxu0 %v8757_v4  ;;  %8301 = vmatpush3.bf16.msra.mxu0 %v8758_v46  ;;  %v8763_v46 = vld [vmem:[#allocation2 + $0x6c] sm:$0xff]   ;;  %v2496_v4 = vrot.slane %v9738_v55, 5  ;;  %v824_v60 = vshll.u32 %v7150_v47, 16  ;;  %v829_v61 = vshrl.u32 %v7151_v18, 16  ;;  %v2373_v63 = vld [vmem:[#allocation2 + $0x78] sm:$0xe] }
 0x100   : > { %8073 = vmatmul.mubr.bf16.vlgmr.msra.gmra.mrb[0].mxu1 %v7285_v9  ;;  %8302 = vmatprep.subr.bf16.mxu0 %v8762_v15  ;;  %v9752_v9 = vld [vmem:[#allocation2 + $0x70] sm:$0xf]  ;;  %v841_v58 = vld [vmem:[#allocation2 + $0xcc] sm:$0xf]  ;;  %v7262_v5 = vrot.slane %v2373_v63, 9 }
 0x101   : > { %8076 = vmatprep.mubr.bf16.mxu1 %v7286_v16  ;;  %8105 = vmatpush3.bf16.msra.mxu1 %v9562_v45  ;;  %v2486_v45 = vrot.slane %v2362_v62, 5  ;;  %v7289_v16 = vcombine.low %v2480_v31, %v2483_v41  ;;  %v2507_v33 = vrot.slane %v9752_v9, 5  ;;  %v832_v62 = vshll.u32 %v7151_v18, 16  ;;  %v8786_v41 = vld [vmem:[%s10338_s1 + $0xf8] sm:$0xff]   ;;  %v2379_v63 = vld [vmem:[#allocation2 + $0x90] sm:$0xe] }
 0x102   : > { %8106 = vmatprep.subr.bf16.mxu1 %v8768_v14  ;;  %v2497_v49 = vsel %vm9283_vm14, %v2495_v35, %v2496_v4  ;;  %v5253_v22 = vld [vmem:[#allocation2 + $0x18] sm:$0xf] }
 0x103   : > { %8303 = vmatpush3.bf16.msra.mxu0 %v8762_v15  ;;  %v2488_v2 = vrot.slane %v2486_v45, 4  ;;  %v2487_v21 = vsel %vm9283_vm14, %v7258_v1, %v2486_v45  ;;  %v8778_v15 = vld [vmem:[%s10338_s1 + $0x1f8] sm:$0xff]   ;;  %v2509_v11 = vrot.slane %v2507_v33, 4  ;;  %v7291_v31 = vcombine.low %v9771_v38, %v2497_v49  ;;  %v8773_v38 = vld [vmem:[#allocation2 + $0xa8] sm:$0xff]  }
 0x104   : > { %8304 = vmatprep.subr.bf16.mxu0 %v8766_v39  ;;  %v2374_v45 = vld [vmem:[#allocation2 + $0x7c] sm:$0xf]  ;;  %v9813_v35 = vsel %vm9283_vm14, %v7261_v51, %v2507_v33  ;;  %v5302_v26 = vshrl.u32 %v5253_v22, 16 }
 0x105   : > { %8107 = vmatpush3.bf16.msra.mxu1 %v8768_v14  ;;  %v2490_v12 = vsel %vm9283_vm14, %v2488_v2, %v2489_v3  ;;  %v9791_v3 = vrot.slane %v829_v61, 7 }
 0x106   : > { %8273 = vmatmul.mubr.bf16.gmra.mrb[8].mxu0 %v8759_v25  ;;  %8108 = vmatprep.subr.bf16.mxu1 %v8772_v48  ;;  %v7290_v14 = vcombine.low %v2487_v21, %v2490_v12  ;;  %v987_v25 = vsel %vm8962_vm7, %v7168_v29, %v986_v59  ;;  %v5254_v12 = vld [vmem:[#allocation2 + $0x1c] sm:$0xf]  ;;  %v5256_v29 = vld [vmem:[#allocation2 + $0x24] sm:$0xf]  ;;  %v5257_v59 = vld [vmem:[#allocation2 + $0x28] sm:$0xf] }
 0x107   : > { %8276 = vmatprep.mubr.bf16.mxu0 %v8761_v7  ;;  %8305 = vmatpush3.bf16.msra.mxu0 %v8766_v39  ;;  %v2502_v39 = vrot.slane %v2500_v53, 4  ;;  %988 = vst [vmem:[#allocation2 + $0xc0] sm:$0x1] %v987_v25  ;;  %v8769_v7 = vld [vmem:[#allocation2 + $0x90] sm:$0xff]   ;;  %v834_v52 = vor.u32 %v832_v62, %v9791_v3  ;;  %v5255_v53 = vld [vmem:[#allocation2 + $0x20] sm:$0x1] }
 0x108   : > { %8077 = vmatmul.mubr.bf16.gmra.mrb[4].mxu1 %v7287_v50  ;;  %8306 = vmatprep.subr.bf16.mxu0 %v8770_v8  ;;  %v2375_v50 = vld [vmem:[#allocation2 + $0x80] sm:$0x1]  ;;  %v5311_v10 = vshll.u32 %v5254_v12, 16  ;;  %v5315_v33 = vshrl.u32 %v5254_v12, 16  ;;  %v5321_v30 = vshll.u32 %v5255_v53, 16  ;;  %v5335_v61 = vshll.u32 %v5257_v59, 16 }
 0x109   : > { %8080 = vmatprep.mubr.bf16.mxu1 %v7288_v17  ;;  %8109 = vmatpush3.bf16.msra.mxu1 %v8772_v48  ;;  %v821_v48 = vshrl.u32 %v7150_v47, 16  ;;  %v2504_v1 = vsel %vm9283_vm14, %v2502_v39, %v2503_v24  ;;  %v8784_v17 = vld [vmem:[%s10338_s1 + $0xf0] sm:$0xff]   ;;  %v2517_v0 = vrot.slane %v2375_v50, 5  ;;  %v8771_v47 = vld [vmem:[#allocation2 + $0x9c] sm:$0xff]   ;;  %v5339_v62 = vshrl.u32 %v5257_v59, 16 }
 0x10a   : > { %8110 = vmatprep.subr.bf16.mxu1 %v8776_v6  ;;  %v7292_v21 = vcombine.low %v2501_v40, %v2504_v1  ;;  %v9824_v39 = vrot.slane %v5311_v10, 5  ;;  %v5317_v18 = vrot.slane %v5315_v33, 4  ;;  %v2383_v12 = vld [vmem:[#allocation2 + $0xa0] sm:$0xf] }
 0x10b   : > { %8307 = vmatpush3.bf16.msra.mxu0 %v8770_v8  ;;  %v823_v8 = vrot.slane %v821_v48, 7  ;;  %v5323_v48 = vrot.slane %v5321_v30, 5  ;;  %v2535_v10 = vrot.slane %v2383_v12, 5 }
 0x10c   : > { %8308 = vmatprep.subr.bf16.mxu0 %v8774_v27  ;;  %v5318_v40 = vor.u32 %v5317_v18, %v9824_v39 }
 0x10d   : > { %8111 = vmatpush3.bf16.msra.mxu1 %v8776_v6  ;;  %v2514_v6 = vrot.slane %v2374_v45, 5  ;;  %v826_v2 = vor.u32 %v824_v60, %v823_v8  ;;  %v827_v55 = vrot.slane %v823_v8, 4  ;;  %v5329_v60 = vshll.u32 %v5256_v29, 16  ;;  %v2380_v8 = vld [vmem:[#allocation2 + $0x94] sm:$0xf] }
 0x10e   : > { %8277 = vmatmul.mubr.bf16.gmra.mrb[12].mxu0 %v8763_v46  ;;  %8112 = vmatprep.subr.bf16.mxu1 %v8780_v43  ;;  %v9798_v46 = vld [vmem:[#allocation2 + $0x88] sm:$0xf]  ;;  %v2381_v45 = vld [vmem:[#allocation2 + $0x98] sm:$0x1] }
 0x10f   : > { %8280 = vmatprep.mubr.bf16.mxu0 %v8765_v20  ;;  %8309 = vmatpush3.bf16.msra.mxu0 %v8774_v27  ;;  %v9796_v27 = vld [vmem:[#allocation2 + $0x84] sm:$0xe]  ;;  %v2378_v20 = vld [vmem:[#allocation2 + $0x8c] sm:$0x1]  ;;  %v842_v28 = vsel %vm8950_vm5, %v826_v2, %v841_v58  ;;  %v2516_v4 = vrot.slane %v2514_v6, 4  ;;  %v2521_v13 = vrot.slane %v9798_v46, 5  ;;  %v835_v19 = vsel %vm8956_vm6, %v827_v55, %v834_v52 }
 0x110   : > { %8081 = vmatmul.mubr.bf16.gmra.mrb[8].mxu1 %v7289_v16  ;;  %8310 = vmatprep.subr.bf16.mxu0 %v8778_v15  ;;  %843 = vst [vmem:[#allocation2 + $0xcc] sm:$0xf] %v842_v28  ;;  %844 = vst [vmem:[#allocation2 + $0xd0] sm:$0xf] %v835_v19  ;;  %v7263_v37 = vrot.slane %v9796_v27, 9  ;;  %v2524_v9 = vrot.slane %v2378_v20, 5  ;;  %v2515_v23 = vsel %vm9283_vm14, %v7262_v5, %v2514_v6 }
 0x111   : > { %8084 = vmatprep.mubr.bf16.mxu1 %v7290_v14  ;;  %8113 = vmatpush3.bf16.msra.mxu1 %v8780_v43  ;;  %v2511_v43 = vsel %vm9283_vm14, %v2509_v11, %v2510_v34  ;;  %v5304_v16 = vrot.slane %v5302_v26, 4  ;;  %v2523_v14 = vrot.slane %v2521_v13, 4  ;;  %v5326_v34 = vshrl.u32 %v5256_v29, 16  ;;  %v9841_v46 = vld [vmem:[%s10338_s1 + $0x100] sm:$0xff]   ;;  %v8775_v28 = vld [vmem:[#allocation2 + $0xb4] sm:$0xff]  }
 0x112   : > { %8114 = vmatprep.subr.bf16.mxu1 %v8782_v32  ;;  %v7293_v51 = vcombine.low %v9813_v35, %v2511_v43  ;;  %v9830_v58 = vsel %vm9283_vm14, %v7263_v37, %v2521_v13  ;;  %v5319_v55 = vrot.slane %v5318_v40, 4  ;;  %v7264_v27 = vrot.slane %v2379_v63, 9  ;;  %v2384_v35 = vld [vmem:[#allocation2 + $0xa4] sm:$0x1] }
 0x113   : > { %8311 = vmatpush3.bf16.msra.mxu0 %v8778_v15  ;;  %v5305_v15 = vshll.u32 %v5253_v22, 16  ;;  %v9834_v5 = vsel %vm9283_vm14, %v2523_v14, %v2524_v9  ;;  %v5328_v6 = vrot.slane %v5326_v34, 4  ;;  %v5341_v20 = vrot.slane %v5339_v62, 4  ;;  %v8777_v43 = vld [vmem:[#allocation2 + $0xc0] sm:$0xff]   ;;  %v5261_v14 = vld [vmem:[#allocation2 + $0x38] sm:$0x1] }
 0x114   : > { %8344 = vmatprep.subr.bf16.mxu0 %v9780_v54  ;;  %v5324_v13 = vsel %vm9069_vm11, %v5319_v55, %v5323_v48  ;;  %v2531_v22 = vrot.slane %v2381_v45, 5  ;;  %v7295_v33 = vcombine.low %v9830_v58, %v9834_v5  ;;  %v5263_v34 = vld [vmem:[#allocation2 + $0x40] sm:$0xf] }
 0x115   : > { %8115 = vmatpush3.bf16.msra.mxu1 %v8782_v32  ;;  %v5307_v24 = vrot.slane %v5305_v15, 5  ;;  %v2518_v32 = vsel %vm9283_vm14, %v2516_v4, %v2517_v0  ;;  %v9836_v0 = vrot.slane %v5335_v61, 5  ;;  %v5387_v55 = vshrl.u32 %v5263_v34, 16 }
 0x116   : > { %8281 = vmatmul.mubr.bf16.gmra.mrb[16].mxu0 %v8767_v56  ;;  %8116 = vmatprep.subr.bf16.mxu1 %v8784_v17  ;;  %v5258_v56 = vld [vmem:[#allocation2 + $0x2c] sm:$0x1] }
 0x117   : > { %8284 = vmatprep.mubr.bf16.mxu0 %v8769_v7  ;;  %v5308_v25 = vor.u32 %v5307_v24, %v5304_v16  ;;  %v7294_v7 = vcombine.low %v2515_v23, %v2518_v32  ;;  %v5345_v11 = vshll.u32 %v5258_v56, 16  ;;  %v865_v50 = vld [vmem:[#allocation2 + $0xcc] sm:$0x2]  ;;  %v989_v1 = vld [vmem:[#allocation2 + $0xcc] sm:$0x1]  ;;  %v5342_v26 = vor.u32 %v5341_v20, %v9836_v0 }
 0x118   : > { %8085 = vmatmul.mubr.bf16.gmra.mrb[12].mxu1 %v7291_v31  ;;  %v7169_v2 = vrot.slane %v865_v50, 9  ;;  %v2538_v16 = vrot.slane %v2384_v35, 5  ;;  %v5259_v24 = vld [vmem:[#allocation2 + $0x30] sm:$0xf]  ;;  %v5260_v32 = vld [vmem:[#allocation2 + $0x34] sm:$0xf] }
 0x119   : > { %8088 = vmatprep.mubr.bf16.mxu1 %v7292_v21  ;;  %8117 = vmatpush3.bf16.msra.mxu1 %v8784_v17  ;;  %v5309_v49 = vrot.slane %v5308_v25, 4  ;;  %v5331_v17 = vrot.slane %v5329_v60, 5  ;;  %v2382_v21 = vld [vmem:[#allocation2 + $0x9c] sm:$0xe]  ;;  %v9854_v15 = vrot.slane %v5345_v11, 5  ;;  %v9862_v23 = vrot.slane %v5342_v26, 4 }
 0x11a   : > { %8118 = vmatprep.subr.bf16.mxu1 %v8786_v41  ;;  %v990_v4 = vsel %vm8962_vm7, %v7169_v2, %v989_v1  ;;  %v7265_v19 = vrot.slane %v2382_v21, 9  ;;  %v5359_v48 = vshll.u32 %v5260_v32, 16  ;;  %v5262_v56 = vld [vmem:[#allocation2 + $0x3c] sm:$0xf]  ;;  %v5363_v63 = vshrl.u32 %v5260_v32, 16 }
 0x11b   : > { %v5314_v31 = vsel %vm9069_vm11, %v5309_v49, %v9824_v39  ;;  %v5332_v52 = vor.u32 %v5331_v17, %v5328_v6  ;;  %991 = vst [vmem:[#allocation2 + $0xcc] sm:$0x1] %v990_v4  ;;  %v5350_v39 = vshrl.u32 %v5259_v24, 16  ;;  %v5348_v60 = vsel %vm9069_vm11, %v9862_v23, %v9854_v15  ;;  %v2385_v49 = vld [vmem:[#allocation2 + $0xa8] sm:$0xe] }
 0x11c   : > { %v9860_v30 = vcombine.low %v5314_v31, %v5324_v13  ;;  %v9868_v59 = vsel %vm9283_vm14, %v7265_v19, %v2535_v10  ;;  %v5361_v11 = vrot.slane %v5359_v48, 5  ;;  %v5374_v45 = vshrl.u32 %v5262_v56, 16  ;;  %v2386_v50 = vld [vmem:[#allocation2 + $0xac] sm:$0xf]  ;;  %v2389_v35 = vld [vmem:[#allocation2 + $0xb8] sm:$0xf] }
 0x11d   : > { %8119 = vmatpush3.bf16.msra.mxu1 %v8786_v41  ;;  %v2528_v41 = vrot.slane %v2380_v8, 5  ;;  %v9851_v53 = vrot.slane %v5332_v52, 4  ;;  %v5352_v18 = vrot.slane %v5350_v39, 4  ;;  %v5369_v8 = vshll.u32 %v5261_v14, 16  ;;  %v5266_v39 = vld [vmem:[#allocation2 + $0x4c] sm:$0xf] }
 0x11e   : > { %8285 = vmatmul.mubr.bf16.gmra.mrb[20].mxu0 %v8771_v47  ;;  %8392 = vmatprep.subr.bf16.mxu1 %v9841_v46  ;;  %v2537_v47 = vrot.slane %v2535_v10, 4  ;;  %v5365_v58 = vrot.slane %v5363_v63, 4  ;;  %v5377_v5 = vshll.u32 %v5262_v56, 16  ;;  %v5383_v6 = vshll.u32 %v5263_v34, 16  ;;  %v5269_v63 = vld [vmem:[#allocation2 + $0x58] sm:$0xf] }
 0x11f   : > { %8288 = vmatprep.mubr.bf16.mxu0 %v8773_v38  ;;  %v2529_v37 = vsel %vm9283_vm14, %v7264_v27, %v2528_v41  ;;  %v2530_v9 = vrot.slane %v2528_v41, 4  ;;  %v5353_v38 = vshll.u32 %v5259_v24, 16  ;;  %v5371_v17 = vrot.slane %v5369_v8, 5  ;;  %v2387_v27 = vld [vmem:[#allocation2 + $0xb0] sm:$0x1] }
 0x120   : > { %8089 = vmatmul.mubr.bf16.gmra.mrb[16].mxu1 %v7293_v51  ;;  %v5338_v51 = vsel %vm9069_vm11, %v9851_v53, %v9836_v0  ;;  %v2539_v61 = vsel %vm9283_vm14, %v2537_v47, %v2538_v16  ;;  %v5376_v2 = vrot.slane %v5374_v45, 4  ;;  %v5366_v20 = vor.u32 %v5365_v58, %v5361_v11  ;;  %v5265_v24 = vld [vmem:[#allocation2 + $0x48] sm:$0xf]  ;;  %v5270_v8 = vld [vmem:[#allocation2 + $0x5c] sm:$0x1] }
 0x121   : > { %8092 = vmatprep.mubr.bf16.mxu1 %v7294_v7  ;;  %v2532_v29 = vsel %vm9283_vm14, %v2530_v9, %v2531_v22  ;;  %v5355_v62 = vrot.slane %v5353_v38, 5  ;;  %v5264_v7 = vld [vmem:[#allocation2 + $0x44] sm:$0x1]  ;;  %v7297_v40 = vcombine.low %v9868_v59, %v2539_v61  ;;  %v5379_v41 = vrot.slane %v5377_v5, 5  ;;  %v5267_v38 = vld [vmem:[#allocation2 + $0x50] sm:$0x1] }
 0x122   : > { %v7296_v25 = vcombine.low %v2529_v37, %v2532_v29  ;;  %v5393_v0 = vshll.u32 %v5264_v7, 16  ;;  %v8779_v31 = vld [vmem:[#allocation2 + $0xcc] sm:$0xff]   ;;  %v9881_v21 = vrot.slane %v5383_v6, 5  ;;  %v5389_v4 = vrot.slane %v5387_v55, 4  ;;  %v5268_v61 = vld [vmem:[#allocation2 + $0x54] sm:$0xf] }
 0x123   : > { %v5356_v1 = vor.u32 %v5355_v62, %v5352_v18  ;;  %v7266_v22 = vrot.slane %v2385_v49, 9  ;;  %v2542_v12 = vrot.slane %v2386_v50, 5  ;;  %v5367_v53 = vrot.slane %v5366_v20, 4  ;;  %v8783_v45 = vld [vmem:[%s10338_s1 + $0x208] sm:$0xff]  }
 0x124   : > { %v9883_v13 = vrot.slane %v5393_v0, 5  ;;  %v5380_v26 = vor.u32 %v5379_v41, %v5376_v2  ;;  %v2545_v15 = vrot.slane %v2387_v27, 5  ;;  %v5390_v37 = vor.u32 %v5389_v4, %v9881_v21  ;;  %v8787_v20 = vld [vmem:[#allocation2 + $0xc] sm:$0xff]  }
 0x125   : > { %v5357_v52 = vrot.slane %v5356_v1, 4  ;;  %v2543_v9 = vsel %vm9283_vm14, %v7266_v22, %v2542_v12  ;;  %v2544_v10 = vrot.slane %v2542_v12, 4  ;;  %v2549_v32 = vrot.slane %v2389_v35, 5 }
 0x126   : > { %8289 = vmatmul.mubr.bf16.gmra.mrb[24].mxu0 %v8775_v28  ;;  %v2388_v28 = vld [vmem:[#allocation2 + $0xb4] sm:$0xe]  ;;  %v5381_v23 = vrot.slane %v5380_v26, 4  ;;  %v7501_v29 = vcombine.low %v5338_v51, %v5348_v60  ;;  %v5391_v59 = vrot.slane %v5390_v37, 4  ;;  %v5401_v51 = vshll.u32 %v5265_v24, 16 }
 0x127   : > { %8292 = vmatprep.mubr.bf16.mxu0 %v8777_v43  ;;  %v5362_v19 = vsel %vm9069_vm11, %v5357_v52, %v5361_v11  ;;  %v2390_v43 = vld [vmem:[#allocation2 + $0xbc] sm:$0x1]  ;;  %v7267_v16 = vrot.slane %v2388_v28, 9  ;;  %v2546_v47 = vsel %vm9283_vm14, %v2544_v10, %v2545_v15  ;;  %v2551_v34 = vrot.slane %v2549_v32, 4  ;;  %v5273_v37 = vld [vmem:[#allocation2 + $0x68] sm:$0x1] }
 0x128   : > { %8093 = vmatmul.mubr.bf16.gmra.mrb[20].mxu1 %v7295_v33  ;;  %v5372_v33 = vsel %vm9069_vm11, %v5367_v53, %v5371_v17  ;;  %v2552_v14 = vrot.slane %v2390_v43, 5  ;;  %v7298_v48 = vcombine.low %v2543_v9, %v2546_v47  ;;  %v5386_v62 = vsel %vm9069_vm11, %v5381_v23, %v9881_v21  ;;  %v8785_v21 = vld [vmem:[%s10338_s1 + $0x210] sm:$0xff]   ;;  %v5272_v43 = vld [vmem:[#allocation2 + $0x64] sm:$0xf] }
 0x129   : > { %8096 = vmatprep.mubr.bf16.mxu1 %v7296_v25  ;;  %v5398_v25 = vshrl.u32 %v5265_v24, 16  ;;  %v7502_v18 = vcombine.low %v5362_v19, %v5372_v33  ;;  %v2550_v56 = vsel %vm9283_vm14, %v7267_v16, %v2549_v32  ;;  %v5407_v60 = vshll.u32 %v5266_v39, 16  ;;  %v5271_v19 = vld [vmem:[#allocation2 + $0x60] sm:$0xf]  ;;  %v8788_v32 = vld [vmem:[#allocation2 + $0x18] sm:$0xff]  }
 0x12a   : > { %v5396_v7 = vsel %vm9069_vm11, %v5391_v59, %v9883_v13  ;;  %v2553_v49 = vsel %vm9283_vm14, %v2551_v34, %v2552_v14  ;;  %v5417_v11 = vshll.u32 %v5267_v38, 16  ;;  %v5403_v1 = vrot.slane %v5401_v51, 5  ;;  %v8790_v51 = vld [vmem:[#allocation2 + $0x24] sm:$0xff]  }
 0x12b   : > { %v7299_v50 = vcombine.low %v2550_v56, %v2553_v49  ;;  %v5409_v58 = vrot.slane %v5407_v60, 5  ;;  %v5422_v5 = vshrl.u32 %v5268_v61, 16  ;;  %v5425_v2 = vshll.u32 %v5268_v61, 16 }
 0x12c   : > { %v5419_v17 = vrot.slane %v5417_v11, 5  ;;  %v5431_v55 = vshll.u32 %v5269_v63, 16  ;;  %v5441_v52 = vshll.u32 %v5270_v8, 16  ;;  %v836_v13 = vrot.slane %v9791_v3, 4 }
 0x12d   : > { %v5424_v27 = vrot.slane %v5422_v5, 4  ;;  %v5427_v28 = vrot.slane %v5425_v2, 5  ;;  %v7503_v53 = vcombine.low %v5386_v62, %v5396_v7  ;;  %v5446_v9 = vshrl.u32 %v5271_v19, 16  ;;  %v5276_v62 = vld [vmem:[#allocation2 + $0x74] sm:$0x1] }
 0x12e   : > { %8293 = vmatmul.mubr.bf16.gmra.mrb[28].mxu0 %v8779_v31  ;;  %v5435_v31 = vshrl.u32 %v5269_v63, 16  ;;  %v5433_v4 = vrot.slane %v5431_v55, 5  ;;  %v5443_v35 = vrot.slane %v5441_v52, 5  ;;  %v5449_v24 = vshll.u32 %v5271_v19, 16 }
 0x12f   : > { %8312 = vmatprep.mubr.bf16.mxu0 %v9860_v30  ;;  %v5400_v30 = vrot.slane %v5398_v25, 4  ;;  %v5428_v15 = vor.u32 %v5427_v28, %v5424_v27  ;;  %v5448_v14 = vrot.slane %v5446_v9, 4  ;;  %v5465_v61 = vshll.u32 %v5273_v37, 16  ;;  %v5279_v27 = vld [vmem:[#allocation2 + $0x80] sm:$0x1] }
 0x130   : > { %8097 = vmatmul.mubr.bf16.gmra.mrb[24].mxu1 %v7297_v40  ;;  %v5411_v40 = vshrl.u32 %v5266_v39, 16  ;;  %v5437_v12 = vrot.slane %v5435_v31, 4  ;;  %v5459_v39 = vshrl.u32 %v5272_v43, 16  ;;  %v5451_v38 = vrot.slane %v5449_v24, 5  ;;  %v5281_v37 = vld [vmem:[#allocation2 + $0x88] sm:$0xf] }
 0x131   : > { %8100 = vmatprep.mubr.bf16.mxu1 %v7298_v48  ;;  %v5404_v0 = vor.u32 %v5403_v1, %v5400_v30  ;;  %v5429_v23 = vrot.slane %v5428_v15, 4  ;;  %v5275_v48 = vld [vmem:[#allocation2 + $0x70] sm:$0xf]  ;;  %v5467_v11 = vrot.slane %v5465_v61, 5  ;;  %v5489_v55 = vshll.u32 %v5276_v62, 16 }
 0x132   : > { %v5413_v6 = vrot.slane %v5411_v40, 4  ;;  %v5438_v16 = vor.u32 %v5437_v12, %v5433_v4  ;;  %v5461_v34 = vrot.slane %v5459_v39, 4  ;;  %v5452_v63 = vor.u32 %v5451_v38, %v5448_v14  ;;  %v5280_v12 = vld [vmem:[#allocation2 + $0x84] sm:$0xf]  ;;  %v8791_v15 = vld [vmem:[#allocation2 + $0x30] sm:$0xff]   ;;  %v8793_v39 = vld [vmem:[#allocation2 + $0x3c] sm:$0xff]  }
 0x133   : > { %v5405_v22 = vrot.slane %v5404_v0, 4  ;;  %v5434_v56 = vsel %vm9069_vm11, %v5429_v23, %v5433_v4  ;;  %v5479_v49 = vshll.u32 %v5275_v48, 16  ;;  %v5483_v5 = vshrl.u32 %v5275_v48, 16  ;;  %v5278_v0 = vld [vmem:[#allocation2 + $0x7c] sm:$0xf]  ;;  %v8798_v61 = vld [vmem:[%s10338_s1 + $0x230] sm:$0xff]  }
 0x134   : > { %v5414_v41 = vor.u32 %v5413_v6, %v5409_v58  ;;  %v5439_v47 = vrot.slane %v5438_v16, 4  ;;  %v5277_v6 = vld [vmem:[#allocation2 + $0x78] sm:$0xf]  ;;  %v5491_v28 = vrot.slane %v5489_v55, 5  ;;  %v5507_v16 = vshrl.u32 %v5278_v0, 16 }
 0x135   : > { %v5410_v10 = vsel %vm9069_vm11, %v5405_v22, %v5409_v58  ;;  %v5481_v58 = vrot.slane %v5479_v49, 5  ;;  %v5497_v4 = vshll.u32 %v5277_v6, 16  ;;  %v5503_v22 = vshll.u32 %v5278_v0, 16 }
 0x136   : > { %8313 = vmatmul.mubr.bf16.vlgmr.msra.gmra.mrb[0].mxu0 %v7501_v29  ;;  %v5415_v26 = vrot.slane %v5414_v41, 4  ;;  %v5274_v29 = vld [vmem:[#allocation2 + $0x6c] sm:$0xf]  ;;  %v5444_v60 = vsel %vm9069_vm11, %v5439_v47, %v5443_v35  ;;  %v5494_v41 = vshrl.u32 %v5277_v6, 16  ;;  %v5513_v24 = vshll.u32 %v5279_v27, 16 }
 0x137   : > { %8345 = vmatpush3.bf16.msra.mxu0 %v9780_v54  ;;  %8316 = vmatprep.mubr.bf16.mxu0 %v7502_v18  ;;  %v5455_v54 = vshll.u32 %v5272_v43, 16  ;;  %v8789_v18 = vld [vmem:[%s10338_s1 + $0x218] sm:$0xff]   ;;  %v5470_v30 = vshrl.u32 %v5274_v29, 16  ;;  %v5473_v7 = vshll.u32 %v5274_v29, 16  ;;  %v8811_v35 = vld [vmem:[%s10338_s1 + $0x108] sm:$0xff]   ;;  %v5499_v9 = vrot.slane %v5497_v4, 5 }
 0x138   : > { %8346 = vmatprep.subr.bf16.mxu0 %v8783_v45  ;;  %8101 = vmatmul.mubr.bf16.gmra.mrb[28].mxu1 %v7299_v50  ;;  %v5420_v33 = vsel %vm9069_vm11, %v5415_v26, %v5419_v17  ;;  %v5453_v50 = vrot.slane %v5452_v63, 4  ;;  %v7505_v17 = vcombine.low %v5434_v56, %v5444_v60  ;;  %v5496_v43 = vrot.slane %v5494_v41, 4  ;;  %v5283_v63 = vld [vmem:[#allocation2 + $0x90] sm:$0xf]  ;;  %v8801_v4 = vld [vmem:[%s10338_s1 + $0x238] sm:$0xff]  }
 0x139   : > { %8120 = vmatprep.mubr.bf16.mxu1 %v8787_v20  ;;  %v7504_v59 = vcombine.low %v5410_v10, %v5420_v33  ;;  %v5457_v25 = vrot.slane %v5455_v54, 5  ;;  %v5472_v8 = vrot.slane %v5470_v30, 4  ;;  %v5475_v1 = vrot.slane %v5473_v7, 5  ;;  %v5282_v54 = vld [vmem:[#allocation2 + $0x8c] sm:$0x1] }
 0x13a   : > { %v5485_v20 = vrot.slane %v5483_v5, 4  ;;  %v5505_v10 = vrot.slane %v5503_v22, 5  ;;  %v5521_v14 = vshll.u32 %v5280_v12, 16  ;;  %v5500_v29 = vor.u32 %v5499_v9, %v5496_v43  ;;  %v5284_v7 = vld [vmem:[#allocation2 + $0x94] sm:$0xf]  ;;  %v8814_v9 = vld [vmem:[%s10338_s1 + $0x120] sm:$0xff]  }
 0x13b   : > { %8347 = vmatpush3.bf16.msra.mxu0 %v8783_v45  ;;  %v5462_v40 = vor.u32 %v5461_v34, %v5457_v25  ;;  %v8792_v45 = vld [vmem:[%s10338_s1 + $0x220] sm:$0xff]   ;;  %v5458_v31 = vsel %vm9069_vm11, %v5453_v50, %v5457_v25  ;;  %v5476_v52 = vor.u32 %v5475_v1, %v5472_v8  ;;  %v5515_v47 = vrot.slane %v5513_v24, 5  ;;  %v8812_v25 = vld [vmem:[%s10338_s1 + $0x110] sm:$0xff]   ;;  %v5285_v8 = vld [vmem:[#allocation2 + $0x98] sm:$0x1] }
 0x13c   : > { %8348 = vmatprep.subr.bf16.mxu0 %v8785_v21  ;;  %v5486_v26 = vor.u32 %v5485_v20, %v5481_v58  ;;  %v5527_v38 = vshll.u32 %v5281_v37, 16  ;;  %v5523_v56 = vrot.slane %v5521_v14, 5  ;;  %v5531_v34 = vshrl.u32 %v5281_v37, 16 }
 0x13d   : > { %v5463_v2 = vrot.slane %v5462_v40, 4  ;;  %v5501_v30 = vrot.slane %v5500_v29, 4  ;;  %v5542_v50 = vshrl.u32 %v5283_v63, 16  ;;  %v5545_v5 = vshll.u32 %v5283_v63, 16 }
 0x13e   : > { %8317 = vmatmul.mubr.bf16.gmra.mrb[4].mxu0 %v7503_v53  ;;  %v5477_v53 = vrot.slane %v5476_v52, 4  ;;  %v5487_v23 = vrot.slane %v5486_v26, 4  ;;  %v9948_v60 = vrot.slane %v5527_v38, 5  ;;  %v5533_v40 = vrot.slane %v5531_v34, 4  ;;  %v5288_v26 = vld [vmem:[#allocation2 + $0xa4] sm:$0x1] }
 0x13f   : > { %8320 = vmatprep.mubr.bf16.mxu0 %v7504_v59  ;;  %8349 = vmatpush3.bf16.msra.mxu0 %v8785_v21  ;;  %v5468_v21 = vsel %vm9069_vm11, %v5463_v2, %v5467_v11  ;;  %v5509_v59 = vrot.slane %v5507_v16, 4  ;;  %v5537_v11 = vshll.u32 %v5282_v54, 16  ;;  %v5551_v6 = vshll.u32 %v5284_v7, 16 }
 0x140   : > { %8121 = vmatmul.mubr.bf16.vlgmr.msra.gmra.mrb[0].mxu1 %v8788_v32  ;;  %8350 = vmatprep.subr.bf16.mxu0 %v8789_v18  ;;  %v7506_v19 = vcombine.low %v5458_v31, %v5468_v21  ;;  %v5482_v33 = vsel %vm9069_vm11, %v5477_v53, %v5481_v58  ;;  %v5518_v32 = vshrl.u32 %v5280_v12, 16  ;;  %v8794_v58 = vld [vmem:[#allocation2 + $0x48] sm:$0xff]   ;;  %v5534_v55 = vor.u32 %v5533_v40, %v9948_v60  ;;  %v8796_v31 = vld [vmem:[#allocation2 + $0x54] sm:$0xff]   ;;  %v5287_v53 = vld [vmem:[#allocation2 + $0xa0] sm:$0xf] }
 0x141   : > { %8124 = vmatprep.mubr.bf16.mxu1 %v8790_v51  ;;  %8400 = vmatpush3.bf16.msra.mxu1 %v9841_v46  ;;  %v8795_v46 = vld [vmem:[%s10338_s1 + $0x228] sm:$0xff]   ;;  %v5510_v51 = vor.u32 %v5509_v59, %v5505_v10  ;;  %v5539_v0 = vrot.slane %v5537_v11, 5  ;;  %v5544_v27 = vrot.slane %v5542_v50, 4  ;;  %v5547_v20 = vrot.slane %v5545_v5, 5  ;;  %v5293_v5 = vld [vmem:[#allocation2 + $0xb8] sm:$0xf] }
 0x142   : > { %8393 = vmatprep.subr.bf16.mxu1 %v8811_v35  ;;  %v5520_v48 = vrot.slane %v5518_v32, 4  ;;  %v5553_v41 = vrot.slane %v5551_v6, 5  ;;  %v5555_v21 = vshrl.u32 %v5284_v7, 16  ;;  %v5575_v24 = vshll.u32 %v5287_v53, 16  ;;  %v8797_v7 = vld [vmem:[#allocation2 + $0x60] sm:$0xff]   ;;  %v8799_v6 = vld [vmem:[#allocation2 + $0x6c] sm:$0xff]  }
 0x143   : > { %8351 = vmatpush3.bf16.msra.mxu0 %v8789_v18  ;;  %v5492_v18 = vsel %vm9069_vm11, %v5487_v23, %v5491_v28  ;;  %v5511_v1 = vrot.slane %v5510_v51, 4  ;;  %v5286_v28 = vld [vmem:[#allocation2 + $0x9c] sm:$0xf]  ;;  %v5579_v54 = vshrl.u32 %v5287_v53, 16  ;;  %v5585_v59 = vshll.u32 %v5288_v26, 16 }
 0x144   : > { %8352 = vmatprep.subr.bf16.mxu0 %v8792_v45  ;;  %v7507_v62 = vcombine.low %v5482_v33, %v5492_v18  ;;  %v5524_v49 = vor.u32 %v5523_v56, %v5520_v48  ;;  %v5557_v43 = vrot.slane %v5555_v21, 4  ;;  %v5566_v37 = vshrl.u32 %v5286_v28, 16  ;;  %v5290_v48 = vld [vmem:[#allocation2 + $0xac] sm:$0xf]  ;;  %v5291_v56 = vld [vmem:[#allocation2 + $0xb0] sm:$0x1] }
 0x145   : > { %8401 = vmatpush3.bf16.msra.mxu1 %v8811_v35  ;;  %v5516_v52 = vsel %vm9069_vm11, %v5511_v1, %v5515_v47  ;;  %v5535_v35 = vrot.slane %v5534_v55, 4  ;;  %v5581_v29 = vrot.slane %v5579_v54, 4  ;;  %v5289_v47 = vld [vmem:[#allocation2 + $0xa8] sm:$0xf]  ;;  %v5587_v51 = vrot.slane %v5585_v59, 5 }
 0x146   : > { %8321 = vmatmul.mubr.bf16.gmra.mrb[8].mxu0 %v7505_v17  ;;  %8394 = vmatprep.subr.bf16.mxu1 %v8812_v25  ;;  %v8813_v17 = vld [vmem:[%s10338_s1 + $0x118] sm:$0xff]   ;;  %v5525_v2 = vrot.slane %v5524_v49, 4  ;;  %v5558_v23 = vor.u32 %v5557_v43, %v5553_v41  ;;  %v5568_v32 = vrot.slane %v5566_v37, 4  ;;  %v5590_v34 = vshrl.u32 %v5289_v47, 16  ;;  %v5295_v26 = vld [vmem:[#allocation2 + $0xc0] sm:$0xf] }
 0x147   : > { %8324 = vmatprep.mubr.bf16.mxu0 %v7506_v19  ;;  %8353 = vmatpush3.bf16.msra.mxu0 %v8792_v45  ;;  %v5506_v45 = vsel %vm9069_vm11, %v5501_v30, %v5505_v10  ;;  %v5561_v19 = vshll.u32 %v5285_v8, 16  ;;  %v5540_v10 = vsel %vm9069_vm11, %v5535_v35, %v5539_v0  ;;  %v5599_v40 = vshll.u32 %v5290_v48, 16  ;;  %v5292_v8 = vld [vmem:[#allocation2 + $0xb4] sm:$0xf]  ;;  %v5294_v0 = vld [vmem:[#allocation2 + $0xbc] sm:$0x1] }
 0x148   : > { %8125 = vmatmul.mubr.bf16.gmra.mrb[4].mxu1 %v8791_v15  ;;  %8354 = vmatprep.subr.bf16.mxu0 %v8795_v46  ;;  %v7508_v22 = vcombine.low %v5506_v45, %v5516_v52  ;;  %v5530_v12 = vsel %vm9069_vm11, %v5525_v2, %v9948_v60  ;;  %v5548_v15 = vor.u32 %v5547_v20, %v5544_v27  ;;  %v5559_v18 = vrot.slane %v5558_v23, 4  ;;  %v845_v59 = vld [vmem:[#allocation2 + $0xd4] sm:$0x1] }
 0x149   : > { %8128 = vmatprep.mubr.bf16.mxu1 %v8793_v39  ;;  %8402 = vmatpush3.bf16.msra.mxu1 %v8812_v25  ;;  %v5563_v16 = vrot.slane %v5561_v19, 5  ;;  %v5577_v39 = vrot.slane %v5575_v24, 5  ;;  %v7509_v38 = vcombine.low %v5530_v12, %v5540_v10  ;;  %v5593_v60 = vshll.u32 %v5289_v47, 16  ;;  %v8817_v10 = vld [vmem:[%s10338_s1 + $0x138] sm:$0xff]  }
 0x14a   : > { %8395 = vmatprep.subr.bf16.mxu1 %v8813_v17  ;;  %v5549_v33 = vrot.slane %v5548_v15, 4  ;;  %v5592_v49 = vrot.slane %v5590_v34, 4  ;;  %v5603_v11 = vshrl.u32 %v5290_v48, 16  ;;  %v5609_v55 = vshll.u32 %v5291_v56, 16  ;;  %v5298_v48 = vld [vmem:[#allocation2 + $0xcc] sm:$0xf] }
 0x14b   : > { %8355 = vmatpush3.bf16.msra.mxu0 %v8795_v46  ;;  %v5569_v46 = vshll.u32 %v5286_v28, 16  ;;  %v5582_v30 = vor.u32 %v5581_v29, %v5577_v39  ;;  %v5564_v63 = vsel %vm9069_vm11, %v5559_v18, %v5563_v16  ;;  %v5614_v27 = vshrl.u32 %v5292_v8, 16  ;;  %v8802_v56 = vld [vmem:[#allocation2 + $0x84] sm:$0xff]  }
 0x14c   : > { %8356 = vmatprep.subr.bf16.mxu0 %v8798_v61  ;;  %v5554_v25 = vsel %vm9069_vm11, %v5549_v33, %v5553_v41  ;;  %v5605_v2 = vrot.slane %v5603_v11, 4  ;;  %v5617_v21 = vshll.u32 %v5292_v8, 16  ;;  %v5623_v19 = vshll.u32 %v5293_v5, 16 }
 0x14d   : > { %8403 = vmatpush3.bf16.msra.mxu1 %v8813_v17  ;;  %v5571_v14 = vrot.slane %v5569_v46, 5  ;;  %v7510_v50 = vcombine.low %v5554_v25, %v5564_v63  ;;  %v5583_v1 = vrot.slane %v5582_v30, 4  ;;  %v5601_v17 = vrot.slane %v5599_v40, 5  ;;  %v5296_v46 = vld [vmem:[#allocation2 + $0xc4] sm:$0xf] }
 0x14e   : > { %8325 = vmatmul.mubr.bf16.gmra.mrb[12].mxu0 %v7507_v62  ;;  %8396 = vmatprep.subr.bf16.mxu1 %v8814_v9  ;;  %v5619_v35 = vrot.slane %v5617_v21, 5  ;;  %v5627_v53 = vshrl.u32 %v5293_v5, 16  ;;  %v5633_v37 = vshll.u32 %v5294_v0, 16  ;;  %v5625_v54 = vrot.slane %v5623_v19, 5  ;;  %v6075_v19 = vld [vmem:[#allocation2 + $0x28] sm:$0xf] }
 0x14f   : > { %8328 = vmatprep.mubr.bf16.mxu0 %v7508_v22  ;;  %8357 = vmatpush3.bf16.msra.mxu0 %v8798_v61  ;;  %v8815_v61 = vld [vmem:[%s10338_s1 + $0x128] sm:$0xff]   ;;  %v5572_v62 = vor.u32 %v5571_v14, %v5568_v32  ;;  %v5588_v20 = vsel %vm9069_vm11, %v5583_v1, %v5587_v51  ;;  %v5606_v28 = vor.u32 %v5605_v2, %v5601_v17  ;;  %v5616_v22 = vrot.slane %v5614_v27, 4  ;;  %v8800_v14 = vld [vmem:[#allocation2 + $0x78] sm:$0xff]   ;;  %v5299_v51 = vld [vmem:[#allocation2 + $0xd0] sm:$0xf] }
 0x150   : > { %8129 = vmatmul.mubr.bf16.gmra.mrb[8].mxu1 %v8794_v58  ;;  %8358 = vmatprep.subr.bf16.mxu0 %v8801_v4  ;;  %v5595_v58 = vrot.slane %v5593_v60, 5  ;;  %v5629_v33 = vrot.slane %v5627_v53, 4  ;;  %v5635_v32 = vrot.slane %v5633_v37, 5  ;;  %v5641_v29 = vshll.u32 %v5295_v26, 16  ;;  %v8804_v53 = vld [vmem:[#allocation2 + $0x9c] sm:$0xff]  }
 0x151   : > { %8132 = vmatprep.mubr.bf16.mxu1 %v8796_v31  ;;  %8404 = vmatpush3.bf16.msra.mxu1 %v8814_v9  ;;  %v5573_v45 = vrot.slane %v5572_v62, 4  ;;  %v8816_v31 = vld [vmem:[%s10338_s1 + $0x130] sm:$0xff]   ;;  %v5607_v43 = vrot.slane %v5606_v28, 4  ;;  %v5297_v9 = vld [vmem:[#allocation2 + $0xc8] sm:$0x1]  ;;  %v5620_v24 = vor.u32 %v5619_v35, %v5616_v22  ;;  %v5647_v18 = vshll.u32 %v5296_v46, 16 }
 0x152   : > { %8397 = vmatprep.subr.bf16.mxu1 %v8815_v61  ;;  %v5596_v41 = vor.u32 %v5595_v58, %v5592_v49  ;;  %v5630_v25 = vor.u32 %v5629_v33, %v5625_v54  ;;  %v5651_v62 = vshrl.u32 %v5296_v46, 16  ;;  %v5657_v30 = vshll.u32 %v5297_v9, 16  ;;  %v6074_v28 = vld [vmem:[#allocation2 + $0x24] sm:$0xe] }
 0x153   : > { %8359 = vmatpush3.bf16.msra.mxu0 %v8801_v4  ;;  %v5578_v52 = vsel %vm9069_vm11, %v5573_v45, %v5577_v39  ;;  %v5611_v4 = vrot.slane %v5609_v55, 5  ;;  %v5638_v39 = vshrl.u32 %v5295_v26, 16  ;;  %v846_v49 = vsel %vm8962_vm7, %v836_v13, %v845_v59  ;;  %v6071_v55 = vld [vmem:[#allocation2 + $0x18] sm:$0xe]  ;;  %v6079_v59 = vld [vmem:[#allocation2 + $0x38] sm:$0x1] }
 0x154   : > { %v5597_v12 = vrot.slane %v5596_v41, 4  ;;  %v7511_v15 = vcombine.low %v5578_v52, %v5588_v20  ;;  %v5631_v63 = vrot.slane %v5630_v25, 4  ;;  %v5653_v11 = vrot.slane %v5651_v62, 4  ;;  %847 = vst [vmem:[#allocation2 + $0xd4] sm:$0x1] %v846_v49 }
 0x155   : > { %8405 = vmatpush3.bf16.msra.mxu1 %v8815_v61  ;;  %v5612_v23 = vsel %vm9069_vm11, %v5607_v43, %v5611_v4  ;;  %v5640_v34 = vrot.slane %v5638_v39, 4  ;;  %v5643_v61 = vrot.slane %v5641_v29, 5  ;;  %v5659_v8 = vrot.slane %v5657_v30, 5  ;;  %v6073_v41 = vld [vmem:[#allocation2 + $0x20] sm:$0x1]  ;;  %v8805_v29 = vld [vmem:[#allocation2 + $0xa8] sm:$0xff]  }
 0x156   : > { %8329 = vmatmul.mubr.bf16.gmra.mrb[16].mxu0 %v7509_v38  ;;  %8398 = vmatprep.subr.bf16.mxu1 %v8816_v31  ;;  %v5602_v16 = vsel %vm9069_vm11, %v5597_v12, %v5601_v17  ;;  %v5621_v38 = vrot.slane %v5620_v24, 4  ;;  %v5636_v45 = vsel %vm9069_vm11, %v5631_v63, %v5635_v32  ;;  %v5662_v1 = vshrl.u32 %v5298_v48, 16  ;;  %v6077_v32 = vld [vmem:[#allocation2 + $0x30] sm:$0xe]  ;;  %v6080_v25 = vld [vmem:[#allocation2 + $0x3c] sm:$0xe] }
 0x157   : > { %8332 = vmatprep.mubr.bf16.mxu0 %v7510_v50  ;;  %v7512_v47 = vcombine.low %v5602_v16, %v5612_v23  ;;  %v5644_v40 = vor.u32 %v5643_v61, %v5640_v34  ;;  %v1009_v50 = vld [vmem:[#allocation2 + $0xd0] sm:$0x8]  ;;  %v5665_v58 = vshll.u32 %v5298_v48, 16  ;;  %v5671_v5 = vshll.u32 %v5299_v51, 16  ;;  %v6082_v48 = vld [vmem:[#allocation2 + $0x44] sm:$0x1] }
 0x158   : > { %8133 = vmatmul.mubr.bf16.gmra.mrb[12].mxu1 %v8797_v7  ;;  %v5626_v60 = vsel %vm9069_vm11, %v5621_v38, %v5625_v54  ;;  %v5649_v7 = vrot.slane %v5647_v18, 5  ;;  %v5675_v3 = vshrl.u32 %v5299_v51, 16  ;;  %v7187_v13 = vrot.slane %v1009_v50, 11  ;;  %v6081_v18 = vld [vmem:[#allocation2 + $0x40] sm:$0xf] }
 0x159   : > { %8136 = vmatprep.mubr.bf16.mxu1 %v8799_v6  ;;  %8406 = vmatpush3.bf16.msra.mxu1 %v8816_v31  ;;  %v7513_v6 = vcombine.low %v5626_v60, %v5636_v45  ;;  %v5645_v17 = vrot.slane %v5644_v40, 4  ;;  %v5664_v0 = vrot.slane %v5662_v1, 4  ;;  %v5667_v27 = vrot.slane %v5665_v58, 5  ;;  %v8803_v31 = vld [vmem:[#allocation2 + $0x90] sm:$0xff]  }
 0x15a   : > { %8399 = vmatprep.subr.bf16.mxu1 %v8817_v10  ;;  %v5654_v2 = vor.u32 %v5653_v11, %v5649_v7  ;;  %v6169_v21 = vrot.slane %v6072_v36, 5  ;;  %v10000_v22 = vrot.slane %v5671_v5, 5  ;;  %v5677_v12 = vrot.slane %v5675_v3, 4  ;;  %v8806_v60 = vld [vmem:[#allocation2 + $0xb4] sm:$0xff]   ;;  %v6083_v11 = vld [vmem:[#allocation2 + $0x48] sm:$0xe] }
 0x15b   : > { %v5650_v52 = vsel %vm9069_vm11, %v5645_v17, %v5649_v7  ;;  %v5668_v4 = vor.u32 %v5667_v27, %v5664_v0  ;;  %v7524_v35 = vrot.slane %v6071_v55, 9  ;;  %v1134_v37 = vld [vmem:[#allocation2 + $0xd4] sm:$0x1]  ;;  %v6172_v46 = vrot.slane %v6073_v41, 5  ;;  %v6085_v1 = vld [vmem:[#allocation2 + $0x50] sm:$0x1] }
 0x15c   : > { %v5655_v20 = vrot.slane %v5654_v2, 4  ;;  %v7525_v9 = vrot.slane %v6074_v28, 9  ;;  %v1135_v16 = vsel %vm9021_vm8, %v7187_v13, %v1134_v37  ;;  %v6171_v54 = vrot.slane %v6169_v21, 4  ;;  %v6087_v13 = vld [vmem:[#allocation2 + $0x58] sm:$0xf]  ;;  %v8807_v37 = vld [vmem:[#allocation2 + $0xc0] sm:$0xff]  }
 0x15d   : > { %8407 = vmatpush3.bf16.msra.mxu1 %v8817_v10  ;;  %v6176_v10 = vrot.slane %v6075_v19, 5  ;;  %v10006_v24 = vrot.slane %v5668_v4, 4  ;;  %1136 = vst [vmem:[#allocation2 + $0xd4] sm:$0x1] %v1135_v16  ;;  %v5678_v39 = vor.u32 %v5677_v12, %v10000_v22  ;;  %v6186_v42 = vrot.slane %v6079_v59, 5 }
 0x15e   : > { %8333 = vmatmul.mubr.bf16.gmra.mrb[20].mxu0 %v7511_v15  ;;  %v5660_v26 = vsel %vm9069_vm11, %v5655_v20, %v5659_v8  ;;  %v6076_v15 = vld [vmem:[#allocation2 + $0x2c] sm:$0x1]  ;;  %v6190_v61 = vrot.slane %v6081_v18, 5  ;;  %v10011_v62 = vsel %vm9283_vm14, %v7524_v35, %v6169_v21  ;;  %v10015_v30 = vsel %vm9283_vm14, %v6171_v54, %v6172_v46  ;;  %v6088_v20 = vld [vmem:[#allocation2 + $0x5c] sm:$0x1] }
 0x15f   : > { %8336 = vmatprep.mubr.bf16.mxu0 %v7512_v47  ;;  %v7514_v43 = vcombine.low %v5650_v52, %v5660_v26  ;;  %v6178_v33 = vrot.slane %v6176_v10, 4  ;;  %v6179_v23 = vrot.slane %v6076_v15, 5  ;;  %v7526_v47 = vrot.slane %v6077_v32, 9  ;;  %v6084_v8 = vld [vmem:[#allocation2 + $0x4c] sm:$0xf] }
 0x160   : > { %8137 = vmatmul.mubr.bf16.gmra.mrb[16].mxu1 %v8800_v14  ;;  %v6078_v14 = vld [vmem:[#allocation2 + $0x34] sm:$0xf]  ;;  %v6193_v51 = vrot.slane %v6082_v48, 5  ;;  %v5679_v63 = vrot.slane %v5678_v39, 4  ;;  %v10019_v7 = vsel %vm9283_vm14, %v7525_v9, %v6176_v10  ;;  %v6192_v40 = vrot.slane %v6190_v61, 4 }
 0x161   : > { %8140 = vmatprep.mubr.bf16.mxu1 %v8802_v56  ;;  %v6183_v38 = vrot.slane %v6078_v14, 5  ;;  %v7527_v56 = vrot.slane %v6080_v25, 9  ;;  %v10023_v49 = vsel %vm9283_vm14, %v6178_v33, %v6179_v23  ;;  %v7528_v58 = vrot.slane %v6083_v11, 9  ;;  %v3414_v41 = vld [vmem:[#allocation2 + $0x6c] sm:$0xf] }
 0x162   : > { %v6197_v5 = vrot.slane %v6084_v8, 5  ;;  %v5674_v2 = vsel %vm9069_vm11, %v10006_v24, %v10000_v22  ;;  %v7556_v3 = vcombine.low %v10011_v62, %v10015_v30  ;;  %v6200_v36 = vrot.slane %v6085_v1, 5  ;;  %v3415_v12 = vld [vmem:[#allocation2 + $0x70] sm:$0xf]  ;;  %v3417_v16 = vld [vmem:[#allocation2 + $0x78] sm:$0xf] }
 0x163   : > { %v6185_v34 = vrot.slane %v6183_v38, 4  ;;  %v10027_v50 = vsel %vm9283_vm14, %v7526_v47, %v6183_v38  ;;  %v10041_v55 = vsel %vm9283_vm14, %v7527_v56, %v6190_v61  ;;  %v10045_v27 = vsel %vm9283_vm14, %v6192_v40, %v6193_v51  ;;  %v3418_v32 = vld [vmem:[#allocation2 + $0x7c] sm:$0xf]  ;;  %v3419_v47 = vld [vmem:[#allocation2 + $0x80] sm:$0x1] }
 0x164   : > { %v5300_v17 = vld [vmem:[#allocation2 + $0xd4] sm:$0x1]  ;;  %v6199_v52 = vrot.slane %v6197_v5, 4  ;;  %v7557_v21 = vcombine.low %v10019_v7, %v10023_v49  ;;  %v6204_v22 = vrot.slane %v6087_v13, 5  ;;  %v3631_v26 = vshrl.u32 %v3414_v41, 16 }
 0x165   : > { %v10031_v45 = vsel %vm9283_vm14, %v6185_v34, %v6186_v42  ;;  %v5681_v0 = vshll.u32 %v5300_v17, 16  ;;  %v3634_v15 = vshll.u32 %v3414_v41, 16  ;;  %v6207_v9 = vrot.slane %v6088_v20, 5  ;;  %v6089_v48 = vld [vmem:[#allocation2 + $0x60] sm:$0xe] }
 0x166   : > { %8337 = vmatmul.mubr.bf16.gmra.mrb[24].mxu0 %v7513_v6  ;;  %v6086_v6 = vld [vmem:[#allocation2 + $0x54] sm:$0xe]  ;;  %v7558_v28 = vcombine.low %v10027_v50, %v10031_v45  ;;  %v10057_v19 = vsel %vm9283_vm14, %v6199_v52, %v6200_v36  ;;  %v3640_v10 = vshll.u32 %v3415_v12, 16  ;;  %v3633_v54 = vrot.slane %v3631_v26, 4  ;;  %v6090_v56 = vld [vmem:[#allocation2 + $0x64] sm:$0xf] }
 0x167   : > { %8340 = vmatprep.mubr.bf16.mxu0 %v7514_v43  ;;  %v7529_v4 = vrot.slane %v6086_v6, 9  ;;  %v5683_v35 = vrot.slane %v5681_v0, 5  ;;  %v7559_v43 = vcombine.low %v10041_v55, %v10045_v27  ;;  %v3636_v33 = vrot.slane %v3634_v15, 5  ;;  %v6091_v51 = vld [vmem:[#allocation2 + $0x68] sm:$0x1] }
 0x168   : > { %8141 = vmatmul.mubr.bf16.gmra.mrb[20].mxu1 %v8803_v31  ;;  %v10049_v31 = vsel %vm9283_vm14, %v7528_v58, %v6197_v5  ;;  %v3644_v23 = vshrl.u32 %v3415_v12, 16  ;;  %v6206_v39 = vrot.slane %v6204_v22, 4  ;;  %v3655_v18 = vshrl.u32 %v3417_v16, 16  ;;  %v6092_v8 = vld [vmem:[#allocation2 + $0x6c] sm:$0xe] }
 0x169   : > { %8144 = vmatprep.mubr.bf16.mxu1 %v8804_v53  ;;  %v3416_v53 = vld [vmem:[#allocation2 + $0x74] sm:$0x1]  ;;  %v7560_v46 = vcombine.low %v10049_v31, %v10057_v19  ;;  %v5684_v24 = vsel %vm9069_vm11, %v5679_v63, %v5683_v35  ;;  %v10067_v38 = vsel %vm9283_vm14, %v7529_v4, %v6204_v22  ;;  %v3637_v25 = vor.u32 %v3636_v33, %v3633_v54  ;;  %v6093_v17 = vld [vmem:[#allocation2 + $0x70] sm:$0xf]  ;;  %v3420_v22 = vld [vmem:[#allocation2 + $0x84] sm:$0xf] }
 0x16a   : > { %v7515_v14 = vcombine.low %v5674_v2, %v5684_v24  ;;  %v3650_v59 = vshll.u32 %v3416_v53, 16  ;;  %v3646_v42 = vrot.slane %v3644_v23, 4  ;;  %v3658_v61 = vshll.u32 %v3417_v16, 16  ;;  %v3421_v16 = vld [vmem:[#allocation2 + $0x88] sm:$0xf] }
 0x16b   : > { %v3664_v62 = vshll.u32 %v3418_v32, 16  ;;  %v3668_v30 = vshrl.u32 %v3418_v32, 16  ;;  %v3657_v40 = vrot.slane %v3655_v18, 4  ;;  %v3674_v11 = vshll.u32 %v3419_v47, 16  ;;  %v3422_v23 = vld [vmem:[#allocation2 + $0x8c] sm:$0x1] }
 0x16c   : > { %v3652_v34 = vrot.slane %v3650_v59, 5  ;;  %v10071_v1 = vsel %vm9283_vm14, %v6206_v39, %v6207_v9  ;;  %v3660_v58 = vrot.slane %v3658_v61, 5  ;;  %v7530_v13 = vrot.slane %v6089_v48, 9  ;;  %v3423_v47 = vld [vmem:[#allocation2 + $0x90] sm:$0xf] }
 0x16d   : > { %v3666_v5 = vrot.slane %v3664_v62, 5  ;;  %v3670_v6 = vrot.slane %v3668_v30, 4  ;;  %v6211_v0 = vrot.slane %v6090_v56, 5  ;;  %v3676_v41 = vrot.slane %v3674_v11, 5  ;;  %v3425_v18 = vld [vmem:[#allocation2 + $0x98] sm:$0x1] }
 0x16e   : > { %8341 = vmatmul.mubr.bf16.gmra.mrb[28].mxu0 %v7515_v14  ;;  %v3661_v52 = vor.u32 %v3660_v58, %v3657_v40  ;;  %v6214_v4 = vrot.slane %v6091_v51, 5  ;;  %v7531_v53 = vrot.slane %v6092_v8, 9  ;;  %v6218_v26 = vrot.slane %v6093_v17, 5  ;;  %v6095_v62 = vld [vmem:[#allocation2 + $0x78] sm:$0xe] }
 0x16f   : > { %8360 = vmatprep.mubr.bf16.mxu0 %v7556_v3  ;;  %v6094_v3 = vld [vmem:[#allocation2 + $0x74] sm:$0x1]  ;;  %v3671_v20 = vor.u32 %v3670_v6, %v3666_v5  ;;  %v6213_v35 = vrot.slane %v6211_v0, 4  ;;  %v7561_v24 = vcombine.low %v10067_v38, %v10071_v1  ;;  %v10081_v54 = vsel %vm9283_vm14, %v7530_v13, %v6211_v0  ;;  %v6096_v51 = vld [vmem:[#allocation2 + $0x7c] sm:$0xf] }
 0x170   : > { %8145 = vmatmul.mubr.bf16.gmra.mrb[24].mxu1 %v8805_v29  ;;  %v3642_v29 = vrot.slane %v3640_v10, 5  ;;  %v6221_v10 = vrot.slane %v6094_v3, 5  ;;  %v6220_v33 = vrot.slane %v6218_v26, 4  ;;  %v3679_v32 = vshrl.u32 %v3420_v22, 16  ;;  %v6097_v8 = vld [vmem:[#allocation2 + $0x80] sm:$0x1] }
 0x171   : > { %8148 = vmatprep.mubr.bf16.mxu1 %v8806_v60  ;;  %v3638_v60 = vrot.slane %v3637_v25, 4  ;;  %v3672_v9 = vrot.slane %v3671_v20, 4  ;;  %v3682_v59 = vshll.u32 %v3420_v22, 16  ;;  %v3424_v25 = vld [vmem:[#allocation2 + $0x94] sm:$0xf]  ;;  %v10099_v49 = vsel %vm9283_vm14, %v7531_v53, %v6218_v26 }
 0x172   : > { %v3647_v63 = vor.u32 %v3646_v42, %v3642_v29  ;;  %v3688_v42 = vshll.u32 %v3421_v16, 16  ;;  %v10103_v48 = vsel %vm9283_vm14, %v6220_v33, %v6221_v10  ;;  %v3698_v61 = vshll.u32 %v3422_v23, 16  ;;  %v6100_v55 = vld [vmem:[#allocation2 + $0x8c] sm:$0x1]  ;;  %v3427_v23 = vld [vmem:[#allocation2 + $0xa0] sm:$0xf] }
 0x173   : > { %v3643_v2 = vsel %vm9069_vm11, %v3638_v60, %v3642_v29  ;;  %v3677_v39 = vsel %vm9069_vm11, %v3672_v9, %v3676_v41  ;;  %v10092_v29 = vsel %vm9283_vm14, %v6213_v35, %v6214_v4  ;;  %v3684_v56 = vrot.slane %v3682_v59, 5 }
 0x174   : > { %v3648_v36 = vrot.slane %v3647_v63, 4  ;;  %v3690_v30 = vrot.slane %v3688_v42, 5  ;;  %v3703_v50 = vshrl.u32 %v3423_v47, 16  ;;  %v3706_v45 = vshll.u32 %v3423_v47, 16 }
 0x175   : > { %v3700_v40 = vrot.slane %v3698_v61, 5  ;;  %v3716_v11 = vshrl.u32 %v3424_v25, 16  ;;  %v3722_v17 = vshll.u32 %v3425_v18, 16  ;;  %v7532_v3 = vrot.slane %v6095_v62, 9 }
 0x176   : > { %v3653_v12 = vsel %vm9069_vm11, %v3648_v36, %v3652_v34  ;;  %8361 = vmatmul.mubr.bf16.vlgmr.msra.gmra.mrb[0].mxu0 %v7557_v21  ;;  %v3681_v21 = vrot.slane %v3679_v32, 4  ;;  %v3692_v34 = vshrl.u32 %v3421_v16, 16  ;;  %v3705_v58 = vrot.slane %v3703_v50, 4 }
 0x177   : > { %v7372_v15 = vcombine.low %v3643_v2, %v3653_v12  ;;  %8364 = vmatprep.mubr.bf16.mxu0 %v7558_v28  ;;  %v3712_v28 = vshll.u32 %v3424_v25, 16  ;;  %v6098_v2 = vld [vmem:[#allocation2 + $0x84] sm:$0xe]  ;;  %v3718_v0 = vrot.slane %v3716_v11, 4  ;;  %v3724_v41 = vrot.slane %v3722_v17, 5 }
 0x178   : > { %8149 = vmatmul.mubr.bf16.gmra.mrb[28].mxu1 %v8807_v37  ;;  %v3662_v37 = vrot.slane %v3661_v52, 4  ;;  %v3685_v60 = vor.u32 %v3684_v56, %v3681_v21  ;;  %v3694_v63 = vrot.slane %v3692_v34, 4  ;;  %v6099_v52 = vld [vmem:[#allocation2 + $0x88] sm:$0xf]  ;;  %v6225_v4 = vrot.slane %v6096_v51, 5 }
 0x179   : > { %8184 = vmatprep.mubr.bf16.mxu1 %v7372_v15  ;;  %v3714_v6 = vrot.slane %v3712_v28, 5  ;;  %v6228_v22 = vrot.slane %v6097_v8, 5  ;;  %v3426_v12 = vld [vmem:[#allocation2 + $0x9c] sm:$0xf]  ;;  %v7533_v15 = vrot.slane %v6098_v2, 9  ;;  %v7563_v9 = vcombine.low %v10099_v49, %v10103_v48 }
 0x17a   : > { %v3667_v14 = vsel %vm9069_vm11, %v3662_v37, %v3666_v5  ;;  %v3708_v5 = vrot.slane %v3706_v45, 5  ;;  %v3686_v36 = vrot.slane %v3685_v60, 4  ;;  %v3695_v13 = vor.u32 %v3694_v63, %v3690_v30  ;;  %v3431_v34 = vld [vmem:[#allocation2 + $0xb0] sm:$0x1]  ;;  %v6101_v45 = vld [vmem:[#allocation2 + $0x90] sm:$0xe] }
 0x17b   : > { %v7373_v7 = vcombine.low %v3667_v14, %v3677_v39  ;;  %v3719_v26 = vor.u32 %v3718_v0, %v3714_v6  ;;  %v7562_v37 = vcombine.low %v10081_v54, %v10092_v29  ;;  %v6227_v16 = vrot.slane %v6225_v4, 4  ;;  %v3428_v54 = vld [vmem:[#allocation2 + $0xa4] sm:$0x1]  ;;  %v3429_v39 = vld [vmem:[#allocation2 + $0xa8] sm:$0xf] }
 0x17c   : > { %v3709_v20 = vor.u32 %v3708_v5, %v3705_v58  ;;  %v3691_v35 = vsel %vm9069_vm11, %v3686_v36, %v3690_v30  ;;  %v3696_v53 = vrot.slane %v3695_v13, 4  ;;  %v6232_v33 = vrot.slane %v6099_v52, 5  ;;  %v6103_v13 = vld [vmem:[#allocation2 + $0x98] sm:$0x1] }
 0x17d   : > { %v3727_v32 = vshrl.u32 %v3426_v12, 16  ;;  %v10123_v19 = vsel %vm9283_vm14, %v7532_v3, %v6225_v4  ;;  %v6235_v47 = vrot.slane %v6100_v55, 5  ;;  %v3730_v42 = vshll.u32 %v3426_v12, 16 }
 0x17e   : > { %8365 = vmatmul.mubr.bf16.gmra.mrb[4].mxu0 %v7559_v43  ;;  %v3710_v10 = vrot.slane %v3709_v20, 4  ;;  %v3701_v27 = vsel %vm9069_vm11, %v3696_v53, %v3700_v40  ;;  %v3720_v43 = vrot.slane %v3719_v26, 4  ;;  %v10133_v59 = vsel %vm9283_vm14, %v7533_v15, %v6232_v33  ;;  %v6102_v40 = vld [vmem:[#allocation2 + $0x94] sm:$0xf] }
 0x17f   : > { %8368 = vmatprep.mubr.bf16.mxu0 %v7560_v46  ;;  %v7374_v14 = vcombine.low %v3691_v35, %v3701_v27  ;;  %v10127_v46 = vsel %vm9283_vm14, %v6227_v16, %v6228_v22  ;;  %v3729_v25 = vrot.slane %v3727_v32, 4  ;;  %v3736_v18 = vshll.u32 %v3427_v23, 16  ;;  %v6105_v22 = vld [vmem:[#allocation2 + $0xa0] sm:$0xf]  ;;  %v3432_v15 = vld [vmem:[#allocation2 + $0xb4] sm:$0xf] }
 0x180   : > { %8185 = vmatmul.mubr.bf16.vlgmr.msra.gmra.mrb[16].mxu1 %v7373_v7  ;;  %v3715_v31 = vsel %vm9069_vm11, %v3710_v10, %v3714_v6  ;;  %v3725_v29 = vsel %vm9069_vm11, %v3720_v43, %v3724_v41  ;;  %v3430_v7 = vld [vmem:[#allocation2 + $0xac] sm:$0xf]  ;;  %v3740_v56 = vshrl.u32 %v3427_v23, 16  ;;  %v7564_v61 = vcombine.low %v10123_v19, %v10127_v46  ;;  %v6104_v41 = vld [vmem:[#allocation2 + $0x9c] sm:$0xe] }
 0x181   : > { %8188 = vmatprep.mubr.bf16.mxu1 %v7374_v14  ;;  %v7375_v21 = vcombine.low %v3715_v31, %v3725_v29  ;;  %v3746_v62 = vshll.u32 %v3428_v54, 16  ;;  %v3751_v30 = vshrl.u32 %v3429_v39, 16  ;;  %v3754_v50 = vshll.u32 %v3429_v39, 16  ;;  %v6106_v27 = vld [vmem:[#allocation2 + $0xa4] sm:$0x1] }
 0x182   : > { %v6234_v28 = vrot.slane %v6232_v33, 4  ;;  %v3732_v51 = vrot.slane %v3730_v42, 5  ;;  %v3738_v60 = vrot.slane %v3736_v18, 5  ;;  %v3742_v63 = vrot.slane %v3740_v56, 4  ;;  %v3433_v43 = vld [vmem:[#allocation2 + $0xb8] sm:$0xf] }
 0x183   : > { %v3748_v11 = vrot.slane %v3746_v62, 5  ;;  %v3753_v8 = vrot.slane %v3751_v30, 4  ;;  %v3756_v58 = vrot.slane %v3754_v50, 5  ;;  %v3760_v5 = vshll.u32 %v3430_v7, 16  ;;  %v3434_v31 = vld [vmem:[#allocation2 + $0xbc] sm:$0x1] }
 0x184   : > { %v3733_v6 = vor.u32 %v3732_v51, %v3729_v25  ;;  %v3743_v17 = vor.u32 %v3742_v63, %v3738_v60  ;;  %v3764_v2 = vshrl.u32 %v3430_v7, 16  ;;  %v3770_v36 = vshll.u32 %v3431_v34, 16  ;;  %v3435_v7 = vld [vmem:[#allocation2 + $0xc0] sm:$0xf]  ;;  %v3436_v34 = vld [vmem:[#allocation2 + $0xc4] sm:$0xf] }
 0x185   : > { %v3757_v0 = vor.u32 %v3756_v58, %v3753_v8  ;;  %v3762_v3 = vrot.slane %v3760_v5, 5  ;;  %v7534_v52 = vrot.slane %v6101_v45, 9  ;;  %v6239_v20 = vrot.slane %v6102_v40, 5  ;;  %v6107_v50 = vld [vmem:[#allocation2 + $0xa8] sm:$0xe] }
 0x186   : > { %8369 = vmatmul.mubr.bf16.gmra.mrb[8].mxu0 %v7561_v24  ;;  %v10142_v4 = vsel %vm9283_vm14, %v6234_v28, %v6235_v47  ;;  %v3734_v38 = vrot.slane %v3733_v6, 4  ;;  %v3744_v1 = vrot.slane %v3743_v17, 4  ;;  %v3766_v24 = vrot.slane %v3764_v2, 4  ;;  %v6109_v58 = vld [vmem:[#allocation2 + $0xb0] sm:$0x1] }
 0x187   : > { %8372 = vmatprep.mubr.bf16.mxu0 %v7562_v37  ;;  %v3758_v12 = vrot.slane %v3757_v0, 4  ;;  %v3772_v35 = vrot.slane %v3770_v36, 5  ;;  %v6241_v53 = vrot.slane %v6239_v20, 4  ;;  %v6242_v26 = vrot.slane %v6103_v13, 5 }
 0x188   : > { %8189 = vmatmul.mubr.bf16.gmra.mrb[20].mxu1 %v7375_v21  ;;  %v3739_v37 = vsel %vm9069_vm11, %v3734_v38, %v3738_v60  ;;  %v3749_v10 = vsel %vm9069_vm11, %v3744_v1, %v3748_v11  ;;  %v3767_v16 = vor.u32 %v3766_v24, %v3762_v3  ;;  %v6240_v55 = vsel %vm9283_vm14, %v7534_v52, %v6239_v20  ;;  %v6108_v60 = vld [vmem:[#allocation2 + $0xac] sm:$0xf]  ;;  %v6111_v52 = vld [vmem:[#allocation2 + $0xb8] sm:$0xf] }
 0x189   : > { %v7565_v33 = vcombine.low %v10133_v59, %v10142_v4  ;;  %v7376_v23 = vcombine.low %v3739_v37, %v3749_v10  ;;  %v6243_v32 = vsel %vm9283_vm14, %v6241_v53, %v6242_v26  ;;  %v7535_v14 = vrot.slane %v6104_v41, 9  ;;  %v6110_v26 = vld [vmem:[#allocation2 + $0xb4] sm:$0xe]  ;;  %v6114_v37 = vld [vmem:[#allocation2 + $0xc4] sm:$0xf] }
 0x18a   : > { %v3763_v19 = vsel %vm9069_vm11, %v3758_v12, %v3762_v3  ;;  %v3768_v46 = vrot.slane %v3767_v16, 4  ;;  %v6246_v54 = vrot.slane %v6105_v22, 5  ;;  %v3775_v39 = vshrl.u32 %v3432_v15, 16 }
 0x18b   : > { %8192 = vmatprep.mubr.bf16.mxu1 %v7376_v23  ;;  %v7566_v29 = vcombine.low %v6240_v55, %v6243_v32  ;;  %v6249_v47 = vrot.slane %v6106_v27, 5  ;;  %v3778_v59 = vshll.u32 %v3432_v15, 16  ;;  %v3784_v25 = vshll.u32 %v3433_v43, 16  ;;  %v6113_v32 = vld [vmem:[#allocation2 + $0xc0] sm:$0xe] }
 0x18c   : > { %v3773_v21 = vsel %vm9069_vm11, %v3768_v46, %v3772_v35  ;;  %v3777_v42 = vrot.slane %v3775_v39, 4  ;;  %v3788_v18 = vshrl.u32 %v3433_v43, 16  ;;  %v3794_v56 = vshll.u32 %v3434_v31, 16  ;;  %v6112_v43 = vld [vmem:[#allocation2 + $0xbc] sm:$0x1] }
 0x18d   : > { %v7377_v62 = vcombine.low %v3763_v19, %v3773_v21  ;;  %v10163_v30 = vsel %vm9283_vm14, %v7535_v14, %v6246_v54  ;;  %v3780_v49 = vrot.slane %v3778_v59, 5  ;;  %v3786_v48 = vrot.slane %v3784_v25, 5  ;;  %v6115_v14 = vld [vmem:[#allocation2 + $0xc8] sm:$0x1] }
 0x18e   : > { %8373 = vmatmul.mubr.bf16.gmra.mrb[12].mxu0 %v7563_v9  ;;  %v3437_v9 = vld [vmem:[#allocation2 + $0xc8] sm:$0x1]  ;;  %v6248_v45 = vrot.slane %v6246_v54, 4  ;;  %v3790_v28 = vrot.slane %v3788_v18, 4  ;;  %v3796_v51 = vrot.slane %v3794_v56, 5  ;;  %v3802_v40 = vshll.u32 %v3435_v7, 16 }
 0x18f   : > { %8376 = vmatprep.mubr.bf16.mxu0 %v7564_v61  ;;  %v3799_v61 = vshrl.u32 %v3435_v7, 16  ;;  %v3781_v63 = vor.u32 %v3780_v49, %v3777_v42  ;;  %v3808_v11 = vshll.u32 %v3436_v34, 16  ;;  %v3812_v8 = vshrl.u32 %v3436_v34, 16  ;;  %v6117_v42 = vld [vmem:[#allocation2 + $0xd0] sm:$0xf] }
 0x190   : > { %8193 = vmatmul.mubr.bf16.gmra.mrb[24].mxu1 %v7377_v62  ;;  %v3791_v5 = vor.u32 %v3790_v28, %v3786_v48  ;;  %v3818_v17 = vshll.u32 %v3437_v9, 16  ;;  %v7536_v2 = vrot.slane %v6107_v50, 9  ;;  %v3804_v13 = vrot.slane %v3802_v40, 5  ;;  %v6118_v49 = vld [vmem:[#allocation2 + $0xd4] sm:$0x1] }
 0x191   : > { %v3801_v6 = vrot.slane %v3799_v61, 4  ;;  %v3782_v36 = vrot.slane %v3781_v63, 4  ;;  %v3810_v0 = vrot.slane %v3808_v11, 5  ;;  %v3814_v3 = vrot.slane %v3812_v8, 4 }
 0x192   : > { %v6250_v20 = vsel %vm9283_vm14, %v6248_v45, %v6249_v47  ;;  %v3792_v41 = vrot.slane %v3791_v5, 4  ;;  %v6253_v4 = vrot.slane %v6108_v60, 5  ;;  %v6256_v38 = vrot.slane %v6109_v58, 5 }
 0x193   : > { %v3787_v1 = vsel %vm9069_vm11, %v3782_v36, %v3786_v48  ;;  %v3805_v24 = vor.u32 %v3804_v13, %v3801_v6  ;;  %v3815_v22 = vor.u32 %v3814_v3, %v3810_v0  ;;  %v3820_v12 = vrot.slane %v3818_v17, 5 }
 0x194   : > { %v3797_v35 = vsel %vm9069_vm11, %v3792_v41, %v3796_v51  ;;  %v6255_v53 = vrot.slane %v6253_v4, 4  ;;  %v6260_v15 = vrot.slane %v6111_v52, 5  ;;  %v6254_v27 = vsel %vm9283_vm14, %v7536_v2, %v6253_v4 }
 0x195   : > { %v7378_v10 = vcombine.low %v3787_v1, %v3797_v35  ;;  %v3806_v16 = vrot.slane %v3805_v24, 4  ;;  %v3816_v55 = vrot.slane %v3815_v22, 4  ;;  %v7537_v46 = vrot.slane %v6110_v26, 9 }
 0x196   : > { %8377 = vmatmul.mubr.bf16.gmra.mrb[16].mxu0 %v7565_v33  ;;  %v7567_v33 = vcombine.low %v10163_v30, %v6250_v20  ;;  %v6257_v23 = vsel %vm9283_vm14, %v6255_v53, %v6256_v38  ;;  %v6267_v54 = vrot.slane %v6114_v37, 5  ;;  %v6262_v47 = vrot.slane %v6260_v15, 4  ;;  %v6116_v30 = vld [vmem:[#allocation2 + $0xcc] sm:$0xe]  ;;  %v10211_v38 = vld [vmem:[%s10339_s2] ss:$0 sm:$0xff] }
 0x197   : > { %8380 = vmatprep.mubr.bf16.mxu0 %v7566_v29  ;;  %8196 = vmatprep.mubr.bf16.mxu1 %v7378_v10  ;;  %v3811_v31 = vsel %vm9069_vm11, %v3806_v16, %v3810_v0  ;;  %v3821_v19 = vsel %vm9069_vm11, %v3816_v55, %v3820_v12  ;;  %v7568_v29 = vcombine.low %v6254_v27, %v6257_v23  ;;  %v6263_v59 = vrot.slane %v6112_v43, 5 }
 0x198   : > { %v7379_v39 = vcombine.low %v3811_v31, %v3821_v19  ;;  %v7538_v25 = vrot.slane %v6113_v32, 9  ;;  %v6269_v7 = vrot.slane %v6267_v54, 4  ;;  %v6270_v21 = vrot.slane %v6115_v14, 5 }
 0x199   : > { %v6261_v18 = vsel %vm9283_vm14, %v7537_v46, %v6260_v15  ;;  %v6264_v44 = vsel %vm9283_vm14, %v6262_v47, %v6263_v59  ;;  %v6274_v56 = vrot.slane %v6117_v42, 5  ;;  %v7539_v50 = vrot.slane %v6116_v30, 9 }
 0x19a   : > { %8197 = vmatmul.mubr.bf16.gmra.mrb[28].mxu1 %v7379_v39  ;;  %v6268_v34 = vsel %vm9283_vm14, %v7538_v25, %v6267_v54  ;;  %v6271_v62 = vsel %vm9283_vm14, %v6269_v7, %v6270_v21  ;;  %v7569_v48 = vcombine.low %v6261_v18, %v6264_v44  ;;  %v6277_v28 = vrot.slane %v6118_v49, 5 }
 0x19b   : > { %v7570_v9 = vcombine.low %v6268_v34, %v6271_v62  ;;  %v6276_v45 = vrot.slane %v6274_v56, 4  ;;  %v6275_v51 = vsel %vm9283_vm14, %v7539_v50, %v6274_v56 }
 0x19d   : > { %v6278_v61 = vsel %vm9283_vm14, %v6276_v45, %v6277_v28 }
 0x19e   : > { %8381 = vmatmul.mubr.bf16.gmra.mrb[20].mxu0 %v7567_v33  ;;  %v7571_v60 = vcombine.low %v6275_v51, %v6278_v61 }
 0x19f   : > { %8384 = vmatprep.mubr.bf16.mxu0 %v7568_v29 }
 0x1a6   : > { %8385 = vmatmul.mubr.bf16.gmra.mrb[24].mxu0 %v7569_v48 }
 0x1a7   : > { %8388 = vmatprep.mubr.bf16.mxu0 %v7570_v9 }
 0x1ae   : > { %8389 = vmatmul.mubr.bf16.gmra.mrb[28].mxu0 %v7571_v60 }
 0x213   : > { %v8122_v63 = vpop.f32.mrb[0].mxu1 }
 0x214   : > { %v3167_v40 = vpop.f32.mrb[1].mxu1 }
 0x215   : > { %v8123_v11 = vpop.f32.mrb[2].mxu1 }
 0x216   : > { %v3170_v8 = vpop.f32.mrb[3].mxu1 }
 0x21b   : > { %v8126_v58 = vpop.f32.mrb[4].mxu1 }
 0x21c   : > { %v3183_v5 = vpop.f32.mrb[5].mxu1 }
 0x21d   : > { %v8127_v6 = vpop.f32.mrb[6].mxu1 }
 0x21e   : > { %v3186_v17 = vpop.f32.mrb[7].mxu1 }
 0x223   : > { %v10192_v2 = vpop.f32.mrb[8].mxu1 }
 0x224   : > { %v10194_v36 = vpop.f32.mrb[9].mxu1 }
 0x225   : > { %v10196_v13 = vpop.f32.mrb[10].mxu1 }
 0x226   : > { %v10198_v0 = vpop.f32.mrb[11].mxu1 }
 0x22b   : > { %v10200_v57 = vpop.f32.mrb[12].mxu1 }
 0x22c   : > { %v10202_v3 = vpop.f32.mrb[13].mxu1 }
 0x22d   : > { %v10204_v52 = vpop.f32.mrb[14].mxu1 }
 0x22e   : > { %v10206_v20 = vpop.f32.mrb[15].mxu1 }
 0x249   : > { %v8362_v41 = vpop.f32.mrb[0].mxu0 }
 0x24a   : > { %v8408_v4 = vadd.f32 %v8362_v41, %v8122_v63  ;;  %v6442_v1 = vpop.f32.mrb[1].mxu0 }
 0x24b   : > { %v8409_v24 = vadd.f32 %v6442_v1, %v3167_v40  ;;  %v8363_v22 = vpop.f32.mrb[2].mxu0 }
 0x24c   : > { %v8410_v12 = vadd.f32 %v8363_v22, %v8123_v11  ;;  %v6445_v35 = vpop.f32.mrb[3].mxu0  ;;  %v6706_v10 = vadd.f32 %v8408_v4, %v10211_v38 }
 0x24d   : > { %v6704_v26 = vadd.f32 %v8409_v24, %v10211_v38  ;;  %v8411_v15 = vadd.f32 %v6445_v35, %v3170_v8 }
 0x24e   : > { %v6707_v16 = vadd.f32 %v8410_v12, %v10211_v38  ;;  %v6936_v39 = vmul.f32 %v6706_v10, %v6706_v10 }
 0x24f   : > { %v6705_v27 = vadd.f32 %v8411_v15, %v10211_v38  ;;  %v6934_v23 = vmul.f32 %v6704_v26, %v6704_v26 }
 0x250   : > { %v7657_v33 = vpack.c.bf16 %v6707_v16, %v6706_v10  ;;  %v6937_v7 = vmul.f32 %v6707_v16, %v6707_v16 }
 0x251   : > { %v7652_v32 = vpack.c.bf16 %v6705_v27, %v6704_v26  ;;  %v6896_v14 = vadd.f32 %v6705_v27, %v6704_v26  ;;  %v6935_v31 = vmul.f32 %v6705_v27, %v6705_v27  ;;  %v8366_v19 = vpop.f32.mrb[4].mxu0 }
 0x252   : > { %7729 = vst [vmem:[%s10227_s7 + $0x8] sm:$0xff] %v7657_v33   ;;  %v8412_v46 = vadd.f32 %v8366_v19, %v8126_v58  ;;  %v6458_v54 = vpop.f32.mrb[5].mxu0 }
 0x253   : > { %v10213_v53 = vpop.f32.mrb[16].mxu1  ;;  %7653 = vst [vmem:[%s10227_s7] sm:$0xff] %v7652_v32   ;;  %v6897_v29 = vadd.f32 %v6896_v14, %v6706_v10  ;;  %v6966_v47 = vadd.f32 %v6935_v31, %v6934_v23  ;;  %v8413_v59 = vadd.f32 %v6458_v54, %v3183_v5  ;;  %v8367_v25 = vpop.f32.mrb[6].mxu0 }
 0x254   : > { %v10216_v37 = vpop.f32.mrb[17].mxu1  ;;  %v8414_v21 = vadd.f32 %v8367_v25, %v8127_v6  ;;  %v6461_v42 = vpop.f32.mrb[7].mxu0  ;;  %v6710_v62 = vadd.f32 %v8412_v46, %v10211_v38 }
 0x255   : > { %v10220_v55 = vpop.f32.mrb[18].mxu1  ;;  %v6967_v18 = vadd.f32 %v6966_v47, %v6936_v39  ;;  %v6708_v44 = vadd.f32 %v8413_v59, %v10211_v38  ;;  %v6898_v56 = vadd.f32 %v6897_v29, %v6707_v16  ;;  %v8415_v34 = vadd.f32 %v6461_v42, %v3186_v17 }
 0x256   : > { %v10230_v43 = vpop.f32.mrb[19].mxu1  ;;  %v6711_v30 = vadd.f32 %v8414_v21, %v10211_v38  ;;  %v6940_v6 = vmul.f32 %v6710_v62, %v6710_v62 }
 0x257   : > { %v6899_v49 = vadd.f32 %v6898_v56, %v6708_v44  ;;  %v6938_v48 = vmul.f32 %v6708_v44, %v6708_v44  ;;  %v6968_v9 = vadd.f32 %v6967_v18, %v6937_v7  ;;  %v6709_v50 = vadd.f32 %v8415_v34, %v10211_v38 }
 0x258   : > { %v7667_v45 = vpack.c.bf16 %v6711_v30, %v6710_v62  ;;  %v6941_v22 = vmul.f32 %v6711_v30, %v6711_v30 }
 0x259   : > { %v6969_v51 = vadd.f32 %v6968_v9, %v6938_v48  ;;  %v7662_v61 = vpack.c.bf16 %v6709_v50, %v6708_v44  ;;  %v6900_v60 = vadd.f32 %v6899_v49, %v6709_v50  ;;  %v6939_v63 = vmul.f32 %v6709_v50, %v6709_v50  ;;  %v8370_v40 = vpop.f32.mrb[8].mxu0 }
 0x25a   : > { %7731 = vst [vmem:[%s10227_s7 + $0x18] sm:$0xff] %v7667_v45   ;;  %v8416_v8 = vadd.f32 %v8370_v40, %v10192_v2  ;;  %v6474_v58 = vpop.f32.mrb[9].mxu0 }
 0x25b   : > { %v10238_v28 = vpop.f32.mrb[20].mxu1  ;;  %7730 = vst [vmem:[%s10227_s7 + $0x10] sm:$0xff] %v7662_v61   ;;  %v6901_v17 = vadd.f32 %v6900_v60, %v6710_v62  ;;  %v6970_v41 = vadd.f32 %v6969_v51, %v6939_v63  ;;  %v8417_v4 = vadd.f32 %v6474_v58, %v10194_v36  ;;  %v8371_v1 = vpop.f32.mrb[10].mxu0 }
 0x25c   : > { %v10240_v11 = vpop.f32.mrb[21].mxu1  ;;  %v8418_v12 = vadd.f32 %v8371_v1, %v10196_v13  ;;  %v6477_v35 = vpop.f32.mrb[11].mxu0  ;;  %v6714_v16 = vadd.f32 %v8416_v8, %v10211_v38 }
 0x25d   : > { %v10244_v5 = vpop.f32.mrb[22].mxu1  ;;  %v6971_v26 = vadd.f32 %v6970_v41, %v6940_v6  ;;  %v6712_v2 = vadd.f32 %v8417_v4, %v10211_v38  ;;  %v6902_v15 = vadd.f32 %v6901_v17, %v6711_v30  ;;  %v8419_v10 = vadd.f32 %v6477_v35, %v10198_v0 }
 0x25e   : > { %v10248_v24 = vpop.f32.mrb[23].mxu1  ;;  %v6715_v27 = vadd.f32 %v8418_v12, %v10211_v38  ;;  %v6944_v29 = vmul.f32 %v6714_v16, %v6714_v16 }
 0x25f   : > { %v6903_v36 = vadd.f32 %v6902_v15, %v6712_v2  ;;  %v6942_v33 = vmul.f32 %v6712_v2, %v6712_v2  ;;  %v6972_v23 = vadd.f32 %v6971_v26, %v6941_v22  ;;  %v6713_v32 = vadd.f32 %v8419_v10, %v10211_v38 }
 0x260   : > { %v7677_v14 = vpack.c.bf16 %v6715_v27, %v6714_v16  ;;  %v6945_v21 = vmul.f32 %v6715_v27, %v6715_v27 }
 0x261   : > { %v6973_v13 = vadd.f32 %v6972_v23, %v6942_v33  ;;  %v7672_v31 = vpack.c.bf16 %v6713_v32, %v6712_v2  ;;  %v6904_v19 = vadd.f32 %v6903_v36, %v6713_v32  ;;  %v6943_v46 = vmul.f32 %v6713_v32, %v6713_v32  ;;  %v8374_v54 = vpop.f32.mrb[12].mxu0 }
 0x262   : > { %7733 = vst [vmem:[%s10227_s7 + $0x28] sm:$0xff] %v7677_v14   ;;  %v8420_v39 = vadd.f32 %v8374_v54, %v10200_v57  ;;  %v6490_v0 = vpop.f32.mrb[13].mxu0 }
 0x263   : > { %7732 = vst [vmem:[%s10227_s7 + $0x20] sm:$0xff] %v7672_v31   ;;  %v6905_v47 = vadd.f32 %v6904_v19, %v6714_v16  ;;  %v6974_v59 = vadd.f32 %v6973_v13, %v6943_v46  ;;  %v8421_v25 = vadd.f32 %v6490_v0, %v10202_v3  ;;  %v8375_v7 = vpop.f32.mrb[14].mxu0  ;;  %v10263_v30 = vpop.f32.mrb[24].mxu1 }
 0x264   : > { %v8422_v42 = vadd.f32 %v8375_v7, %v10204_v52  ;;  %v6493_v18 = vpop.f32.mrb[15].mxu0  ;;  %v6718_v57 = vadd.f32 %v8420_v39, %v10211_v38  ;;  %v10267_v48 = vpop.f32.mrb[25].mxu1 }
 0x265   : > { %v6975_v44 = vadd.f32 %v6974_v59, %v6944_v29  ;;  %v6716_v56 = vadd.f32 %v8421_v25, %v10211_v38  ;;  %v6906_v34 = vadd.f32 %v6905_v47, %v6715_v27  ;;  %v8423_v62 = vadd.f32 %v6493_v18, %v10206_v20  ;;  %v10270_v45 = vpop.f32.mrb[26].mxu1 }
 0x266   : > { %v6719_v49 = vadd.f32 %v8422_v42, %v10211_v38  ;;  %v10272_v61 = vpop.f32.mrb[27].mxu1  ;;  %v6948_v17 = vmul.f32 %v6718_v57, %v6718_v57 }
 0x267   : > { %v6907_v3 = vadd.f32 %v6906_v34, %v6716_v56  ;;  %v6946_v9 = vmul.f32 %v6716_v56, %v6716_v56  ;;  %v6976_v52 = vadd.f32 %v6975_v44, %v6945_v21  ;;  %v6717_v50 = vadd.f32 %v8423_v62, %v10211_v38 }
 0x268   : > { %v7687_v51 = vpack.c.bf16 %v6719_v49, %v6718_v57  ;;  %v6949_v12 = vmul.f32 %v6719_v49, %v6719_v49 }
 0x269   : > { %v6977_v20 = vadd.f32 %v6976_v52, %v6946_v9  ;;  %v7682_v60 = vpack.c.bf16 %v6717_v50, %v6716_v56  ;;  %v6908_v63 = vadd.f32 %v6907_v3, %v6717_v50  ;;  %v6947_v40 = vmul.f32 %v6717_v50, %v6717_v50  ;;  %v8378_v8 = vpop.f32.mrb[16].mxu0 }
 0x26a   : > { %7735 = vst [vmem:[%s10227_s7 + $0x38] sm:$0xff] %v7687_v51   ;;  %v8424_v58 = vadd.f32 %v8378_v8, %v10213_v53  ;;  %v6506_v6 = vpop.f32.mrb[17].mxu0 }
 0x26b   : > { %7734 = vst [vmem:[%s10227_s7 + $0x30] sm:$0xff] %v7682_v60   ;;  %v6909_v41 = vadd.f32 %v6908_v63, %v6718_v57  ;;  %v6978_v4 = vadd.f32 %v6977_v20, %v6947_v40  ;;  %v8425_v1 = vadd.f32 %v6506_v6, %v10216_v37  ;;  %v8379_v22 = vpop.f32.mrb[18].mxu0 }
 0x26c   : > { %v8426_v35 = vadd.f32 %v8379_v22, %v10220_v55  ;;  %v6509_v26 = vpop.f32.mrb[19].mxu0  ;;  %v6722_v53 = vadd.f32 %v8424_v58, %v10211_v38 }
 0x26d   : > { %v6979_v2 = vadd.f32 %v6978_v4, %v6948_v17  ;;  %v6720_v15 = vadd.f32 %v8425_v1, %v10211_v38  ;;  %v6910_v10 = vadd.f32 %v6909_v41, %v6719_v49  ;;  %v8427_v16 = vadd.f32 %v6509_v26, %v10230_v43  ;;  %v10284_v55 = vpop.f32.mrb[28].mxu1 }
 0x26e   : > { %v6723_v27 = vadd.f32 %v8426_v35, %v10211_v38  ;;  %v10286_v54 = vpop.f32.mrb[29].mxu1  ;;  %v6952_v29 = vmul.f32 %v6722_v53, %v6722_v53 }
 0x26f   : > { %v6911_v36 = vadd.f32 %v6910_v10, %v6720_v15  ;;  %v6950_v33 = vmul.f32 %v6720_v15, %v6720_v15  ;;  %v6980_v37 = vadd.f32 %v6979_v2, %v6949_v12  ;;  %v6721_v23 = vadd.f32 %v8427_v16, %v10211_v38  ;;  %v10290_v0 = vpop.f32.mrb[30].mxu1 }
 0x270   : > { %v7697_v32 = vpack.c.bf16 %v6723_v27, %v6722_v53  ;;  %v10294_v21 = vpop.f32.mrb[31].mxu1  ;;  %v6953_v42 = vmul.f32 %v6723_v27, %v6723_v27 }
 0x271   : > { %v6981_v14 = vadd.f32 %v6980_v37, %v6950_v33  ;;  %v7692_v13 = vpack.c.bf16 %v6721_v23, %v6720_v15  ;;  %v6912_v31 = vadd.f32 %v6911_v36, %v6721_v23  ;;  %v6951_v19 = vmul.f32 %v6721_v23, %v6721_v23  ;;  %v8382_v46 = vpop.f32.mrb[20].mxu0 }
 0x272   : > { %7737 = vst [vmem:[%s10227_s7 + $0x48] sm:$0xff] %v7697_v32   ;;  %v8428_v43 = vadd.f32 %v8382_v46, %v10238_v28  ;;  %v6522_v39 = vpop.f32.mrb[21].mxu0 }
 0x273   : > { %7736 = vst [vmem:[%s10227_s7 + $0x40] sm:$0xff] %v7692_v13   ;;  %v6913_v47 = vadd.f32 %v6912_v31, %v6722_v53  ;;  %v6982_v59 = vadd.f32 %v6981_v14, %v6951_v19  ;;  %v8429_v25 = vadd.f32 %v6522_v39, %v10240_v11  ;;  %v8383_v7 = vpop.f32.mrb[22].mxu0 }
 0x274   : > { %v8430_v18 = vadd.f32 %v8383_v7, %v10244_v5  ;;  %v6525_v44 = vpop.f32.mrb[23].mxu0  ;;  %v6726_v57 = vadd.f32 %v8428_v43, %v10211_v38 }
 0x275   : > { %v6983_v56 = vadd.f32 %v6982_v59, %v6952_v29  ;;  %v6724_v28 = vadd.f32 %v8429_v25, %v10211_v38  ;;  %v6914_v34 = vadd.f32 %v6913_v47, %v6723_v27  ;;  %v8431_v62 = vadd.f32 %v6525_v44, %v10248_v24 }
 0x276   : > { %v6727_v49 = vadd.f32 %v8430_v18, %v10211_v38  ;;  %v6956_v8 = vmul.f32 %v6726_v57, %v6726_v57 }
 0x277   : > { %v6915_v11 = vadd.f32 %v6914_v34, %v6724_v28  ;;  %v6954_v3 = vmul.f32 %v6724_v28, %v6724_v28  ;;  %v6984_v9 = vadd.f32 %v6983_v56, %v6953_v42  ;;  %v6725_v52 = vadd.f32 %v8431_v62, %v10211_v38 }
 0x278   : > { %v7707_v50 = vpack.c.bf16 %v6727_v49, %v6726_v57  ;;  %v6957_v4 = vmul.f32 %v6727_v49, %v6727_v49 }
 0x279   : > { %v6985_v5 = vadd.f32 %v6984_v9, %v6954_v3  ;;  %v7702_v51 = vpack.c.bf16 %v6725_v52, %v6724_v28  ;;  %v6916_v20 = vadd.f32 %v6915_v11, %v6725_v52  ;;  %v6955_v60 = vmul.f32 %v6725_v52, %v6725_v52  ;;  %v8386_v63 = vpop.f32.mrb[24].mxu0 }
 0x27a   : > { %7739 = vst [vmem:[%s10227_s7 + $0x58] sm:$0xff] %v7707_v50   ;;  %v8432_v40 = vadd.f32 %v8386_v63, %v10263_v30  ;;  %v6538_v24 = vpop.f32.mrb[25].mxu0 }
 0x27b   : > { %7738 = vst [vmem:[%s10227_s7 + $0x50] sm:$0xff] %v7702_v51   ;;  %v6917_v58 = vadd.f32 %v6916_v20, %v6726_v57  ;;  %v6986_v6 = vadd.f32 %v6985_v5, %v6955_v60  ;;  %v8433_v17 = vadd.f32 %v6538_v24, %v10267_v48  ;;  %v8387_v41 = vpop.f32.mrb[26].mxu0 }
 0x27c   : > { %v8434_v1 = vadd.f32 %v8387_v41, %v10270_v45  ;;  %v6541_v22 = vpop.f32.mrb[27].mxu0  ;;  %v6730_v30 = vadd.f32 %v8432_v40, %v10211_v38 }
 0x27d   : > { %v6987_v12 = vadd.f32 %v6986_v6, %v6956_v8  ;;  %v6728_v35 = vadd.f32 %v8433_v17, %v10211_v38  ;;  %v6918_v26 = vadd.f32 %v6917_v58, %v6727_v49  ;;  %v8435_v2 = vadd.f32 %v6541_v22, %v10272_v61 }
 0x27e   : > { %v6731_v15 = vadd.f32 %v8434_v1, %v10211_v38  ;;  %v6960_v14 = vmul.f32 %v6730_v30, %v6730_v30 }
 0x27f   : > { %v6919_v10 = vadd.f32 %v6918_v26, %v6728_v35  ;;  %v6958_v16 = vmul.f32 %v6728_v35, %v6728_v35  ;;  %v6988_v48 = vadd.f32 %v6987_v12, %v6957_v4  ;;  %v6729_v53 = vadd.f32 %v8435_v2, %v10211_v38 }
 0x280   : > { %v7717_v27 = vpack.c.bf16 %v6731_v15, %v6730_v30  ;;  %v6961_v43 = vmul.f32 %v6731_v15, %v6731_v15 }
 0x281   : > { %v6989_v45 = vadd.f32 %v6988_v48, %v6958_v16  ;;  %v7712_v36 = vpack.c.bf16 %v6729_v53, %v6728_v35  ;;  %v6920_v33 = vadd.f32 %v6919_v10, %v6729_v53  ;;  %v6959_v37 = vmul.f32 %v6729_v53, %v6729_v53  ;;  %v8390_v23 = vpop.f32.mrb[28].mxu0 }
 0x282   : > { %7741 = vst [vmem:[%s10227_s7 + $0x68] sm:$0xff] %v7717_v27   ;;  %v8436_v32 = vadd.f32 %v8390_v23, %v10284_v55  ;;  %v6554_v61 = vpop.f32.mrb[29].mxu0 }
 0x283   : > { %7740 = vst [vmem:[%s10227_s7 + $0x60] sm:$0xff] %v7712_v36   ;;  %v6921_v13 = vadd.f32 %v6920_v33, %v6730_v30  ;;  %v6990_v31 = vadd.f32 %v6989_v45, %v6959_v37  ;;  %v8437_v19 = vadd.f32 %v6554_v61, %v10286_v54  ;;  %v8391_v46 = vpop.f32.mrb[30].mxu0 }
 0x284   : > { %v8438_v39 = vadd.f32 %v8391_v46, %v10290_v0  ;;  %v6557_v29 = vpop.f32.mrb[31].mxu0  ;;  %v6734_v7 = vadd.f32 %v8436_v32, %v10211_v38 }
 0x285   : > { %v6991_v47 = vadd.f32 %v6990_v31, %v6960_v14  ;;  %v6732_v59 = vadd.f32 %v8437_v19, %v10211_v38  ;;  %v6922_v25 = vadd.f32 %v6921_v13, %v6731_v15  ;;  %v8439_v55 = vadd.f32 %v6557_v29, %v10294_v21 }
 0x286   : > { %v6735_v42 = vadd.f32 %v8438_v39, %v10211_v38  ;;  %v6964_v49 = vmul.f32 %v6734_v7, %v6734_v7 }
 0x287   : > { %v6923_v18 = vadd.f32 %v6922_v25, %v6732_v59  ;;  %v6962_v44 = vmul.f32 %v6732_v59, %v6732_v59  ;;  %v6992_v54 = vadd.f32 %v6991_v47, %v6961_v43  ;;  %v6733_v56 = vadd.f32 %v8439_v55, %v10211_v38 }
 0x288   : > { %v7727_v28 = vpack.c.bf16 %v6735_v42, %v6734_v7  ;;  %v6965_v3 = vmul.f32 %v6735_v42, %v6735_v42 }
 0x289   : > { %v6993_v0 = vadd.f32 %v6992_v54, %v6962_v44  ;;  %v7722_v34 = vpack.c.bf16 %v6733_v56, %v6732_v59  ;;  %v6924_v62 = vadd.f32 %v6923_v18, %v6733_v56  ;;  %v6963_v57 = vmul.f32 %v6733_v56, %v6733_v56 }
 0x28a   : > { %7743 = vst [vmem:[%s10227_s7 + $0x78] sm:$0xff] %v7727_v28  }
 0x28b   : > { %7742 = vst [vmem:[%s10227_s7 + $0x70] sm:$0xff] %v7722_v34   ;;  %v6925_v11 = vadd.f32 %v6924_v62, %v6734_v7  ;;  %v6994_v21 = vadd.f32 %v6993_v0, %v6963_v57 }
 0x28d   : > { %v6926_v9 = vadd.f32 %v6925_v11, %v6735_v42  ;;  %v6995_v52 = vadd.f32 %v6994_v21, %v6964_v49 }
 0x28f   : > { %v6927_v50 = vrot.slane %v6926_v9, 4  ;;  %v6996_v5 = vadd.f32 %v6995_v52, %v6965_v3 }
 0x291   : > { %v6928_v51 = vadd.f32 %v6927_v50, %v6926_v9  ;;  %v6997_v20 = vrot.slane %v6996_v5, 4 }
 0x293   : > { %v6929_v60 = vrot.slane %v6928_v51, 2  ;;  %v6998_v38 = vadd.f32 %v6997_v20, %v6996_v5 }
 0x295   : > { %v6930_v63 = vadd.f32 %v6929_v60, %v6928_v51  ;;  %v6999_v40 = vrot.slane %v6998_v38, 2 }
 0x297   : > { %v6931_v24 = vrot.slane %v6930_v63, 1  ;;  %v7000_v8 = vadd.f32 %v6999_v40, %v6998_v38 }
 0x299   : > { %v6932_v58 = vadd.f32 %v6931_v24, %v6930_v63  ;;  %v7001_v6 = vrot.slane %v7000_v8, 1 }
 0x29b   : > { %6933 = vst [vmem:[%s295_s10] sm:$0x1] %v6932_v58  ;;  %v7002_v17 = vadd.f32 %v7001_v6, %v7000_v8 }
 0x29d   : > { %7003 = vst [vmem:[%s295_s10 + $0x1] sm:$0x1] %v7002_v17 }
 0x29e PF: > { %s17_s23 = sadd.s32 1, %s8840_s23   ;;  %s10356_s21 = smov %s8836_s22 }
 0x29f   : > { %p14_p5 = scmp.ge.s32.totalorder %s17_s23, 4   ;;  %s10357_s22 = smov %s10359_s3 }
 0x2a1   :  { %16 = sbr.rel (!%p14_p5) target bundleno = 2 (0x2), region = 96 }

// kernel: resnet_block_forward.4
= control target key start
LH: loop header
LB: loop body
LE: loop exit
PB: predicated region body
PF: predicated region fallthrough
CT: control target
= control target key end

     0   :  { %s9312_s21 = smov 0   ;;  %s9314_s22 = smov 0   ;;  %s11151_s0 = inlined_call_operand.vmem [shape: bf16[2,16,16,128], index: 0, kind: input, shape index: {}]   ;;  %s11152_s1 = inlined_call_operand.vmem [shape: bf16[9,128,128], index: 1, kind: input, shape index: {}]   ;;  %s11153_s2 = inlined_call_operand.vmem [shape: f32[1,128], index: 2, kind: input, shape index: {}]   ;;  %s11154_s3 = inlined_call_operand.vmem [shape: f32[1,128], index: 3, kind: input, shape index: {}]   ;;  %s11155_s4 = inlined_call_operand.vmem [shape: f32[1,128], index: 4, kind: input, shape index: {}]   ;;  %s11156_s5 = inlined_call_operand.vmem [shape: bf16[2,16,16,128], index: 5, kind: output, shape index: {0}]   ;;  %s11157_s6 = inlined_call_operand.vmem [shape: f32[2,1,2,128], index: 6, kind: output, shape index: {1}]  }
   0x1   :  { %s9316_s23 = smov 0  }
   0x2 LB: > { %s29_s24 = sadd.s32 1, %s9271_s22  ;;  %p7408_p0 = scmp.ge.s32.totalorder %s9275_s23, 1  ;;  %s9275_s23 = sphi %s9316_s23, %s17_s23   ;;  %s9271_s22 = sphi %s9314_s22, %s11171_s22   ;;  %s9267_s21 = sphi %s9312_s21, %s11170_s21  }
   0x3   : > { %p31_p1 = scmp.ge.s32.totalorder %s29_s24, 2  ;;  %p231_p2 = scmp.lt.s32.totalorder %s9275_s23, 3 }
   0x5   : > { %s11173_s24 = smov (%p31_p1, %s29_s24), 0  ;;  %p232_p3 = pnand %p7408_p0, %p231_p2 }
   0x6   : > { %v9117_v0 = vld [vmem:[%s11152_s1] sm:$0xff] (!%p232_p3)   ;;  %v9118_v1 = vld [vmem:[%s11152_s1 + $0x8] sm:$0xff] (!%p232_p3)   ;;  %p273_p4 = scmp.lt.s32.totalorder (!%p232_p3), %s9267_s21, 1  ;;  %v9119_v3 = vld [vmem:[%s11152_s1 + $0x10] sm:$0xff] (!%p232_p3)   ;;  %vm895_vm0 = vcmask (!%p232_p3), 1043456   ;;  %vm902_vm3 = vcmask (!%p232_p3), 1040384  }
   0x7   : > { %235 = sbr.rel (%p232_p3) target bundleno = 698 (0x2ba), region = 40  ;;  %8389 = vmatprep.subr.bf16.mxu1 (!%p232_p3), %v9117_v0  ;;  %v9120_v2 = vld [vmem:[%s11152_s1 + $0x100] sm:$0xff] (!%p232_p3)   ;;  %v9122_v4 = vld [vmem:[%s11152_s1 + $0x108] sm:$0xff] (!%p232_p3)   ;;  %v9124_v5 = vld [vmem:[%s11152_s1 + $0x110] sm:$0xff] (!%p232_p3)   ;;  %vm571_vm1 = vsmask.f32 (!%p232_p3), 256 }
   0x8   : > { %8390 = vmatpush3.bf16.msra.mxu1 (!%p232_p3), %v9117_v0  ;;  %8581 = vmatprep.subr.bf16.mxu0 (!%p232_p3), %v9120_v2  ;;  %v9121_v6 = vld [vmem:[%s11152_s1 + $0x18] sm:$0xff] (!%p232_p3)   ;;  %v9123_v8 = vld [vmem:[%s11152_s1 + $0x20] sm:$0xff] (!%p232_p3)   ;;  %v9125_v13 = vld [vmem:[%s11152_s1 + $0x28] sm:$0xff] (!%p232_p3)   ;;  %vm572_vm2 = vsmask.f32 (!%p232_p3), 4368  ;;  %vm2705_vm12 = vcmask (!%p232_p3), 1042432  }
   0x9   : > { %8391 = vmatprep.subr.bf16.mxu1 (!%p232_p3), %v9118_v1  ;;  %8582 = vmatpush3.bf16.msra.mxu0 (!%p232_p3), %v9120_v2  ;;  %v9126_v7 = vld [vmem:[%s11152_s1 + $0x118] sm:$0xff] (!%p232_p3)   ;;  %v9128_v9 = vld [vmem:[%s11152_s1 + $0x120] sm:$0xff] (!%p232_p3)   ;;  %v9130_v19 = vld [vmem:[%s11152_s1 + $0x128] sm:$0xff] (!%p232_p3)   ;;  %vm896_vm4 = vsmask.f32 (!%p232_p3), 7938  ;;  %vm2706_vm13 = vcmask (!%p232_p3), 1046532  }
   0xa   : > { %8583 = vmatprep.subr.bf16.mxu0 (!%p232_p3), %v9122_v4  ;;  %v9373_v10 = vld [vmem:[%s11154_s3] ss:$0 sm:$0xff] (!%p232_p3)  ;;  %v9127_v24 = vld [vmem:[%s11152_s1 + $0x30] sm:$0xff] (!%p232_p3)   ;;  %v9129_v39 = vld [vmem:[%s11152_s1 + $0x38] sm:$0xff] (!%p232_p3)   ;;  %vm1836_vm9 = vsmask.f32 (!%p232_p3), 3328 }
   0xb   : > { %v9383_v18 = vld [vmem:[%s11155_s4] ss:$0 sm:$0xff] (!%p232_p3)  ;;  %v9133_v36 = vld [vmem:[%s11152_s1 + $0x130] sm:$0xff] (!%p232_p3)   ;;  %v9134_v50 = vld [vmem:[%s11152_s1 + $0x138] sm:$0xff] (!%p232_p3)   ;;  %vm1837_vm10 = vsmask.f32 (!%p232_p3), 7440 }
   0xc   : > { %8392 = vmatpush3.bf16.msra.mxu1 (!%p232_p3), %v9118_v1  ;;  %v1060_v52 = vld [vmem:[#allocation2] sm:$0xf] (!%p232_p3)  ;;  %v1064_v53 = vld [vmem:[#allocation2 + $0x8] sm:$0x1] (!%p232_p3)  ;;  %v907_v58 = vld [vmem:[#allocation2 + $0x18] sm:$0xf] (!%p232_p3) }
   0xd   : > { %8393 = vmatprep.subr.bf16.mxu1 (!%p232_p3), %v9119_v3  ;;  %8584 = vmatpush3.bf16.msra.mxu0 (!%p232_p3), %v9122_v4  ;;  %vm9416_vm5 = vmor (!%p232_p3), %vm571_vm1, %vm572_vm2  ;;  %v898_v62 = vld [vmem:[#allocation2 + $0xc] sm:$0xf] (!%p232_p3)  ;;  %v9423_v1 = vld [vmem:[%s11152_s1 + $0x40] sm:$0xff] (!%p232_p3)  }
   0xe   : > { %s11175_s21 = smov (!%p273_p4, %s9267_s21), 1  ;;  %8585 = vmatprep.subr.bf16.mxu0 %v9124_v5  ;;  %vm9427_vm6 = vmand %vm895_vm0, %vm896_vm4 }
   0xf   : > { %s7919_s15 = sshll.u32 %s11175_s21, 7  ;;  %vm9438_vm7 = vmand %vm902_vm3, %vm571_vm1 }
  0x10   : > { %8394 = vmatpush3.bf16.msra.mxu1 %v9119_v3  ;;  %s9365_s26 = scalar_lea.vmem %s11151_s0, %s7919_s15  ;;  %vm9489_vm8 = vmand %vm902_vm3, %vm896_vm4  ;;  %s11039_s27 = scalar_lea.vmem %s11156_s5, %s7919_s15 }
  0x11   : > { %8395 = vmatprep.subr.bf16.mxu1 %v9121_v6  ;;  %8586 = vmatpush3.bf16.msra.mxu0 %v9124_v5  ;;  %v8156_v11 = vld [vmem:[%s9365_s26 + $0x8] sm:$0xff]   ;;  %v7990_v12 = vld [vmem:[%s9365_s26] sm:$0xff]   ;;  %v8142_v29 = vld [vmem:[%s9365_s26 + $0x10] sm:$0xff]   ;;  %s7413_s15 = sshll.u32 %s11175_s21, 1 }
  0x12   : > { %8587 = vmatprep.subr.bf16.mxu0 %v9126_v7  ;;  %v8055_v14 = vunpack.c.l.bf16 %v8156_v11  ;;  %v8056_v15 = vunpack.c.h.bf16 %v8156_v11  ;;  %v7991_v16 = vunpack.c.l.bf16 %v7990_v12  ;;  %v7992_v17 = vunpack.c.h.bf16 %v7990_v12  ;;  %v8143_v51 = vld [vmem:[%s9365_s26 + $0x18] sm:$0xff]   ;;  %v904_v5 = vld [vmem:[#allocation2 + $0x14] sm:$0x1]  ;;  %vm9557_vm11 = vmor %vm1836_vm9, %vm1837_vm10  ;;  %s295_s30 = scalar_lea.vmem %s11157_s6, %s7413_s15 }
  0x13   : > { %v7999_v30 = vunpack.c.l.bf16 %v8142_v29  ;;  %v8000_v31 = vunpack.c.h.bf16 %v8142_v29  ;;  %v8144_v29 = vld [vmem:[%s9365_s26 + $0x20] sm:$0xff]   ;;  %vm9781_vm14 = vmor %vm2705_vm12, %vm2706_vm13 }
  0x14   : > { %8396 = vmatpush3.bf16.msra.mxu1 %v9121_v6  ;;  %v1028_v20 = vmul.f32 %v8055_v14, %v9373_v10  ;;  %v1029_v21 = vmul.f32 %v8056_v15, %v9373_v10  ;;  %v373_v22 = vmul.f32 %v7991_v16, %v9373_v10  ;;  %v374_v23 = vmul.f32 %v7992_v17, %v9373_v10  ;;  %v911_v14 = vld [vmem:[#allocation2 + $0x20] sm:$0x1] }
  0x15   : > { %8397 = vmatprep.subr.bf16.mxu1 %v9123_v8  ;;  %8588 = vmatpush3.bf16.msra.mxu0 %v9126_v7  ;;  %v377_v37 = vmul.f32 %v7999_v30, %v9373_v10  ;;  %v378_v38 = vmul.f32 %v8000_v31, %v9373_v10  ;;  %v8003_v6 = vunpack.c.l.bf16 %v8143_v51  ;;  %v8004_v7 = vunpack.c.h.bf16 %v8143_v51 }
  0x16   : > { %8589 = vmatprep.subr.bf16.mxu0 %v9128_v9  ;;  %v1030_v25 = vadd.f32 %v9383_v18, %v1028_v20  ;;  %v1031_v26 = vadd.f32 %v9383_v18, %v1029_v21  ;;  %v411_v27 = vadd.f32 %v9383_v18, %v373_v22  ;;  %v412_v28 = vadd.f32 %v9383_v18, %v374_v23 }
  0x17   : > { %v415_v44 = vadd.f32 %v9383_v18, %v377_v37  ;;  %v416_v45 = vadd.f32 %v9383_v18, %v378_v38 }
  0x18   : > { %8398 = vmatpush3.bf16.msra.mxu1 %v9123_v8  ;;  %v1032_v32 = vmax.f32 %v1030_v25, 0.0  ;;  %v1033_v33 = vmax.f32 %v1031_v26, 0.0  ;;  %v443_v34 = vmax.f32 %v411_v27, 0.0  ;;  %v444_v35 = vmax.f32 %v412_v28, 0.0 }
  0x19   : > { %8399 = vmatprep.subr.bf16.mxu1 %v9125_v13  ;;  %8590 = vmatpush3.bf16.msra.mxu0 %v9128_v9  ;;  %v447_v63 = vmax.f32 %v415_v44, 0.0  ;;  %v448_v0 = vmax.f32 %v416_v45, 0.0  ;;  %v914_v45 = vld [vmem:[#allocation2 + $0x24] sm:$0xf] }
  0x1a   : > { %8591 = vmatprep.subr.bf16.mxu0 %v9130_v19  ;;  %v7953_v40 = vpack.c.bf16 %v1032_v32, %v1032_v32  ;;  %v7954_v41 = vpack.c.bf16 %v1033_v33, %v1033_v33  ;;  %v7921_v42 = vpack.c.bf16 %v443_v34, %v443_v34  ;;  %v7922_v43 = vpack.c.bf16 %v444_v35, %v444_v35  ;;  %v8145_v34 = vld [vmem:[%s9365_s26 + $0x28] sm:$0xff]  }
  0x1b   : > { %v7925_v27 = vpack.c.bf16 %v447_v63, %v447_v63  ;;  %v7926_v28 = vpack.c.bf16 %v448_v0, %v448_v0  ;;  %v379_v32 = vmul.f32 %v8003_v6, %v9373_v10  ;;  %v380_v33 = vmul.f32 %v8004_v7, %v9373_v10 }
  0x1c   : > { %8400 = vmatpush3.bf16.msra.mxu1 %v9125_v13  ;;  %v1041_v46 = vshrl.u32 %v7953_v40, 16  ;;  %v1044_v47 = vshll.u32 %v7953_v40, 16  ;;  %v1049_v48 = vshrl.u32 %v7954_v41, 16  ;;  %v1052_v49 = vshll.u32 %v7954_v41, 16  ;;  %v9434_v13 = vld [vmem:[%s11152_s1 + $0x140] sm:$0xff]  }
  0x1d   : > { %8401 = vmatprep.subr.bf16.mxu1 %v9127_v24  ;;  %8592 = vmatpush3.bf16.msra.mxu0 %v9130_v19  ;;  %v575_v54 = vshrl.u32 %v7921_v42, 16  ;;  %v578_v55 = vshll.u32 %v7921_v42, 16  ;;  %v583_v56 = vshrl.u32 %v7922_v43, 16  ;;  %v586_v57 = vshll.u32 %v7922_v43, 16 }
  0x1e   : > { %8593 = vmatprep.subr.bf16.mxu0 %v9133_v36  ;;  %v1043_v60 = vrot.slane %v1041_v46, 7  ;;  %v1051_v61 = vrot.slane %v1049_v48, 7  ;;  %v609_v35 = vshrl.u32 %v7925_v27, 16  ;;  %v617_v37 = vshrl.u32 %v7926_v28, 16 }
  0x1f   : > { %v577_v3 = vrot.slane %v575_v54, 7  ;;  %v585_v4 = vrot.slane %v583_v56, 7  ;;  %v620_v38 = vshll.u32 %v7926_v28, 16  ;;  %v418_v40 = vadd.f32 %v9383_v18, %v380_v33 }
  0x20   : > { %8402 = vmatpush3.bf16.msra.mxu1 %v9127_v24  ;;  %v1046_v8 = vor.u32 %v1044_v47, %v1043_v60  ;;  %v1047_v9 = vrot.slane %v1043_v60, 4  ;;  %v1054_v11 = vor.u32 %v1052_v49, %v1051_v61  ;;  %v1056_v12 = vrot.slane %v1051_v61, 4 }
  0x21   : > { %8403 = vmatprep.subr.bf16.mxu1 %v9129_v39  ;;  %8594 = vmatpush3.bf16.msra.mxu0 %v9133_v36  ;;  %v580_v16 = vor.u32 %v578_v55, %v577_v3  ;;  %v581_v17 = vrot.slane %v577_v3, 4  ;;  %v588_v19 = vor.u32 %v586_v57, %v585_v4  ;;  %v590_v20 = vrot.slane %v585_v4, 4  ;;  %v8146_v57 = vld [vmem:[%s9365_s26 + $0x30] sm:$0xff]  }
  0x22   : > { %8595 = vmatprep.subr.bf16.mxu0 %v9134_v50  ;;  %v1055_v21 = vsel %vm9416_vm5, %v1047_v9, %v1054_v11  ;;  %v1061_v22 = vsel %vm9427_vm6, %v1046_v8, %v1060_v52  ;;  %v1065_v23 = vsel %vm9438_vm7, %v1056_v12, %v1064_v53  ;;  %v908_v24 = vsel %vm9427_vm6, %v1046_v8, %v907_v58  ;;  %v918_v52 = vld [vmem:[#allocation2 + $0x2c] sm:$0x1] }
  0x23   : > { %1062 = vst [vmem:[#allocation2] sm:$0xf] %v1061_v22  ;;  %1063 = vst [vmem:[#allocation2 + $0x4] sm:$0xf] %v1055_v21  ;;  %v589_v25 = vsel %vm9416_vm5, %v581_v17, %v588_v19  ;;  %v899_v26 = vsel %vm9427_vm6, %v580_v16, %v898_v62  ;;  %v905_v30 = vsel %vm9438_vm7, %v590_v20, %v904_v5  ;;  %v612_v36 = vshll.u32 %v7925_v27, 16 }
  0x24   : > { %8404 = vmatpush3.bf16.msra.mxu1 %v9129_v39  ;;  %1066 = vst [vmem:[#allocation2 + $0x8] sm:$0x1] %v1065_v23  ;;  %909 = vst [vmem:[#allocation2 + $0x18] sm:$0xf] %v908_v24  ;;  %v912_v31 = vsel %vm9438_vm7, %v1056_v12, %v911_v14  ;;  %v417_v39 = vadd.f32 %v9383_v18, %v379_v32  ;;  %v8007_v41 = vunpack.c.l.bf16 %v8144_v29  ;;  %v8008_v42 = vunpack.c.h.bf16 %v8144_v29 }
  0x25   : > { %8437 = vmatprep.subr.bf16.mxu1 %v9423_v1  ;;  %910 = vst [vmem:[#allocation2 + $0x1c] sm:$0xf] %v1055_v21  ;;  %900 = vst [vmem:[#allocation2 + $0xc] sm:$0xf] %v899_v26  ;;  %8596 = vmatpush3.bf16.msra.mxu0 %v9134_v50  ;;  %v611_v43 = vrot.slane %v609_v35, 7  ;;  %v619_v44 = vrot.slane %v617_v37, 7  ;;  %v8011_v46 = vunpack.c.l.bf16 %v8145_v34  ;;  %v8012_v47 = vunpack.c.h.bf16 %v8145_v34 }
  0x26   : > { %901 = vst [vmem:[#allocation2 + $0x10] sm:$0xf] %v589_v25  ;;  %906 = vst [vmem:[#allocation2 + $0x14] sm:$0x1] %v905_v30  ;;  %8629 = vmatprep.subr.bf16.mxu0 %v9434_v13  ;;  %v449_v48 = vmax.f32 %v417_v39, 0.0  ;;  %v450_v49 = vmax.f32 %v418_v40, 0.0  ;;  %v381_v50 = vmul.f32 %v8007_v41, %v9373_v10  ;;  %v382_v51 = vmul.f32 %v8008_v42, %v9373_v10 }
  0x27   : > { %913 = vst [vmem:[#allocation2 + $0x20] sm:$0x1] %v912_v31  ;;  %v614_v53 = vor.u32 %v612_v36, %v611_v43  ;;  %v615_v54 = vrot.slane %v611_v43, 4  ;;  %v622_v55 = vor.u32 %v620_v38, %v619_v44  ;;  %v624_v56 = vrot.slane %v619_v44, 4  ;;  %v9504_v36 = vld [vmem:[%s9365_s26 + $0x38] sm:$0xff]  }
  0x28   : > { %v7927_v61 = vpack.c.bf16 %v449_v48, %v449_v48  ;;  %v9469_v62 = vpack.c.bf16 %v450_v49, %v450_v49  ;;  %v9472_v63 = vadd.f32 %v9383_v18, %v381_v50  ;;  %v9475_v0 = vadd.f32 %v9383_v18, %v382_v51  ;;  %v921_v51 = vld [vmem:[#allocation2 + $0x30] sm:$0xf] }
  0x29   : > { %v623_v6 = vsel %vm9416_vm5, %v615_v54, %v622_v55  ;;  %v915_v7 = vsel %vm9427_vm6, %v614_v53, %v914_v45  ;;  %v919_v8 = vsel %vm9438_vm7, %v624_v56, %v918_v52  ;;  %v383_v14 = vmul.f32 %v8011_v46, %v9373_v10 }
  0x2a   : > { %v1114_v58 = vld [vmem:[#allocation2] sm:$0x2]  ;;  %v1204_v60 = vld [vmem:[#allocation2] sm:$0x1]  ;;  %916 = vst [vmem:[#allocation2 + $0x24] sm:$0xf] %v915_v7  ;;  %v384_v16 = vmul.f32 %v8012_v47, %v9373_v10  ;;  %v8015_v23 = vunpack.c.l.bf16 %v8146_v57  ;;  %v8016_v30 = vunpack.c.h.bf16 %v8146_v57  ;;  %v8019_v57 = vunpack.c.l.bf16 %v9504_v36 }
  0x2b   : > { %v7456_v3 = vrot.slane %v1114_v58, 9  ;;  %v1116_v11 = vld [vmem:[#allocation2 + $0x18] sm:$0x2]  ;;  %917 = vst [vmem:[#allocation2 + $0x28] sm:$0xf] %v623_v6  ;;  %v626_v12 = vshrl.u32 %v7927_v61, 16  ;;  %v9496_v28 = vadd.f32 %v9383_v18, %v383_v14 }
  0x2c   : > { %v1115_v4 = vld [vmem:[#allocation2 + $0xc] sm:$0x2]  ;;  %v1207_v5 = vld [vmem:[#allocation2 + $0xc] sm:$0x1]  ;;  %920 = vst [vmem:[#allocation2 + $0x2c] sm:$0x1] %v919_v8  ;;  %v9499_v29 = vadd.f32 %v9383_v18, %v384_v16  ;;  %v385_v41 = vmul.f32 %v8015_v23, %v9373_v10  ;;  %v386_v42 = vmul.f32 %v8016_v30, %v9373_v10 }
  0x2d   : > { %v7457_v9 = vrot.slane %v1115_v4, 9  ;;  %v1205_v17 = vsel %vm9438_vm7, %v7456_v3, %v1204_v60  ;;  %v7458_v20 = vrot.slane %v1116_v11, 9  ;;  %v1210_v21 = vld [vmem:[#allocation2 + $0x18] sm:$0x1]  ;;  %v629_v22 = vshll.u32 %v7927_v61, 16  ;;  %v9142_v4 = vld [vmem:[%s11152_s1 + $0x48] sm:$0xff]  }
  0x2e   : > { %1206 = vst [vmem:[#allocation2] sm:$0x1] %v1205_v17  ;;  %v1259_v25 = vld [vmem:[#allocation2 + $0x10] sm:$0x8]  ;;  %v1352_v26 = vld [vmem:[#allocation2 + $0x14] sm:$0x1]  ;;  %v9520_v55 = vadd.f32 %v9383_v18, %v385_v41  ;;  %v9523_v56 = vadd.f32 %v9383_v18, %v386_v42 }
  0x2f   : > { %v1208_v24 = vsel %vm9438_vm7, %v7457_v9, %v1207_v5  ;;  %v3657_v27 = vld [vmem:[#allocation2 + $0x10] sm:$0xf]  ;;  %v1211_v31 = vsel %vm9438_vm7, %v7458_v20, %v1210_v21  ;;  %v7475_v32 = vrot.slane %v1259_v25, 11  ;;  %v1260_v35 = vld [vmem:[#allocation2 + $0x1c] sm:$0x8]  ;;  %v9506_v40 = vrot.slane %v626_v12, 7 }
  0x30   : > { %1209 = vst [vmem:[#allocation2 + $0xc] sm:$0x1] %v1208_v24  ;;  %v3714_v33 = vshll.u32 %v3657_v27, 16  ;;  %v3718_v34 = vshrl.u32 %v3657_v27, 16  ;;  %1212 = vst [vmem:[#allocation2 + $0x18] sm:$0x1] %v1211_v31  ;;  %v8020_v21 = vunpack.c.h.bf16 %v9504_v36 }
  0x31   : > { %v7476_v37 = vrot.slane %v1260_v35, 11  ;;  %v1355_v38 = vld [vmem:[#allocation2 + $0x20] sm:$0x1]  ;;  %v3660_v39 = vld [vmem:[#allocation2 + $0x1c] sm:$0xf]  ;;  %v1353_v43 = vsel %vm9489_vm8, %v7475_v32, %v1352_v26  ;;  %v631_v49 = vor.u32 %v629_v22, %v9506_v40  ;;  %v632_v50 = vrot.slane %v9506_v40, 4 }
  0x32   : > { %v9512_v44 = vrot.slane %v3714_v33, 5  ;;  %v3720_v45 = vrot.slane %v3718_v34, 4  ;;  %v3738_v46 = vshll.u32 %v3660_v39, 16  ;;  %1354 = vst [vmem:[#allocation2 + $0x14] sm:$0x1] %v1353_v43  ;;  %v3742_v48 = vshrl.u32 %v3660_v39, 16 }
  0x33   : > { %v1356_v47 = vsel %vm9489_vm8, %v7476_v37, %v1355_v38  ;;  %v1117_v52 = vld [vmem:[#allocation2 + $0x24] sm:$0x2]  ;;  %v1213_v53 = vld [vmem:[#allocation2 + $0x24] sm:$0x1]  ;;  %v634_v3 = vshrl.u32 %v9469_v62, 16  ;;  %v637_v8 = vshll.u32 %v9469_v62, 16  ;;  %v922_v9 = vsel %vm9427_vm6, %v631_v49, %v921_v51 }
  0x34   : > { %v3721_v54 = vor.u32 %v3720_v45, %v9512_v44  ;;  %1357 = vst [vmem:[#allocation2 + $0x20] sm:$0x1] %v1356_v47  ;;  %v7459_v58 = vrot.slane %v1117_v52, 9  ;;  %v9526_v60 = vrot.slane %v3738_v46, 5  ;;  %v3744_v61 = vrot.slane %v3742_v48, 4  ;;  %v9147_v32 = vld [vmem:[%s11152_s1 + $0x50] sm:$0xff]  }
  0x35   : > { %v1261_v5 = vld [vmem:[#allocation2 + $0x28] sm:$0x8]  ;;  %v9131_v6 = vld [vmem:[#allocation2] sm:$0xff]   ;;  %v451_v11 = vmax.f32 %v9472_v63, 0.0  ;;  %v9541_v20 = vrot.slane %v634_v3, 7  ;;  %v452_v24 = vmax.f32 %v9475_v0, 0.0 }
  0x36   : > { %v9532_v7 = vrot.slane %v3721_v54, 4  ;;  %v1214_v14 = vsel %vm9438_vm7, %v7459_v58, %v1213_v53  ;;  %v3745_v17 = vor.u32 %v3744_v61, %v9526_v60  ;;  %923 = vst [vmem:[#allocation2 + $0x30] sm:$0xf] %v922_v9  ;;  %8405 = vmatprep.mubr.bf16.mxu1 %v9131_v6  ;;  %v7477_v31 = vrot.slane %v1261_v5, 11  ;;  %v1358_v43 = vld [vmem:[#allocation2 + $0x2c] sm:$0x1] }
  0x37   : > { %v9132_v12 = vld [vmem:[#allocation2 + $0xc] sm:$0xff]   ;;  %v9135_v22 = vld [vmem:[#allocation2 + $0x18] sm:$0xff]   ;;  %1215 = vst [vmem:[#allocation2 + $0x24] sm:$0x1] %v1214_v14  ;;  %v7929_v63 = vpack.c.bf16 %v451_v11, %v451_v11  ;;  %v639_v27 = vor.u32 %v637_v8, %v9541_v20  ;;  %v641_v30 = vrot.slane %v9541_v20, 4  ;;  %v7930_v41 = vpack.c.bf16 %v452_v24, %v452_v24 }
  0x38   : > { %v3656_v16 = vld [vmem:[#allocation2 + $0xc] sm:$0xf]  ;;  %8406 = vmatmul.mubr.bf16.vlgmr.msra.gmra.mrb[0].mxu1 %v9132_v12  ;;  %v3659_v25 = vld [vmem:[#allocation2 + $0x18] sm:$0xf]  ;;  %v9545_v26 = vrot.slane %v3745_v17, 4  ;;  %v1359_v6 = vsel %vm9489_vm8, %v7477_v31, %v1358_v43 }
  0x39   : > { %v3705_v62 = vshrl.u32 %v3656_v16, 16  ;;  %v3708_v23 = vshll.u32 %v3656_v16, 16  ;;  %8409 = vmatprep.mubr.bf16.mxu1 %v9135_v22  ;;  %v3658_v33 = vld [vmem:[#allocation2 + $0x14] sm:$0x1]  ;;  %8438 = vmatpush3.bf16.msra.mxu1 %v9423_v1  ;;  %v3729_v0 = vshrl.u32 %v3659_v25, 16  ;;  %v3732_v37 = vshll.u32 %v3659_v25, 16 }
  0x3a   : > { %v3724_v38 = vshll.u32 %v3658_v33, 16  ;;  %v640_v40 = vsel %vm9416_vm5, %v632_v50, %v639_v27  ;;  %v643_v42 = vshrl.u32 %v7929_v63, 16  ;;  %8439 = vmatprep.subr.bf16.mxu1 %v9142_v4  ;;  %v928_v49 = vld [vmem:[#allocation2 + $0x3c] sm:$0xf]  ;;  %v646_v53 = vshll.u32 %v7929_v63, 16 }
  0x3b   : > { %v3707_v34 = vrot.slane %v3705_v62, 4  ;;  %v3710_v35 = vrot.slane %v3708_v23, 5  ;;  %v3661_v39 = vld [vmem:[#allocation2 + $0x20] sm:$0x1]  ;;  %v3731_v47 = vrot.slane %v3729_v0, 4  ;;  %v3734_v1 = vrot.slane %v3732_v37, 5 }
  0x3c   : > { %v3748_v48 = vshll.u32 %v3661_v39, 16  ;;  %924 = vst [vmem:[#allocation2 + $0x34] sm:$0xf] %v640_v40  ;;  %v3726_v51 = vrot.slane %v3724_v38, 5  ;;  %v645_v52 = vrot.slane %v643_v42, 7  ;;  %v651_v50 = vshrl.u32 %v7930_v41, 16 }
  0x3d   : > { %v3711_v46 = vor.u32 %v3710_v35, %v3707_v34  ;;  %v3735_v58 = vor.u32 %v3734_v1, %v3731_v47  ;;  %v1118_v3 = vld [vmem:[#allocation2 + $0x30] sm:$0x2]  ;;  %v1216_v5 = vld [vmem:[#allocation2 + $0x30] sm:$0x1]  ;;  %8440 = vmatpush3.bf16.msra.mxu1 %v9142_v4  ;;  %1360 = vst [vmem:[#allocation2 + $0x2c] sm:$0x1] %v1359_v6 }
  0x3e   : > { %v3750_v61 = vrot.slane %v3748_v48, 5  ;;  %v9136_v8 = vld [vmem:[#allocation2 + $0x24] sm:$0xff]   ;;  %v3727_v9 = vsel %vm9557_vm11, %v9532_v7, %v3726_v51  ;;  %v7460_v11 = vrot.slane %v1118_v3, 9  ;;  %v648_v12 = vor.u32 %v646_v53, %v645_v52  ;;  %v925_v16 = vld [vmem:[#allocation2 + $0x38] sm:$0x1]  ;;  %8441 = vmatprep.subr.bf16.mxu1 %v9147_v32 }
  0x3f   : > { %v3712_v54 = vrot.slane %v3711_v46, 4  ;;  %v649_v14 = vrot.slane %v645_v52, 4  ;;  %v9152_v17 = vld [vmem:[%s11152_s1 + $0x58] sm:$0xff]   ;;  %v3736_v4 = vrot.slane %v3735_v58, 4  ;;  %v9575_v7 = vrot.slane %v651_v50, 7  ;;  %v9157_v0 = vld [vmem:[%s11152_s1 + $0x60] sm:$0xff]  }
  0x40   : > { %v3751_v62 = vsel %vm9557_vm11, %v9545_v26, %v3750_v61  ;;  %v3662_v23 = vld [vmem:[#allocation2 + $0x24] sm:$0xf]  ;;  %v3663_v24 = vld [vmem:[#allocation2 + $0x28] sm:$0xf]  ;;  %8410 = vmatmul.mubr.bf16.gmra.mrb[4].mxu1 %v9136_v8  ;;  %v1217_v25 = vsel %vm9438_vm7, %v7460_v11, %v1216_v5  ;;  %v654_v27 = vshll.u32 %v7930_v41, 16  ;;  %v929_v31 = vsel %vm9427_vm6, %v648_v12, %v928_v49  ;;  %v9143_v61 = vld [vmem:[%s11152_s1 + $0x150] sm:$0xff]  }
  0x41   : > { %v3717_v22 = vsel %vm9557_vm11, %v3712_v54, %v9512_v44  ;;  %v3741_v44 = vsel %vm9557_vm11, %v3736_v4, %v9526_v60  ;;  %v9139_v26 = vld [vmem:[%s11152_s1 + $0x148] sm:$0xff]   ;;  %1218 = vst [vmem:[#allocation2 + $0x30] sm:$0x1] %v1217_v25  ;;  %v658_v33 = vrot.slane %v9575_v7, 4  ;;  %930 = vst [vmem:[#allocation2 + $0x3c] sm:$0xf] %v929_v31  ;;  %8442 = vmatpush3.bf16.msra.mxu1 %v9147_v32 }
  0x42   : > { %v7668_v63 = vcombine.low %v3717_v22, %v3727_v9  ;;  %v3753_v34 = vshrl.u32 %v3662_v23, 16  ;;  %v3756_v35 = vshll.u32 %v3662_v23, 16  ;;  %v7669_v37 = vcombine.low %v3741_v44, %v3751_v62  ;;  %8443 = vmatprep.subr.bf16.mxu1 %v9152_v17  ;;  %v932_v47 = vld [vmem:[#allocation2 + $0x44] sm:$0x1] }
  0x43   : > { %v656_v38 = vor.u32 %v654_v27, %v9575_v7  ;;  %v3762_v60 = vshll.u32 %v3663_v24, 16  ;;  %v3766_v39 = vshrl.u32 %v3663_v24, 16  ;;  %v9592_v40 = vld [vmem:[#allocation2 + $0x34] sm:$0x8]  ;;  %v926_v32 = vsel %vm9438_vm7, %v641_v30, %v925_v16 }
  0x44   : > { %8597 = vmatprep.mubr.bf16.mxu0 %v7668_v63  ;;  %v3755_v41 = vrot.slane %v3753_v34, 4  ;;  %v3758_v42 = vrot.slane %v3756_v35, 5  ;;  %v7478_v43 = vrot.slane %v9592_v40, 11  ;;  %v3666_v46 = vld [vmem:[#allocation2 + $0x34] sm:$0xf]  ;;  %v453_v30 = vmax.f32 %v9496_v28, 0.0 }
  0x45   : > { %8598 = vmatmul.mubr.bf16.vlgmr.msra.gmra.mrb[0].mxu0 %v7669_v37  ;;  %v657_v1 = vsel %vm9416_vm5, %v649_v14, %v656_v38  ;;  %v3764_v48 = vrot.slane %v3762_v60, 5  ;;  %v3768_v49 = vrot.slane %v3766_v39, 4  ;;  %927 = vst [vmem:[#allocation2 + $0x38] sm:$0x1] %v926_v32  ;;  %v3786_v51 = vshll.u32 %v3666_v46, 16  ;;  %8444 = vmatpush3.bf16.msra.mxu1 %v9152_v17  ;;  %v9161_v28 = vld [vmem:[%s11152_s1 + $0x68] sm:$0xff]  }
  0x46   : > { %8630 = vmatpush3.bf16.msra.mxu0 %v9434_v13  ;;  %931 = vst [vmem:[#allocation2 + $0x40] sm:$0xf] %v657_v1  ;;  %v3664_v52 = vld [vmem:[#allocation2 + $0x2c] sm:$0x1]  ;;  %v3759_v20 = vor.u32 %v3758_v42, %v3755_v41  ;;  %v3790_v53 = vshrl.u32 %v3666_v46, 16  ;;  %v454_v50 = vmax.f32 %v9499_v29, 0.0  ;;  %8445 = vmatprep.subr.bf16.mxu1 %v9157_v0  ;;  %v7931_v8 = vpack.c.bf16 %v453_v30, %v453_v30 }
  0x47   : > { %8631 = vmatprep.subr.bf16.mxu0 %v9139_v26  ;;  %v3769_v54 = vor.u32 %v3768_v49, %v3764_v48  ;;  %v3772_v58 = vshll.u32 %v3664_v52, 16  ;;  %v9607_v3 = vrot.slane %v3786_v51, 5  ;;  %v455_v13 = vmax.f32 %v9520_v55, 0.0  ;;  %v9144_v14 = vld [vmem:[%s11152_s1 + $0x158] sm:$0xff]   ;;  %v9148_v49 = vld [vmem:[%s11152_s1 + $0x160] sm:$0xff]  }
  0x48   : > { %v3760_v5 = vrot.slane %v3759_v20, 4  ;;  %v3792_v6 = vrot.slane %v3790_v53, 4  ;;  %v7932_v9 = vpack.c.bf16 %v454_v50, %v454_v50  ;;  %v9140_v29 = vld [vmem:[#allocation2 + $0x30] sm:$0xff]   ;;  %v1119_v11 = vld [vmem:[#allocation2 + $0x3c] sm:$0x2]  ;;  %v933_v55 = vsel %vm9438_vm7, %v658_v33, %v932_v47 }
  0x49   : > { %v3770_v12 = vrot.slane %v3769_v54, 4  ;;  %v9616_v16 = vpack.c.bf16 %v455_v13, %v455_v13  ;;  %v9623_v17 = vmul.f32 %v8019_v57, %v9373_v10  ;;  %v7461_v22 = vrot.slane %v1119_v11, 9  ;;  %v1219_v4 = vld [vmem:[#allocation2 + $0x3c] sm:$0x1]  ;;  %v3665_v23 = vld [vmem:[#allocation2 + $0x30] sm:$0xf]  ;;  %8446 = vmatpush3.bf16.msra.mxu1 %v9157_v0  ;;  %8413 = vmatprep.mubr.bf16.mxu1 %v9140_v29 }
  0x4a   : > { %8632 = vmatpush3.bf16.msra.mxu0 %v9139_v26  ;;  %v3765_v62 = vsel %vm9557_vm11, %v3760_v5, %v3764_v48  ;;  %v3774_v7 = vrot.slane %v3772_v58, 5  ;;  %v3793_v24 = vor.u32 %v3792_v6, %v9607_v3  ;;  %934 = vst [vmem:[#allocation2 + $0x44] sm:$0x1] %v933_v55  ;;  %v3777_v63 = vshrl.u32 %v3665_v23, 16  ;;  %8447 = vmatprep.subr.bf16.mxu1 %v9161_v28  ;;  %v935_v47 = vld [vmem:[#allocation2 + $0x48] sm:$0xf] }
  0x4b   : > { %8633 = vmatprep.subr.bf16.mxu0 %v9143_v61  ;;  %v3780_v25 = vshll.u32 %v3665_v23, 16  ;;  %v660_v27 = vshrl.u32 %v7931_v8, 16  ;;  %v663_v31 = vshll.u32 %v7931_v8, 16  ;;  %v1220_v57 = vsel %vm9438_vm7, %v7461_v22, %v1219_v4  ;;  %v939_v30 = vld [vmem:[#allocation2 + $0x50] sm:$0x1] }
  0x4c   : > { %v3775_v44 = vsel %vm9557_vm11, %v3770_v12, %v3774_v7  ;;  %v1361_v26 = vld [vmem:[#allocation2 + $0x38] sm:$0x1]  ;;  %v9632_v33 = vrot.slane %v3793_v24, 4  ;;  %v668_v34 = vshrl.u32 %v7932_v9, 16  ;;  %1221 = vst [vmem:[#allocation2 + $0x3c] sm:$0x1] %v1220_v57  ;;  %v425_v7 = vadd.f32 %v9383_v18, %v9623_v17 }
  0x4d   : > { %v7670_v35 = vcombine.low %v3765_v62, %v3775_v44  ;;  %v1362_v0 = vsel %vm9489_vm8, %v7478_v43, %v1361_v26  ;;  %v3779_v37 = vrot.slane %v3777_v63, 4  ;;  %v3782_v38 = vrot.slane %v3780_v25, 5  ;;  %v1263_v60 = vld [vmem:[#allocation2 + $0x40] sm:$0x8]  ;;  %8448 = vmatpush3.bf16.msra.mxu1 %v9161_v28  ;;  %v9165_v5 = vld [vmem:[%s11152_s1 + $0x70] sm:$0xff]  }
  0x4e   : > { %1363 = vst [vmem:[#allocation2 + $0x38] sm:$0x1] %v1362_v0  ;;  %8634 = vmatpush3.bf16.msra.mxu0 %v9143_v61  ;;  %v662_v39 = vrot.slane %v660_v27, 7  ;;  %v670_v40 = vrot.slane %v668_v34, 7  ;;  %v671_v41 = vshll.u32 %v7932_v9, 16  ;;  %v456_v42 = vmax.f32 %v9523_v56, 0.0  ;;  %8449 = vmatprep.subr.bf16.mxu1 %v9165_v5 }
  0x4f   : > { %v3669_v32 = vld [vmem:[#allocation2 + $0x40] sm:$0xf]  ;;  %8601 = vmatprep.mubr.bf16.mxu0 %v7670_v35  ;;  %v3783_v46 = vor.u32 %v3782_v38, %v3779_v37  ;;  %8635 = vmatprep.subr.bf16.mxu0 %v9144_v14  ;;  %v677_v1 = vshrl.u32 %v9616_v16, 16  ;;  %v680_v43 = vshll.u32 %v9616_v16, 16  ;;  %v7479_v48 = vrot.slane %v1263_v60, 11  ;;  %v9149_v16 = vld [vmem:[%s11152_s1 + $0x168] sm:$0xff]  }
  0x50   : > { %v665_v51 = vor.u32 %v663_v31, %v662_v39  ;;  %v666_v52 = vrot.slane %v662_v39, 4  ;;  %v673_v20 = vor.u32 %v671_v41, %v670_v40  ;;  %v675_v53 = vrot.slane %v670_v40, 4  ;;  %v942_v56 = vld [vmem:[#allocation2 + $0x54] sm:$0xf]  ;;  %v9167_v31 = vld [vmem:[%s11152_s1 + $0x78] sm:$0xff]   ;;  %v8148_v57 = vld [vmem:[%s9365_s26 + $0x40] sm:$0xff]  }
  0x51   : > { %v9642_v50 = vrot.slane %v3783_v46, 4  ;;  %v7934_v54 = vpack.c.bf16 %v456_v42, %v456_v42  ;;  %v679_v58 = vrot.slane %v677_v1, 7  ;;  %v1364_v61 = vld [vmem:[#allocation2 + $0x44] sm:$0x1]  ;;  %v3810_v13 = vshll.u32 %v3669_v32, 16  ;;  %8450 = vmatpush3.bf16.msra.mxu1 %v9165_v5  ;;  %v9153_v44 = vld [vmem:[%s11152_s1 + $0x170] sm:$0xff]  }
  0x52   : > { %8636 = vmatpush3.bf16.msra.mxu0 %v9144_v14  ;;  %v674_v6 = vsel %vm9416_vm5, %v666_v52, %v673_v20  ;;  %v936_v8 = vsel %vm9427_vm6, %v665_v51, %v935_v47  ;;  %v1365_v9 = vsel %vm9489_vm8, %v7479_v48, %v1364_v61  ;;  %v3814_v28 = vshrl.u32 %v3669_v32, 16  ;;  %v946_v37 = vld [vmem:[#allocation2 + $0x5c] sm:$0x1]  ;;  %8451 = vmatprep.subr.bf16.mxu1 %v9167_v31  ;;  %v9169_v38 = vld [vmem:[%s11152_s1 + $0x80] sm:$0xff]  }
  0x53   : > { %v3789_v29 = vsel %vm9557_vm11, %v9642_v50, %v9607_v3  ;;  %937 = vst [vmem:[#allocation2 + $0x48] sm:$0xf] %v936_v8  ;;  %938 = vst [vmem:[#allocation2 + $0x4c] sm:$0xf] %v674_v6  ;;  %v682_v11 = vor.u32 %v680_v43, %v679_v58  ;;  %v683_v12 = vrot.slane %v679_v58, 4  ;;  %v685_v14 = vshrl.u32 %v7934_v54, 16  ;;  %8637 = vmatprep.subr.bf16.mxu0 %v9148_v49 }
  0x54   : > { %1366 = vst [vmem:[#allocation2 + $0x44] sm:$0x1] %v1365_v9  ;;  %v9141_v55 = vld [vmem:[#allocation2 + $0x3c] sm:$0xff]   ;;  %v688_v22 = vshll.u32 %v7934_v54, 16  ;;  %v940_v62 = vsel %vm9438_vm7, %v675_v53, %v939_v30  ;;  %v388_v3 = vmul.f32 %v8020_v21, %v9373_v10  ;;  %v9672_v10 = vrot.slane %v3810_v13, 5 }
  0x55   : > { %v3668_v4 = vld [vmem:[#allocation2 + $0x3c] sm:$0xf]  ;;  %v3667_v23 = vld [vmem:[#allocation2 + $0x38] sm:$0x1]  ;;  %v687_v24 = vrot.slane %v685_v14, 7  ;;  %v943_v63 = vsel %vm9427_vm6, %v682_v11, %v942_v56  ;;  %8414 = vmatmul.mubr.bf16.gmra.mrb[8].mxu1 %v9141_v55  ;;  %v3816_v21 = vrot.slane %v3814_v28, 4  ;;  %v8023_v32 = vunpack.c.l.bf16 %v8148_v57 }
  0x56   : > { %v3801_v25 = vshrl.u32 %v3668_v4, 16  ;;  %v3804_v27 = vshll.u32 %v3668_v4, 16  ;;  %941 = vst [vmem:[#allocation2 + $0x50] sm:$0x1] %v940_v62  ;;  %v3796_v36 = vshll.u32 %v3667_v23, 16  ;;  %8638 = vmatpush3.bf16.msra.mxu0 %v9148_v49  ;;  %v426_v17 = vadd.f32 %v9383_v18, %v388_v3  ;;  %8452 = vmatpush3.bf16.msra.mxu1 %v9167_v31 }
  0x57   : > { %944 = vst [vmem:[#allocation2 + $0x54] sm:$0xf] %v943_v63  ;;  %v690_v26 = vor.u32 %v688_v22, %v687_v24  ;;  %v692_v34 = vrot.slane %v687_v24, 4  ;;  %8639 = vmatprep.subr.bf16.mxu0 %v9149_v16  ;;  %v3817_v39 = vor.u32 %v3816_v21, %v9672_v10  ;;  %v457_v18 = vmax.f32 %v425_v7, 0.0  ;;  %8485 = vmatprep.subr.bf16.mxu1 %v9169_v38  ;;  %v9696_v13 = vld [vmem:[%s11154_s3] ss:$0 sm:$0xff] }
  0x58   : > { %v3803_v35 = vrot.slane %v3801_v25, 4  ;;  %v3806_v0 = vrot.slane %v3804_v27, 5  ;;  %v3798_v60 = vrot.slane %v3796_v36, 5  ;;  %v458_v40 = vmax.f32 %v426_v17, 0.0  ;;  %v949_v14 = vld [vmem:[#allocation2 + $0x60] sm:$0xf] }
  0x59   : > { %v691_v41 = vsel %vm9416_vm5, %v683_v12, %v690_v26  ;;  %v8024_v46 = vunpack.c.h.bf16 %v8148_v57  ;;  %v7935_v48 = vpack.c.bf16 %v457_v18, %v457_v18  ;;  %v947_v51 = vsel %vm9438_vm7, %v692_v34, %v946_v37  ;;  %v9708_v63 = vld [vmem:[%s9365_s26 + $0x48] sm:$0xff]   ;;  %v9713_v25 = vld [vmem:[%s11152_s1 + $0x180] sm:$0xff]   ;;  %v6345_v19 = vld [vmem:[#allocation2 + $0x38] sm:$0x1] }
  0x5a   : > { %v3807_v42 = vor.u32 %v3806_v0, %v3803_v35  ;;  %v3799_v47 = vsel %vm9557_vm11, %v9632_v33, %v3798_v60  ;;  %v1120_v1 = vld [vmem:[#allocation2 + $0x48] sm:$0x2]  ;;  %v1222_v43 = vld [vmem:[#allocation2 + $0x48] sm:$0x1]  ;;  %945 = vst [vmem:[#allocation2 + $0x58] sm:$0xf] %v691_v41  ;;  %8640 = vmatpush3.bf16.msra.mxu0 %v9149_v16  ;;  %v7936_v49 = vpack.c.bf16 %v458_v40, %v458_v40  ;;  %v8027_v18 = vunpack.c.l.bf16 %v9708_v63 }
  0x5b   : > { %v7671_v52 = vcombine.low %v3789_v29, %v3799_v47  ;;  %v7462_v20 = vrot.slane %v1120_v1, 9  ;;  %v3670_v53 = vld [vmem:[#allocation2 + $0x44] sm:$0x1]  ;;  %v3818_v30 = vrot.slane %v3817_v39, 4  ;;  %948 = vst [vmem:[#allocation2 + $0x5c] sm:$0x1] %v947_v51  ;;  %8641 = vmatprep.subr.bf16.mxu0 %v9153_v44  ;;  %v389_v5 = vmul.f32 %v9696_v13, %v8023_v32 }
  0x5c   : > { %v3808_v56 = vrot.slane %v3807_v42, 4  ;;  %v9154_v33 = vld [vmem:[%s11152_s1 + $0x178] sm:$0xff]   ;;  %v3820_v50 = vshll.u32 %v3670_v53, 16  ;;  %v1264_v54 = vld [vmem:[#allocation2 + $0x4c] sm:$0x8]  ;;  %v694_v61 = vshrl.u32 %v7935_v48, 16  ;;  %v390_v6 = vmul.f32 %v9696_v13, %v8024_v46 }
  0x5d   : > { %v1367_v58 = vld [vmem:[#allocation2 + $0x50] sm:$0x1]  ;;  %8602 = vmatmul.mubr.bf16.gmra.mrb[4].mxu0 %v7671_v52  ;;  %v1223_v8 = vsel %vm9438_vm7, %v7462_v20, %v1222_v43  ;;  %v7480_v11 = vrot.slane %v1264_v54, 11  ;;  %v697_v12 = vshll.u32 %v7935_v48, 16  ;;  %v3672_v22 = vld [vmem:[#allocation2 + $0x4c] sm:$0xf] }
  0x5e   : > { %v1121_v9 = vld [vmem:[#allocation2 + $0x54] sm:$0x2]  ;;  %v1225_v28 = vld [vmem:[#allocation2 + $0x54] sm:$0x1]  ;;  %v3813_v29 = vsel %vm9557_vm11, %v3808_v56, %v9672_v10  ;;  %1224 = vst [vmem:[#allocation2 + $0x48] sm:$0x1] %v1223_v8  ;;  %8642 = vmatpush3.bf16.msra.mxu0 %v9153_v44  ;;  %v391_v8 = vmul.f32 %v9696_v13, %v8027_v18 }
  0x5f   : > { %v7463_v16 = vrot.slane %v1121_v9, 9  ;;  %v3822_v55 = vrot.slane %v3820_v50, 5  ;;  %v696_v4 = vrot.slane %v694_v61, 7  ;;  %v702_v62 = vshrl.u32 %v7936_v49, 16  ;;  %8643 = vmatprep.subr.bf16.mxu0 %v9154_v33  ;;  %v953_v21 = vld [vmem:[#allocation2 + $0x68] sm:$0x1] }
  0x60   : > { %v1368_v3 = vsel %vm9489_vm8, %v7480_v11, %v1367_v58  ;;  %v3834_v7 = vshll.u32 %v3672_v22, 16  ;;  %v3838_v23 = vshrl.u32 %v3672_v22, 16  ;;  %v705_v24 = vshll.u32 %v7936_v49, 16  ;;  %v9726_v35 = vld [vmem:[%s11155_s4] ss:$0 sm:$0xff]  ;;  %v9734_v48 = vld [vmem:[%s9365_s26 + $0x50] sm:$0xff]  }
  0x61   : > { %v1226_v27 = vsel %vm9438_vm7, %v7463_v16, %v1225_v28  ;;  %v3823_v31 = vsel %vm9557_vm11, %v3818_v30, %v3822_v55  ;;  %1369 = vst [vmem:[#allocation2 + $0x50] sm:$0x1] %v1368_v3  ;;  %v699_v36 = vor.u32 %v697_v12, %v696_v4  ;;  %v700_v10 = vrot.slane %v696_v4, 4  ;;  %v1265_v38 = vld [vmem:[#allocation2 + $0x58] sm:$0x8] }
  0x62   : > { %1227 = vst [vmem:[#allocation2 + $0x54] sm:$0x1] %v1226_v27  ;;  %v7672_v17 = vcombine.low %v3813_v29, %v3823_v31  ;;  %v9719_v57 = vrot.slane %v3834_v7, 5  ;;  %v3840_v44 = vrot.slane %v3838_v23, 4  ;;  %v704_v26 = vrot.slane %v702_v62, 7  ;;  %8644 = vmatpush3.bf16.msra.mxu0 %v9154_v33 }
  0x63   : > { %v950_v34 = vsel %vm9427_vm6, %v699_v36, %v949_v14  ;;  %v427_v0 = vadd.f32 %v9726_v35, %v389_v5  ;;  %v428_v37 = vadd.f32 %v9726_v35, %v390_v6  ;;  %v1370_v60 = vld [vmem:[#allocation2 + $0x5c] sm:$0x1]  ;;  %v3675_v39 = vld [vmem:[#allocation2 + $0x58] sm:$0xf]  ;;  %v7481_v32 = vrot.slane %v1265_v38, 11  ;;  %8677 = vmatprep.subr.bf16.mxu0 %v9713_v25 }
  0x64   : > { %8605 = vmatprep.mubr.bf16.mxu0 %v7672_v17  ;;  %v3841_v40 = vor.u32 %v3840_v44, %v9719_v57  ;;  %v707_v41 = vor.u32 %v705_v24, %v704_v26  ;;  %v709_v42 = vrot.slane %v704_v26, 4  ;;  %951 = vst [vmem:[#allocation2 + $0x60] sm:$0xf] %v950_v34  ;;  %v3858_v1 = vshll.u32 %v3675_v39, 16  ;;  %v956_v24 = vld [vmem:[#allocation2 + $0x6c] sm:$0xf] }
  0x65   : > { %v459_v46 = vmax.f32 %v427_v0, 0.0  ;;  %v460_v47 = vmax.f32 %v428_v37, 0.0  ;;  %v3862_v43 = vshrl.u32 %v3675_v39, 16  ;;  %v9145_v49 = vld [vmem:[#allocation2 + $0x48] sm:$0xff]   ;;  %v1371_v53 = vsel %vm9489_vm8, %v7481_v32, %v1370_v60 }
  0x66   : > { %v3671_v51 = vld [vmem:[#allocation2 + $0x48] sm:$0xf]  ;;  %v3842_v52 = vrot.slane %v3841_v40, 4  ;;  %v708_v20 = vsel %vm9416_vm5, %v700_v10, %v707_v41  ;;  %v954_v56 = vsel %vm9438_vm7, %v709_v42, %v953_v21  ;;  %1372 = vst [vmem:[#allocation2 + $0x5c] sm:$0x1] %v1371_v53  ;;  %8417 = vmatprep.mubr.bf16.mxu1 %v9145_v49  ;;  %v9742_v61 = vrot.slane %v3858_v1, 5 }
  0x67   : > { %v3825_v30 = vshrl.u32 %v3671_v51, 16  ;;  %v3828_v33 = vshll.u32 %v3671_v51, 16  ;;  %952 = vst [vmem:[#allocation2 + $0x64] sm:$0xf] %v708_v20  ;;  %v7937_v50 = vpack.c.bf16 %v459_v46, %v459_v46  ;;  %v7938_v54 = vpack.c.bf16 %v460_v47, %v460_v47  ;;  %955 = vst [vmem:[#allocation2 + $0x68] sm:$0x1] %v954_v56 }
  0x68   : > { %v3673_v58 = vld [vmem:[#allocation2 + $0x50] sm:$0x1]  ;;  %v3864_v5 = vrot.slane %v3862_v43, 4  ;;  %v8028_v6 = vunpack.c.h.bf16 %v9708_v63  ;;  %v8031_v12 = vunpack.c.l.bf16 %v9734_v48 }
  0x69   : > { %v9146_v9 = vld [vmem:[#allocation2 + $0x54] sm:$0xff]   ;;  %v3827_v28 = vrot.slane %v3825_v30, 4  ;;  %v3830_v29 = vrot.slane %v3828_v33, 5  ;;  %v3844_v11 = vshll.u32 %v3673_v58, 16  ;;  %v711_v14 = vshrl.u32 %v7937_v50, 16 }
  0x6a   : > { %v714_v16 = vshll.u32 %v7937_v50, 16  ;;  %v719_v55 = vshrl.u32 %v7938_v54, 16  ;;  %v722_v22 = vshll.u32 %v7938_v54, 16  ;;  %v3674_v4 = vld [vmem:[#allocation2 + $0x54] sm:$0xf]  ;;  %8418 = vmatmul.mubr.bf16.gmra.mrb[12].mxu1 %v9146_v9  ;;  %v3865_v27 = vor.u32 %v3864_v5, %v9742_v61 }
  0x6b   : > { %v3831_v62 = vor.u32 %v3830_v29, %v3827_v28  ;;  %v3846_v3 = vrot.slane %v3844_v11, 5  ;;  %v1122_v7 = vld [vmem:[#allocation2 + $0x60] sm:$0x2]  ;;  %v1228_v23 = vld [vmem:[#allocation2 + $0x60] sm:$0x1]  ;;  %v3849_v63 = vshrl.u32 %v3674_v4, 16  ;;  %v392_v30 = vmul.f32 %v9696_v13, %v8028_v6 }
  0x6c   : > { %v7464_v31 = vrot.slane %v1122_v7, 9  ;;  %v713_v36 = vrot.slane %v711_v14, 7  ;;  %v9748_v10 = vrot.slane %v719_v55, 7  ;;  %v3852_v21 = vshll.u32 %v3674_v4, 16  ;;  %v4474_v54 = vld [vmem:[#allocation2 + $0xc] sm:$0xe] }
  0x6d   : > { %v3832_v17 = vrot.slane %v3831_v62, 4  ;;  %v3847_v44 = vsel %vm9557_vm11, %v3842_v52, %v3846_v3  ;;  %v3851_v26 = vrot.slane %v3849_v63, 4  ;;  %v3866_v34 = vrot.slane %v3865_v27, 4  ;;  %v3676_v39 = vld [vmem:[#allocation2 + $0x5c] sm:$0x1] }
  0x6e   : > { %v1229_v0 = vsel %vm9438_vm7, %v7464_v31, %v1228_v23  ;;  %v716_v37 = vor.u32 %v714_v16, %v713_v36  ;;  %v717_v38 = vrot.slane %v713_v36, 4  ;;  %v724_v60 = vor.u32 %v722_v22, %v9748_v10  ;;  %v1266_v32 = vld [vmem:[#allocation2 + $0x64] sm:$0x8]  ;;  %v1373_v49 = vld [vmem:[#allocation2 + $0x68] sm:$0x1]  ;;  %v9786_v62 = vld [vmem:[%s9365_s26 + $0x58] sm:$0xff]  }
  0x6f   : > { %v3837_v18 = vsel %vm9557_vm11, %v3832_v17, %v9719_v57  ;;  %1230 = vst [vmem:[#allocation2 + $0x60] sm:$0x1] %v1229_v0  ;;  %v726_v40 = vrot.slane %v9748_v10, 4  ;;  %v3854_v41 = vrot.slane %v3852_v21, 5  ;;  %v3868_v42 = vshll.u32 %v3676_v39, 16 }
  0x70   : > { %v7673_v46 = vcombine.low %v3837_v18, %v3847_v44  ;;  %v725_v47 = vsel %vm9416_vm5, %v717_v38, %v724_v60  ;;  %v957_v1 = vsel %vm9427_vm6, %v716_v37, %v956_v24  ;;  %v7482_v43 = vrot.slane %v1266_v32, 11  ;;  %v3678_v51 = vld [vmem:[#allocation2 + $0x64] sm:$0xf]  ;;  %v4475_v58 = vld [vmem:[#allocation2 + $0x10] sm:$0xf] }
  0x71   : > { %958 = vst [vmem:[#allocation2 + $0x6c] sm:$0xf] %v957_v1  ;;  %959 = vst [vmem:[#allocation2 + $0x70] sm:$0xf] %v725_v47  ;;  %v3855_v52 = vor.u32 %v3854_v41, %v3851_v26  ;;  %v3870_v57 = vrot.slane %v3868_v42, 5  ;;  %v3882_v20 = vshll.u32 %v3678_v51, 16  ;;  %v429_v33 = vadd.f32 %v9726_v35, %v391_v8 }
  0x72   : > { %v3886_v53 = vshrl.u32 %v3678_v51, 16  ;;  %8606 = vmatmul.mubr.bf16.gmra.mrb[8].mxu0 %v7673_v46  ;;  %v1374_v56 = vsel %vm9489_vm8, %v7482_v43, %v1373_v49  ;;  %v8032_v50 = vunpack.c.h.bf16 %v9734_v48  ;;  %v430_v11 = vadd.f32 %v9726_v35, %v392_v30 }
  0x73   : > { %v3856_v5 = vrot.slane %v3855_v52, 4  ;;  %v3871_v9 = vsel %vm9557_vm11, %v3866_v34, %v3870_v57  ;;  %1375 = vst [vmem:[#allocation2 + $0x68] sm:$0x1] %v1374_v56  ;;  %v9770_v28 = vrot.slane %v3882_v20, 5  ;;  %v461_v14 = vmax.f32 %v429_v33, 0.0 }
  0x74   : > { %v3888_v29 = vrot.slane %v3886_v53, 4  ;;  %v393_v6 = vmul.f32 %v9696_v13, %v8031_v12  ;;  %v394_v8 = vmul.f32 %v9696_v13, %v8032_v50  ;;  %v7692_v22 = vrot.slane %v4474_v54, 9  ;;  %v963_v52 = vld [vmem:[#allocation2 + $0x78] sm:$0xf]  ;;  %v4476_v54 = vld [vmem:[#allocation2 + $0x14] sm:$0x1] }
  0x75   : > { %v3861_v48 = vsel %vm9557_vm11, %v3856_v5, %v9742_v61  ;;  %v4572_v4 = vrot.slane %v4475_v58, 5  ;;  %v462_v23 = vmax.f32 %v430_v11, 0.0  ;;  %v7939_v24 = vpack.c.bf16 %v461_v14, %v461_v14  ;;  %v4477_v11 = vld [vmem:[#allocation2 + $0x18] sm:$0xe]  ;;  %v4478_v14 = vld [vmem:[#allocation2 + $0x1c] sm:$0xf] }
  0x76   : > { %v3889_v16 = vor.u32 %v3888_v29, %v9770_v28  ;;  %v9150_v3 = vld [vmem:[#allocation2 + $0x60] sm:$0xff]   ;;  %v7674_v12 = vcombine.low %v3861_v48, %v3871_v9  ;;  %v431_v63 = vadd.f32 %v9726_v35, %v393_v6  ;;  %v432_v36 = vadd.f32 %v9726_v35, %v394_v8 }
  0x77   : > { %v3677_v7 = vld [vmem:[#allocation2 + $0x60] sm:$0xf]  ;;  %8421 = vmatprep.mubr.bf16.mxu1 %v9150_v3  ;;  %v7940_v44 = vpack.c.bf16 %v462_v23, %v462_v23  ;;  %v9792_v26 = vsel %vm9781_vm14, %v7692_v22, %v4572_v4  ;;  %v8035_v34 = vunpack.c.l.bf16 %v9786_v62  ;;  %v8036_v0 = vunpack.c.h.bf16 %v9786_v62  ;;  %v970_v23 = vld [vmem:[#allocation2 + $0x84] sm:$0xf] }
  0x78   : > { %v3873_v61 = vshrl.u32 %v3677_v7, 16  ;;  %v3876_v27 = vshll.u32 %v3677_v7, 16  ;;  %v3890_v31 = vrot.slane %v3889_v16, 4  ;;  %v1123_v21 = vld [vmem:[#allocation2 + $0x6c] sm:$0x2]  ;;  %8609 = vmatprep.mubr.bf16.mxu0 %v7674_v12  ;;  %v728_v39 = vshrl.u32 %v7939_v24, 16 }
  0x79   : > { %v1231_v17 = vld [vmem:[#allocation2 + $0x6c] sm:$0x1]  ;;  %v7465_v37 = vrot.slane %v1123_v21, 9  ;;  %v731_v41 = vshll.u32 %v7939_v24, 16  ;;  %v736_v42 = vshrl.u32 %v7940_v44, 16  ;;  %v739_v32 = vshll.u32 %v7940_v44, 16 }
  0x7a   : > { %v3875_v38 = vrot.slane %v3873_v61, 4  ;;  %v3878_v60 = vrot.slane %v3876_v27, 5  ;;  %v3679_v18 = vld [vmem:[#allocation2 + $0x68] sm:$0x1]  ;;  %v463_v46 = vmax.f32 %v431_v63, 0.0  ;;  %v730_v49 = vrot.slane %v728_v39, 7 }
  0x7b   : > { %v1232_v47 = vsel %vm9438_vm7, %v7465_v37, %v1231_v17  ;;  %v3892_v43 = vshll.u32 %v3679_v18, 16  ;;  %v9798_v51 = vrot.slane %v736_v42, 7  ;;  %v464_v57 = vmax.f32 %v432_v36, 0.0  ;;  %v4479_v22 = vld [vmem:[#allocation2 + $0x20] sm:$0x1] }
  0x7c   : > { %v3879_v1 = vor.u32 %v3878_v60, %v3875_v38  ;;  %1233 = vst [vmem:[#allocation2 + $0x6c] sm:$0x1] %v1232_v47  ;;  %v7941_v20 = vpack.c.bf16 %v463_v46, %v463_v46  ;;  %v4574_v53 = vrot.slane %v4572_v4, 4  ;;  %v733_v33 = vor.u32 %v731_v41, %v730_v49  ;;  %v8152_v17 = vld [vmem:[%s9365_s26 + $0x60] sm:$0xff]   ;;  %v4481_v47 = vld [vmem:[#allocation2 + $0x28] sm:$0xf] }
  0x7d   : > { %v3894_v30 = vrot.slane %v3892_v43, 5  ;;  %v734_v50 = vrot.slane %v730_v49, 4  ;;  %v741_v58 = vor.u32 %v739_v32, %v9798_v51  ;;  %v743_v5 = vrot.slane %v9798_v51, 4  ;;  %v4480_v18 = vld [vmem:[#allocation2 + $0x24] sm:$0xe] }
  0x7e   : > { %v3880_v56 = vrot.slane %v3879_v1, 4  ;;  %v7942_v9 = vpack.c.bf16 %v464_v57, %v464_v57  ;;  %v745_v29 = vshrl.u32 %v7941_v20, 16  ;;  %v964_v48 = vsel %vm9427_vm6, %v733_v33, %v963_v52  ;;  %v4482_v52 = vld [vmem:[#allocation2 + $0x2c] sm:$0x1]  ;;  %v4483_v57 = vld [vmem:[#allocation2 + $0x30] sm:$0xe] }
  0x7f   : > { %v3895_v8 = vsel %vm9557_vm11, %v3890_v31, %v3894_v30  ;;  %v748_v16 = vshll.u32 %v7941_v20, 16  ;;  %v742_v3 = vsel %vm9416_vm5, %v734_v50, %v741_v58  ;;  %965 = vst [vmem:[#allocation2 + $0x78] sm:$0xf] %v964_v48  ;;  %v7693_v63 = vrot.slane %v4477_v11, 9  ;;  %v4484_v30 = vld [vmem:[#allocation2 + $0x34] sm:$0xf] }
  0x80   : > { %v3885_v6 = vsel %vm9557_vm11, %v3880_v56, %v9770_v28  ;;  %v747_v12 = vrot.slane %v745_v29, 7  ;;  %v753_v7 = vshrl.u32 %v7942_v9, 16  ;;  %966 = vst [vmem:[#allocation2 + $0x7c] sm:$0xf] %v742_v3  ;;  %v756_v24 = vshll.u32 %v7942_v9, 16 }
  0x81   : > { %v7675_v4 = vcombine.low %v3885_v6, %v3895_v8  ;;  %v4575_v28 = vrot.slane %v4476_v54, 5  ;;  %v4579_v61 = vrot.slane %v4478_v14, 5  ;;  %v4582_v21 = vrot.slane %v4479_v22, 5  ;;  %v9162_v14 = vld [vmem:[%s11152_s1 + $0x188] sm:$0xff]  }
  0x82   : > { %v750_v27 = vor.u32 %v748_v16, %v747_v12  ;;  %v751_v31 = vrot.slane %v747_v12, 4  ;;  %v9811_v36 = vrot.slane %v753_v7, 7  ;;  %v395_v39 = vmul.f32 %v9696_v13, %v8035_v34 }
  0x83   : > { %8610 = vmatmul.mubr.bf16.gmra.mrb[12].mxu0 %v7675_v4  ;;  %v9151_v44 = vld [vmem:[#allocation2 + $0x6c] sm:$0xff]   ;;  %v4576_v37 = vsel %vm9781_vm14, %v4574_v53, %v4575_v28  ;;  %v4580_v38 = vsel %vm9781_vm14, %v7693_v63, %v4579_v61  ;;  %v4581_v60 = vrot.slane %v4579_v61, 4  ;;  %v396_v34 = vmul.f32 %v9696_v13, %v8036_v0  ;;  %v4485_v61 = vld [vmem:[#allocation2 + $0x38] sm:$0x1] }
  0x84   : > { %v758_v41 = vor.u32 %v756_v24, %v9811_v36  ;;  %v760_v42 = vrot.slane %v9811_v36, 4  ;;  %v971_v32 = vsel %vm9427_vm6, %v750_v27, %v970_v23  ;;  %v7724_v46 = vcombine.low %v9792_v26, %v4576_v37  ;;  %8422 = vmatmul.mubr.bf16.gmra.mrb[16].mxu1 %v9151_v44  ;;  %v9166_v27 = vld [vmem:[%s11152_s1 + $0x190] sm:$0xff]   ;;  %v9176_v36 = vld [vmem:[%s11152_s1 + $0x1b8] sm:$0xff]  }
  0x85   : > { %972 = vst [vmem:[#allocation2 + $0x84] sm:$0xf] %v971_v32  ;;  %v4583_v1 = vsel %vm9781_vm14, %v4581_v60, %v4582_v21  ;;  %v433_v43 = vadd.f32 %v9726_v35, %v395_v39  ;;  %v8039_v49 = vunpack.c.l.bf16 %v8152_v17  ;;  %v8040_v53 = vunpack.c.h.bf16 %v8152_v17 }
  0x86   : > { %v759_v20 = vsel %vm9416_vm5, %v751_v31, %v758_v41  ;;  %8645 = vmatprep.mubr.bf16.mxu0 %v7724_v46  ;;  %v7725_v26 = vcombine.low %v4580_v38, %v4583_v1  ;;  %v7694_v56 = vrot.slane %v4480_v18, 9  ;;  %v1124_v33 = vld [vmem:[#allocation2 + $0x78] sm:$0x2]  ;;  %v1234_v50 = vld [vmem:[#allocation2 + $0x78] sm:$0x1]  ;;  %v434_v62 = vadd.f32 %v9726_v35, %v396_v34 }
  0x87   : > { %973 = vst [vmem:[#allocation2 + $0x88] sm:$0xf] %v759_v20  ;;  %v465_v54 = vmax.f32 %v433_v43, 0.0  ;;  %v397_v0 = vmul.f32 %v9696_v13, %v8039_v49  ;;  %v4586_v58 = vrot.slane %v4481_v47, 5  ;;  %v7466_v9 = vrot.slane %v1124_v33, 9 }
  0x88   : > { %v398_v29 = vmul.f32 %v9696_v13, %v8040_v53  ;;  %v4589_v11 = vrot.slane %v4482_v52, 5  ;;  %v7695_v6 = vrot.slane %v4483_v57, 9  ;;  %v466_v8 = vmax.f32 %v434_v62, 0.0  ;;  %v977_v41 = vld [vmem:[#allocation2 + $0x90] sm:$0xf]  ;;  %v8153_v57 = vld [vmem:[%s9365_s26 + $0x68] sm:$0xff]  }
  0x89   : > { %v7943_v48 = vpack.c.bf16 %v465_v54, %v465_v54  ;;  %v435_v16 = vadd.f32 %v9726_v35, %v397_v0  ;;  %v4587_v22 = vsel %vm9781_vm14, %v7694_v56, %v4586_v58  ;;  %v1235_v4 = vsel %vm9438_vm7, %v7466_v9, %v1234_v50  ;;  %v9168_v0 = vld [vmem:[%s11152_s1 + $0x198] sm:$0xff]  }
  0x8a   : > { %v436_v3 = vadd.f32 %v9726_v35, %v398_v29  ;;  %v4588_v12 = vrot.slane %v4586_v58, 4  ;;  %v4593_v7 = vrot.slane %v4484_v30, 5  ;;  %1236 = vst [vmem:[#allocation2 + $0x78] sm:$0x1] %v1235_v4  ;;  %v7944_v23 = vpack.c.bf16 %v466_v8, %v466_v8  ;;  %v8154_v30 = vld [vmem:[%s9365_s26 + $0x70] sm:$0xff]  }
  0x8b   : > { %8646 = vmatmul.mubr.bf16.vlgmr.msra.gmra.mrb[0].mxu0 %v7725_v26  ;;  %v762_v24 = vshrl.u32 %v7943_v48, 16  ;;  %v765_v28 = vshll.u32 %v7943_v48, 16  ;;  %v467_v63 = vmax.f32 %v435_v16, 0.0  ;;  %v4596_v1 = vrot.slane %v4485_v61, 5  ;;  %v984_v8 = vld [vmem:[#allocation2 + $0x9c] sm:$0xf] }
  0x8c   : > { %8678 = vmatpush3.bf16.msra.mxu0 %v9713_v25  ;;  %v1125_v31 = vld [vmem:[#allocation2 + $0x84] sm:$0x2]  ;;  %v1237_v21 = vld [vmem:[#allocation2 + $0x84] sm:$0x1]  ;;  %v468_v17 = vmax.f32 %v436_v3, 0.0  ;;  %v4590_v44 = vsel %vm9781_vm14, %v4588_v12, %v4589_v11  ;;  %v4594_v37 = vsel %vm9781_vm14, %v7695_v6, %v4593_v7  ;;  %v4595_v25 = vrot.slane %v4593_v7, 4 }
  0x8d   : > { %8679 = vmatprep.subr.bf16.mxu0 %v9162_v14  ;;  %v7467_v38 = vrot.slane %v1125_v31, 9  ;;  %v764_v60 = vrot.slane %v762_v24, 7  ;;  %v770_v39 = vshrl.u32 %v7944_v23, 16  ;;  %v773_v18 = vshll.u32 %v7944_v23, 16  ;;  %v4486_v4 = vld [vmem:[#allocation2 + $0x3c] sm:$0xe] }
  0x8e   : > { %v7945_v32 = vpack.c.bf16 %v467_v63, %v467_v63  ;;  %v7946_v46 = vpack.c.bf16 %v468_v17, %v468_v17  ;;  %v7726_v47 = vcombine.low %v4587_v22, %v4590_v44  ;;  %v4597_v54 = vsel %vm9781_vm14, %v4595_v25, %v4596_v1  ;;  %v4487_v3 = vld [vmem:[#allocation2 + $0x40] sm:$0xf]  ;;  %v4489_v17 = vld [vmem:[#allocation2 + $0x48] sm:$0xe] }
  0x8f   : > { %v1238_v34 = vsel %vm9438_vm7, %v7467_v38, %v1237_v21  ;;  %v767_v43 = vor.u32 %v765_v28, %v764_v60  ;;  %v768_v49 = vrot.slane %v764_v60, 4  ;;  %v9854_v52 = vrot.slane %v770_v39, 7  ;;  %v4488_v28 = vld [vmem:[#allocation2 + $0x44] sm:$0x1]  ;;  %v960_v60 = vld [vmem:[#allocation2 + $0x74] sm:$0x1] }
  0x90   : > { %8680 = vmatpush3.bf16.msra.mxu0 %v9162_v14  ;;  %1239 = vst [vmem:[#allocation2 + $0x84] sm:$0x1] %v1238_v34  ;;  %v779_v20 = vshrl.u32 %v7945_v32, 16  ;;  %v782_v26 = vshll.u32 %v7945_v32, 16  ;;  %v787_v53 = vshrl.u32 %v7946_v46, 16  ;;  %v790_v56 = vshll.u32 %v7946_v46, 16  ;;  %8649 = vmatprep.mubr.bf16.mxu0 %v7726_v47 }
  0x91   : > { %8681 = vmatprep.subr.bf16.mxu0 %v9166_v27  ;;  %v775_v33 = vor.u32 %v773_v18, %v9854_v52  ;;  %v777_v50 = vrot.slane %v9854_v52, 4  ;;  %v978_v62 = vsel %vm9427_vm6, %v767_v43, %v977_v41  ;;  %v9155_v58 = vld [vmem:[#allocation2 + $0x78] sm:$0xff]   ;;  %v7727_v11 = vcombine.low %v4594_v37, %v4597_v54  ;;  %v9170_v63 = vld [vmem:[%s11152_s1 + $0x1a0] sm:$0xff]   ;;  %v4490_v47 = vld [vmem:[#allocation2 + $0x4c] sm:$0xf] }
  0x92   : > { %979 = vst [vmem:[#allocation2 + $0x90] sm:$0xf] %v978_v62  ;;  %v781_v9 = vrot.slane %v779_v20, 7  ;;  %v9867_v29 = vrot.slane %v787_v53, 7  ;;  %v8043_v14 = vunpack.c.l.bf16 %v8153_v57  ;;  %v8044_v48 = vunpack.c.h.bf16 %v8153_v57  ;;  %8425 = vmatprep.mubr.bf16.mxu1 %v9155_v58  ;;  %v967_v39 = vld [vmem:[#allocation2 + $0x80] sm:$0x1] }
  0x93   : > { %v776_v6 = vsel %vm9416_vm5, %v768_v49, %v775_v33  ;;  %v8047_v16 = vunpack.c.l.bf16 %v8154_v30  ;;  %v8048_v22 = vunpack.c.h.bf16 %v8154_v30  ;;  %8650 = vmatmul.mubr.bf16.gmra.mrb[4].mxu0 %v7727_v11  ;;  %v7696_v25 = vrot.slane %v4486_v4, 9  ;;  %v9890_v49 = vld [vmem:[#allocation2 + $0x50] sm:$0x1]  ;;  %v9172_v20 = vld [vmem:[%s11152_s1 + $0x1a8] sm:$0xff]  }
  0x94   : > { %8682 = vmatpush3.bf16.msra.mxu0 %v9166_v27  ;;  %980 = vst [vmem:[#allocation2 + $0x94] sm:$0xf] %v776_v6  ;;  %v784_v12 = vor.u32 %v782_v26, %v781_v9  ;;  %v785_v7 = vrot.slane %v781_v9, 4  ;;  %v792_v23 = vor.u32 %v790_v56, %v9867_v29  ;;  %v794_v24 = vrot.slane %v9867_v29, 4  ;;  %v974_v62 = vld [vmem:[#allocation2 + $0x8c] sm:$0x1] }
  0x95   : > { %v399_v61 = vmul.f32 %v9696_v13, %v8043_v14  ;;  %v400_v31 = vmul.f32 %v9696_v13, %v8044_v48  ;;  %v401_v27 = vmul.f32 %v9696_v13, %v8047_v16  ;;  %v402_v21 = vmul.f32 %v9696_v13, %v8048_v22  ;;  %8683 = vmatprep.subr.bf16.mxu0 %v9168_v0  ;;  %v981_v16 = vld [vmem:[#allocation2 + $0x98] sm:$0x1]  ;;  %v9174_v22 = vld [vmem:[%s11152_s1 + $0x1b0] sm:$0xff]  }
  0x96   : > { %v793_v44 = vsel %vm9416_vm5, %v785_v7, %v792_v23  ;;  %v985_v37 = vsel %vm9427_vm6, %v784_v12, %v984_v8  ;;  %v4600_v38 = vrot.slane %v4487_v3, 5  ;;  %v4603_v43 = vrot.slane %v4488_v28, 5 }
  0x97   : > { %v9156_v18 = vld [vmem:[#allocation2 + $0x84] sm:$0xff]   ;;  %986 = vst [vmem:[#allocation2 + $0x9c] sm:$0xf] %v985_v37  ;;  %987 = vst [vmem:[#allocation2 + $0xa0] sm:$0xf] %v793_v44  ;;  %v437_v41 = vadd.f32 %v9726_v35, %v399_v61  ;;  %v438_v32 = vadd.f32 %v9726_v35, %v400_v31  ;;  %v439_v13 = vadd.f32 %v9726_v35, %v401_v27  ;;  %v7697_v57 = vrot.slane %v4489_v17, 9 }
  0x98   : > { %v440_v46 = vadd.f32 %v9726_v35, %v402_v21  ;;  %8684 = vmatpush3.bf16.msra.mxu0 %v9168_v0  ;;  %v4601_v1 = vsel %vm9781_vm14, %v7696_v25, %v4600_v38  ;;  %v4602_v34 = vrot.slane %v4600_v38, 4  ;;  %8426 = vmatmul.mubr.bf16.gmra.mrb[20].mxu1 %v9156_v18  ;;  %v961_v30 = vsel %vm9438_vm7, %v726_v40, %v960_v60  ;;  %v9906_v40 = vld [vmem:[%s9365_s26 + $0x78] sm:$0xff]  }
  0x99   : > { %8685 = vmatprep.subr.bf16.mxu0 %v9170_v63  ;;  %v1126_v26 = vld [vmem:[#allocation2 + $0x90] sm:$0x2]  ;;  %v1240_v53 = vld [vmem:[#allocation2 + $0x90] sm:$0x1]  ;;  %v469_v56 = vmax.f32 %v437_v41, 0.0  ;;  %v470_v35 = vmax.f32 %v438_v32, 0.0  ;;  %v968_v33 = vsel %vm9438_vm7, %v743_v5, %v967_v39  ;;  %v975_v31 = vsel %vm9438_vm7, %v760_v42, %v974_v62 }
  0x9a   : > { %v7468_v54 = vrot.slane %v1126_v26, 9  ;;  %v471_v0 = vmax.f32 %v439_v13, 0.0  ;;  %v472_v58 = vmax.f32 %v440_v46, 0.0  ;;  %v4604_v9 = vsel %vm9781_vm14, %v4602_v34, %v4603_v43  ;;  %962 = vst [vmem:[#allocation2 + $0x74] sm:$0x1] %v961_v30 }
  0x9b   : > { %969 = vst [vmem:[#allocation2 + $0x80] sm:$0x1] %v968_v33  ;;  %v7947_v11 = vpack.c.bf16 %v469_v56, %v469_v56  ;;  %v7948_v14 = vpack.c.bf16 %v470_v35, %v470_v35  ;;  %v7728_v10 = vcombine.low %v4601_v1, %v4604_v9  ;;  %v4607_v6 = vrot.slane %v4490_v47, 5  ;;  %976 = vst [vmem:[#allocation2 + $0x8c] sm:$0x1] %v975_v31 }
  0x9c   : > { %8686 = vmatpush3.bf16.msra.mxu0 %v9170_v63  ;;  %v1241_v51 = vsel %vm9438_vm7, %v7468_v54, %v1240_v53  ;;  %v7949_v5 = vpack.c.bf16 %v471_v0, %v471_v0  ;;  %v7950_v8 = vpack.c.bf16 %v472_v58, %v472_v58  ;;  %v4610_v48 = vrot.slane %v9890_v49, 5  ;;  %v991_v63 = vld [vmem:[#allocation2 + $0xa8] sm:$0xf]  ;;  %v1258_v39 = vld [vmem:[#allocation2 + $0x4] sm:$0x8] }
  0x9d   : > { %8687 = vmatprep.subr.bf16.mxu0 %v9172_v20  ;;  %1242 = vst [vmem:[#allocation2 + $0x90] sm:$0x1] %v1241_v51  ;;  %v796_v4 = vshrl.u32 %v7947_v11, 16  ;;  %v799_v3 = vshll.u32 %v7947_v11, 16  ;;  %v804_v12 = vshrl.u32 %v7948_v14, 16  ;;  %v807_v7 = vshll.u32 %v7948_v14, 16  ;;  %8653 = vmatprep.mubr.bf16.mxu0 %v7728_v10 }
  0x9e   : > { %v1127_v23 = vld [vmem:[#allocation2 + $0x9c] sm:$0x2]  ;;  %v1243_v28 = vld [vmem:[#allocation2 + $0x9c] sm:$0x1]  ;;  %v4608_v61 = vsel %vm9781_vm14, %v7697_v57, %v4607_v6  ;;  %v982_v27 = vsel %vm9438_vm7, %v777_v50, %v981_v16  ;;  %v8051_v21 = vunpack.c.l.bf16 %v9906_v40  ;;  %v813_v25 = vshrl.u32 %v7949_v5, 16  ;;  %v9179_v58 = vld [vmem:[%s11152_s1 + $0x1c0] sm:$0xff]  }
  0x9f   : > { %v7469_v17 = vrot.slane %v1127_v23, 9  ;;  %v798_v44 = vrot.slane %v796_v4, 7  ;;  %v9925_v37 = vrot.slane %v804_v12, 7  ;;  %983 = vst [vmem:[#allocation2 + $0x98] sm:$0x1] %v982_v27  ;;  %v816_v42 = vshll.u32 %v7949_v5, 16 }
  0xa0   : > { %8688 = vmatpush3.bf16.msra.mxu0 %v9172_v20  ;;  %v821_v38 = vshrl.u32 %v7950_v8, 16  ;;  %v824_v52 = vshll.u32 %v7950_v8, 16  ;;  %v4609_v60 = vrot.slane %v4607_v6, 4  ;;  %v1349_v13 = vld [vmem:[#allocation2 + $0x8] sm:$0x1]  ;;  %v815_v1 = vrot.slane %v813_v25, 7 }
  0xa1   : > { %8689 = vmatprep.subr.bf16.mxu0 %v9174_v22  ;;  %v1244_v50 = vsel %vm9438_vm7, %v7469_v17, %v1243_v28  ;;  %v801_v18 = vor.u32 %v799_v3, %v798_v44  ;;  %v802_v41 = vrot.slane %v798_v44, 4  ;;  %v809_v32 = vor.u32 %v807_v7, %v9925_v37  ;;  %v1788_v46 = vld [vmem:[#allocation2] sm:$0xf]  ;;  %v1789_v49 = vld [vmem:[#allocation2 + $0x4] sm:$0xf] }
  0xa2   : > { %1245 = vst [vmem:[#allocation2 + $0x9c] sm:$0x1] %v1244_v50  ;;  %v811_v47 = vrot.slane %v9925_v37, 4  ;;  %v9934_v34 = vrot.slane %v821_v38, 7  ;;  %v4611_v43 = vsel %vm9781_vm14, %v4609_v60, %v4610_v48  ;;  %v998_v26 = vld [vmem:[#allocation2 + $0xb4] sm:$0xf]  ;;  %v818_v33 = vor.u32 %v816_v42, %v815_v1 }
  0xa3   : > { %v810_v57 = vsel %vm9416_vm5, %v802_v41, %v809_v32  ;;  %v992_v20 = vsel %vm9427_vm6, %v801_v18, %v991_v63  ;;  %v7729_v53 = vcombine.low %v4608_v61, %v4611_v43  ;;  %v7474_v56 = vrot.slane %v1258_v39, 11  ;;  %v1791_v35 = vld [vmem:[#allocation2 + $0xc] sm:$0xf]  ;;  %v1792_v6 = vld [vmem:[#allocation2 + $0x10] sm:$0xf] }
  0xa4   : > { %8690 = vmatpush3.bf16.msra.mxu0 %v9174_v22  ;;  %v9159_v30 = vld [vmem:[#allocation2 + $0x90] sm:$0xff]   ;;  %993 = vst [vmem:[#allocation2 + $0xa8] sm:$0xf] %v992_v20  ;;  %994 = vst [vmem:[#allocation2 + $0xac] sm:$0xf] %v810_v57  ;;  %v819_v62 = vrot.slane %v815_v1, 4  ;;  %v826_v54 = vor.u32 %v824_v52, %v9934_v34  ;;  %v999_v5 = vsel %vm9427_vm6, %v818_v33, %v998_v26  ;;  %v8052_v1 = vunpack.c.h.bf16 %v9906_v40 }
  0xa5   : > { %v828_v0 = vrot.slane %v9934_v34, 4  ;;  %8691 = vmatprep.subr.bf16.mxu0 %v9176_v36  ;;  %8654 = vmatmul.mubr.bf16.gmra.mrb[8].mxu0 %v7729_v53  ;;  %v1350_v9 = vsel %vm9489_vm8, %v7474_v56, %v1349_v13  ;;  %v1840_v11 = vshrl.u32 %v1788_v46, 16  ;;  %v1843_v14 = vshll.u32 %v1788_v46, 16  ;;  %v1793_v48 = vld [vmem:[#allocation2 + $0x14] sm:$0x1] }
  0xa6   : > { %v1849_v10 = vshll.u32 %v1789_v49, 16  ;;  %8429 = vmatprep.mubr.bf16.mxu1 %v9159_v30  ;;  %v827_v51 = vsel %vm9416_vm5, %v819_v62, %v826_v54  ;;  %1351 = vst [vmem:[#allocation2 + $0x8] sm:$0x1] %v1350_v9  ;;  %v1853_v8 = vshrl.u32 %v1789_v49, 16  ;;  %v1864_v16 = vshrl.u32 %v1791_v35, 16 }
  0xa7   : > { %v4492_v22 = vld [vmem:[#allocation2 + $0x54] sm:$0xe]  ;;  %1000 = vst [vmem:[#allocation2 + $0xb4] sm:$0xf] %v999_v5  ;;  %1001 = vst [vmem:[#allocation2 + $0xb8] sm:$0xf] %v827_v51 }
  0xa8   : > { %v1842_v4 = vrot.slane %v1840_v11, 4  ;;  %v1845_v3 = vrot.slane %v1843_v14, 5  ;;  %v9953_v12 = vrot.slane %v1849_v10, 5  ;;  %v1867_v7 = vshll.u32 %v1791_v35, 16  ;;  %v4493_v23 = vld [vmem:[#allocation2 + $0x58] sm:$0xf]  ;;  %8692 = vmatpush3.bf16.msra.mxu0 %v9176_v36 }
  0xa9   : > { %v1855_v28 = vrot.slane %v1853_v8, 4  ;;  %v1866_v63 = vrot.slane %v1864_v16, 4  ;;  %v1873_v61 = vshll.u32 %v1792_v6, 16  ;;  %v1877_v31 = vshrl.u32 %v1792_v6, 16  ;;  %8725 = vmatprep.subr.bf16.mxu0 %v9179_v58  ;;  %v9160_v27 = vld [vmem:[#allocation2 + $0x9c] sm:$0xff]  }
  0xaa   : > { %v1846_v17 = vor.u32 %v1845_v3, %v1842_v4  ;;  %v1869_v44 = vrot.slane %v1867_v7, 5  ;;  %v1883_v25 = vshll.u32 %v1793_v48, 16  ;;  %v7698_v42 = vrot.slane %v4492_v22, 9  ;;  %8430 = vmatmul.mubr.bf16.gmra.mrb[24].mxu1 %v9160_v27  ;;  %v4494_v36 = vld [vmem:[#allocation2 + $0x5c] sm:$0x1] }
  0xab   : > { %v1856_v38 = vor.u32 %v1855_v28, %v9953_v12  ;;  %v1875_v52 = vrot.slane %v1873_v61, 5  ;;  %v1879_v60 = vrot.slane %v1877_v31, 4  ;;  %v4614_v39 = vrot.slane %v4493_v23, 5  ;;  %v1128_v50 = vld [vmem:[#allocation2 + $0xa8] sm:$0x2] }
  0xac   : > { %v1246_v18 = vld [vmem:[#allocation2 + $0xa8] sm:$0x1]  ;;  %v1870_v41 = vor.u32 %v1869_v44, %v1866_v63  ;;  %v4495_v32 = vld [vmem:[#allocation2 + $0x60] sm:$0xe]  ;;  %v4496_v13 = vld [vmem:[#allocation2 + $0x64] sm:$0xf] }
  0xad   : > { %v4497_v46 = vld [vmem:[#allocation2 + $0x68] sm:$0x1]  ;;  %v9239_v43 = vld [vmem:[%s11154_s3] ss:$0 sm:$0xff]  ;;  %v7470_v57 = vrot.slane %v1128_v50, 9  ;;  %v1847_v20 = vrot.slane %v1846_v17, 4  ;;  %v1880_v53 = vor.u32 %v1879_v60, %v1875_v52  ;;  %v4615_v54 = vsel %vm9781_vm14, %v7698_v42, %v4614_v39 }
  0xae   : > { %v9962_v49 = vmul.f32 %v9239_v43, %v8051_v21  ;;  %v1857_v26 = vrot.slane %v1856_v38, 4  ;;  %v1794_v56 = vld [vmem:[#allocation2 + $0x18] sm:$0xf]  ;;  %v988_v35 = vld [vmem:[#allocation2 + $0xa4] sm:$0x1]  ;;  %v1871_v33 = vrot.slane %v1870_v41, 4  ;;  %v9975_v10 = vmul.f32 %v9239_v43, %v8052_v1 }
  0xaf   : > { %v1790_v30 = vld [vmem:[#allocation2 + $0x8] sm:$0x1]  ;;  %v1885_v62 = vrot.slane %v1883_v25, 5  ;;  %v4616_v58 = vrot.slane %v4614_v39, 4  ;;  %v1247_v9 = vsel %vm9438_vm7, %v7470_v57, %v1246_v18  ;;  %v1129_v11 = vld [vmem:[#allocation2 + $0xb4] sm:$0x2]  ;;  %v1852_v21 = vsel %vm9557_vm11, %v1847_v20, %v9953_v12 }
  0xb0   : > { %v1249_v40 = vld [vmem:[#allocation2 + $0xb4] sm:$0x1]  ;;  %v989_v14 = vsel %vm9438_vm7, %v794_v24, %v988_v35  ;;  %1248 = vst [vmem:[#allocation2 + $0xa8] sm:$0x1] %v1247_v9  ;;  %v7471_v6 = vrot.slane %v1129_v11, 9  ;;  %v1859_v51 = vshll.u32 %v1790_v30, 16  ;;  %v1876_v5 = vsel %vm9557_vm11, %v1871_v33, %v1875_v52 }
  0xb1   : > { %v1881_v8 = vrot.slane %v1880_v53, 4  ;;  %990 = vst [vmem:[#allocation2 + $0xa4] sm:$0x1] %v989_v14  ;;  %v4617_v48 = vrot.slane %v4494_v36, 5  ;;  %v7699_v16 = vrot.slane %v4495_v32, 9  ;;  %v4621_v22 = vrot.slane %v4496_v13, 5 }
  0xb2   : > { %v4624_v4 = vrot.slane %v4497_v46, 5  ;;  %v1795_v3 = vld [vmem:[#allocation2 + $0x1c] sm:$0xf]  ;;  %v1250_v29 = vsel %vm9438_vm7, %v7471_v6, %v1249_v40  ;;  %v1861_v12 = vrot.slane %v1859_v51, 5  ;;  %v1796_v7 = vld [vmem:[#allocation2 + $0x20] sm:$0x1] }
  0xb3   : > { %v1886_v24 = vsel %vm9557_vm11, %v1881_v8, %v1885_v62  ;;  %v1888_v23 = vshrl.u32 %v1794_v56, 16  ;;  %1251 = vst [vmem:[#allocation2 + $0xb4] sm:$0x1] %v1250_v29  ;;  %v4618_v63 = vsel %vm9781_vm14, %v4616_v58, %v4617_v48  ;;  %v4622_v61 = vsel %vm9781_vm14, %v7699_v16, %v4621_v22  ;;  %v1797_v27 = vld [vmem:[#allocation2 + $0x24] sm:$0xf] }
  0xb4   : > { %v9983_v28 = vcombine.low %v1876_v5, %v1886_v24  ;;  %v4623_v31 = vrot.slane %v4621_v22, 4  ;;  %v1862_v17 = vsel %vm9557_vm11, %v1857_v26, %v1861_v12  ;;  %v7730_v44 = vcombine.low %v4615_v54, %v4618_v63  ;;  %v995_v38 = vld [vmem:[#allocation2 + $0xb0] sm:$0x1]  ;;  %v1798_v18 = vld [vmem:[#allocation2 + $0x28] sm:$0xf] }
  0xb5   : > { %v1890_v25 = vrot.slane %v1888_v23, 4  ;;  %v1891_v42 = vshll.u32 %v1794_v56, 16  ;;  %v7532_v52 = vcombine.low %v1852_v21, %v1862_v17  ;;  %v1897_v39 = vshll.u32 %v1795_v3, 16  ;;  %v1799_v41 = vld [vmem:[#allocation2 + $0x2c] sm:$0x1] }
  0xb6   : > { %v4625_v60 = vsel %vm9781_vm14, %v4623_v31, %v4624_v4  ;;  %v1901_v50 = vshrl.u32 %v1795_v3, 16  ;;  %8657 = vmatprep.mubr.bf16.mxu0 %v7730_v44  ;;  %v1907_v13 = vshll.u32 %v1796_v7, 16  ;;  %v1912_v46 = vshrl.u32 %v1797_v27, 16  ;;  %v1267_v1 = vld [vmem:[#allocation2 + $0x70] sm:$0x8] }
  0xb7   : > { %v7731_v36 = vcombine.low %v4622_v61, %v4625_v60  ;;  %v1893_v32 = vrot.slane %v1891_v42, 5  ;;  %v9163_v43 = vld [vmem:[#allocation2 + $0xa8] sm:$0xff]   ;;  %v1899_v57 = vrot.slane %v1897_v39, 5  ;;  %v1915_v26 = vshll.u32 %v1797_v27, 16  ;;  %v4499_v56 = vld [vmem:[#allocation2 + $0x70] sm:$0xf] }
  0xb8   : > { %v1903_v20 = vrot.slane %v1901_v50, 4  ;;  %v4498_v53 = vld [vmem:[#allocation2 + $0x6c] sm:$0xe]  ;;  %v996_v35 = vsel %vm9438_vm7, %v811_v47, %v995_v38  ;;  %v1909_v33 = vrot.slane %v1907_v13, 5  ;;  %v1914_v62 = vrot.slane %v1912_v46, 4  ;;  %8433 = vmatprep.mubr.bf16.mxu1 %v9163_v43 }
  0xb9   : > { %8658 = vmatmul.mubr.bf16.gmra.mrb[12].mxu0 %v7731_v36  ;;  %v1894_v30 = vor.u32 %v1893_v32, %v1890_v25  ;;  %v1921_v54 = vshll.u32 %v1798_v18, 16  ;;  %v1268_v58 = vld [vmem:[#allocation2 + $0x7c] sm:$0x8]  ;;  %997 = vst [vmem:[#allocation2 + $0xb0] sm:$0x1] %v996_v35  ;;  %v1917_v11 = vrot.slane %v1915_v26, 5 }
  0xba   : > { %v1904_v9 = vor.u32 %v1903_v20, %v1899_v57  ;;  %v1925_v40 = vshrl.u32 %v1798_v18, 16  ;;  %v1931_v21 = vshll.u32 %v1799_v41, 16  ;;  %v1376_v14 = vld [vmem:[#allocation2 + $0x74] sm:$0x1]  ;;  %v4501_v6 = vld [vmem:[#allocation2 + $0x78] sm:$0xe] }
  0xbb   : > { %v9164_v51 = vld [vmem:[#allocation2 + $0xb4] sm:$0xff]   ;;  %v1895_v5 = vrot.slane %v1894_v30, 4  ;;  %v1923_v37 = vrot.slane %v1921_v54, 5  ;;  %v7483_v8 = vrot.slane %v1267_v1, 11  ;;  %v4502_v48 = vld [vmem:[#allocation2 + $0x7c] sm:$0xf]  ;;  %v1918_v4 = vor.u32 %v1917_v11, %v1914_v62 }
  0xbc   : > { %v10000_v47 = vld [vmem:[%s11155_s4] ss:$0 sm:$0xff]  ;;  %v1905_v22 = vrot.slane %v1904_v9, 4  ;;  %v1927_v3 = vrot.slane %v1925_v40, 4  ;;  %v1933_v29 = vrot.slane %v1931_v21, 5  ;;  %8434 = vmatmul.mubr.bf16.gmra.mrb[28].mxu1 %v9164_v51  ;;  %v7700_v23 = vrot.slane %v4498_v53, 9 }
  0xbd   : > { %v10004_v16 = vadd.f32 %v10000_v47, %v9962_v49  ;;  %v1800_v12 = vld [vmem:[#allocation2 + $0x30] sm:$0xf]  ;;  %v1900_v24 = vsel %vm9557_vm11, %v1895_v5, %v1899_v57  ;;  %v1377_v7 = vsel %vm9489_vm8, %v7483_v8, %v1376_v14  ;;  %v4628_v63 = vrot.slane %v4499_v56, 5  ;;  %v1379_v61 = vld [vmem:[#allocation2 + $0x80] sm:$0x1]  ;;  %8453 = vmatprep.mubr.bf16.mxu1 %v7532_v52  ;;  %v9171_v54 = vld [vmem:[%s11152_s1 + $0x88] sm:$0xff]  }
  0xbe   : > { %v1910_v49 = vsel %vm9557_vm11, %v1905_v22, %v1909_v33  ;;  %v1919_v31 = vrot.slane %v1918_v4, 4  ;;  %v1928_v27 = vor.u32 %v1927_v3, %v1923_v37  ;;  %1378 = vst [vmem:[#allocation2 + $0x74] sm:$0x1] %v1377_v7  ;;  %v7484_v17 = vrot.slane %v1268_v58, 11  ;;  %v1801_v44 = vld [vmem:[#allocation2 + $0x34] sm:$0xf] }
  0xbf   : > { %v7534_v25 = vcombine.low %v1900_v24, %v1910_v49  ;;  %v10014_v42 = vsel %vm9781_vm14, %v7700_v23, %v4628_v63  ;;  %v4630_v38 = vrot.slane %v4628_v63, 4  ;;  %v7701_v60 = vrot.slane %v4501_v6, 9  ;;  %v1802_v39 = vld [vmem:[#allocation2 + $0x38] sm:$0x1]  ;;  %v1803_v36 = vld [vmem:[#allocation2 + $0x3c] sm:$0xf] }
  0xc0   : > { %v1924_v50 = vsel %vm9557_vm11, %v1919_v31, %v1923_v37  ;;  %v1929_v52 = vrot.slane %v1928_v27, 4  ;;  %v1380_v18 = vsel %vm9489_vm8, %v7484_v17, %v1379_v61  ;;  %v4635_v41 = vrot.slane %v4502_v48, 5  ;;  %v1804_v32 = vld [vmem:[#allocation2 + $0x40] sm:$0xf]  ;;  %v1805_v56 = vld [vmem:[#allocation2 + $0x44] sm:$0x1] }
  0xc1   : > { %1381 = vst [vmem:[#allocation2 + $0x80] sm:$0x1] %v1380_v18  ;;  %v1936_v13 = vshrl.u32 %v1800_v12, 16  ;;  %v1939_v46 = vshll.u32 %v1800_v12, 16  ;;  %v1945_v1 = vshll.u32 %v1801_v44, 16  ;;  %v1949_v43 = vshrl.u32 %v1801_v44, 16 }
  0xc2   : > { %v1934_v57 = vsel %vm9557_vm11, %v1929_v52, %v1933_v29  ;;  %v10024_v20 = vsel %vm9781_vm14, %v7701_v60, %v4635_v41  ;;  %v4637_v26 = vrot.slane %v4635_v41, 4  ;;  %v1955_v53 = vshll.u32 %v1802_v39, 16  ;;  %v1269_v21 = vld [vmem:[#allocation2 + $0x88] sm:$0x8]  ;;  %v4504_v8 = vld [vmem:[#allocation2 + $0x84] sm:$0xe] }
  0xc3   : > { %v10026_v35 = vcombine.low %v1924_v50, %v1934_v57  ;;  %v1938_v30 = vrot.slane %v1936_v13, 4  ;;  %v1941_v33 = vrot.slane %v1939_v46, 5  ;;  %v1947_v62 = vrot.slane %v1945_v1, 5  ;;  %v9241_v22 = vld [vmem:[%s11152_s1 + $0x80] sm:$0xff]   ;;  %v4505_v12 = vld [vmem:[#allocation2 + $0x88] sm:$0xf] }
  0xc4   : > { %v1951_v58 = vrot.slane %v1949_v43, 4  ;;  %v1957_v9 = vrot.slane %v1955_v53, 5  ;;  %v1960_v11 = vshrl.u32 %v1803_v36, 16  ;;  %v1963_v40 = vshll.u32 %v1803_v36, 16  ;;  %8454 = vmatmul.mubr.bf16.vlgmr.msra.gmra.mrb[0].mxu1 %v9983_v28  ;;  %v9173_v28 = vld [vmem:[%s11152_s1 + $0x90] sm:$0xff]  }
  0xc5   : > { %v4500_v14 = vld [vmem:[#allocation2 + $0x74] sm:$0x1]  ;;  %v1942_v6 = vor.u32 %v1941_v33, %v1938_v30  ;;  %v1969_v51 = vshll.u32 %v1804_v32, 16  ;;  %v1973_v5 = vshrl.u32 %v1804_v32, 16  ;;  %v1979_v37 = vshll.u32 %v1805_v56, 16  ;;  %8457 = vmatprep.mubr.bf16.mxu1 %v7534_v25  ;;  %8486 = vmatpush3.bf16.msra.mxu1 %v9241_v22 }
  0xc6   : > { %v4631_v48 = vrot.slane %v4500_v14, 5  ;;  %v1952_v4 = vor.u32 %v1951_v58, %v1947_v62  ;;  %v1962_v3 = vrot.slane %v1960_v11, 4  ;;  %v1965_v29 = vrot.slane %v1963_v40, 5  ;;  %8487 = vmatprep.subr.bf16.mxu1 %v9171_v54  ;;  %v1382_v61 = vld [vmem:[#allocation2 + $0x8c] sm:$0x1] }
  0xc7   : > { %v1943_v24 = vrot.slane %v1942_v6, 4  ;;  %v1971_v7 = vrot.slane %v1969_v51, 5  ;;  %v1975_v23 = vrot.slane %v1973_v5, 4  ;;  %v1981_v63 = vrot.slane %v1979_v37, 5  ;;  %v1270_v49 = vld [vmem:[#allocation2 + $0x94] sm:$0x8] }
  0xc8   : > { %v4507_v31 = vld [vmem:[#allocation2 + $0x90] sm:$0xe]  ;;  %v4632_v27 = vsel %vm9781_vm14, %v4630_v38, %v4631_v48  ;;  %v4503_v17 = vld [vmem:[#allocation2 + $0x80] sm:$0x1]  ;;  %v1953_v44 = vrot.slane %v1952_v4, 4  ;;  %v1966_v25 = vor.u32 %v1965_v29, %v1962_v3  ;;  %v7485_v60 = vrot.slane %v1269_v21, 11 }
  0xc9   : > { %v4508_v39 = vld [vmem:[#allocation2 + $0x94] sm:$0xf]  ;;  %v7732_v50 = vcombine.low %v10014_v42, %v4632_v27  ;;  %v4638_v52 = vrot.slane %v4503_v17, 5  ;;  %v1948_v18 = vsel %vm9557_vm11, %v1943_v24, %v1947_v62  ;;  %v1976_v41 = vor.u32 %v1975_v23, %v1971_v7  ;;  %v1385_v36 = vld [vmem:[#allocation2 + $0x98] sm:$0x1]  ;;  %8488 = vmatpush3.bf16.msra.mxu1 %v9171_v54  ;;  %v9177_v29 = vld [vmem:[%s11152_s1 + $0xa0] sm:$0xff]  }
  0xca   : > { %v1806_v32 = vld [vmem:[#allocation2 + $0x48] sm:$0xf]  ;;  %v1958_v13 = vsel %vm9557_vm11, %v1953_v44, %v1957_v9  ;;  %v1967_v46 = vrot.slane %v1966_v25, 4  ;;  %v1383_v38 = vsel %vm9489_vm8, %v7485_v60, %v1382_v61  ;;  %v7702_v1 = vrot.slane %v4504_v8, 9  ;;  %v1807_v43 = vld [vmem:[#allocation2 + $0x4c] sm:$0xf]  ;;  %8489 = vmatprep.subr.bf16.mxu1 %v9173_v28 }
  0xcb   : > { %v9175_v42 = vld [vmem:[%s11152_s1 + $0x98] sm:$0xff]   ;;  %8661 = vmatprep.mubr.bf16.mxu0 %v7732_v50  ;;  %v4639_v57 = vsel %vm9781_vm14, %v4637_v26, %v4638_v52  ;;  %v7536_v53 = vcombine.low %v1948_v18, %v1958_v13  ;;  %v1977_v56 = vrot.slane %v1976_v41, 4  ;;  %1384 = vst [vmem:[#allocation2 + $0x8c] sm:$0x1] %v1383_v38  ;;  %v4642_v30 = vrot.slane %v4505_v12, 5  ;;  %v9181_v13 = vld [vmem:[%s11152_s1 + $0xa8] sm:$0xff]  }
  0xcc   : > { %v1808_v33 = vld [vmem:[#allocation2 + $0x50] sm:$0x1]  ;;  %v1809_v62 = vld [vmem:[#allocation2 + $0x54] sm:$0xf]  ;;  %v7733_v58 = vcombine.low %v10024_v20, %v4639_v57  ;;  %v1972_v54 = vsel %vm9557_vm11, %v1967_v46, %v1971_v7  ;;  %v7486_v9 = vrot.slane %v1270_v49, 11  ;;  %v7703_v11 = vrot.slane %v4507_v31, 9  ;;  %8458 = vmatmul.mubr.bf16.gmra.mrb[4].mxu1 %v10026_v35 }
  0xcd   : > { %v1982_v40 = vsel %vm9557_vm11, %v1977_v56, %v1981_v63  ;;  %v10060_v26 = vsel %vm9781_vm14, %v7702_v1, %v4642_v30  ;;  %v4644_v21 = vrot.slane %v4642_v30, 4  ;;  %v4649_v14 = vrot.slane %v4508_v39, 5  ;;  %8461 = vmatprep.mubr.bf16.mxu1 %v7536_v53  ;;  %v1810_v37 = vld [vmem:[#allocation2 + $0x58] sm:$0xf]  ;;  %v1811_v4 = vld [vmem:[#allocation2 + $0x5c] sm:$0x1]  ;;  %8490 = vmatpush3.bf16.msra.mxu1 %v9173_v28 }
  0xce   : > { %8662 = vmatmul.mubr.bf16.gmra.mrb[16].mxu0 %v7733_v58  ;;  %v7537_v6 = vcombine.low %v1972_v54, %v1982_v40  ;;  %v1386_v20 = vsel %vm9489_vm8, %v7486_v9, %v1385_v36  ;;  %v1984_v51 = vshrl.u32 %v1806_v32, 16  ;;  %v1987_v5 = vshll.u32 %v1806_v32, 16  ;;  %v1271_v3 = vld [vmem:[#allocation2 + $0xa0] sm:$0x8]  ;;  %v10073_v63 = vld [vmem:[#allocation2 + $0x9c] sm:$0xe]  ;;  %8491 = vmatprep.subr.bf16.mxu1 %v9175_v42 }
  0xcf   : > { %1387 = vst [vmem:[#allocation2 + $0x98] sm:$0x1] %v1386_v20  ;;  %v10066_v35 = vsel %vm9781_vm14, %v7703_v11, %v4649_v14  ;;  %v10068_v8 = vrot.slane %v4649_v14, 4  ;;  %v1993_v48 = vshll.u32 %v1807_v43, 16  ;;  %v1997_v22 = vshrl.u32 %v1807_v43, 16 }
  0xd0   : > { %v1986_v12 = vrot.slane %v1984_v51, 4  ;;  %v1989_v24 = vrot.slane %v1987_v5, 5  ;;  %v2003_v7 = vshll.u32 %v1808_v33, 16  ;;  %v2008_v23 = vshrl.u32 %v1809_v62, 16  ;;  %v1388_v41 = vld [vmem:[#allocation2 + $0xa4] sm:$0x1] }
  0xd1   : > { %v1995_v61 = vrot.slane %v1993_v48, 5  ;;  %v1999_v49 = vrot.slane %v1997_v22, 4  ;;  %v2011_v31 = vshll.u32 %v1809_v62, 16  ;;  %v2017_v27 = vshll.u32 %v1810_v37, 16  ;;  %v4511_v36 = vld [vmem:[#allocation2 + $0xa0] sm:$0xf]  ;;  %8492 = vmatpush3.bf16.msra.mxu1 %v9175_v42 }
  0xd2   : > { %v4506_v17 = vld [vmem:[#allocation2 + $0x8c] sm:$0x1]  ;;  %v1990_v44 = vor.u32 %v1989_v24, %v1986_v12  ;;  %v2005_v25 = vrot.slane %v2003_v7, 5  ;;  %v2010_v60 = vrot.slane %v2008_v23, 4  ;;  %v2021_v28 = vshrl.u32 %v1810_v37, 16  ;;  %8493 = vmatprep.subr.bf16.mxu1 %v9177_v29 }
  0xd3   : > { %v4645_v39 = vrot.slane %v4506_v17, 5  ;;  %v2000_v50 = vor.u32 %v1999_v49, %v1995_v61  ;;  %v2013_v52 = vrot.slane %v2011_v31, 5  ;;  %v2019_v18 = vrot.slane %v2017_v27, 5  ;;  %v1272_v32 = vld [vmem:[#allocation2 + $0xac] sm:$0x8] }
  0xd4   : > { %v1991_v46 = vrot.slane %v1990_v44, 4  ;;  %v2023_v38 = vrot.slane %v2021_v28, 4  ;;  %v2027_v1 = vshll.u32 %v1811_v4, 16  ;;  %v7487_v43 = vrot.slane %v1271_v3, 11  ;;  %v4513_v57 = vld [vmem:[#allocation2 + $0xa8] sm:$0xe]  ;;  %8462 = vmatmul.mubr.bf16.gmra.mrb[8].mxu1 %v7537_v6 }
  0xd5   : > { %v4514_v53 = vld [vmem:[#allocation2 + $0xac] sm:$0xf]  ;;  %v4646_v56 = vsel %vm9781_vm14, %v4644_v21, %v4645_v39  ;;  %v2001_v30 = vrot.slane %v2000_v50, 4  ;;  %v2014_v33 = vor.u32 %v2013_v52, %v2010_v60  ;;  %v7704_v62 = vrot.slane %v10073_v63, 9  ;;  %v1391_v40 = vld [vmem:[#allocation2 + $0xb0] sm:$0x1]  ;;  %8494 = vmatpush3.bf16.msra.mxu1 %v9177_v29 }
  0xd6   : > { %v7734_v42 = vcombine.low %v10060_v26, %v4646_v56  ;;  %v4509_v58 = vld [vmem:[#allocation2 + $0x98] sm:$0x1]  ;;  %v1996_v54 = vsel %vm9557_vm11, %v1991_v46, %v1995_v61  ;;  %v2024_v9 = vor.u32 %v2023_v38, %v2019_v18  ;;  %v2029_v11 = vrot.slane %v2027_v1, 5  ;;  %v1812_v51 = vld [vmem:[#allocation2 + $0x60] sm:$0xf]  ;;  %8495 = vmatprep.subr.bf16.mxu1 %v9181_v13  ;;  %v9185_v4 = vld [vmem:[%s11152_s1 + $0xb0] sm:$0xff]  }
  0xd7   : > { %v4652_v14 = vrot.slane %v4509_v58, 5  ;;  %v2006_v6 = vsel %vm9557_vm11, %v2001_v30, %v2005_v25  ;;  %v2015_v20 = vrot.slane %v2014_v33, 4  ;;  %v1389_v21 = vsel %vm9489_vm8, %v7487_v43, %v1388_v41  ;;  %v1813_v5 = vld [vmem:[#allocation2 + $0x64] sm:$0xf]  ;;  %v1814_v7 = vld [vmem:[#allocation2 + $0x68] sm:$0x1] }
  0xd8   : > { %8665 = vmatprep.mubr.bf16.mxu0 %v7734_v42  ;;  %v7538_v26 = vcombine.low %v1996_v54, %v2006_v6  ;;  %v2025_v37 = vrot.slane %v2024_v9, 4  ;;  %1390 = vst [vmem:[#allocation2 + $0xa4] sm:$0x1] %v1389_v21  ;;  %v4656_v48 = vrot.slane %v4511_v36, 5  ;;  %v7488_v22 = vrot.slane %v1272_v32, 11  ;;  %v9189_v25 = vld [vmem:[%s11152_s1 + $0xb8] sm:$0xff]  }
  0xd9   : > { %v4653_v3 = vsel %vm9781_vm14, %v10068_v8, %v4652_v14  ;;  %v2020_v12 = vsel %vm9557_vm11, %v2015_v20, %v2019_v18  ;;  %v7705_v24 = vrot.slane %v4513_v57, 9  ;;  %v4663_v29 = vrot.slane %v4514_v53, 5  ;;  %v1815_v31 = vld [vmem:[#allocation2 + $0x6c] sm:$0xf]  ;;  %v1816_v27 = vld [vmem:[#allocation2 + $0x70] sm:$0xf]  ;;  %8496 = vmatpush3.bf16.msra.mxu1 %v9181_v13 }
  0xda   : > { %v7735_v23 = vcombine.low %v10066_v35, %v4653_v3  ;;  %8465 = vmatprep.mubr.bf16.mxu1 %v7538_v26  ;;  %v2030_v63 = vsel %vm9557_vm11, %v2025_v37, %v2029_v11  ;;  %v10101_v61 = vsel %vm9781_vm14, %v7704_v62, %v4656_v48  ;;  %v4658_v49 = vrot.slane %v4656_v48, 4  ;;  %v1817_v52 = vld [vmem:[#allocation2 + $0x74] sm:$0x1]  ;;  %v1002_v18 = vld [vmem:[#allocation2 + $0xbc] sm:$0x1]  ;;  %8497 = vmatprep.subr.bf16.mxu1 %v9185_v4  ;;  %v10119_v56 = vld [vmem:[%s11152_s1 + $0xc0] sm:$0xff]  }
  0xdb   : > { %v7539_v8 = vcombine.low %v2020_v12, %v2030_v63  ;;  %v1392_v17 = vsel %vm9489_vm8, %v7488_v22, %v1391_v40  ;;  %v10107_v44 = vsel %vm9781_vm14, %v7705_v24, %v4663_v29  ;;  %v10109_v35 = vrot.slane %v4663_v29, 4  ;;  %v10114_v41 = vld [vmem:[#allocation2 + $0xb8] sm:$0x8]  ;;  %v4516_v53 = vld [vmem:[#allocation2 + $0xb4] sm:$0xe] }
  0xdc   : > { %8666 = vmatmul.mubr.bf16.gmra.mrb[20].mxu0 %v7735_v23  ;;  %1393 = vst [vmem:[#allocation2 + $0xb0] sm:$0x1] %v1392_v17  ;;  %v2032_v60 = vshrl.u32 %v1812_v51, 16  ;;  %v2035_v28 = vshll.u32 %v1812_v51, 16  ;;  %v2041_v39 = vshll.u32 %v1813_v5, 16  ;;  %v2045_v50 = vshrl.u32 %v1813_v5, 16 }
  0xdd   : > { %8466 = vmatmul.mubr.bf16.gmra.mrb[12].mxu1 %v7539_v8  ;;  %v2051_v36 = vshll.u32 %v1814_v7, 16  ;;  %v2056_v32 = vshrl.u32 %v1815_v31, 16  ;;  %v2059_v46 = vshll.u32 %v1815_v31, 16  ;;  %v2065_v13 = vshll.u32 %v1816_v27, 16  ;;  %v4517_v14 = vld [vmem:[#allocation2 + $0xb8] sm:$0xf] }
  0xde   : > { %v2034_v38 = vrot.slane %v2032_v60, 4  ;;  %v2037_v1 = vrot.slane %v2035_v28, 5  ;;  %v2043_v43 = vrot.slane %v2041_v39, 5  ;;  %v2047_v57 = vrot.slane %v2045_v50, 4  ;;  %8498 = vmatpush3.bf16.msra.mxu1 %v9185_v4  ;;  %v1818_v5 = vld [vmem:[#allocation2 + $0x78] sm:$0xf] }
  0xdf   : > { %v4512_v30 = vld [vmem:[#allocation2 + $0xa4] sm:$0x1]  ;;  %v2053_v33 = vrot.slane %v2051_v36, 5  ;;  %v2058_v62 = vrot.slane %v2056_v32, 4  ;;  %v2061_v42 = vrot.slane %v2059_v46, 5  ;;  %v2067_v58 = vrot.slane %v2065_v13, 5  ;;  %8499 = vmatprep.subr.bf16.mxu1 %v9189_v25 }
  0xe0   : > { %v4659_v54 = vrot.slane %v4512_v30, 5  ;;  %v2038_v9 = vor.u32 %v2037_v1, %v2034_v38  ;;  %v2048_v11 = vor.u32 %v2047_v57, %v2043_v43  ;;  %v2069_v40 = vshrl.u32 %v1816_v27, 16  ;;  %v1822_v36 = vld [vmem:[#allocation2 + $0x88] sm:$0xf] }
  0xe1   : > { %v2062_v6 = vor.u32 %v2061_v42, %v2058_v62  ;;  %v2075_v20 = vshll.u32 %v1817_v52, 16  ;;  %v1003_v21 = vsel %vm9438_vm7, %v828_v0, %v1002_v18  ;;  %v7489_v51 = vrot.slane %v10114_v41, 11  ;;  %v1005_v62 = vld [vmem:[#allocation2 + $0xc0] sm:$0xf] }
  0xe2   : > { %v4660_v26 = vsel %vm9781_vm14, %v4658_v49, %v4659_v54  ;;  %v2039_v37 = vrot.slane %v2038_v9, 4  ;;  %v2049_v48 = vrot.slane %v2048_v11, 4  ;;  %v2071_v22 = vrot.slane %v2069_v40, 4  ;;  %1004 = vst [vmem:[#allocation2 + $0xbc] sm:$0x1] %v1003_v21  ;;  %8500 = vmatpush3.bf16.msra.mxu1 %v9189_v25 }
  0xe3   : > { %v7736_v4 = vcombine.low %v10101_v61, %v4660_v26  ;;  %v4515_v3 = vld [vmem:[#allocation2 + $0xb0] sm:$0x1]  ;;  %v2063_v12 = vrot.slane %v2062_v6, 4  ;;  %v2077_v24 = vrot.slane %v2075_v20, 5  ;;  %v7706_v29 = vrot.slane %v4516_v53, 9  ;;  %8533 = vmatprep.subr.bf16.mxu1 %v10119_v56 }
  0xe4   : > { %v4666_v34 = vrot.slane %v4515_v3, 5  ;;  %v2044_v0 = vsel %vm9557_vm11, %v2039_v37, %v2043_v43  ;;  %v2054_v7 = vsel %vm9557_vm11, %v2049_v48, %v2053_v33  ;;  %v2072_v23 = vor.u32 %v2071_v22, %v2067_v58  ;;  %v1819_v25 = vld [vmem:[#allocation2 + $0x7c] sm:$0xf]  ;;  %v1009_v9 = vld [vmem:[#allocation2 + $0xc8] sm:$0x1] }
  0xe5   : > { %8669 = vmatprep.mubr.bf16.mxu0 %v7736_v4  ;;  %v7540_v63 = vcombine.low %v2044_v0, %v2054_v7  ;;  %v2068_v61 = vsel %vm9557_vm11, %v2063_v12, %v2067_v58  ;;  %v4670_v49 = vrot.slane %v4517_v14, 5  ;;  %v442_v31 = vadd.f32 %v10000_v47, %v9975_v10  ;;  %v1820_v10 = vld [vmem:[#allocation2 + $0x80] sm:$0x1] }
  0xe6   : > { %v4667_v27 = vsel %vm9781_vm14, %v10109_v35, %v4666_v34  ;;  %v2073_v8 = vrot.slane %v2072_v23, 4  ;;  %v473_v17 = vmax.f32 %v10004_v16, 0.0  ;;  %v2080_v60 = vshrl.u32 %v1818_v5, 16  ;;  %v1821_v16 = vld [vmem:[#allocation2 + $0x84] sm:$0xf] }
  0xe7   : > { %v7737_v28 = vcombine.low %v10107_v44, %v4667_v27  ;;  %8469 = vmatprep.mubr.bf16.mxu1 %v7540_v63  ;;  %v10145_v39 = vsel %vm9781_vm14, %v7706_v29, %v4670_v49  ;;  %v10147_v50 = vrot.slane %v4670_v49, 4  ;;  %v474_v52 = vmax.f32 %v442_v31, 0.0  ;;  %v1825_v63 = vld [vmem:[#allocation2 + $0x94] sm:$0xf] }
  0xe8   : > { %v2078_v47 = vsel %vm9557_vm11, %v2073_v8, %v2077_v24  ;;  %v7951_v35 = vpack.c.bf16 %v473_v17, %v473_v17  ;;  %v2082_v18 = vrot.slane %v2080_v60, 4  ;;  %v2083_v41 = vshll.u32 %v1818_v5, 16  ;;  %v1823_v24 = vld [vmem:[#allocation2 + $0x8c] sm:$0x1] }
  0xe9   : > { %8670 = vmatmul.mubr.bf16.gmra.mrb[24].mxu0 %v7737_v28  ;;  %v7541_v32 = vcombine.low %v2068_v61, %v2078_v47  ;;  %v1394_v44 = vld [vmem:[#allocation2 + $0xbc] sm:$0x1]  ;;  %v7952_v46 = vpack.c.bf16 %v474_v52, %v474_v52  ;;  %v2089_v13 = vshll.u32 %v1819_v25, 16  ;;  %v2093_v38 = vshrl.u32 %v1819_v25, 16 }
  0xea   : > { %v1395_v1 = vsel %vm9489_vm8, %v7489_v51, %v1394_v44  ;;  %v830_v43 = vshrl.u32 %v7951_v35, 16  ;;  %v833_v57 = vshll.u32 %v7951_v35, 16  ;;  %v2085_v53 = vrot.slane %v2083_v41, 5  ;;  %v1824_v51 = vld [vmem:[#allocation2 + $0x90] sm:$0xf] }
  0xeb   : > { %8470 = vmatmul.mubr.bf16.gmra.mrb[16].mxu1 %v7541_v32  ;;  %1396 = vst [vmem:[#allocation2 + $0xbc] sm:$0x1] %v1395_v1  ;;  %v838_v30 = vshrl.u32 %v7952_v46, 16  ;;  %v841_v33 = vshll.u32 %v7952_v46, 16  ;;  %v2091_v42 = vrot.slane %v2089_v13, 5  ;;  %v2095_v58 = vrot.slane %v2093_v38, 4 }
  0xec   : > { %v832_v54 = vrot.slane %v830_v43, 7  ;;  %v2086_v11 = vor.u32 %v2085_v53, %v2082_v18  ;;  %v2099_v40 = vshll.u32 %v1820_v10, 16  ;;  %v2104_v14 = vshrl.u32 %v1821_v16, 16  ;;  %v1827_v52 = vld [vmem:[#allocation2 + $0x9c] sm:$0xf] }
  0xed   : > { %v840_v6 = vrot.slane %v838_v30, 7  ;;  %v2096_v20 = vor.u32 %v2095_v58, %v2091_v42  ;;  %v2107_v21 = vshll.u32 %v1821_v16, 16  ;;  %v2113_v5 = vshll.u32 %v1822_v36, 16  ;;  %v1826_v35 = vld [vmem:[#allocation2 + $0x98] sm:$0x1] }
  0xee   : > { %v835_v26 = vor.u32 %v833_v57, %v832_v54  ;;  %v836_v37 = vrot.slane %v832_v54, 4  ;;  %v2087_v48 = vrot.slane %v2086_v11, 4  ;;  %v2101_v22 = vrot.slane %v2099_v40, 5  ;;  %v1828_v16 = vld [vmem:[#allocation2 + $0xa0] sm:$0xf] }
  0xef   : > { %v843_v4 = vor.u32 %v841_v33, %v840_v6  ;;  %v845_v3 = vrot.slane %v840_v6, 4  ;;  %v2097_v12 = vrot.slane %v2096_v20, 4  ;;  %v2106_v29 = vrot.slane %v2104_v14, 4 }
  0xf0   : > { %v1006_v34 = vsel %vm9427_vm6, %v835_v26, %v1005_v62  ;;  %v2092_v0 = vsel %vm9557_vm11, %v2087_v48, %v2091_v42  ;;  %v2109_v7 = vrot.slane %v2107_v21, 5  ;;  %v2115_v23 = vrot.slane %v2113_v5, 5  ;;  %v1829_v5 = vld [vmem:[#allocation2 + $0xa4] sm:$0x1] }
  0xf1   : > { %v844_v61 = vsel %vm9416_vm5, %v836_v37, %v843_v4  ;;  %1007 = vst [vmem:[#allocation2 + $0xc0] sm:$0xf] %v1006_v34  ;;  %v1010_v49 = vsel %vm9438_vm7, %v845_v3, %v1009_v9  ;;  %v2102_v31 = vsel %vm9557_vm11, %v2097_v12, %v2101_v22  ;;  %v2117_v27 = vshrl.u32 %v1822_v36, 16 }
  0xf2   : > { %v4518_v8 = vld [vmem:[#allocation2 + $0xbc] sm:$0x1]  ;;  %1008 = vst [vmem:[#allocation2 + $0xc4] sm:$0xf] %v844_v61  ;;  %1011 = vst [vmem:[#allocation2 + $0xc8] sm:$0x1] %v1010_v49  ;;  %v7542_v17 = vcombine.low %v2092_v0, %v2102_v31  ;;  %v2110_v25 = vor.u32 %v2109_v7, %v2106_v29 }
  0xf3   : > { %v2123_v60 = vshll.u32 %v1823_v24, 16  ;;  %v2128_v28 = vshrl.u32 %v1824_v51, 16  ;;  %v4673_v10 = vrot.slane %v4518_v8, 5  ;;  %v2119_v47 = vrot.slane %v2117_v27, 4  ;;  %v1832_v27 = vld [vmem:[#allocation2 + $0xb0] sm:$0x1] }
  0xf4   : > { %v2131_v18 = vshll.u32 %v1824_v51, 16  ;;  %v2137_v41 = vshll.u32 %v1825_v63, 16  ;;  %8473 = vmatprep.mubr.bf16.mxu1 %v7542_v17  ;;  %v2111_v32 = vrot.slane %v2110_v25, 4  ;;  %v2141_v13 = vshrl.u32 %v1825_v63, 16  ;;  %v1830_v51 = vld [vmem:[#allocation2 + $0xa8] sm:$0xf] }
  0xf5   : > { %v2125_v44 = vrot.slane %v2123_v60, 5  ;;  %v2130_v46 = vrot.slane %v2128_v28, 4  ;;  %v4674_v36 = vsel %vm9781_vm14, %v10147_v50, %v4673_v10  ;;  %v2120_v38 = vor.u32 %v2119_v47, %v2115_v23  ;;  %v1833_v28 = vld [vmem:[#allocation2 + $0xb4] sm:$0xf] }
  0xf6   : > { %v2133_v1 = vrot.slane %v2131_v18, 5  ;;  %v2139_v43 = vrot.slane %v2137_v41, 5  ;;  %v7738_v57 = vcombine.low %v10145_v39, %v4674_v36  ;;  %v2116_v53 = vsel %vm9557_vm11, %v2111_v32, %v2115_v23  ;;  %v1831_v23 = vld [vmem:[#allocation2 + $0xac] sm:$0xf]  ;;  %v1834_v18 = vld [vmem:[#allocation2 + $0xb8] sm:$0xf] }
  0xf7   : > { %v2143_v30 = vrot.slane %v2141_v13, 4  ;;  %v2147_v33 = vshll.u32 %v1826_v35, 16  ;;  %v2121_v62 = vrot.slane %v2120_v38, 4  ;;  %v2152_v58 = vshrl.u32 %v1827_v52, 16 }
  0xf8   : > { %v2134_v42 = vor.u32 %v2133_v1, %v2130_v46  ;;  %v2155_v54 = vshll.u32 %v1827_v52, 16  ;;  %8673 = vmatprep.mubr.bf16.mxu0 %v7738_v57  ;;  %v4519_v9 = vld [vmem:[#allocation2 + $0xc0] sm:$0xe]  ;;  %v2161_v14 = vshll.u32 %v1828_v16, 16  ;;  %v2165_v50 = vshrl.u32 %v1828_v16, 16 }
  0xf9   : > { %v2144_v11 = vor.u32 %v2143_v30, %v2139_v43  ;;  %v2149_v40 = vrot.slane %v2147_v33, 5  ;;  %v1274_v6 = vld [vmem:[#allocation2 + $0xc4] sm:$0x8]  ;;  %v1397_v20 = vld [vmem:[#allocation2 + $0xc8] sm:$0x1]  ;;  %v2126_v39 = vsel %vm9557_vm11, %v2121_v62, %v2125_v44  ;;  %v7707_v37 = vrot.slane %v4519_v9, 9 }
  0xfa   : > { %v4520_v21 = vld [vmem:[#allocation2 + $0xc4] sm:$0xf]  ;;  %v7490_v26 = vrot.slane %v1274_v6, 11  ;;  %v7543_v22 = vcombine.low %v2116_v53, %v2126_v39  ;;  %v2135_v4 = vrot.slane %v2134_v42, 4  ;;  %v2154_v12 = vrot.slane %v2152_v58, 4 }
  0xfb   : > { %v4677_v48 = vrot.slane %v4520_v21, 5  ;;  %v2145_v3 = vrot.slane %v2144_v11, 4  ;;  %v2157_v24 = vrot.slane %v2155_v54, 5  ;;  %v2163_v7 = vrot.slane %v2161_v14, 5  ;;  %v1835_v1 = vld [vmem:[#allocation2 + $0xbc] sm:$0x1] }
  0xfc   : > { %v1398_v29 = vsel %vm9489_vm8, %v7490_v26, %v1397_v20  ;;  %8474 = vmatmul.mubr.bf16.gmra.mrb[20].mxu1 %v7543_v22  ;;  %v2140_v63 = vsel %vm9557_vm11, %v2135_v4, %v2139_v43  ;;  %v2167_v31 = vrot.slane %v2165_v50, 4  ;;  %v2171_v17 = vshll.u32 %v1829_v5, 16  ;;  %v2609_v43 = vld [vmem:[#allocation2] sm:$0xe]  ;;  %v2610_v62 = vld [vmem:[#allocation2 + $0x4] sm:$0xf] }
  0xfd   : > { %v10175_v34 = vsel %vm9781_vm14, %v7707_v37, %v4677_v48  ;;  %v4679_v0 = vrot.slane %v4677_v48, 4  ;;  %1399 = vst [vmem:[#allocation2 + $0xc8] sm:$0x1] %v1398_v29  ;;  %v2150_v61 = vsel %vm9557_vm11, %v2145_v3, %v2149_v40  ;;  %v2158_v49 = vor.u32 %v2157_v24, %v2154_v12  ;;  %v2611_v20 = vld [vmem:[#allocation2 + $0x8] sm:$0x1]  ;;  %v9178_v12 = vld [vmem:[#allocation2 + $0x18] sm:$0xff]  }
  0xfe   : > { %v7544_v8 = vcombine.low %v2140_v63, %v2150_v61  ;;  %v2176_v25 = vshrl.u32 %v1830_v51, 16  ;;  %v2179_v60 = vshll.u32 %v1830_v51, 16  ;;  %v2168_v10 = vor.u32 %v2167_v31, %v2163_v7  ;;  %v2612_v26 = vld [vmem:[#allocation2 + $0xc] sm:$0xe]  ;;  %v2614_v63 = vld [vmem:[#allocation2 + $0x14] sm:$0x1] }
  0xff   : > { %v2159_v52 = vrot.slane %v2158_v49, 4  ;;  %v2185_v47 = vshll.u32 %v1831_v23, 16  ;;  %v2189_v35 = vshrl.u32 %v1831_v23, 16  ;;  %v2173_v41 = vrot.slane %v2171_v17, 5  ;;  %v2613_v23 = vld [vmem:[#allocation2 + $0x10] sm:$0xf] }
 0x100   : > { %8477 = vmatprep.mubr.bf16.mxu1 %v7544_v8  ;;  %v2178_v16 = vrot.slane %v2176_v25, 4  ;;  %v2181_v32 = vrot.slane %v2179_v60, 5  ;;  %v2195_v44 = vshll.u32 %v1832_v27, 16  ;;  %v2169_v13 = vrot.slane %v2168_v10, 4  ;;  %v2615_v8 = vld [vmem:[#allocation2 + $0x18] sm:$0xe] }
 0x101   : > { %v2164_v46 = vsel %vm9557_vm11, %v2159_v52, %v2163_v7  ;;  %v2187_v36 = vrot.slane %v2185_v47, 5  ;;  %v2191_v38 = vrot.slane %v2189_v35, 4  ;;  %v2200_v30 = vshrl.u32 %v1833_v28, 16  ;;  %v2616_v17 = vld [vmem:[#allocation2 + $0x1c] sm:$0xf] }
 0x102   : > { %v2182_v57 = vor.u32 %v2181_v32, %v2178_v16  ;;  %v2197_v53 = vrot.slane %v2195_v44, 5  ;;  %v2203_v33 = vshll.u32 %v1833_v28, 16  ;;  %v2174_v42 = vsel %vm9557_vm11, %v2169_v13, %v2173_v41  ;;  %v2617_v52 = vld [vmem:[#allocation2 + $0x20] sm:$0x1] }
 0x103   : > { %v2192_v58 = vor.u32 %v2191_v38, %v2187_v36  ;;  %v2209_v54 = vshll.u32 %v1834_v18, 16  ;;  %v2213_v9 = vshrl.u32 %v1834_v18, 16  ;;  %v7545_v40 = vcombine.low %v2164_v46, %v2174_v42  ;;  %v10196_v18 = vld [vmem:[#allocation2 + $0x34] sm:$0xf] }
 0x104   : > { %v4521_v11 = vld [vmem:[#allocation2 + $0xc8] sm:$0x1]  ;;  %v2183_v14 = vrot.slane %v2182_v57, 4  ;;  %v2202_v50 = vrot.slane %v2200_v30, 4  ;;  %v2205_v6 = vrot.slane %v2203_v33, 5  ;;  %v2219_v22 = vshll.u32 %v1835_v1, 16 }
 0x105   : > { %v4680_v21 = vrot.slane %v4521_v11, 5  ;;  %v2193_v39 = vrot.slane %v2192_v58, 4  ;;  %v2211_v5 = vrot.slane %v2209_v54, 5  ;;  %v2215_v51 = vrot.slane %v2213_v9, 4  ;;  %8478 = vmatmul.mubr.bf16.gmra.mrb[24].mxu1 %v7545_v40  ;;  %v2618_v57 = vld [vmem:[#allocation2 + $0x24] sm:$0xe] }
 0x106   : > { %v2188_v37 = vsel %vm9557_vm11, %v2183_v14, %v2187_v36  ;;  %v2206_v48 = vor.u32 %v2205_v6, %v2202_v50  ;;  %v7556_v4 = vrot.slane %v2609_v43, 9  ;;  %v2710_v7 = vrot.slane %v2610_v62, 5  ;;  %v2620_v30 = vld [vmem:[#allocation2 + $0x2c] sm:$0x1]  ;;  %v9182_v62 = vld [vmem:[#allocation2 + $0x30] sm:$0xff]  }
 0x107   : > { %v4681_v3 = vsel %vm9781_vm14, %v4679_v0, %v4680_v21  ;;  %v2198_v24 = vsel %vm9557_vm11, %v2193_v39, %v2197_v53  ;;  %v2216_v29 = vor.u32 %v2215_v51, %v2211_v5  ;;  %v2221_v27 = vrot.slane %v2219_v22, 5  ;;  %v9180_v53 = vld [vmem:[#allocation2 + $0x24] sm:$0xff]   ;;  %v2621_v14 = vld [vmem:[#allocation2 + $0x30] sm:$0xe]  ;;  %v2623_v50 = vld [vmem:[#allocation2 + $0x38] sm:$0x1] }
 0x108   : > { %v7739_v61 = vcombine.low %v10175_v34, %v4681_v3  ;;  %v7546_v49 = vcombine.low %v2188_v37, %v2198_v24  ;;  %v2207_v31 = vrot.slane %v2206_v48, 4  ;;  %v2711_v60 = vsel %vm9781_vm14, %v7556_v4, %v2710_v7  ;;  %v2619_v34 = vld [vmem:[#allocation2 + $0x28] sm:$0xf]  ;;  %v2625_v39 = vld [vmem:[#allocation2 + $0x40] sm:$0xf]  ;;  %v9187_v4 = vld [vmem:[%s11152_s1 + $0x1d0] sm:$0xff]  }
 0x109   : > { %v2217_v25 = vrot.slane %v2216_v29, 4  ;;  %v2712_v0 = vrot.slane %v2710_v7, 4  ;;  %v2713_v28 = vrot.slane %v2611_v20, 5  ;;  %v7557_v47 = vrot.slane %v2612_v26, 9  ;;  %v9183_v9 = vld [vmem:[%s11152_s1 + $0x1c8] sm:$0xff]   ;;  %v9242_v22 = vld [vmem:[%s11152_s1 + $0x1c0] sm:$0xff]  }
 0x10a   : > { %8674 = vmatmul.mubr.bf16.gmra.mrb[28].mxu0 %v7739_v61  ;;  %8481 = vmatprep.mubr.bf16.mxu1 %v7546_v49  ;;  %v2212_v10 = vsel %vm9557_vm11, %v2207_v31, %v2211_v5  ;;  %v2717_v35 = vrot.slane %v2613_v23, 5  ;;  %v2720_v32 = vrot.slane %v2614_v63, 5  ;;  %v2724_v44 = vrot.slane %v2616_v17, 5  ;;  %v8157_v5 = vld [vmem:[%s9365_s26 + $0x70] sm:$0xff]   ;;  %v2624_v26 = vld [vmem:[#allocation2 + $0x3c] sm:$0xe] }
 0x10b   : > { %8693 = vmatprep.mubr.bf16.mxu0 %v9178_v12  ;;  %v2222_v41 = vsel %vm9557_vm11, %v2217_v25, %v2221_v27  ;;  %v2714_v16 = vsel %vm9781_vm14, %v2712_v0, %v2713_v28  ;;  %v7558_v38 = vrot.slane %v2615_v8, 9  ;;  %v2727_v43 = vrot.slane %v2617_v52, 5  ;;  %v10215_v37 = vld [vmem:[#allocation2 + $0x44] sm:$0x1]  ;;  %v10217_v48 = vld [vmem:[#allocation2 + $0x4c] sm:$0xf] }
 0x10c   : > { %v7547_v46 = vcombine.low %v2212_v10, %v2222_v41  ;;  %v7588_v13 = vcombine.low %v2711_v60, %v2714_v16  ;;  %v2719_v36 = vrot.slane %v2717_v35, 4  ;;  %v2726_v1 = vrot.slane %v2724_v44, 4  ;;  %v2627_v7 = vld [vmem:[#allocation2 + $0x48] sm:$0xe]  ;;  %v10225_v23 = vld [vmem:[#allocation2 + $0x58] sm:$0xf] }
 0x10d   : > { %v2731_v33 = vrot.slane %v2619_v34, 5  ;;  %v2718_v42 = vsel %vm9781_vm14, %v7557_v47, %v2717_v35  ;;  %v2738_v54 = vrot.slane %v10196_v18, 5  ;;  %v2725_v11 = vsel %vm9781_vm14, %v7558_v38, %v2724_v44  ;;  %v9184_v63 = vld [vmem:[#allocation2 + $0x3c] sm:$0xff]   ;;  %v9197_v49 = vld [vmem:[%s11152_s1 + $0xc8] sm:$0xff]   ;;  %v2629_v0 = vld [vmem:[#allocation2 + $0x50] sm:$0x1] }
 0x10e   : > { %8482 = vmatmul.mubr.bf16.gmra.mrb[28].mxu1 %v7547_v46  ;;  %v2721_v58 = vsel %vm9781_vm14, %v2719_v36, %v2720_v32  ;;  %v2728_v40 = vsel %vm9781_vm14, %v2726_v1, %v2727_v43  ;;  %v7559_v6 = vrot.slane %v2618_v57, 9  ;;  %v2734_v21 = vrot.slane %v2620_v30, 5  ;;  %v9186_v8 = vld [vmem:[#allocation2 + $0x48] sm:$0xff]   ;;  %v2630_v52 = vld [vmem:[#allocation2 + $0x54] sm:$0xe]  ;;  %v9191_v32 = vld [vmem:[%s11152_s1 + $0x1d8] sm:$0xff]  }
 0x10f   : > { %8501 = vmatprep.mubr.bf16.mxu1 %v7588_v13  ;;  %v2733_v20 = vrot.slane %v2731_v33, 4  ;;  %v7589_v51 = vcombine.low %v2718_v42, %v2721_v58  ;;  %v7590_v3 = vcombine.low %v2725_v11, %v2728_v40  ;;  %v7560_v12 = vrot.slane %v2621_v14, 9  ;;  %v10237_v10 = vld [vmem:[#allocation2 + $0x5c] sm:$0x1]  ;;  %v10239_v47 = vld [vmem:[#allocation2 + $0x64] sm:$0xf] }
 0x110   : > { %v2740_v24 = vrot.slane %v2738_v54, 4  ;;  %v2741_v29 = vrot.slane %v2623_v50, 5  ;;  %v2745_v61 = vrot.slane %v2625_v39, 5  ;;  %v8059_v31 = vunpack.c.l.bf16 %v8157_v5  ;;  %v1130_v35 = vld [vmem:[#allocation2 + $0xc0] sm:$0x2]  ;;  %v9201_v43 = vld [vmem:[%s11152_s1 + $0xd0] sm:$0xff]  }
 0x111   : > { %v8060_v27 = vunpack.c.h.bf16 %v8157_v5  ;;  %v10232_v17 = vsel %vm9781_vm14, %v7559_v6, %v2731_v33  ;;  %v2735_v25 = vsel %vm9781_vm14, %v2733_v20, %v2734_v21  ;;  %v7561_v60 = vrot.slane %v2624_v26, 9  ;;  %v1252_v38 = vld [vmem:[#allocation2 + $0xc0] sm:$0x1]  ;;  %v10269_v50 = vld [vmem:[#allocation2 + $0x6c] sm:$0xe] }
 0x112   : > { %8694 = vmatmul.mubr.bf16.vlgmr.msra.gmra.mrb[0].mxu0 %v9180_v53  ;;  %v2752_v28 = vrot.slane %v10217_v48, 5  ;;  %v2739_v34 = vsel %vm9781_vm14, %v7560_v12, %v2738_v54  ;;  %v2742_v18 = vsel %vm9781_vm14, %v2740_v24, %v2741_v29  ;;  %v2748_v41 = vrot.slane %v10215_v37, 5  ;;  %v9243_v53 = vld [vmem:[%s11154_s3] ss:$0 sm:$0xff]  ;;  %v2633_v54 = vld [vmem:[#allocation2 + $0x60] sm:$0xe] }
 0x113   : > { %8726 = vmatpush3.bf16.msra.mxu0 %v9242_v22  ;;  %8697 = vmatprep.mubr.bf16.mxu0 %v9182_v62  ;;  %v2759_v16 = vrot.slane %v10225_v23, 5  ;;  %v7591_v44 = vcombine.low %v10232_v17, %v2735_v25  ;;  %v2747_v46 = vrot.slane %v2745_v61, 4  ;;  %v7562_v13 = vrot.slane %v2627_v7, 9  ;;  %v10271_v6 = vld [vmem:[#allocation2 + $0x70] sm:$0xf]  ;;  %v9188_v24 = vld [vmem:[#allocation2 + $0x54] sm:$0xff]  }
 0x114   : > { %8727 = vmatprep.subr.bf16.mxu0 %v9183_v9  ;;  %v2755_v36 = vrot.slane %v2629_v0, 5  ;;  %v2754_v1 = vrot.slane %v2752_v28, 4  ;;  %v7472_v57 = vrot.slane %v1130_v35, 9  ;;  %v1074_v30 = vmul.f32 %v9243_v53, %v8059_v31  ;;  %v9244_v21 = vld [vmem:[%s11155_s4] ss:$0 sm:$0xff] }
 0x115   : > { %v1075_v33 = vmul.f32 %v9243_v53, %v8060_v27  ;;  %v7592_v62 = vcombine.low %v2739_v34, %v2742_v18  ;;  %v10265_v42 = vsel %vm9781_vm14, %v7561_v60, %v2745_v61  ;;  %v7563_v58 = vrot.slane %v2630_v52, 9  ;;  %v10286_v26 = vld [vmem:[#allocation2 + $0x74] sm:$0x1]  ;;  %v9190_v29 = vld [vmem:[#allocation2 + $0x60] sm:$0xff]   ;;  %v5520_v52 = vld [vmem:[#allocation2 + $0x1c] sm:$0xf] }
 0x116   : > { %8502 = vmatmul.mubr.bf16.vlgmr.msra.gmra.mrb[0].mxu1 %v7589_v51  ;;  %v2766_v11 = vrot.slane %v10239_v47, 5  ;;  %v2761_v40 = vrot.slane %v2759_v16, 4  ;;  %v2762_v14 = vrot.slane %v10237_v10, 5  ;;  %v1253_v20 = vsel %vm9438_vm7, %v7472_v57, %v1252_v38  ;;  %v10312_v25 = vld [vmem:[%s11152_s1 + $0xe0] sm:$0xff]   ;;  %v10323_v18 = vld [vmem:[#allocation2 + $0x78] sm:$0xe] }
 0x117   : > { %8728 = vmatpush3.bf16.msra.mxu0 %v9183_v9  ;;  %8505 = vmatprep.mubr.bf16.mxu1 %v7590_v3  ;;  %v2635_v9 = vld [vmem:[#allocation2 + $0x68] sm:$0x1]  ;;  %v1076_v39 = vadd.f32 %v9244_v21, %v1074_v30  ;;  %v10280_v5 = vsel %vm9781_vm14, %v2747_v46, %v2748_v41  ;;  %v10284_v51 = vsel %vm9781_vm14, %v7562_v13, %v2752_v28  ;;  %v7564_v22 = vrot.slane %v2633_v54, 9  ;;  %v9205_v3 = vld [vmem:[%s11152_s1 + $0xd8] sm:$0xff]   ;;  %v9192_v53 = vld [vmem:[#allocation2 + $0x6c] sm:$0xff]  }
 0x118   : > { %8729 = vmatprep.subr.bf16.mxu0 %v9187_v4  ;;  %8534 = vmatpush3.bf16.msra.mxu1 %v10119_v56  ;;  %v10261_v56 = vld [vmem:[%s11152_s1 + $0x1e0] sm:$0xff]   ;;  %1254 = vst [vmem:[#allocation2 + $0xc0] sm:$0x1] %v1253_v20  ;;  %v1077_v37 = vadd.f32 %v9244_v21, %v1075_v33  ;;  %v10290_v48 = vsel %vm9781_vm14, %v2754_v1, %v2755_v36  ;;  %v2768_v23 = vrot.slane %v2766_v11, 4  ;;  %v2773_v27 = vrot.slane %v10271_v6, 5  ;;  %v9203_v30 = vld [vmem:[%s11152_s1 + $0x1f0] sm:$0xff]  }
 0x119   : > { %8535 = vmatprep.subr.bf16.mxu1 %v9197_v49  ;;  %v1078_v12 = vmax.f32 %v1076_v39, 0.0  ;;  %v10297_v7 = vsel %vm9781_vm14, %v7563_v58, %v2759_v16  ;;  %v10305_v31 = vsel %vm9781_vm14, %v2761_v40, %v2762_v14  ;;  %v7593_v60 = vcombine.low %v10265_v42, %v10280_v5  ;;  %v5519_v28 = vld [vmem:[#allocation2 + $0x18] sm:$0xf]  ;;  %v10325_v41 = vld [vmem:[#allocation2 + $0x7c] sm:$0xf]  ;;  %v9211_v20 = vld [vmem:[%s11152_s1 + $0xe8] sm:$0xff]  }
 0x11a   : > { %8698 = vmatmul.mubr.bf16.gmra.mrb[4].mxu0 %v9184_v63  ;;  %v7565_v63 = vrot.slane %v10269_v50, 9  ;;  %v1079_v61 = vmax.f32 %v1077_v37, 0.0  ;;  %v7594_v10 = vcombine.low %v10284_v51, %v10290_v48  ;;  %v10321_v47 = vsel %vm9781_vm14, %v7564_v22, %v2766_v11  ;;  %v10333_v13 = vld [vmem:[#allocation2 + $0x88] sm:$0xf]  ;;  %v5522_v36 = vld [vmem:[#allocation2 + $0x24] sm:$0xf] }
 0x11b   : > { %8701 = vmatprep.mubr.bf16.mxu0 %v9186_v8  ;;  %8730 = vmatpush3.bf16.msra.mxu0 %v9187_v4  ;;  %v2769_v4 = vrot.slane %v2635_v9, 5  ;;  %v2776_v8 = vrot.slane %v10286_v26, 5  ;;  %v7955_v17 = vpack.c.bf16 %v1078_v12, %v1078_v12  ;;  %v7595_v16 = vcombine.low %v10297_v7, %v10305_v31  ;;  %v1107_v58 = vld [vmem:[#allocation2 + $0xcc] sm:$0xf]  ;;  %v10345_v11 = vld [vmem:[#allocation2 + $0x80] sm:$0x1] }
 0x11c   : > { %8731 = vmatprep.subr.bf16.mxu0 %v9191_v32  ;;  %8536 = vmatpush3.bf16.msra.mxu1 %v9197_v49  ;;  %v9199_v49 = vld [vmem:[%s11152_s1 + $0x1e8] sm:$0xff]   ;;  %v7956_v0 = vpack.c.bf16 %v1079_v61, %v1079_v61  ;;  %v5568_v1 = vshrl.u32 %v5519_v28, 16  ;;  %v5577_v57 = vshll.u32 %v5520_v52, 16  ;;  %v10341_v33 = vsel %vm9781_vm14, %v7565_v63, %v2773_v27  ;;  %v10347_v40 = vld [vmem:[#allocation2 + $0x84] sm:$0xe]  ;;  %v9194_v21 = vld [vmem:[#allocation2 + $0x78] sm:$0xff]  }
 0x11d   : > { %8537 = vmatprep.subr.bf16.mxu1 %v9201_v43  ;;  %v1087_v35 = vshrl.u32 %v7955_v17, 16  ;;  %v1090_v34 = vshll.u32 %v7955_v17, 16  ;;  %v5521_v14 = vld [vmem:[#allocation2 + $0x20] sm:$0x1]  ;;  %v5592_v50 = vshrl.u32 %v5522_v36, 16  ;;  %v5595_v6 = vshll.u32 %v5522_v36, 16 }
 0x11e   : > { %8506 = vmatmul.mubr.bf16.gmra.mrb[4].mxu1 %v7591_v44  ;;  %v1095_v44 = vshrl.u32 %v7956_v0, 16  ;;  %v1098_v46 = vshll.u32 %v7956_v0, 16  ;;  %v7566_v5 = vrot.slane %v10323_v18, 9  ;;  %v2780_v51 = vrot.slane %v10325_v41, 5  ;;  %v5523_v48 = vld [vmem:[#allocation2 + $0x28] sm:$0xf] }
 0x11f   : > { %8732 = vmatpush3.bf16.msra.mxu0 %v9191_v32  ;;  %8509 = vmatprep.mubr.bf16.mxu1 %v7592_v62  ;;  %v10331_v32 = vsel %vm9781_vm14, %v2768_v23, %v2769_v4  ;;  %v1089_v38 = vrot.slane %v1087_v35, 7  ;;  %v2775_v62 = vrot.slane %v2773_v27, 4  ;;  %v2787_v37 = vrot.slane %v10333_v13, 5  ;;  %v9207_v22 = vld [vmem:[%s11152_s1 + $0x1f8] sm:$0xff]   ;;  %v9213_v26 = vld [vmem:[%s11152_s1 + $0xf0] sm:$0xff]  }
 0x120   : > { %8733 = vmatprep.subr.bf16.mxu0 %v10261_v56  ;;  %8538 = vmatpush3.bf16.msra.mxu1 %v9201_v43  ;;  %v5571_v43 = vshll.u32 %v5519_v28, 16  ;;  %v10343_v42 = vrot.slane %v1095_v44, 7  ;;  %v5570_v12 = vrot.slane %v5568_v1, 4  ;;  %v5587_v2 = vshll.u32 %v5521_v14, 16  ;;  %v10390_v18 = vld [vmem:[#allocation2 + $0x94] sm:$0xf] }
 0x121   : > { %8539 = vmatprep.subr.bf16.mxu1 %v9205_v3  ;;  %v1092_v54 = vor.u32 %v1090_v34, %v1089_v38  ;;  %v1093_v9 = vrot.slane %v1089_v38, 4  ;;  %v10370_v23 = vsel %vm9781_vm14, %v2775_v62, %v2776_v8  ;;  %v5597_v27 = vrot.slane %v5595_v6, 5  ;;  %v5525_v41 = vld [vmem:[#allocation2 + $0x30] sm:$0xf]  ;;  %v9196_v44 = vld [vmem:[#allocation2 + $0x84] sm:$0xff]  }
 0x122   : > { %8702 = vmatmul.mubr.bf16.gmra.mrb[8].mxu0 %v9188_v24  ;;  %v1100_v39 = vor.u32 %v1098_v46, %v10343_v42  ;;  %v5573_v24 = vrot.slane %v5571_v43, 5  ;;  %v5601_v17 = vshll.u32 %v5523_v48, 16  ;;  %v2782_v8 = vrot.slane %v2780_v51, 4  ;;  %v9198_v1 = vld [vmem:[#allocation2 + $0x90] sm:$0xff]   ;;  %v10404_v62 = vld [vmem:[#allocation2 + $0x98] sm:$0x1] }
 0x123   : > { %8705 = vmatprep.mubr.bf16.mxu0 %v9190_v29  ;;  %8734 = vmatpush3.bf16.msra.mxu0 %v10261_v56  ;;  %v5581_v56 = vshrl.u32 %v5520_v52, 16  ;;  %v1108_v4 = vsel %vm9427_vm6, %v1092_v54, %v1107_v58  ;;  %v10364_v29 = vrot.slane %v5577_v57, 5  ;;  %v2783_v59 = vrot.slane %v10345_v11, 5  ;;  %v5524_v52 = vld [vmem:[#allocation2 + $0x2c] sm:$0x1]  ;;  %v9215_v58 = vld [vmem:[%s11152_s1 + $0xf8] sm:$0xff]  }
 0x124   : > { %8735 = vmatprep.subr.bf16.mxu0 %v9199_v49  ;;  %8540 = vmatpush3.bf16.msra.mxu1 %v9205_v3  ;;  %v10362_v3 = vld [vmem:[#allocation2 + $0x8c] sm:$0x1]  ;;  %v1101_v63 = vsel %vm9416_vm5, %v1093_v9, %v1100_v39  ;;  %1109 = vst [vmem:[#allocation2 + $0xcc] sm:$0xf] %v1108_v4  ;;  %v7567_v0 = vrot.slane %v10347_v40, 9  ;;  %v7597_v35 = vcombine.low %v10341_v33, %v10370_v23  ;;  %v1102_v46 = vrot.slane %v10343_v42, 4 }
 0x125   : > { %8541 = vmatprep.subr.bf16.mxu1 %v10312_v25  ;;  %v5583_v61 = vrot.slane %v5581_v56, 4  ;;  %1110 = vst [vmem:[#allocation2 + $0xd0] sm:$0xf] %v1101_v63  ;;  %v2790_v28 = vrot.slane %v10362_v3, 5  ;;  %v5574_v34 = vor.u32 %v5573_v24, %v5570_v12  ;;  %v10395_v36 = vsel %vm9781_vm14, %v7566_v5, %v2780_v51  ;;  %v10413_v9 = vld [vmem:[#allocation2 + $0x9c] sm:$0xe] }
 0x126   : > { %8510 = vmatmul.mubr.bf16.gmra.mrb[8].mxu1 %v7593_v60  ;;  %v5605_v60 = vshrl.u32 %v5523_v48, 16  ;;  %v2789_v38 = vrot.slane %v2787_v37, 4  ;;  %v10400_v43 = vrot.slane %v5587_v2, 5  ;;  %v5611_v56 = vshll.u32 %v5524_v52, 16  ;;  %v10415_v11 = vld [vmem:[#allocation2 + $0xa0] sm:$0xf] }
 0x127   : > { %8736 = vmatpush3.bf16.msra.mxu0 %v9199_v49  ;;  %8513 = vmatprep.mubr.bf16.mxu1 %v7594_v10  ;;  %v5594_v49 = vrot.slane %v5592_v50, 4  ;;  %v7596_v10 = vcombine.low %v10321_v47, %v10331_v32  ;;  %v5584_v47 = vor.u32 %v5583_v61, %v10364_v29  ;;  %v2645_v32 = vld [vmem:[#allocation2 + $0x90] sm:$0xe]  ;;  %v2794_v54 = vrot.slane %v10390_v18, 5  ;;  %v5526_v40 = vld [vmem:[#allocation2 + $0x34] sm:$0xf] }
 0x128   : > { %8737 = vmatprep.subr.bf16.mxu0 %v9203_v30  ;;  %8542 = vmatpush3.bf16.msra.mxu1 %v10312_v25  ;;  %v10384_v25 = vld [vmem:[%s11152_s1 + $0x200] sm:$0xff]   ;;  %v5616_v14 = vshrl.u32 %v5525_v41, 16  ;;  %v5619_v50 = vshll.u32 %v5525_v41, 16  ;;  %v10423_v7 = vsel %vm9781_vm14, %v7567_v0, %v2787_v37  ;;  %v10425_v31 = vrot.slane %v5574_v34, 4  ;;  %v5528_v24 = vld [vmem:[#allocation2 + $0x3c] sm:$0xf] }
 0x129   : > { %8543 = vmatprep.subr.bf16.mxu1 %v9211_v20  ;;  %v5598_v57 = vor.u32 %v5597_v27, %v5594_v49  ;;  %v10427_v5 = vrot.slane %v5584_v47, 4  ;;  %v10430_v51 = vld [vmem:[#allocation2 + $0xa4] sm:$0x1]  ;;  %v5625_v12 = vshll.u32 %v5526_v40, 16  ;;  %v5629_v37 = vshrl.u32 %v5526_v40, 16  ;;  %v9200_v47 = vld [vmem:[#allocation2 + $0x9c] sm:$0xff]  }
 0x12a   : > { %8706 = vmatmul.mubr.bf16.gmra.mrb[12].mxu0 %v9192_v53  ;;  %v10402_v53 = vrot.slane %v5601_v17, 5  ;;  %v5618_v48 = vrot.slane %v5616_v14, 4  ;;  %v10437_v61 = vrot.slane %v5611_v56, 5  ;;  %v2796_v2 = vrot.slane %v2794_v54, 4  ;;  %v5527_v27 = vld [vmem:[#allocation2 + $0x38] sm:$0x1] }
 0x12b   : > { %8709 = vmatprep.mubr.bf16.mxu0 %v9194_v21  ;;  %8738 = vmatpush3.bf16.msra.mxu0 %v9203_v30  ;;  %v5607_v30 = vrot.slane %v5605_v60, 4  ;;  %v1131_v6 = vld [vmem:[#allocation2 + $0xcc] sm:$0x2]  ;;  %v2784_v21 = vsel %vm9781_vm14, %v2782_v8, %v2783_v59  ;;  %v10432_v4 = vrot.slane %v5598_v57, 4  ;;  %v2797_v49 = vrot.slane %v10404_v62, 5 }
 0x12c   : > { %8739 = vmatprep.subr.bf16.mxu0 %v9207_v22  ;;  %8544 = vmatpush3.bf16.msra.mxu1 %v9211_v20  ;;  %v1255_v20 = vld [vmem:[#allocation2 + $0xcc] sm:$0x1]  ;;  %v7473_v39 = vrot.slane %v1131_v6, 9  ;;  %v7598_v17 = vcombine.low %v10395_v36, %v2784_v21  ;;  %v10445_v60 = vsel %vm9781_vm14, %v2789_v38, %v2790_v28  ;;  %v2801_v8 = vrot.slane %v10415_v11, 5  ;;  %v5529_v59 = vld [vmem:[#allocation2 + $0x40] sm:$0xf] }
 0x12d   : > { %8545 = vmatprep.subr.bf16.mxu1 %v9213_v26  ;;  %v5608_v13 = vor.u32 %v5607_v30, %v10402_v53  ;;  %v5530_v0 = vld [vmem:[#allocation2 + $0x44] sm:$0x1]  ;;  %v5640_v34 = vshrl.u32 %v5528_v24, 16  ;;  %v5643_v18 = vshll.u32 %v5528_v24, 16  ;;  %v2652_v41 = vld [vmem:[#allocation2 + $0xac] sm:$0xf]  ;;  %v5580_v6 = vsel %vm9557_vm11, %v10425_v31, %v10364_v29 }
 0x12e   : > { %8514 = vmatmul.mubr.bf16.gmra.mrb[12].mxu1 %v7595_v16  ;;  %v7568_v16 = vrot.slane %v2645_v32, 9  ;;  %v1256_v63 = vsel %vm9438_vm7, %v7473_v39, %v1255_v20  ;;  %v2804_v28 = vrot.slane %v10430_v51, 5  ;;  %v5631_v36 = vrot.slane %v5629_v37, 4  ;;  %v10461_v38 = vld [vmem:[%s11152_s1 + $0x100] sm:$0xff]   ;;  %v9202_v32 = vld [vmem:[#allocation2 + $0xa8] sm:$0xff]  }
 0x12f   : > { %8517 = vmatprep.mubr.bf16.mxu1 %v7596_v10  ;;  %8740 = vmatpush3.bf16.msra.mxu0 %v9207_v22  ;;  %v5621_v22 = vrot.slane %v5619_v50, 5  ;;  %1257 = vst [vmem:[#allocation2 + $0xcc] sm:$0x1] %v1256_v63  ;;  %v10453_v3 = vrot.slane %v5608_v13, 4  ;;  %v5635_v57 = vshll.u32 %v5527_v27, 16  ;;  %v5649_v30 = vshll.u32 %v5529_v59, 16 }
 0x130   : > { %8773 = vmatprep.subr.bf16.mxu0 %v10384_v25  ;;  %8546 = vmatpush3.bf16.msra.mxu1 %v9213_v26  ;;  %v7569_v26 = vrot.slane %v10413_v9, 9  ;;  %v10451_v52 = vsel %vm9781_vm14, %v7568_v16, %v2794_v54  ;;  %v5653_v62 = vshrl.u32 %v5529_v59, 16  ;;  %v5659_v56 = vshll.u32 %v5530_v0, 16  ;;  %v2651_v54 = vld [vmem:[#allocation2 + $0xa8] sm:$0xe] }
 0x131   : > { %8547 = vmatprep.subr.bf16.mxu1 %v9215_v58  ;;  %v5622_v10 = vor.u32 %v5621_v22, %v5618_v48  ;;  %v2653_v9 = vld [vmem:[#allocation2 + $0xb0] sm:$0x1]  ;;  %v2808_v11 = vrot.slane %v2652_v41, 5  ;;  %v2803_v40 = vrot.slane %v2801_v8, 4  ;;  %v10473_v50 = vrot.slane %v5640_v34, 4  ;;  %v9204_v41 = vld [vmem:[#allocation2 + $0xb4] sm:$0xff]  }
 0x132   : > { %8710 = vmatmul.mubr.bf16.gmra.mrb[16].mxu0 %v9196_v44  ;;  %v10456_v44 = vrot.slane %v5625_v12, 5  ;;  %v10475_v33 = vrot.slane %v5643_v18, 5  ;;  %v10477_v23 = vld [vmem:[#allocation2 + $0xb8] sm:$0xf]  ;;  %v5590_v20 = vsel %vm9557_vm11, %v10427_v5, %v10400_v43  ;;  %v10489_v16 = vld [vmem:[#allocation2 + $0xb4] sm:$0xe]  ;;  %v2802_v27 = vsel %vm9781_vm14, %v7569_v26, %v2801_v8 }
 0x133   : > { %8713 = vmatprep.mubr.bf16.mxu0 %v9198_v1  ;;  %v2798_v1 = vsel %vm9781_vm14, %v2796_v2, %v2797_v49  ;;  %v10471_v14 = vrot.slane %v5622_v10, 4  ;;  %v5532_v39 = vld [vmem:[#allocation2 + $0x4c] sm:$0xf]  ;;  %v10491_v51 = vrot.slane %v5635_v57, 5  ;;  %v10493_v48 = vrot.slane %v5649_v30, 5 }
 0x134   : > { %8548 = vmatpush3.bf16.msra.mxu1 %v9215_v58  ;;  %v7599_v58 = vcombine.low %v10423_v7, %v10445_v60  ;;  %v7600_v21 = vcombine.low %v10451_v52, %v2798_v1  ;;  %v5632_v7 = vor.u32 %v5631_v36, %v10456_v44  ;;  %v5655_v22 = vrot.slane %v5653_v62, 4  ;;  %v5534_v2 = vld [vmem:[#allocation2 + $0x54] sm:$0xf]  ;;  %v5535_v0 = vld [vmem:[#allocation2 + $0x58] sm:$0xf]  ;;  %v9206_v36 = vld [vmem:[#allocation2 + $0xc0] sm:$0xff]  }
 0x135   : > { %8821 = vmatprep.subr.bf16.mxu1 %v10461_v38  ;;  %v7570_v13 = vrot.slane %v2651_v54, 9  ;;  %v10495_v12 = vrot.slane %v5659_v56, 5  ;;  %v2810_v37 = vrot.slane %v2808_v11, 4  ;;  %v2811_v24 = vrot.slane %v2653_v9, 5 }
 0x136   : > { %8518 = vmatmul.mubr.bf16.gmra.mrb[16].mxu1 %v7597_v35  ;;  %v5531_v35 = vld [vmem:[#allocation2 + $0x48] sm:$0xf]  ;;  %v5604_v49 = vsel %vm9557_vm11, %v10432_v4, %v10402_v53  ;;  %v5673_v59 = vshll.u32 %v5532_v39, 16  ;;  %v2805_v52 = vsel %vm9781_vm14, %v2803_v40, %v2804_v28  ;;  %v10505_v10 = vrot.slane %v5632_v7, 4  ;;  %v5538_v7 = vld [vmem:[#allocation2 + $0x64] sm:$0xf] }
 0x137   : > { %8521 = vmatprep.mubr.bf16.mxu1 %v7598_v17  ;;  %v5664_v63 = vshrl.u32 %v5531_v35, 16  ;;  %v2656_v17 = vld [vmem:[#allocation2 + $0xbc] sm:$0x1]  ;;  %v5667_v60 = vshll.u32 %v5531_v35, 16  ;;  %v5646_v34 = vor.u32 %v10475_v33, %v10473_v50  ;;  %v2815_v18 = vrot.slane %v10477_v23, 5 }
 0x138   : > { %v2809_v53 = vsel %vm9781_vm14, %v7570_v13, %v2808_v11  ;;  %v7571_v4 = vrot.slane %v10489_v16, 9  ;;  %v5677_v26 = vshrl.u32 %v5532_v39, 16  ;;  %v5688_v8 = vshrl.u32 %v5534_v2, 16  ;;  %v5536_v50 = vld [vmem:[#allocation2 + $0x5c] sm:$0x1] }
 0x139   : > { %v2812_v28 = vsel %vm9781_vm14, %v2810_v37, %v2811_v24  ;;  %v5697_v1 = vshll.u32 %v5535_v0, 16  ;;  %v5701_v57 = vshrl.u32 %v5535_v0, 16  ;;  %v5666_v30 = vrot.slane %v5664_v63, 4  ;;  %v5537_v33 = vld [vmem:[#allocation2 + $0x60] sm:$0xf] }
 0x13a   : > { %8714 = vmatmul.mubr.bf16.gmra.mrb[20].mxu0 %v9200_v47  ;;  %v5533_v47 = vld [vmem:[#allocation2 + $0x50] sm:$0x1]  ;;  %v5669_v62 = vrot.slane %v5667_v60, 5  ;;  %v10515_v56 = vrot.slane %v5673_v59, 5  ;;  %v7601_v54 = vcombine.low %v2802_v27, %v2805_v52  ;;  %v5656_v9 = vor.u32 %v5655_v22, %v10493_v48  ;;  %v5539_v52 = vld [vmem:[#allocation2 + $0x68] sm:$0x1] }
 0x13b   : > { %8717 = vmatprep.mubr.bf16.mxu0 %v9202_v32  ;;  %v5691_v32 = vshll.u32 %v5534_v2, 16  ;;  %v2817_v11 = vrot.slane %v2815_v18, 4  ;;  %v2818_v40 = vrot.slane %v2656_v17, 5  ;;  %v5690_v23 = vrot.slane %v5688_v8, 4 }
 0x13c   : > { %v5712_v16 = vshrl.u32 %v5537_v33, 16  ;;  %v5614_v39 = vsel %vm9557_vm11, %v10453_v3, %v10437_v61  ;;  %v7602_v13 = vcombine.low %v2809_v53, %v2812_v28  ;;  %v5703_v37 = vrot.slane %v5701_v57, 4 }
 0x13d   : > { %v5693_v35 = vrot.slane %v5691_v32, 5  ;;  %v5715_v22 = vshll.u32 %v5537_v33, 16  ;;  %v5647_v24 = vrot.slane %v5646_v34, 4  ;;  %v5670_v63 = vor.u32 %v5669_v62, %v5666_v30  ;;  %v5540_v34 = vld [vmem:[#allocation2 + $0x6c] sm:$0xf] }
 0x13e   : > { %8522 = vmatmul.mubr.bf16.gmra.mrb[20].mxu1 %v7599_v58  ;;  %v5679_v58 = vrot.slane %v5677_v26, 4  ;;  %v5683_v27 = vshll.u32 %v5533_v47, 16  ;;  %v5657_v17 = vrot.slane %v5656_v9, 4  ;;  %v2816_v60 = vsel %vm9781_vm14, %v7571_v4, %v2815_v18  ;;  %v5543_v30 = vld [vmem:[#allocation2 + $0x78] sm:$0xf] }
 0x13f   : > { %8525 = vmatprep.mubr.bf16.mxu1 %v7600_v21  ;;  %v10518_v21 = vrot.slane %v5697_v1, 5  ;;  %v2819_v59 = vsel %vm9781_vm14, %v2817_v11, %v2818_v40  ;;  %v5707_v0 = vshll.u32 %v5536_v50, 16  ;;  %v5694_v61 = vor.u32 %v5693_v35, %v5690_v23  ;;  %v5544_v33 = vld [vmem:[#allocation2 + $0x7c] sm:$0xf] }
 0x140   : > { %v5680_v2 = vor.u32 %v5679_v58, %v10515_v56  ;;  %v5714_v3 = vrot.slane %v5712_v16, 4  ;;  %v5717_v53 = vrot.slane %v5715_v22, 5  ;;  %v5721_v26 = vshll.u32 %v5538_v7, 16  ;;  %v9212_v16 = vld [vmem:[%s11152_s1 + $0x208] sm:$0xff]  }
 0x141   : > { %v7804_v18 = vcombine.low %v5580_v6, %v5590_v20  ;;  %v7805_v4 = vcombine.low %v5604_v49, %v5614_v39  ;;  %v5628_v8 = vsel %vm9557_vm11, %v10471_v14, %v10456_v44  ;;  %v5638_v43 = vsel %vm9557_vm11, %v10505_v10, %v10491_v51  ;;  %v5541_v20 = vld [vmem:[#allocation2 + $0x70] sm:$0xf] }
 0x142   : > { %8718 = vmatmul.mubr.bf16.gmra.mrb[24].mxu0 %v9204_v41  ;;  %v9208_v41 = vld [vmem:[#allocation2 + $0xcc] sm:$0xff]   ;;  %v5671_v5 = vrot.slane %v5670_v63, 4  ;;  %v5681_v28 = vrot.slane %v5680_v2, 4  ;;  %v5685_v47 = vrot.slane %v5683_v27, 5  ;;  %v7603_v32 = vcombine.low %v2816_v60, %v2819_v59  ;;  %v5547_v27 = vld [vmem:[#allocation2 + $0x88] sm:$0xf] }
 0x143   : > { %8721 = vmatprep.mubr.bf16.mxu0 %v9206_v36  ;;  %v5704_v36 = vor.u32 %v5703_v37, %v10518_v21  ;;  %v10548_v29 = vrot.slane %v5707_v0, 5  ;;  %v5725_v31 = vshrl.u32 %v5538_v7, 16  ;;  %v5731_v6 = vshll.u32 %v5539_v52, 16  ;;  %v9216_v44 = vld [vmem:[#allocation2 + $0xc] sm:$0xff]   ;;  %v10576_v0 = vld [vmem:[#allocation2 + $0x80] sm:$0x1] }
 0x144   : > { %v10550_v49 = vrot.slane %v5694_v61, 4  ;;  %v5718_v14 = vor.u32 %v5717_v53, %v5714_v3  ;;  %v5736_v1 = vshrl.u32 %v5540_v34, 16  ;;  %v5739_v57 = vshll.u32 %v5540_v34, 16 }
 0x145   : > { %v5652_v51 = vsel %vm9557_vm11, %v5647_v24, %v10493_v48  ;;  %v5662_v10 = vsel %vm9557_vm11, %v5657_v17, %v10495_v12  ;;  %v5705_v62 = vrot.slane %v5704_v36, 4  ;;  %v10558_v58 = vrot.slane %v5721_v26, 5  ;;  %v5546_v12 = vld [vmem:[#allocation2 + $0x84] sm:$0xf]  ;;  %v9217_v17 = vld [vmem:[#allocation2 + $0x18] sm:$0xff]  }
 0x146   : > { %8526 = vmatmul.mubr.bf16.gmra.mrb[24].mxu1 %v7601_v54  ;;  %v5542_v54 = vld [vmem:[#allocation2 + $0x74] sm:$0x1]  ;;  %v5676_v9 = vsel %vm9557_vm11, %v5671_v5, %v10515_v56  ;;  %v5686_v11 = vsel %vm9557_vm11, %v5681_v28, %v5685_v47  ;;  %v5745_v40 = vshll.u32 %v5541_v20, 16  ;;  %v5749_v50 = vshrl.u32 %v5541_v20, 16  ;;  %v9219_v47 = vld [vmem:[#allocation2 + $0x24] sm:$0xff]  }
 0x147   : > { %8529 = vmatprep.mubr.bf16.mxu1 %v7602_v13  ;;  %v5727_v23 = vrot.slane %v5725_v31, 4  ;;  %v10565_v48 = vrot.slane %v5731_v6, 5  ;;  %v5760_v35 = vshrl.u32 %v5543_v30, 16  ;;  %v5763_v7 = vshll.u32 %v5543_v30, 16  ;;  %v5550_v5 = vld [vmem:[#allocation2 + $0x94] sm:$0xf] }
 0x148   : > { %v10570_v39 = vrot.slane %v5718_v14, 4  ;;  %v5738_v56 = vrot.slane %v5736_v1, 4  ;;  %v5741_v13 = vrot.slane %v5739_v57, 5  ;;  %v5755_v37 = vshll.u32 %v5542_v54, 16  ;;  %v5552_v54 = vld [vmem:[#allocation2 + $0x9c] sm:$0xf] }
 0x149   : > { %v7806_v22 = vcombine.low %v5628_v8, %v5638_v43  ;;  %v10572_v24 = vcombine.low %v5652_v51, %v5662_v10  ;;  %v5769_v63 = vshll.u32 %v5544_v33, 16  ;;  %v5773_v2 = vshrl.u32 %v5544_v33, 16  ;;  %v5549_v43 = vld [vmem:[#allocation2 + $0x90] sm:$0xf]  ;;  %v5548_v51 = vld [vmem:[#allocation2 + $0x8c] sm:$0x1] }
 0x14a   : > { %8722 = vmatmul.mubr.bf16.gmra.mrb[28].mxu0 %v9208_v41  ;;  %v10574_v60 = vrot.slane %v5745_v40, 5  ;;  %v5751_v59 = vrot.slane %v5749_v50, 4  ;;  %v5784_v52 = vshrl.u32 %v5546_v12, 16  ;;  %v5787_v41 = vshll.u32 %v5546_v12, 16  ;;  %v5551_v40 = vld [vmem:[#allocation2 + $0x98] sm:$0x1] }
 0x14b   : > { %8741 = vmatprep.mubr.bf16.mxu0 %v7804_v18  ;;  %v7808_v61 = vcombine.low %v5676_v9, %v5686_v11  ;;  %v5728_v3 = vor.u32 %v5727_v23, %v10558_v58  ;;  %v5762_v53 = vrot.slane %v5760_v35, 4  ;;  %v5765_v26 = vrot.slane %v5763_v7, 5  ;;  %v9218_v23 = vld [vmem:[%s11152_s1 + $0x218] sm:$0xff]  }
 0x14c   : > { %v5700_v34 = vsel %vm9557_vm11, %v10550_v49, %v10518_v21  ;;  %v5710_v18 = vsel %vm9557_vm11, %v5705_v62, %v10548_v29  ;;  %v5793_v8 = vshll.u32 %v5547_v27, 16  ;;  %v5797_v36 = vshrl.u32 %v5547_v27, 16  ;;  %v9220_v27 = vld [vmem:[#allocation2 + $0x30] sm:$0xff]  }
 0x14d   : > { %v5742_v28 = vor.u32 %v5741_v13, %v5738_v56  ;;  %v5775_v21 = vrot.slane %v5773_v2, 4  ;;  %v5808_v31 = vshrl.u32 %v5549_v43, 16  ;;  %v5786_v6 = vrot.slane %v5784_v52, 4  ;;  %v9222_v52 = vld [vmem:[#allocation2 + $0x3c] sm:$0xff]  }
 0x14e   : > { %8530 = vmatmul.mubr.bf16.gmra.mrb[28].mxu1 %v7603_v32  ;;  %v10590_v32 = vrot.slane %v5769_v63, 5  ;;  %v5789_v29 = vrot.slane %v5787_v41, 5  ;;  %v5811_v20 = vshll.u32 %v5549_v43, 16  ;;  %v5817_v49 = vshll.u32 %v5550_v5, 16  ;;  %v10639_v43 = vld [vmem:[#allocation2 + $0xa4] sm:$0x1] }
 0x14f   : > { %8549 = vmatprep.mubr.bf16.mxu1 %v9216_v44  ;;  %v5729_v44 = vrot.slane %v5728_v3, 4  ;;  %v10592_v14 = vrot.slane %v5755_v37, 5  ;;  %v5821_v1 = vshrl.u32 %v5550_v5, 16  ;;  %v10595_v57 = vcombine.low %v5700_v34, %v5710_v18  ;;  %v9246_v37 = vld [vmem:[%s11152_s1 + $0x108] sm:$0xff]  }
 0x150   : > { %v5752_v30 = vor.u32 %v5751_v59, %v10574_v60  ;;  %v10598_v10 = vrot.slane %v5793_v8, 5  ;;  %v5799_v62 = vrot.slane %v5797_v36, 4  ;;  %v5766_v9 = vor.u32 %v5765_v26, %v5762_v53  ;;  %v5555_v3 = vld [vmem:[#allocation2 + $0xa8] sm:$0xf]  ;;  %v5556_v18 = vld [vmem:[#allocation2 + $0xac] sm:$0xf] }
 0x151   : > { %v5776_v11 = vor.u32 %v5775_v21, %v10590_v32  ;;  %v5810_v50 = vrot.slane %v5808_v31, 4  ;;  %v5813_v33 = vrot.slane %v5811_v20, 5  ;;  %v10604_v35 = vrot.slane %v5742_v28, 4  ;;  %v9247_v28 = vld [vmem:[%s11152_s1 + $0x110] sm:$0xff]  }
 0x152   : > { %8742 = vmatmul.mubr.bf16.vlgmr.msra.gmra.mrb[0].mxu0 %v7805_v4  ;;  %v9214_v4 = vld [vmem:[%s11152_s1 + $0x210] sm:$0xff]   ;;  %v5790_v7 = vor.u32 %v5789_v29, %v5786_v6  ;;  %v10607_v12 = vrot.slane %v5817_v49, 5  ;;  %v5724_v56 = vsel %vm9557_vm11, %v10570_v39, %v10558_v58  ;;  %v5734_v13 = vsel %vm9557_vm11, %v5729_v44, %v10565_v48 }
 0x153   : > { %8774 = vmatpush3.bf16.msra.mxu0 %v10384_v25  ;;  %8745 = vmatprep.mubr.bf16.mxu0 %v7806_v22  ;;  %v5779_v25 = vshll.u32 %v10576_v0, 16  ;;  %v5553_v22 = vld [vmem:[#allocation2 + $0xa0] sm:$0xf]  ;;  %v5835_v63 = vshll.u32 %v5552_v54, 16  ;;  %v10620_v2 = vrot.slane %v5752_v30, 4  ;;  %v5803_v58 = vshll.u32 %v5548_v51, 16 }
 0x154   : > { %8775 = vmatprep.subr.bf16.mxu0 %v9212_v16  ;;  %v5827_v39 = vshll.u32 %v5551_v40, 16  ;;  %v10623_v48 = vrot.slane %v5766_v9, 4  ;;  %v10625_v59 = vrot.slane %v5776_v11, 4  ;;  %v5814_v41 = vor.u32 %v5813_v33, %v5810_v50  ;;  %v5558_v29 = vld [vmem:[#allocation2 + $0xb4] sm:$0xf]  ;;  %v9224_v51 = vld [vmem:[%s11152_s1 + $0x228] sm:$0xff]  }
 0x155   : > { %v10627_v0 = vrot.slane %v5779_v25, 5  ;;  %v10632_v53 = vrot.slane %v5790_v7, 4  ;;  %v5845_v34 = vshrl.u32 %v5553_v22, 16  ;;  %v7810_v8 = vcombine.low %v5724_v56, %v5734_v13  ;;  %v5559_v25 = vld [vmem:[#allocation2 + $0xb8] sm:$0xf] }
 0x156   : > { %8550 = vmatmul.mubr.bf16.vlgmr.msra.gmra.mrb[0].mxu1 %v9217_v17  ;;  %v5800_v17 = vor.u32 %v5799_v62, %v10598_v10  ;;  %v5748_v36 = vsel %vm9557_vm11, %v10604_v35, %v10574_v60  ;;  %v10646_v21 = vrot.slane %v5803_v58, 5  ;;  %v10648_v31 = vrot.slane %v5827_v39, 5  ;;  %v9225_v33 = vld [vmem:[#allocation2 + $0x54] sm:$0xff]   ;;  %v10678_v56 = vld [vmem:[#allocation2 + $0xb0] sm:$0x1] }
 0x157   : > { %8776 = vmatpush3.bf16.msra.mxu0 %v9212_v16  ;;  %8553 = vmatprep.mubr.bf16.mxu1 %v9219_v47  ;;  %v5823_v16 = vrot.slane %v5821_v1, 4  ;;  %v5856_v6 = vshrl.u32 %v5555_v3, 16  ;;  %v10650_v60 = vrot.slane %v5814_v41, 4  ;;  %v5859_v20 = vshll.u32 %v5555_v3, 16  ;;  %v9223_v1 = vld [vmem:[#allocation2 + $0x48] sm:$0xff]   ;;  %v9248_v35 = vld [vmem:[%s11152_s1 + $0x118] sm:$0xff]  }
 0x158   : > { %8777 = vmatprep.subr.bf16.mxu0 %v9214_v4  ;;  %8829 = vmatpush3.bf16.msra.mxu1 %v10461_v38  ;;  %v5832_v38 = vshrl.u32 %v5552_v54, 16  ;;  %v10644_v47 = vrot.slane %v5800_v17, 4  ;;  %v5865_v49 = vshll.u32 %v5556_v18, 16  ;;  %v5869_v44 = vshrl.u32 %v5556_v18, 16  ;;  %v5561_v17 = vld [vmem:[#allocation2 + $0xc0] sm:$0xf] }
 0x159   : > { %8822 = vmatprep.subr.bf16.mxu1 %v9246_v37  ;;  %v5824_v26 = vor.u32 %v5823_v16, %v10607_v12  ;;  %v5880_v54 = vshrl.u32 %v5558_v29, 16  ;;  %v5883_v9 = vshll.u32 %v5558_v29, 16  ;;  %v5758_v11 = vsel %vm9557_vm11, %v10620_v2, %v10592_v14  ;;  %v5562_v58 = vld [vmem:[#allocation2 + $0xc4] sm:$0xf] }
 0x15a   : > { %8746 = vmatmul.mubr.bf16.gmra.mrb[4].mxu0 %v10572_v24  ;;  %v9221_v24 = vld [vmem:[%s11152_s1 + $0x220] sm:$0xff]   ;;  %v5834_v5 = vrot.slane %v5832_v38, 4  ;;  %v10663_v50 = vrot.slane %v5845_v34, 4  ;;  %v5772_v7 = vsel %vm9557_vm11, %v10623_v48, %v10590_v32  ;;  %v5782_v14 = vsel %vm9557_vm11, %v10625_v59, %v10627_v0  ;;  %v5560_v48 = vld [vmem:[#allocation2 + $0xbc] sm:$0x1] }
 0x15b   : > { %8749 = vmatprep.mubr.bf16.mxu0 %v7808_v61  ;;  %8778 = vmatpush3.bf16.msra.mxu0 %v9214_v4  ;;  %v5841_v61 = vshll.u32 %v5553_v22, 16  ;;  %v5837_v4 = vrot.slane %v5835_v63, 5  ;;  %v10652_v30 = vrot.slane %v5824_v26, 4  ;;  %v5851_v16 = vshll.u32 %v10639_v43, 16  ;;  %v9249_v41 = vld [vmem:[%s11152_s1 + $0x120] sm:$0xff]  }
 0x15c   : > { %8779 = vmatprep.subr.bf16.mxu0 %v9218_v23  ;;  %8830 = vmatpush3.bf16.msra.mxu1 %v9246_v37  ;;  %v10680_v13 = vrot.slane %v5856_v6, 4  ;;  %v10685_v37 = vrot.slane %v5859_v20, 5  ;;  %v10687_v32 = vrot.slane %v5865_v49, 5  ;;  %v10689_v22 = vrot.slane %v5869_v44, 4  ;;  %v5563_v26 = vld [vmem:[#allocation2 + $0xc8] sm:$0x1] }
 0x15d   : > { %8823 = vmatprep.subr.bf16.mxu1 %v9247_v28  ;;  %v10657_v62 = vrot.slane %v5841_v61, 5  ;;  %v5838_v40 = vor.u32 %v5837_v4, %v5834_v5  ;;  %v5893_v38 = vshrl.u32 %v5559_v25, 16  ;;  %v7811_v63 = vcombine.low %v5748_v36, %v5758_v11  ;;  %v1111_v4 = vld [vmem:[#allocation2 + $0xd4] sm:$0x1]  ;;  %v9228_v20 = vld [vmem:[#allocation2 + $0x6c] sm:$0xff]  }
 0x15e   : > { %8554 = vmatmul.mubr.bf16.gmra.mrb[4].mxu1 %v9220_v27  ;;  %v5882_v2 = vrot.slane %v5880_v54, 4  ;;  %v5885_v27 = vrot.slane %v5883_v9, 5  ;;  %v7812_v3 = vcombine.low %v5772_v7, %v5782_v14  ;;  %v5907_v61 = vshll.u32 %v5561_v17, 16  ;;  %v9250_v54 = vld [vmem:[%s11152_s1 + $0x128] sm:$0xff]  }
 0x15f   : > { %8780 = vmatpush3.bf16.msra.mxu0 %v9218_v23  ;;  %8557 = vmatprep.mubr.bf16.mxu1 %v9222_v52  ;;  %v5889_v23 = vshll.u32 %v5559_v25, 16  ;;  %v10691_v39 = vrot.slane %v5838_v40, 4  ;;  %v5895_v0 = vrot.slane %v5893_v38, 4  ;;  %v5904_v52 = vshrl.u32 %v5561_v17, 16  ;;  %v6337_v17 = vld [vmem:[#allocation2 + $0x18] sm:$0xe] }
 0x160   : > { %8781 = vmatprep.subr.bf16.mxu0 %v9221_v24  ;;  %8831 = vmatpush3.bf16.msra.mxu1 %v9247_v28  ;;  %v5913_v34 = vshll.u32 %v5562_v58, 16  ;;  %v5806_v18 = vsel %vm9557_vm11, %v10644_v47, %v10646_v21  ;;  %v5875_v36 = vshll.u32 %v10678_v56, 16  ;;  %v5917_v5 = vshrl.u32 %v5562_v58, 16  ;;  %v9226_v28 = vld [vmem:[#allocation2 + $0x60] sm:$0xff]   ;;  %v9230_v47 = vld [vmem:[%s11152_s1 + $0x238] sm:$0xff]  }
 0x161   : > { %8824 = vmatprep.subr.bf16.mxu1 %v9248_v35  ;;  %v10693_v59 = vrot.slane %v5889_v23, 5  ;;  %v5886_v6 = vor.u32 %v5885_v27, %v5882_v2  ;;  %v5899_v29 = vshll.u32 %v5560_v48, 16  ;;  %v5564_v21 = vld [vmem:[#allocation2 + $0xcc] sm:$0xf]  ;;  %v5906_v49 = vrot.slane %v5904_v52, 4  ;;  %v9229_v48 = vld [vmem:[#allocation2 + $0x78] sm:$0xff]  }
 0x162   : > { %8750 = vmatmul.mubr.bf16.gmra.mrb[8].mxu0 %v10595_v57  ;;  %v9227_v57 = vld [vmem:[%s11152_s1 + $0x230] sm:$0xff]   ;;  %v5909_v44 = vrot.slane %v5907_v61, 5  ;;  %v10716_v25 = vrot.slane %v5913_v34, 5  ;;  %v5919_v40 = vrot.slane %v5917_v5, 4  ;;  %v5820_v15 = vsel %vm9557_vm11, %v10650_v60, %v10607_v12  ;;  %v6339_v58 = vld [vmem:[#allocation2 + $0x20] sm:$0x1] }
 0x163   : > { %8753 = vmatprep.mubr.bf16.mxu0 %v7810_v8  ;;  %8782 = vmatpush3.bf16.msra.mxu0 %v9221_v24  ;;  %v5796_v24 = vsel %vm9557_vm11, %v10632_v53, %v10598_v10  ;;  %v5848_v8 = vor.u32 %v10663_v50, %v10657_v62  ;;  %v5862_v10 = vor.u32 %v10685_v37, %v10680_v13  ;;  %v5923_v50 = vshll.u32 %v5563_v26, 16  ;;  %v6342_v5 = vld [vmem:[#allocation2 + $0x2c] sm:$0x1] }
 0x164   : > { %8783 = vmatprep.subr.bf16.mxu0 %v9224_v51  ;;  %8832 = vmatpush3.bf16.msra.mxu1 %v9248_v35  ;;  %v5872_v53 = vor.u32 %v10689_v22, %v10687_v32  ;;  %v7813_v9 = vcombine.low %v5796_v24, %v5806_v18  ;;  %v5896_v11 = vor.u32 %v5895_v0, %v10693_v59  ;;  %v5931_v23 = vshll.u32 %v5564_v21, 16  ;;  %v6338_v22 = vld [vmem:[#allocation2 + $0x1c] sm:$0xf] }
 0x165   : > { %8825 = vmatprep.subr.bf16.mxu1 %v9249_v41  ;;  %v5830_v42 = vsel %vm9557_vm11, %v10652_v30, %v10648_v31  ;;  %v5849_v35 = vrot.slane %v5848_v8, 4  ;;  %v5853_v7 = vrot.slane %v5851_v16, 5  ;;  %v10736_v14 = vrot.slane %v5862_v10, 4  ;;  %v9251_v31 = vld [vmem:[%s11152_s1 + $0x130] sm:$0xff]   ;;  %v9252_v18 = vld [vmem:[%s11152_s1 + $0x138] sm:$0xff]  }
 0x166   : > { %8558 = vmatmul.mubr.bf16.gmra.mrb[8].mxu1 %v9223_v1  ;;  %v1112_v1 = vsel %vm9438_vm7, %v1102_v46, %v1111_v4  ;;  %v5928_v46 = vshrl.u32 %v5564_v21, 16  ;;  %v10738_v56 = vrot.slane %v5875_v36, 5  ;;  %v5873_v13 = vrot.slane %v5872_v53, 4  ;;  %v9231_v53 = vld [vmem:[#allocation2 + $0x84] sm:$0xff]  }
 0x167   : > { %8784 = vmatpush3.bf16.msra.mxu0 %v9224_v51  ;;  %8561 = vmatprep.mubr.bf16.mxu1 %v9225_v33  ;;  %v1275_v51 = vld [vmem:[#allocation2 + $0xd0] sm:$0x8]  ;;  %1113 = vst [vmem:[#allocation2 + $0xd4] sm:$0x1] %v1112_v1  ;;  %v10740_v12 = vrot.slane %v5886_v6, 4  ;;  %v10742_v60 = vrot.slane %v5899_v29, 5  ;;  %v5910_v37 = vor.u32 %v5909_v44, %v5906_v49  ;;  %v7814_v38 = vcombine.low %v5820_v15, %v5830_v42 }
 0x168   : > { %8785 = vmatprep.subr.bf16.mxu0 %v9227_v57  ;;  %8833 = vmatpush3.bf16.msra.mxu1 %v9249_v41  ;;  %v5565_v33 = vld [vmem:[#allocation2 + $0xd0] sm:$0xf]  ;;  %v10747_v43 = vrot.slane %v5896_v11, 4  ;;  %v10749_v30 = vrot.slane %v5923_v50, 5  ;;  %v7491_v16 = vrot.slane %v1275_v51, 11  ;;  %v5930_v2 = vrot.slane %v5928_v46, 4 }
 0x169   : > { %8826 = vmatprep.subr.bf16.mxu1 %v9250_v54  ;;  %v5933_v27 = vrot.slane %v5931_v23, 5  ;;  %v5941_v0 = vshrl.u32 %v5565_v33, 16  ;;  %v6435_v52 = vrot.slane %v6338_v22, 5  ;;  %v6340_v41 = vld [vmem:[#allocation2 + $0x24] sm:$0xe]  ;;  %v5844_v24 = vsel %vm9557_vm11, %v10691_v39, %v10657_v62 }
 0x16a   : > { %8754 = vmatmul.mubr.bf16.gmra.mrb[12].mxu0 %v7811_v63  ;;  %v5920_v63 = vor.u32 %v5919_v40, %v10716_v25  ;;  %v5911_v26 = vrot.slane %v5910_v37, 4  ;;  %v5854_v8 = vsel %vm9557_vm11, %v5849_v35, %v5853_v7  ;;  %v5868_v36 = vsel %vm9557_vm11, %v10736_v14, %v10687_v32  ;;  %v6343_v1 = vld [vmem:[#allocation2 + $0x30] sm:$0xe]  ;;  %v6347_v15 = vld [vmem:[#allocation2 + $0x40] sm:$0xf] }
 0x16b   : > { %8757 = vmatprep.mubr.bf16.mxu0 %v7812_v3  ;;  %8786 = vmatpush3.bf16.msra.mxu0 %v9227_v57  ;;  %v5937_v57 = vshll.u32 %v5565_v33, 16  ;;  %v6341_v3 = vld [vmem:[#allocation2 + $0x28] sm:$0xf]  ;;  %v5878_v62 = vsel %vm9557_vm11, %v5873_v13, %v10738_v56  ;;  %v7828_v6 = vrot.slane %v6337_v17, 9  ;;  %v5943_v29 = vrot.slane %v5941_v0, 4  ;;  %v9232_v35 = vld [vmem:[#allocation2 + $0x90] sm:$0xff]  }
 0x16c   : > { %8787 = vmatprep.subr.bf16.mxu0 %v9230_v47  ;;  %8834 = vmatpush3.bf16.msra.mxu1 %v9250_v54  ;;  %v6442_v34 = vrot.slane %v6341_v3, 5  ;;  %v5921_v4 = vrot.slane %v5920_v63, 4  ;;  %v6438_v21 = vrot.slane %v6339_v58, 5  ;;  %v7829_v32 = vrot.slane %v6340_v41, 9  ;;  %v10805_v13 = vld [vmem:[#allocation2 + $0x44] sm:$0x1] }
 0x16d   : > { %8827 = vmatprep.subr.bf16.mxu1 %v9251_v31  ;;  %v10770_v10 = vrot.slane %v5937_v57, 5  ;;  %v6445_v44 = vrot.slane %v6342_v5, 5  ;;  %v7815_v51 = vcombine.low %v5844_v24, %v5854_v8  ;;  %v7816_v11 = vcombine.low %v5868_v36, %v5878_v62  ;;  %v10809_v63 = vld [vmem:[#allocation2 + $0x48] sm:$0xe]  ;;  %v10817_v58 = vld [vmem:[#allocation2 + $0x50] sm:$0x1] }
 0x16e   : > { %8562 = vmatmul.mubr.bf16.gmra.mrb[12].mxu1 %v9226_v28  ;;  %v1400_v61 = vld [vmem:[#allocation2 + $0xd4] sm:$0x1]  ;;  %v5934_v28 = vor.u32 %v5933_v27, %v5930_v2  ;;  %v6444_v49 = vrot.slane %v6442_v34, 4  ;;  %v5892_v40 = vsel %vm9557_vm11, %v10740_v12, %v10693_v59  ;;  %v5902_v50 = vsel %vm9557_vm11, %v10747_v43, %v10742_v60  ;;  %v10807_v12 = vld [vmem:[#allocation2 + $0x4c] sm:$0xf] }
 0x16f   : > { %8565 = vmatprep.mubr.bf16.mxu1 %v9228_v20  ;;  %8788 = vmatpush3.bf16.msra.mxu0 %v9230_v47  ;;  %v1401_v39 = vsel %vm9489_vm8, %v7491_v16, %v1400_v61  ;;  %v6437_v47 = vrot.slane %v6435_v52, 4  ;;  %v6344_v20 = vld [vmem:[#allocation2 + $0x34] sm:$0xf]  ;;  %v5916_v33 = vsel %vm9557_vm11, %v5911_v26, %v10716_v25  ;;  %v5926_v42 = vsel %vm9557_vm11, %v5921_v4, %v10749_v30  ;;  %v3680_v0 = vld [vmem:[#allocation2 + $0x6c] sm:$0xf] }
 0x170   : > { %8835 = vmatpush3.bf16.msra.mxu1 %v9251_v31  ;;  %1402 = vst [vmem:[#allocation2 + $0xd4] sm:$0x1] %v1401_v39  ;;  %v6449_v54 = vrot.slane %v6344_v20, 5  ;;  %v10786_v46 = vrot.slane %v5934_v28, 4  ;;  %v5944_v23 = vor.u32 %v5943_v29, %v10770_v10  ;;  %v10791_v59 = vsel %vm9781_vm14, %v7828_v6, %v6435_v52  ;;  %v10827_v24 = vld [vmem:[#allocation2 + $0x58] sm:$0xf] }
 0x171   : > { %8828 = vmatprep.subr.bf16.mxu1 %v9252_v18  ;;  %v10795_v7 = vsel %vm9781_vm14, %v6437_v47, %v6438_v21  ;;  %v10799_v25 = vsel %vm9781_vm14, %v7829_v32, %v6442_v34  ;;  %v10803_v14 = vsel %vm9781_vm14, %v6444_v49, %v6445_v44  ;;  %v7830_v56 = vrot.slane %v6343_v1, 9  ;;  %v3681_v26 = vld [vmem:[#allocation2 + $0x70] sm:$0xf]  ;;  %v3682_v36 = vld [vmem:[#allocation2 + $0x74] sm:$0x1]  ;;  %v9234_v1 = vld [vmem:[#allocation2 + $0xa8] sm:$0xff]  }
 0x172   : > { %8758 = vmatmul.mubr.bf16.gmra.mrb[16].mxu0 %v7813_v9  ;;  %v6346_v9 = vld [vmem:[#allocation2 + $0x3c] sm:$0xe]  ;;  %v6451_v37 = vrot.slane %v6449_v54, 4  ;;  %v6452_v31 = vrot.slane %v6345_v19, 5  ;;  %v6456_v30 = vrot.slane %v6347_v15, 5  ;;  %v7817_v16 = vcombine.low %v5892_v40, %v5902_v50  ;;  %v9235_v50 = vld [vmem:[#allocation2 + $0xb4] sm:$0xff]  }
 0x173   : > { %8761 = vmatprep.mubr.bf16.mxu0 %v7814_v38  ;;  %v7831_v43 = vrot.slane %v6346_v9, 9  ;;  %v7818_v57 = vcombine.low %v5916_v33, %v5926_v42  ;;  %v9233_v38 = vld [vmem:[#allocation2 + $0x9c] sm:$0xff]   ;;  %v5940_v2 = vsel %vm9557_vm11, %v10786_v46, %v10770_v10  ;;  %v5945_v27 = vrot.slane %v5944_v23, 4  ;;  %v3683_v39 = vld [vmem:[#allocation2 + $0x78] sm:$0xf] }
 0x174   : > { %8836 = vmatpush3.bf16.msra.mxu1 %v9252_v18  ;;  %v7860_v17 = vcombine.low %v10791_v59, %v10795_v7  ;;  %v7861_v52 = vcombine.low %v10799_v25, %v10803_v14  ;;  %v10824_v41 = vsel %vm9781_vm14, %v7830_v56, %v6449_v54  ;;  %v6459_v3 = vrot.slane %v10805_v13, 5  ;;  %v6352_v19 = vld [vmem:[#allocation2 + $0x54] sm:$0xe]  ;;  %v3685_v15 = vld [vmem:[#allocation2 + $0x80] sm:$0x1] }
 0x175   : > { %v3897_v61 = vshrl.u32 %v3680_v0, 16  ;;  %v10831_v34 = vsel %vm9781_vm14, %v6451_v37, %v6452_v31  ;;  %v10835_v18 = vsel %vm9781_vm14, %v7831_v43, %v6456_v30  ;;  %v6458_v8 = vrot.slane %v6456_v30, 4  ;;  %v10842_v23 = vld [vmem:[#allocation2 + $0x5c] sm:$0x1]  ;;  %v10852_v30 = vld [vmem:[#allocation2 + $0x64] sm:$0xf] }
 0x176   : > { %8566 = vmatmul.mubr.bf16.gmra.mrb[16].mxu1 %v9229_v48  ;;  %v6463_v48 = vrot.slane %v10807_v12, 5  ;;  %v3900_v62 = vshll.u32 %v3680_v0, 16  ;;  %v7832_v4 = vrot.slane %v10809_v63, 9  ;;  %v3906_v10 = vshll.u32 %v3681_v26, 16  ;;  %v3686_v63 = vld [vmem:[#allocation2 + $0x84] sm:$0xf] }
 0x177   : > { %8569 = vmatprep.mubr.bf16.mxu1 %v9231_v53  ;;  %v5566_v60 = vld [vmem:[#allocation2 + $0xd4] sm:$0x1]  ;;  %v3899_v28 = vrot.slane %v3897_v61, 4  ;;  %v3684_v53 = vld [vmem:[#allocation2 + $0x7c] sm:$0xf]  ;;  %v6466_v29 = vrot.slane %v10817_v58, 5  ;;  %v10850_v37 = vsel %vm9781_vm14, %v6458_v8, %v6459_v3 }
 0x178   : > { %v5947_v22 = vshll.u32 %v5566_v60, 16  ;;  %v6465_v6 = vrot.slane %v6463_v48, 4  ;;  %v3902_v47 = vrot.slane %v3900_v62, 5  ;;  %v3910_v21 = vshrl.u32 %v3681_v26, 16 }
 0x179   : > { %v6470_v32 = vrot.slane %v10827_v24, 5  ;;  %v3908_v20 = vrot.slane %v3906_v10, 5  ;;  %v3916_v49 = vshll.u32 %v3682_v36, 16  ;;  %v3921_v44 = vshrl.u32 %v3683_v39, 16  ;;  %v6355_v24 = vld [vmem:[#allocation2 + $0x60] sm:$0xe] }
 0x17a   : > { %8762 = vmatmul.mubr.bf16.gmra.mrb[20].mxu0 %v7815_v51  ;;  %v5949_v5 = vrot.slane %v5947_v22, 5  ;;  %v3903_v51 = vor.u32 %v3902_v47, %v3899_v28  ;;  %v3912_v54 = vrot.slane %v3910_v21, 4  ;;  %v3924_v9 = vshll.u32 %v3683_v39, 16  ;;  %v9236_v10 = vld [vmem:[#allocation2 + $0xc0] sm:$0xff]   ;;  %v3689_v21 = vld [vmem:[#allocation2 + $0x90] sm:$0xf] }
 0x17b   : > { %8765 = vmatprep.mubr.bf16.mxu0 %v7816_v11  ;;  %v3930_v11 = vshll.u32 %v3684_v53, 16  ;;  %v3918_v33 = vrot.slane %v3916_v49, 5  ;;  %v3923_v42 = vrot.slane %v3921_v44, 4  ;;  %v3934_v46 = vshrl.u32 %v3684_v53, 16 }
 0x17c   : > { %v5950_v40 = vsel %vm9557_vm11, %v5945_v27, %v5949_v5  ;;  %v3913_v56 = vor.u32 %v3912_v54, %v3908_v20  ;;  %v3926_v13 = vrot.slane %v3924_v9, 5  ;;  %v7862_v60 = vcombine.low %v10824_v41, %v10831_v34  ;;  %v6357_v5 = vld [vmem:[#allocation2 + $0x68] sm:$0x1] }
 0x17d   : > { %v10844_v12 = vrot.slane %v3930_v11, 5  ;;  %v7833_v31 = vrot.slane %v6352_v19, 9  ;;  %v3936_v43 = vrot.slane %v3934_v46, 4  ;;  %v10856_v27 = vsel %vm9781_vm14, %v7832_v4, %v6463_v48  ;;  %v3687_v48 = vld [vmem:[#allocation2 + $0x88] sm:$0xf] }
 0x17e   : > { %8570 = vmatmul.mubr.bf16.gmra.mrb[20].mxu1 %v9232_v35  ;;  %v3904_v35 = vrot.slane %v3903_v51, 4  ;;  %v3927_v22 = vor.u32 %v3926_v13, %v3923_v42  ;;  %v10860_v58 = vsel %vm9781_vm14, %v6465_v6, %v6466_v29  ;;  %v6473_v0 = vrot.slane %v10842_v23, 5  ;;  %v3688_v4 = vld [vmem:[#allocation2 + $0x8c] sm:$0x1]  ;;  %v3691_v11 = vld [vmem:[#allocation2 + $0x98] sm:$0x1] }
 0x17f   : > { %8573 = vmatprep.mubr.bf16.mxu1 %v9233_v38  ;;  %v3940_v38 = vshll.u32 %v3685_v15, 16  ;;  %v3937_v3 = vor.u32 %v3936_v43, %v10844_v12  ;;  %v6477_v8 = vrot.slane %v10852_v30, 5  ;;  %v7863_v36 = vcombine.low %v10835_v18, %v10850_v37  ;;  %v10885_v46 = vld [vmem:[#allocation2 + $0x70] sm:$0xf] }
 0x180   : > { %v3909_v26 = vsel %vm9557_vm11, %v3904_v35, %v3908_v20  ;;  %v10873_v62 = vsel %vm9781_vm14, %v7833_v31, %v6470_v32  ;;  %v3928_v39 = vrot.slane %v3927_v22, 4  ;;  %v3945_v28 = vshrl.u32 %v3686_v63, 16  ;;  %v10895_v22 = vld [vmem:[#allocation2 + $0x6c] sm:$0xe] }
 0x181   : > { %v7864_v53 = vcombine.low %v10856_v27, %v10860_v58  ;;  %v3938_v6 = vrot.slane %v3937_v3, 4  ;;  %v3942_v29 = vrot.slane %v3940_v38, 5  ;;  %v7834_v47 = vrot.slane %v6355_v24, 9  ;;  %v10940_v27 = vld [vmem:[#allocation2 + $0x84] sm:$0xe] }
 0x182   : > { %8766 = vmatmul.mubr.bf16.gmra.mrb[24].mxu0 %v7817_v16  ;;  %v7819_v16 = vcombine.low %v5940_v2, %v5950_v40  ;;  %v6472_v2 = vrot.slane %v6470_v32, 4  ;;  %v3947_v32 = vrot.slane %v3945_v28, 4  ;;  %v3948_v49 = vshll.u32 %v3686_v63, 16  ;;  %v3693_v28 = vld [vmem:[#allocation2 + $0xa0] sm:$0xf] }
 0x183   : > { %8769 = vmatprep.mubr.bf16.mxu0 %v7818_v57  ;;  %v3914_v57 = vrot.slane %v3913_v56, 4  ;;  %v3954_v44 = vshll.u32 %v3687_v48, 16  ;;  %v6479_v19 = vrot.slane %v6477_v8, 4  ;;  %v6480_v51 = vrot.slane %v6357_v5, 5 }
 0x184   : > { %v3958_v54 = vshrl.u32 %v3687_v48, 16  ;;  %v3964_v9 = vshll.u32 %v3688_v4, 16  ;;  %v3933_v40 = vsel %vm9557_vm11, %v3928_v39, %v10844_v12  ;;  %v3969_v15 = vshrl.u32 %v3689_v21, 16  ;;  %v10901_v48 = vld [vmem:[#allocation2 + $0x7c] sm:$0xf] }
 0x185   : > { %v3919_v61 = vsel %vm9557_vm11, %v3914_v57, %v3918_v33  ;;  %v3956_v33 = vrot.slane %v3954_v44, 5  ;;  %v3943_v59 = vsel %vm9557_vm11, %v3938_v6, %v3942_v29  ;;  %v3988_v13 = vshll.u32 %v3691_v11, 16  ;;  %v6361_v39 = vld [vmem:[#allocation2 + $0x78] sm:$0xe]  ;;  %v3696_v11 = vld [vmem:[#allocation2 + $0xac] sm:$0xf] }
 0x186   : > { %8574 = vmatmul.mubr.bf16.gmra.mrb[24].mxu1 %v9234_v1  ;;  %v7676_v20 = vcombine.low %v3909_v26, %v3919_v61  ;;  %v3690_v1 = vld [vmem:[#allocation2 + $0x94] sm:$0xf]  ;;  %v3960_v7 = vrot.slane %v3958_v54, 4  ;;  %v3971_v35 = vrot.slane %v3969_v15, 4  ;;  %v3966_v43 = vrot.slane %v3964_v9, 5 }
 0x187   : > { %8577 = vmatprep.mubr.bf16.mxu1 %v9235_v50  ;;  %v3950_v50 = vrot.slane %v3948_v49, 5  ;;  %v3978_v42 = vshll.u32 %v3690_v1, 16  ;;  %v3982_v56 = vshrl.u32 %v3690_v1, 16  ;;  %v10893_v57 = vsel %vm9781_vm14, %v7834_v47, %v6477_v8  ;;  %v6360_v8 = vld [vmem:[#allocation2 + $0x74] sm:$0x1] }
 0x188   : > { %v3961_v31 = vor.u32 %v3960_v7, %v3956_v33  ;;  %v7677_v3 = vcombine.low %v3933_v40, %v3943_v59  ;;  %v6484_v24 = vrot.slane %v10885_v46, 5  ;;  %v7835_v4 = vrot.slane %v10895_v22, 9  ;;  %v3694_v47 = vld [vmem:[#allocation2 + $0xa4] sm:$0x1]  ;;  %v3695_v1 = vld [vmem:[#allocation2 + $0xa8] sm:$0xf] }
 0x189   : > { %v3951_v23 = vor.u32 %v3950_v50, %v3947_v32  ;;  %v3980_v30 = vrot.slane %v3978_v42, 5  ;;  %v3984_v63 = vrot.slane %v3982_v56, 4  ;;  %v6491_v29 = vrot.slane %v10901_v48, 5  ;;  %v3697_v59 = vld [vmem:[#allocation2 + $0xb0] sm:$0x1] }
 0x18a   : > { %8770 = vmatmul.mubr.bf16.gmra.mrb[28].mxu0 %v7819_v16  ;;  %v10889_v16 = vsel %vm9781_vm14, %v6472_v2, %v6473_v0  ;;  %v3962_v26 = vrot.slane %v3961_v31, 4  ;;  %v3692_v0 = vld [vmem:[#allocation2 + $0x9c] sm:$0xf]  ;;  %v10908_v2 = vsel %vm9781_vm14, %v6479_v19, %v6480_v51  ;;  %v6486_v32 = vrot.slane %v6484_v24, 4  ;;  %v10930_v31 = vld [vmem:[#allocation2 + $0x88] sm:$0xf] }
 0x18b   : > { %8789 = vmatprep.mubr.bf16.mxu0 %v7860_v17  ;;  %v3972_v17 = vshll.u32 %v3689_v21, 16  ;;  %v3952_v38 = vrot.slane %v3951_v23, 4  ;;  %v3985_v14 = vor.u32 %v3984_v63, %v3980_v30  ;;  %v7865_v5 = vcombine.low %v10873_v62, %v10889_v16 }
 0x18c   : > { %v3967_v41 = vsel %vm9557_vm11, %v3962_v26, %v3966_v43  ;;  %v3993_v21 = vshrl.u32 %v3692_v0, 16  ;;  %v6487_v49 = vrot.slane %v6360_v8, 5  ;;  %v3996_v54 = vshll.u32 %v3692_v0, 16  ;;  %v3698_v8 = vld [vmem:[#allocation2 + $0xb4] sm:$0xf] }
 0x18d   : > { %v3974_v12 = vrot.slane %v3972_v17, 5  ;;  %v3957_v25 = vsel %vm9557_vm11, %v3952_v38, %v3956_v33  ;;  %v3986_v6 = vrot.slane %v3985_v14, 4  ;;  %v4002_v9 = vshll.u32 %v3693_v28, 16 }
 0x18e   : > { %8578 = vmatmul.mubr.bf16.gmra.mrb[28].mxu1 %v9236_v10  ;;  %v7678_v10 = vcombine.low %v3957_v25, %v3967_v41  ;;  %v3995_v51 = vrot.slane %v3993_v21, 4  ;;  %v7836_v40 = vrot.slane %v6361_v39, 9  ;;  %v4006_v33 = vshrl.u32 %v3693_v28, 16 }
 0x18f   : > { %8613 = vmatprep.mubr.bf16.mxu1 %v7676_v20  ;;  %v3975_v61 = vor.u32 %v3974_v12, %v3971_v35  ;;  %v7866_v20 = vcombine.low %v10893_v57, %v10908_v2  ;;  %v4012_v15 = vshll.u32 %v3694_v47, 16  ;;  %v6493_v7 = vrot.slane %v6491_v29, 4 }
 0x190   : > { %v3998_v17 = vrot.slane %v3996_v54, 5  ;;  %v4004_v42 = vrot.slane %v4002_v9, 5  ;;  %v4017_v46 = vshrl.u32 %v3695_v1, 16  ;;  %v4008_v35 = vrot.slane %v4006_v33, 4  ;;  %v3701_v9 = vld [vmem:[#allocation2 + $0xc0] sm:$0xf] }
 0x191   : > { %v3976_v34 = vrot.slane %v3975_v61, 4  ;;  %v4020_v56 = vshll.u32 %v3695_v1, 16  ;;  %v4036_v22 = vshll.u32 %v3697_v59, 16  ;;  %v4014_v63 = vrot.slane %v4012_v15, 5  ;;  %v10946_v61 = vld [vmem:[#allocation2 + $0x8c] sm:$0x1] }
 0x192   : > { %8790 = vmatmul.mubr.bf16.vlgmr.msra.gmra.mrb[0].mxu0 %v7861_v52  ;;  %v3990_v52 = vrot.slane %v3988_v13, 5  ;;  %v4026_v13 = vshll.u32 %v3696_v11, 16  ;;  %v3999_v43 = vor.u32 %v3998_v17, %v3995_v51  ;;  %v4019_v12 = vrot.slane %v4017_v46, 4  ;;  %v6369_v51 = vld [vmem:[#allocation2 + $0x98] sm:$0x1] }
 0x193   : > { %8793 = vmatprep.mubr.bf16.mxu0 %v7862_v60  ;;  %v6363_v60 = vld [vmem:[#allocation2 + $0x80] sm:$0x1]  ;;  %v3981_v44 = vsel %vm9557_vm11, %v3976_v34, %v3980_v30  ;;  %v4030_v30 = vshrl.u32 %v3696_v11, 16  ;;  %v4009_v38 = vor.u32 %v4008_v35, %v4004_v42  ;;  %v10934_v18 = vsel %vm9781_vm14, %v7835_v4, %v6484_v24  ;;  %v6368_v4 = vld [vmem:[#allocation2 + $0x94] sm:$0xf] }
 0x194   : > { %v3991_v19 = vsel %vm9557_vm11, %v3986_v6, %v3990_v52  ;;  %v6494_v50 = vrot.slane %v6363_v60, 5  ;;  %v4028_v26 = vrot.slane %v4026_v13, 5  ;;  %v10938_v37 = vsel %vm9781_vm14, %v6486_v32, %v6487_v49  ;;  %v3699_v6 = vld [vmem:[#allocation2 + $0xb8] sm:$0xf]  ;;  %v3700_v32 = vld [vmem:[#allocation2 + $0xbc] sm:$0x1] }
 0x195   : > { %v7679_v23 = vcombine.low %v3981_v44, %v3991_v19  ;;  %v4000_v58 = vrot.slane %v3999_v43, 4  ;;  %v6498_v48 = vrot.slane %v10930_v31, 5  ;;  %v4010_v0 = vrot.slane %v4009_v38, 4 }
 0x196   : > { %8614 = vmatmul.mubr.bf16.vlgmr.msra.gmra.mrb[16].mxu1 %v7677_v3  ;;  %v4022_v3 = vrot.slane %v4020_v56, 5  ;;  %v6495_v25 = vsel %vm9781_vm14, %v6493_v7, %v6494_v50  ;;  %v4038_v39 = vrot.slane %v4036_v22, 5  ;;  %v7867_v41 = vcombine.low %v10934_v18, %v10938_v37  ;;  %v3703_v7 = vld [vmem:[#allocation2 + $0xc8] sm:$0x1]  ;;  %v6374_v37 = vld [vmem:[#allocation2 + $0xac] sm:$0xf] }
 0x197   : > { %8617 = vmatprep.mubr.bf16.mxu1 %v7678_v10  ;;  %v4005_v14 = vsel %vm9557_vm11, %v4000_v58, %v4004_v42  ;;  %v7837_v34 = vrot.slane %v10940_v27, 9  ;;  %v4015_v60 = vsel %vm9557_vm11, %v4010_v0, %v4014_v63  ;;  %v6367_v10 = vld [vmem:[#allocation2 + $0x90] sm:$0xe]  ;;  %v4041_v49 = vshrl.u32 %v3698_v8, 16 }
 0x198   : > { %v4023_v24 = vor.u32 %v4022_v3, %v4019_v12  ;;  %v7680_v47 = vcombine.low %v4005_v14, %v4015_v60  ;;  %v6500_v1 = vrot.slane %v6498_v48, 4  ;;  %v6505_v54 = vrot.slane %v6368_v4, 5  ;;  %v6371_v12 = vld [vmem:[#allocation2 + $0xa0] sm:$0xf]  ;;  %v6372_v14 = vld [vmem:[#allocation2 + $0xa4] sm:$0x1] }
 0x199   : > { %v4044_v62 = vshll.u32 %v3698_v8, 16  ;;  %v4050_v16 = vshll.u32 %v3699_v6, 16  ;;  %v7838_v33 = vrot.slane %v6367_v10, 9  ;;  %v4054_v15 = vshrl.u32 %v3699_v6, 16  ;;  %v6373_v60 = vld [vmem:[#allocation2 + $0xa8] sm:$0xe] }
 0x19a   : > { %8794 = vmatmul.mubr.bf16.gmra.mrb[4].mxu0 %v7863_v36  ;;  %v4032_v36 = vrot.slane %v4030_v30, 4  ;;  %v4024_v28 = vrot.slane %v4023_v24, 4  ;;  %v4060_v59 = vshll.u32 %v3700_v32, 16  ;;  %v6508_v17 = vrot.slane %v6369_v51, 5 }
 0x19b   : > { %8797 = vmatprep.mubr.bf16.mxu0 %v7864_v53  ;;  %v10944_v53 = vsel %vm9781_vm14, %v7836_v40, %v6491_v29  ;;  %v6501_v29 = vrot.slane %v10946_v61, 5  ;;  %v4043_v40 = vrot.slane %v4041_v49, 4  ;;  %v4046_v42 = vrot.slane %v4044_v62, 5  ;;  %v6370_v61 = vld [vmem:[#allocation2 + $0x9c] sm:$0xe] }
 0x19c   : > { %v4033_v52 = vor.u32 %v4032_v36, %v4028_v26  ;;  %v7868_v44 = vcombine.low %v10944_v53, %v6495_v25  ;;  %v4029_v19 = vsel %vm9557_vm11, %v4024_v28, %v4028_v26  ;;  %v4052_v46 = vrot.slane %v4050_v16, 5  ;;  %v6375_v28 = vld [vmem:[#allocation2 + $0xb0] sm:$0x1] }
 0x19d   : > { %v6507_v57 = vrot.slane %v6505_v54, 4  ;;  %v4056_v2 = vrot.slane %v4054_v15, 4  ;;  %v4047_v56 = vor.u32 %v4046_v42, %v4043_v40  ;;  %v4084_v43 = vshll.u32 %v3703_v7, 16  ;;  %v6379_v15 = vld [vmem:[#allocation2 + $0xc0] sm:$0xe] }
 0x19e   : > { %8618 = vmatmul.mubr.bf16.gmra.mrb[20].mxu1 %v7679_v23  ;;  %v4034_v21 = vrot.slane %v4033_v52, 4  ;;  %v4065_v23 = vshrl.u32 %v3701_v9, 16  ;;  %v4062_v22 = vrot.slane %v4060_v59, 5  ;;  %v6499_v3 = vsel %vm9781_vm14, %v7837_v34, %v6498_v48  ;;  %v6381_v59 = vld [vmem:[#allocation2 + $0xc8] sm:$0x1] }
 0x19f   : > { %8621 = vmatprep.mubr.bf16.mxu1 %v7680_v47  ;;  %v4057_v30 = vor.u32 %v4056_v2, %v4052_v46  ;;  %v4048_v26 = vrot.slane %v4047_v56, 4  ;;  %v6502_v27 = vsel %vm9781_vm14, %v6500_v1, %v6501_v29  ;;  %v6506_v58 = vsel %vm9781_vm14, %v7838_v33, %v6505_v54  ;;  %v6377_v54 = vld [vmem:[#allocation2 + $0xb8] sm:$0xf] }
 0x1a0   : > { %v4039_v11 = vsel %vm9557_vm11, %v4034_v21, %v4038_v39  ;;  %v4067_v13 = vrot.slane %v4065_v23, 4  ;;  %v6512_v0 = vrot.slane %v6371_v12, 5  ;;  %v4086_v48 = vrot.slane %v4084_v43, 5 }
 0x1a1   : > { %v7681_v50 = vcombine.low %v4029_v19, %v4039_v11  ;;  %v4058_v36 = vrot.slane %v4057_v30, 4  ;;  %v4053_v24 = vsel %vm9557_vm11, %v4048_v26, %v4052_v46  ;;  %v6509_v25 = vsel %vm9781_vm14, %v6507_v57, %v6508_v17  ;;  %v6382_v30 = vld [vmem:[#allocation2 + $0xcc] sm:$0xe] }
 0x1a2   : > { %8798 = vmatmul.mubr.bf16.gmra.mrb[8].mxu0 %v7865_v5  ;;  %v3702_v5 = vld [vmem:[#allocation2 + $0xc4] sm:$0xf]  ;;  %v6519_v4 = vrot.slane %v6374_v37, 5  ;;  %v7869_v10 = vcombine.low %v6499_v3, %v6502_v27  ;;  %v7839_v6 = vrot.slane %v6370_v61, 9  ;;  %v7870_v47 = vcombine.low %v6506_v58, %v6509_v25 }
 0x1a3   : > { %8801 = vmatprep.mubr.bf16.mxu0 %v7866_v20  ;;  %v4068_v20 = vshll.u32 %v3701_v9, 16  ;;  %v4074_v35 = vshll.u32 %v3702_v5, 16  ;;  %v4078_v31 = vshrl.u32 %v3702_v5, 16  ;;  %v4063_v52 = vsel %vm9557_vm11, %v4058_v36, %v4062_v22  ;;  %v6380_v9 = vld [vmem:[#allocation2 + $0xc4] sm:$0xf] }
 0x1a4   : > { %v6514_v21 = vrot.slane %v6512_v0, 4  ;;  %v6515_v32 = vrot.slane %v6372_v14, 5  ;;  %v7840_v1 = vrot.slane %v6373_v60, 9  ;;  %v6521_v19 = vrot.slane %v6519_v4, 4  ;;  %v6376_v5 = vld [vmem:[#allocation2 + $0xb4] sm:$0xe] }
 0x1a5   : > { %v4070_v38 = vrot.slane %v4068_v20, 5  ;;  %v4076_v63 = vrot.slane %v4074_v35, 5  ;;  %v4080_v18 = vrot.slane %v4078_v31, 4  ;;  %v6522_v51 = vrot.slane %v6375_v28, 5  ;;  %v6383_v35 = vld [vmem:[#allocation2 + $0xd0] sm:$0xf] }
 0x1a6   : > { %8622 = vmatmul.mubr.bf16.gmra.mrb[24].mxu1 %v7681_v50  ;;  %v6513_v11 = vsel %vm9781_vm14, %v7839_v6, %v6512_v0  ;;  %v6516_v40 = vsel %vm9781_vm14, %v6514_v21, %v6515_v32  ;;  %v6526_v62 = vrot.slane %v6377_v54, 5  ;;  %v6520_v45 = vsel %vm9781_vm14, %v7840_v1, %v6519_v4  ;;  %v6378_v50 = vld [vmem:[#allocation2 + $0xbc] sm:$0x1]  ;;  %v6384_v22 = vld [vmem:[#allocation2 + $0xd4] sm:$0x1] }
 0x1a7   : > { %v4071_v53 = vor.u32 %v4070_v38, %v4067_v13  ;;  %v4081_v8 = vor.u32 %v4080_v18, %v4076_v63  ;;  %v6523_v16 = vsel %vm9781_vm14, %v6521_v19, %v6522_v51  ;;  %v6533_v33 = vrot.slane %v6380_v9, 5  ;;  %v11025_v6 = vld [vmem:[%s11153_s2] ss:$0 sm:$0xff] }
 0x1a8   : > { %v7871_v7 = vcombine.low %v6513_v11, %v6516_v40  ;;  %v7872_v17 = vcombine.low %v6520_v45, %v6523_v16  ;;  %v7841_v42 = vrot.slane %v6376_v5, 9  ;;  %v6528_v46 = vrot.slane %v6526_v62, 4 }
 0x1a9   : > { %v4072_v39 = vrot.slane %v4071_v53, 4  ;;  %v4082_v34 = vrot.slane %v4081_v8, 4  ;;  %v6529_v23 = vrot.slane %v6378_v50, 5  ;;  %v7842_v57 = vrot.slane %v6379_v15, 9 }
 0x1aa   : > { %8802 = vmatmul.mubr.bf16.gmra.mrb[12].mxu0 %v7867_v41  ;;  %v7682_v41 = vcombine.low %v4053_v24, %v4063_v52  ;;  %v6535_v2 = vrot.slane %v6533_v33, 4  ;;  %v6536_v20 = vrot.slane %v6381_v59, 5  ;;  %v6527_v56 = vsel %vm9781_vm14, %v7841_v42, %v6526_v62 }
 0x1ab   : > { %8805 = vmatprep.mubr.bf16.mxu0 %v7868_v44  ;;  %v4077_v29 = vsel %vm9557_vm11, %v4072_v39, %v4076_v63  ;;  %v4087_v49 = vsel %vm9557_vm11, %v4082_v34, %v4086_v48  ;;  %v6530_v13 = vsel %vm9781_vm14, %v6528_v46, %v6529_v23  ;;  %v6540_v31 = vrot.slane %v6383_v35, 5 }
 0x1ac   : > { %8625 = vmatprep.mubr.bf16.mxu1 %v7682_v41  ;;  %v7683_v44 = vcombine.low %v4077_v29, %v4087_v49  ;;  %v6534_v43 = vsel %vm9781_vm14, %v7842_v57, %v6533_v33  ;;  %v6537_v12 = vsel %vm9781_vm14, %v6535_v2, %v6536_v20  ;;  %v7873_v38 = vcombine.low %v6527_v56, %v6530_v13 }
 0x1ad   : > { %v7874_v63 = vcombine.low %v6534_v43, %v6537_v12  ;;  %v7843_v3 = vrot.slane %v6382_v30, 9  ;;  %v6542_v26 = vrot.slane %v6540_v31, 4  ;;  %v6543_v18 = vrot.slane %v6384_v22, 5 }
 0x1ae   : > { %8626 = vmatmul.mubr.bf16.gmra.mrb[28].mxu1 %v7683_v44 }
 0x1af   : > { %v6541_v37 = vsel %vm9781_vm14, %v7843_v3, %v6540_v31  ;;  %v6544_v27 = vsel %vm9781_vm14, %v6542_v26, %v6543_v18 }
 0x1b0   : > { %v7875_v58 = vcombine.low %v6541_v37, %v6544_v27 }
 0x1b2   : > { %8806 = vmatmul.mubr.bf16.gmra.mrb[16].mxu0 %v7869_v10 }
 0x1b3   : > { %8809 = vmatprep.mubr.bf16.mxu0 %v7870_v47 }
 0x1ba   : > { %8810 = vmatmul.mubr.bf16.gmra.mrb[20].mxu0 %v7871_v7 }
 0x1bb   : > { %8813 = vmatprep.mubr.bf16.mxu0 %v7872_v17 }
 0x1c2   : > { %8814 = vmatmul.mubr.bf16.gmra.mrb[24].mxu0 %v7873_v38 }
 0x1c3   : > { %8817 = vmatprep.mubr.bf16.mxu0 %v7874_v63 }
 0x1ca   : > { %8818 = vmatmul.mubr.bf16.gmra.mrb[28].mxu0 %v7875_v58 }
 0x229   : > { %v8551_v36 = vpop.f32.mrb[0].mxu1 }
 0x22a   : > { %v3433_v53 = vpop.f32.mrb[1].mxu1 }
 0x22b   : > { %v8552_v61 = vpop.f32.mrb[2].mxu1 }
 0x22c   : > { %v3436_v0 = vpop.f32.mrb[3].mxu1 }
 0x231   : > { %v8555_v24 = vpop.f32.mrb[4].mxu1 }
 0x232   : > { %v3449_v8 = vpop.f32.mrb[5].mxu1 }
 0x233   : > { %v8556_v48 = vpop.f32.mrb[6].mxu1 }
 0x234   : > { %v3452_v25 = vpop.f32.mrb[7].mxu1 }
 0x239   : > { %v11006_v14 = vpop.f32.mrb[8].mxu1 }
 0x23a   : > { %v11008_v52 = vpop.f32.mrb[9].mxu1 }
 0x23b   : > { %v11010_v39 = vpop.f32.mrb[10].mxu1 }
 0x23c   : > { %v11012_v4 = vpop.f32.mrb[11].mxu1 }
 0x241   : > { %v11014_v55 = vpop.f32.mrb[12].mxu1 }
 0x242   : > { %v11016_v41 = vpop.f32.mrb[13].mxu1 }
 0x243   : > { %v11018_v34 = vpop.f32.mrb[14].mxu1 }
 0x244   : > { %v11020_v60 = vpop.f32.mrb[15].mxu1 }
 0x265   : > { %v8791_v28 = vpop.f32.mrb[0].mxu0 }
 0x266   : > { %v8837_v10 = vadd.f32 %v8791_v28, %v8551_v36  ;;  %v6708_v29 = vpop.f32.mrb[1].mxu0 }
 0x267   : > { %v8838_v47 = vadd.f32 %v6708_v29, %v3433_v53  ;;  %v8792_v21 = vpop.f32.mrb[2].mxu0 }
 0x268   : > { %v8839_v32 = vadd.f32 %v8792_v21, %v8552_v61  ;;  %v6711_v49 = vpop.f32.mrb[3].mxu0  ;;  %v6972_v51 = vadd.f32 %v8837_v10, %v11025_v6 }
 0x269   : > { %v6970_v44 = vadd.f32 %v8838_v47, %v11025_v6  ;;  %v8840_v1 = vadd.f32 %v6711_v49, %v3436_v0  ;;  %v11028_v19 = vpop.f32.mrb[16].mxu1 }
 0x26a   : > { %v6973_v54 = vadd.f32 %v8839_v32, %v11025_v6  ;;  %v11032_v9 = vpop.f32.mrb[17].mxu1  ;;  %v7202_v17 = vmul.f32 %v6972_v51, %v6972_v51 }
 0x26b   : > { %v6971_v11 = vadd.f32 %v8840_v1, %v11025_v6  ;;  %v11042_v40 = vpop.f32.mrb[18].mxu1  ;;  %v7200_v16 = vmul.f32 %v6970_v44, %v6970_v44 }
 0x26c   : > { %v8069_v62 = vpack.c.bf16 %v6973_v54, %v6972_v51  ;;  %v11044_v45 = vpop.f32.mrb[19].mxu1  ;;  %v7203_v2 = vmul.f32 %v6973_v54, %v6973_v54 }
 0x26d   : > { %v8064_v5 = vpack.c.bf16 %v6971_v11, %v6970_v44  ;;  %v7162_v50 = vadd.f32 %v6971_v11, %v6970_v44  ;;  %v7201_v33 = vmul.f32 %v6971_v11, %v6971_v11  ;;  %v8795_v15 = vpop.f32.mrb[4].mxu0 }
 0x26e   : > { %8158 = vst [vmem:[%s11039_s27 + $0x8] sm:$0xff] %v8069_v62   ;;  %v8841_v59 = vadd.f32 %v8795_v15, %v8555_v24  ;;  %v6724_v7 = vpop.f32.mrb[5].mxu0 }
 0x26f   : > { %8065 = vst [vmem:[%s11039_s27] sm:$0xff] %v8064_v5   ;;  %v7163_v42 = vadd.f32 %v7162_v50, %v6972_v51  ;;  %v7232_v46 = vadd.f32 %v7201_v33, %v7200_v16  ;;  %v8842_v23 = vadd.f32 %v6724_v7, %v3449_v8  ;;  %v8796_v57 = vpop.f32.mrb[6].mxu0 }
 0x270   : > { %v8843_v20 = vadd.f32 %v8796_v57, %v8556_v48  ;;  %v6727_v35 = vpop.f32.mrb[7].mxu0  ;;  %v6976_v30 = vadd.f32 %v8841_v59, %v11025_v6 }
 0x271   : > { %v7233_v56 = vadd.f32 %v7232_v46, %v7202_v17  ;;  %v6974_v13 = vadd.f32 %v8842_v23, %v11025_v6  ;;  %v7164_v31 = vadd.f32 %v7163_v42, %v6973_v54  ;;  %v8844_v43 = vadd.f32 %v6727_v35, %v3452_v25  ;;  %v11049_v12 = vpop.f32.mrb[20].mxu1 }
 0x272   : > { %v6977_v22 = vadd.f32 %v8843_v20, %v11025_v6  ;;  %v11053_v38 = vpop.f32.mrb[21].mxu1  ;;  %v7206_v25 = vmul.f32 %v6976_v30, %v6976_v30 }
 0x273   : > { %v7165_v63 = vadd.f32 %v7164_v31, %v6974_v13  ;;  %v7204_v3 = vmul.f32 %v6974_v13, %v6974_v13  ;;  %v7234_v26 = vadd.f32 %v7233_v56, %v7203_v2  ;;  %v6975_v18 = vadd.f32 %v8844_v43, %v11025_v6  ;;  %v11056_v37 = vpop.f32.mrb[22].mxu1 }
 0x274   : > { %v8079_v27 = vpack.c.bf16 %v6977_v22, %v6976_v30  ;;  %v11058_v58 = vpop.f32.mrb[23].mxu1  ;;  %v7207_v21 = vmul.f32 %v6977_v22, %v6977_v22 }
 0x275   : > { %v7235_v36 = vadd.f32 %v7234_v26, %v7204_v3  ;;  %v8074_v53 = vpack.c.bf16 %v6975_v18, %v6974_v13  ;;  %v7166_v61 = vadd.f32 %v7165_v63, %v6975_v18  ;;  %v7205_v0 = vmul.f32 %v6975_v18, %v6975_v18  ;;  %v8799_v24 = vpop.f32.mrb[8].mxu0 }
 0x276   : > { %8160 = vst [vmem:[%s11039_s27 + $0x18] sm:$0xff] %v8079_v27   ;;  %v8845_v8 = vadd.f32 %v8799_v24, %v11006_v14  ;;  %v6740_v48 = vpop.f32.mrb[9].mxu0 }
 0x277   : > { %8159 = vst [vmem:[%s11039_s27 + $0x10] sm:$0xff] %v8074_v53   ;;  %v7167_v28 = vadd.f32 %v7166_v61, %v6976_v30  ;;  %v7236_v10 = vadd.f32 %v7235_v36, %v7205_v0  ;;  %v8846_v29 = vadd.f32 %v6740_v48, %v11008_v52  ;;  %v8800_v47 = vpop.f32.mrb[10].mxu0 }
 0x278   : > { %v8847_v32 = vadd.f32 %v8800_v47, %v11010_v39  ;;  %v6743_v49 = vpop.f32.mrb[11].mxu0  ;;  %v6980_v14 = vadd.f32 %v8845_v8, %v11025_v6 }
 0x279   : > { %v7237_v44 = vadd.f32 %v7236_v10, %v7206_v25  ;;  %v6978_v1 = vadd.f32 %v8846_v29, %v11025_v6  ;;  %v7168_v51 = vadd.f32 %v7167_v28, %v6977_v22  ;;  %v8848_v54 = vadd.f32 %v6743_v49, %v11012_v4  ;;  %v11067_v11 = vpop.f32.mrb[24].mxu1 }
 0x27a   : > { %v6981_v62 = vadd.f32 %v8847_v32, %v11025_v6  ;;  %v11071_v16 = vpop.f32.mrb[25].mxu1  ;;  %v7210_v2 = vmul.f32 %v6980_v14, %v6980_v14 }
 0x27b   : > { %v7169_v52 = vadd.f32 %v7168_v51, %v6978_v1  ;;  %v7208_v5 = vmul.f32 %v6978_v1, %v6978_v1  ;;  %v7238_v39 = vadd.f32 %v7237_v44, %v7207_v21  ;;  %v6979_v50 = vadd.f32 %v8848_v54, %v11025_v6  ;;  %v11074_v33 = vpop.f32.mrb[26].mxu1 }
 0x27c   : > { %v8089_v15 = vpack.c.bf16 %v6981_v62, %v6980_v14  ;;  %v11076_v59 = vpop.f32.mrb[27].mxu1  ;;  %v7211_v31 = vmul.f32 %v6981_v62, %v6981_v62 }
 0x27d   : > { %v7239_v4 = vadd.f32 %v7238_v39, %v7208_v5  ;;  %v8084_v7 = vpack.c.bf16 %v6979_v50, %v6978_v1  ;;  %v7170_v17 = vadd.f32 %v7169_v52, %v6979_v50  ;;  %v7209_v42 = vmul.f32 %v6979_v50, %v6979_v50  ;;  %v8803_v46 = vpop.f32.mrb[12].mxu0 }
 0x27e   : > { %8162 = vst [vmem:[%s11039_s27 + $0x28] sm:$0xff] %v8089_v15   ;;  %v8849_v23 = vadd.f32 %v8803_v46, %v11014_v55  ;;  %v6756_v57 = vpop.f32.mrb[13].mxu0 }
 0x27f   : > { %8161 = vst [vmem:[%s11039_s27 + $0x20] sm:$0xff] %v8084_v7   ;;  %v7171_v20 = vadd.f32 %v7170_v17, %v6980_v14  ;;  %v7240_v35 = vadd.f32 %v7239_v4, %v7209_v42  ;;  %v8850_v56 = vadd.f32 %v6756_v57, %v11016_v41  ;;  %v8804_v13 = vpop.f32.mrb[14].mxu0 }
 0x280   : > { %v8851_v43 = vadd.f32 %v8804_v13, %v11018_v34  ;;  %v6759_v30 = vpop.f32.mrb[15].mxu0  ;;  %v6984_v55 = vadd.f32 %v8849_v23, %v11025_v6 }
 0x281   : > { %v7241_v22 = vadd.f32 %v7240_v35, %v7210_v2  ;;  %v6982_v63 = vadd.f32 %v8850_v56, %v11025_v6  ;;  %v7172_v3 = vadd.f32 %v7171_v20, %v6981_v62  ;;  %v8852_v26 = vadd.f32 %v6759_v30, %v11020_v60  ;;  %v11088_v25 = vpop.f32.mrb[28].mxu1 }
 0x282   : > { %v6985_v18 = vadd.f32 %v8851_v43, %v11025_v6  ;;  %v11092_v10 = vpop.f32.mrb[29].mxu1  ;;  %v7214_v29 = vmul.f32 %v6984_v55, %v6984_v55 }
 0x283   : > { %v7173_v27 = vadd.f32 %v7172_v3, %v6982_v63  ;;  %v7212_v36 = vmul.f32 %v6982_v63, %v6982_v63  ;;  %v7242_v41 = vadd.f32 %v7241_v22, %v7211_v31  ;;  %v6983_v53 = vadd.f32 %v8852_v26, %v11025_v6  ;;  %v11096_v44 = vpop.f32.mrb[30].mxu1 }
 0x284   : > { %v8099_v61 = vpack.c.bf16 %v6985_v18, %v6984_v55  ;;  %v7215_v1 = vmul.f32 %v6985_v18, %v6985_v18  ;;  %v11099_v14 = vpop.f32.mrb[31].mxu1 }
 0x285   : > { %v7243_v34 = vadd.f32 %v7242_v41, %v7212_v36  ;;  %v8094_v0 = vpack.c.bf16 %v6983_v53, %v6982_v63  ;;  %v7174_v24 = vadd.f32 %v7173_v27, %v6983_v53  ;;  %v7213_v8 = vmul.f32 %v6983_v53, %v6983_v53  ;;  %v8807_v48 = vpop.f32.mrb[16].mxu0 }
 0x286   : > { %8164 = vst [vmem:[%s11039_s27 + $0x38] sm:$0xff] %v8099_v61   ;;  %v8853_v60 = vadd.f32 %v8807_v48, %v11028_v19  ;;  %v6772_v28 = vpop.f32.mrb[17].mxu0 }
 0x287   : > { %8163 = vst [vmem:[%s11039_s27 + $0x30] sm:$0xff] %v8094_v0   ;;  %v7175_v47 = vadd.f32 %v7174_v24, %v6984_v55  ;;  %v7244_v21 = vadd.f32 %v7243_v34, %v7213_v8  ;;  %v8854_v32 = vadd.f32 %v6772_v28, %v11032_v9  ;;  %v8808_v49 = vpop.f32.mrb[18].mxu0 }
 0x288   : > { %v8855_v51 = vadd.f32 %v8808_v49, %v11042_v40  ;;  %v6775_v54 = vpop.f32.mrb[19].mxu0  ;;  %v6988_v39 = vadd.f32 %v8853_v60, %v11025_v6 }
 0x289   : > { %v7245_v62 = vadd.f32 %v7244_v21, %v7214_v29  ;;  %v6986_v19 = vadd.f32 %v8854_v32, %v11025_v6  ;;  %v7176_v52 = vadd.f32 %v7175_v47, %v6985_v18  ;;  %v8856_v5 = vadd.f32 %v6775_v54, %v11044_v45 }
 0x28a   : > { %v6989_v9 = vadd.f32 %v8855_v51, %v11025_v6  ;;  %v7218_v20 = vmul.f32 %v6988_v39, %v6988_v39 }
 0x28b   : > { %v7177_v50 = vadd.f32 %v7176_v52, %v6986_v19  ;;  %v7216_v15 = vmul.f32 %v6986_v19, %v6986_v19  ;;  %v7246_v4 = vadd.f32 %v7245_v62, %v7215_v1  ;;  %v6987_v40 = vadd.f32 %v8856_v5, %v11025_v6 }
 0x28c   : > { %v8109_v7 = vpack.c.bf16 %v6989_v9, %v6988_v39  ;;  %v7219_v43 = vmul.f32 %v6989_v9, %v6989_v9 }
 0x28d   : > { %v7247_v17 = vadd.f32 %v7246_v4, %v7216_v15  ;;  %v8104_v42 = vpack.c.bf16 %v6987_v40, %v6986_v19  ;;  %v7178_v46 = vadd.f32 %v7177_v50, %v6987_v40  ;;  %v7217_v23 = vmul.f32 %v6987_v40, %v6987_v40  ;;  %v8811_v57 = vpop.f32.mrb[20].mxu0 }
 0x28e   : > { %8166 = vst [vmem:[%s11039_s27 + $0x48] sm:$0xff] %v8109_v7   ;;  %v8857_v2 = vadd.f32 %v8811_v57, %v11049_v12  ;;  %v6788_v45 = vpop.f32.mrb[21].mxu0 }
 0x28f   : > { %8165 = vst [vmem:[%s11039_s27 + $0x40] sm:$0xff] %v8104_v42   ;;  %v7179_v35 = vadd.f32 %v7178_v46, %v6988_v39  ;;  %v7248_v56 = vadd.f32 %v7247_v17, %v7217_v23  ;;  %v8858_v13 = vadd.f32 %v6788_v45, %v11053_v38  ;;  %v8812_v31 = vpop.f32.mrb[22].mxu0 }
 0x290   : > { %v8859_v30 = vadd.f32 %v8812_v31, %v11056_v37  ;;  %v6791_v22 = vpop.f32.mrb[23].mxu0  ;;  %v6992_v12 = vadd.f32 %v8857_v2, %v11025_v6 }
 0x291   : > { %v7249_v63 = vadd.f32 %v7248_v56, %v7218_v20  ;;  %v6990_v3 = vadd.f32 %v8858_v13, %v11025_v6  ;;  %v7180_v26 = vadd.f32 %v7179_v35, %v6989_v9  ;;  %v8860_v55 = vadd.f32 %v6791_v22, %v11058_v58 }
 0x292   : > { %v6993_v18 = vadd.f32 %v8859_v30, %v11025_v6  ;;  %v7222_v48 = vmul.f32 %v6992_v12, %v6992_v12 }
 0x293   : > { %v7181_v27 = vadd.f32 %v7180_v26, %v6990_v3  ;;  %v7220_v36 = vmul.f32 %v6990_v3, %v6990_v3  ;;  %v7250_v38 = vadd.f32 %v7249_v63, %v7219_v43  ;;  %v6991_v41 = vadd.f32 %v8860_v55, %v11025_v6 }
 0x294   : > { %v8119_v53 = vpack.c.bf16 %v6993_v18, %v6992_v12  ;;  %v7223_v21 = vmul.f32 %v6993_v18, %v6993_v18 }
 0x295   : > { %v7251_v37 = vadd.f32 %v7250_v38, %v7220_v36  ;;  %v8114_v61 = vpack.c.bf16 %v6991_v41, %v6990_v3  ;;  %v7182_v34 = vadd.f32 %v7181_v27, %v6991_v41  ;;  %v7221_v0 = vmul.f32 %v6991_v41, %v6991_v41  ;;  %v8815_v24 = vpop.f32.mrb[24].mxu0 }
 0x296   : > { %8168 = vst [vmem:[%s11039_s27 + $0x58] sm:$0xff] %v8119_v53   ;;  %v8861_v8 = vadd.f32 %v8815_v24, %v11067_v11  ;;  %v6804_v58 = vpop.f32.mrb[25].mxu0 }
 0x297   : > { %8167 = vst [vmem:[%s11039_s27 + $0x50] sm:$0xff] %v8114_v61   ;;  %v7183_v60 = vadd.f32 %v7182_v34, %v6992_v12  ;;  %v7252_v28 = vadd.f32 %v7251_v37, %v7221_v0  ;;  %v8862_v29 = vadd.f32 %v6804_v58, %v11071_v16  ;;  %v8816_v47 = vpop.f32.mrb[26].mxu0 }
 0x298   : > { %v8863_v32 = vadd.f32 %v8816_v47, %v11074_v33  ;;  %v6807_v49 = vpop.f32.mrb[27].mxu0  ;;  %v6996_v11 = vadd.f32 %v8861_v8, %v11025_v6 }
 0x299   : > { %v7253_v1 = vadd.f32 %v7252_v28, %v7222_v48  ;;  %v6994_v51 = vadd.f32 %v8862_v29, %v11025_v6  ;;  %v7184_v54 = vadd.f32 %v7183_v60, %v6993_v18  ;;  %v8864_v62 = vadd.f32 %v6807_v49, %v11076_v59 }
 0x29a   : > { %v6997_v19 = vadd.f32 %v8863_v32, %v11025_v6  ;;  %v7226_v17 = vmul.f32 %v6996_v11, %v6996_v11 }
 0x29b   : > { %v7185_v52 = vadd.f32 %v7184_v54, %v6994_v51  ;;  %v7224_v5 = vmul.f32 %v6994_v51, %v6994_v51  ;;  %v7254_v16 = vadd.f32 %v7253_v1, %v7223_v21  ;;  %v6995_v39 = vadd.f32 %v8864_v62, %v11025_v6 }
 0x29c   : > { %v8129_v9 = vpack.c.bf16 %v6997_v19, %v6996_v11  ;;  %v7227_v2 = vmul.f32 %v6997_v19, %v6997_v19 }
 0x29d   : > { %v7255_v33 = vadd.f32 %v7254_v16, %v7224_v5  ;;  %v8124_v50 = vpack.c.bf16 %v6995_v39, %v6994_v51  ;;  %v7186_v15 = vadd.f32 %v7185_v52, %v6995_v39  ;;  %v7225_v4 = vmul.f32 %v6995_v39, %v6995_v39  ;;  %v8819_v40 = vpop.f32.mrb[28].mxu0 }
 0x29e   : > { %8170 = vst [vmem:[%s11039_s27 + $0x68] sm:$0xff] %v8129_v9   ;;  %v8865_v7 = vadd.f32 %v8819_v40, %v11088_v25  ;;  %v6820_v59 = vpop.f32.mrb[29].mxu0 }
 0x29f   : > { %8169 = vst [vmem:[%s11039_s27 + $0x60] sm:$0xff] %v8124_v50   ;;  %v7187_v42 = vadd.f32 %v7186_v15, %v6996_v11  ;;  %v7256_v46 = vadd.f32 %v7255_v33, %v7225_v4  ;;  %v8866_v23 = vadd.f32 %v6820_v59, %v11092_v10  ;;  %v8820_v57 = vpop.f32.mrb[30].mxu0 }
 0x2a0   : > { %v8867_v45 = vadd.f32 %v8820_v57, %v11096_v44  ;;  %v6823_v20 = vpop.f32.mrb[31].mxu0  ;;  %v7000_v31 = vadd.f32 %v8865_v7, %v11025_v6 }
 0x2a1   : > { %v7257_v35 = vadd.f32 %v7256_v46, %v7226_v17  ;;  %v6998_v56 = vadd.f32 %v8866_v23, %v11025_v6  ;;  %v7188_v13 = vadd.f32 %v7187_v42, %v6997_v19  ;;  %v8868_v25 = vadd.f32 %v6823_v20, %v11099_v14 }
 0x2a2   : > { %v7001_v43 = vadd.f32 %v8867_v45, %v11025_v6  ;;  %v7230_v18 = vmul.f32 %v7000_v31, %v7000_v31 }
 0x2a3   : > { %v7189_v30 = vadd.f32 %v7188_v13, %v6998_v56  ;;  %v7228_v22 = vmul.f32 %v6998_v56, %v6998_v56  ;;  %v7258_v10 = vadd.f32 %v7257_v35, %v7227_v2  ;;  %v6999_v63 = vadd.f32 %v8868_v25, %v11025_v6 }
 0x2a4   : > { %v8139_v3 = vpack.c.bf16 %v7001_v43, %v7000_v31  ;;  %v7231_v36 = vmul.f32 %v7001_v43, %v7001_v43 }
 0x2a5   : > { %v7259_v44 = vadd.f32 %v7258_v10, %v7228_v22  ;;  %v8134_v26 = vpack.c.bf16 %v6999_v63, %v6998_v56  ;;  %v7190_v55 = vadd.f32 %v7189_v30, %v6999_v63  ;;  %v7229_v12 = vmul.f32 %v6999_v63, %v6999_v63 }
 0x2a6   : > { %8172 = vst [vmem:[%s11039_s27 + $0x78] sm:$0xff] %v8139_v3  }
 0x2a7   : > { %8171 = vst [vmem:[%s11039_s27 + $0x70] sm:$0xff] %v8134_v26   ;;  %v7191_v27 = vadd.f32 %v7190_v55, %v7000_v31  ;;  %v7260_v14 = vadd.f32 %v7259_v44, %v7229_v12 }
 0x2a9   : > { %v7192_v38 = vadd.f32 %v7191_v27, %v7001_v43  ;;  %v7261_v41 = vadd.f32 %v7260_v14, %v7230_v18 }
 0x2ab   : > { %v7193_v53 = vrot.slane %v7192_v38, 4  ;;  %v7262_v37 = vadd.f32 %v7261_v41, %v7231_v36 }
 0x2ad   : > { %v7194_v61 = vadd.f32 %v7193_v53, %v7192_v38  ;;  %v7263_v34 = vrot.slane %v7262_v37, 4 }
 0x2af   : > { %v7195_v0 = vrot.slane %v7194_v61, 2  ;;  %v7264_v6 = vadd.f32 %v7263_v34, %v7262_v37 }
 0x2b1   : > { %v7196_v24 = vadd.f32 %v7195_v0, %v7194_v61  ;;  %v7265_v8 = vrot.slane %v7264_v6, 2 }
 0x2b3   : > { %v7197_v58 = vrot.slane %v7196_v24, 1  ;;  %v7266_v48 = vadd.f32 %v7265_v8, %v7264_v6 }
 0x2b5   : > { %v7198_v60 = vadd.f32 %v7197_v58, %v7196_v24  ;;  %v7267_v28 = vrot.slane %v7266_v48, 1 }
 0x2b7   : > { %7199 = vst [vmem:[%s295_s30] sm:$0x1] %v7198_v60  ;;  %v7268_v29 = vadd.f32 %v7267_v28, %v7266_v48 }
 0x2b9   : > { %7269 = vst [vmem:[%s295_s30 + $0x1] sm:$0x1] %v7268_v29 }
 0x2ba PF: > { %s17_s23 = sadd.s32 1, %s9275_s23   ;;  %s11170_s21 = smov %s9271_s22 }
 0x2bb   : > { %p14_p5 = scmp.ge.s32.totalorder %s17_s23, 4   ;;  %s11171_s22 = smov %s11173_s24 }
 0x2bd   :  { %16 = sbr.rel (!%p14_p5) target bundleno = 2 (0x2), region = 96 }

</bundles_post_ra>
